<compile_context>
chip_gen: v6e
topology: v6e:2x2x1
jax: 0.10.0
libtpu: 0.0.40
codegen_flags: <defaults>
</compile_context>

<pallas_src>
import functools
import math

import jax
import jax.numpy as jnp
import numpy as np
from jax.experimental import pallas as pl
from jax.experimental.pallas import tpu as pltpu


CH_STRIDE_SET = [(1, 64, 1), (64, 64, 2), (64, 128, 1),
                 (128, 128, 2), (128, 256, 1), (256, 256, 2)]
NEG_SLOPE = 0.01  # PyTorch nn.LeakyReLU() default


def _round_up(x, m):
    return (x + m - 1) // m * m


def conv_output_size(input_size, kernel_size_list, stride_list):
    n = input_size
    for k, s in zip(kernel_size_list, stride_list):
        n = (n - k) // s + 1
    return n


# ----------------------------------------------------------------------------
# Static geometry plan.
#   t[i]  : true spatial extent of layer i's input
#   Wc[i] : W extent (multiple of 8) at which layer i computes its stride-1 row
#   P[i]  : W pitch (multiple of 8) of layer i's input activation
# ----------------------------------------------------------------------------
def _plan(input_size):
    strides = [s for _, _, s in CH_STRIDE_SET]
    nl = len(strides)
    t = [input_size]
    for s in strides:
        assert t[-1] >= 3, "input_size too small for the 6-conv stack"
        t.append((t[-1] - 3) // s + 1)
    Wc = [0] * nl
    P = [0] * (nl + 1)
    req = t[nl]                         # columns the FC head needs
    for i in reversed(range(nl)):
        if strides[i] == 1:
            Wc[i] = _round_up(max(t[i + 1], req), 8)
            P[i + 1] = Wc[i]
        else:
            P[i + 1] = _round_up(max(t[i + 1], req), 8)
            Wc[i] = _round_up(max(2 * t[i + 1] - 1, 1), 8)
        req = Wc[i] + 2
    P[0] = req
    # Re-verify the padding invariants (review correctness concern #3).
    for i in range(nl):
        assert Wc[i] + 2 <= P[i], (i, Wc[i], P[i])
        if strides[i] == 2:
            assert 2 * (t[i + 1] - 1) <= Wc[i] - 1
            assert P[i + 1] >= t[i + 1]
    return {"t": t, "Wc": Wc, "P": P, "strides": strides}


# ----------------------------------------------------------------------------
# Parameters: PyTorch-layout init + one-time conversion to the kernel layout.
# ----------------------------------------------------------------------------
def init_params(key, input_size):
    """PyTorch layout: Conv2d (Cout, Cin, 3, 3); Linear (out, in)."""
    params = {"convs": []}
    for cin, cout, _s in CH_STRIDE_SET:
        key, kw_, kb_ = jax.random.split(key, 3)
        bound = 1.0 / math.sqrt(cin * 9)
        w = jax.random.uniform(kw_, (cout, cin, 3, 3), jnp.float32, -bound, bound)
        b = jax.random.uniform(kb_, (cout,), jnp.float32, -bound, bound)
        params["convs"].append((w, b))
    out_sz = conv_output_size(input_size, [3] * 6, [s for _, _, s in CH_STRIDE_SET])
    params["output_size"] = out_sz
    fc1_in = 256 * out_sz * out_sz
    key, k1w, k1b, k2w, k2b = jax.random.split(key, 5)
    b1 = 1.0 / math.sqrt(fc1_in)
    params["fc1_w"] = jax.random.uniform(k1w, (1024, fc1_in), jnp.float32, -b1, b1)
    params["fc1_b"] = jax.random.uniform(k1b, (1024,), jnp.float32, -b1, b1)
    b2 = 1.0 / math.sqrt(1024)
    params["fc2_w"] = jax.random.uniform(k2w, (1, 1024), jnp.float32, -b2, b2)
    params["fc2_b"] = jax.random.uniform(k2b, (1,), jnp.float32, -b2, b2)
    return params


def prepare_params(params, input_size):
    """One-time conversion: (9*Cin, Cout) bf16 conv matrices (K-fused taps),
    bf16 one-hot W-pick tables for the stride-2 layers, NHWC-permuted fc1."""
    assert CH_STRIDE_SET[0][0] == 1 and CH_STRIDE_SET[0][2] == 1
    plan = _plan(input_size)
    t, Wc, P, strides = plan["t"], plan["Wc"], plan["P"], plan["strides"]
    kp = {"plan": plan, "convs": [], "sels": [], "output_size": t[len(strides)]}

    for w, b in params["convs"]:
        cout, cin, kh, kw = w.shape
        w9 = (jnp.transpose(w, (2, 3, 1, 0))           # (kh, kw, cin, cout)
              .reshape(kh * kw * cin, cout).astype(jnp.bfloat16))
        kp["convs"].append((w9, b.reshape(1, cout).astype(jnp.float32)))

    for i, s in enumerate(strides):
        if s == 2:
            t_out, p_next, wc = t[i + 1], P[i + 1], Wc[i]
            sel = np.zeros((t_out, p_next, wc), np.float32)
            for o in range(t_out):
                sel[:, o, 2 * o] = 1.0                 # exact 0/1, exact in bf16
            kp["sels"].append(jnp.asarray(sel).astype(jnp.bfloat16))

    # fc1: reorder input features from PyTorch's NCHW flatten to our NHWC order.
    o = kp["output_size"]
    c = CH_STRIDE_SET[-1][1]
    perm = np.arange(c * o * o).reshape(c, o, o).transpose(1, 2, 0).reshape(-1)
    fc1_w = np.asarray(params["fc1_w"])[:, perm].T     # (o*o*c, 1024), NHWC rows
    kp["fc1_w"] = jnp.asarray(fc1_w).astype(jnp.bfloat16)
    kp["fc1_b"] = params["fc1_b"].reshape(1, -1).astype(jnp.float32)
    kp["fc2_w"] = params["fc2_w"].reshape(1, -1).astype(jnp.float32)
    kp["fc2_b"] = params["fc2_b"].reshape(1, 1).astype(jnp.float32)
    return kp


# ----------------------------------------------------------------------------
# The fused Pallas kernel: one image per grid step, everything VMEM-resident.
# ----------------------------------------------------------------------------
def _wgan_disc_kernel(*refs, plan, n_sel, neg_slope, out_size):
    t, Wc, P, strides = plan["t"], plan["Wc"], plan["P"], plan["strides"]
    nl = len(strides)
    idx = 0
    x_ref = refs[idx]; idx += 1
    conv_refs = refs[idx: idx + 2 * nl]; idx += 2 * nl
    sel_refs = refs[idx: idx + n_sel]; idx += n_sel
    fc1w_ref, fc1b_ref, fc2w_ref, fc2b_ref = refs[idx: idx + 4]; idx += 4
    o_ref = refs[idx]

    x = x_ref[0]                       # (t1, Wc0, 9) bf16: layer-0 im2col patch
    si = 0
    for li in range(nl):
        w9 = conv_refs[2 * li][...]    # (9*cin, cout) bf16
        bias = conv_refs[2 * li + 1][...]
        cout = w9.shape[1]
        cin = w9.shape[0] // 9
        s = strides[li]
        wc = Wc[li]
        h_rows = t[li + 1]

        if li == 0:
            patch = x                  # 9 taps already on the lane axis
        elif s == 1:
            # Full 9-tap K-fusion: one (M, 9*cin) operand, one MXU dot.
            pieces = [x[kh:kh + h_rows, kw:kw + wc, :]
                      for kh in range(3) for kw in range(3)]
            patch = jnp.concatenate(pieces, axis=-1)
        else:
            # Stride 2: H pick is free via an even/odd parity reshape of the
            # leading dim — only the t_out needed output rows get computed.
            tt = x.shape[0]
            if tt % 2:
                x = jnp.concatenate(
                    [x, jnp.zeros((1,) + x.shape[1:], x.dtype)], axis=0)
                tt += 1
            xr = x.reshape(tt // 2, 2, x.shape[1], cin)
            taps = []
            for rs, par in ((0, 0), (0, 1), (1, 0)):   # kh = 0, 1, 2
                rows = xr[rs:rs + h_rows, par:par + 1, :, :].reshape(
                    h_rows, x.shape[1], cin)
                for kw in range(3):
                    taps.append(rows[:, kw:kw + wc, :])
            patch = jnp.concatenate(taps, axis=-1)

        m = h_rows * wc
        y = jnp.dot(patch.reshape(m, 9 * cin), w9,
                    preferred_element_type=jnp.float32)
        y = y + bias
        y = jnp.where(y > 0, y, y * neg_slope)         # LeakyReLU(0.01)
        y = y.astype(jnp.bfloat16).reshape(h_rows, wc, cout)

        if s == 2:
            # W pick: tiny one-hot bf16 batched matmul (exact selection of
            # columns 2*wo, re-pitched to P[li+1]); flash 'bqk,bkd->bqd' shape.
            sel = sel_refs[si][...]; si += 1           # (h_rows, P_next, wc)
            y = jnp.einsum("how,hwc->hoc", sel, y,
                           preferred_element_type=jnp.float32)
            y = y.astype(jnp.bfloat16)

        x = y                                          # (t[li+1], P[li+1], cout)

    # ---- fully connected head (single image -> M = 1) ----
    o = out_size
    feats = [x[hh, ww:ww + 1, :] for hh in range(o) for ww in range(o)]
    feat = feats[0] if len(feats) == 1 else jnp.concatenate(feats, axis=-1)
    h1 = jnp.dot(feat, fc1w_ref[...], preferred_element_type=jnp.float32)
    h1 = h1 + fc1b_ref[...]
    h1 = jnp.where(h1 > 0, h1, h1 * neg_slope)
    # fc2 (1024 -> 1): VPU multiply + lane reduction instead of a 1-wide matmul.
    out = jnp.sum(h1 * fc2w_ref[...], axis=1, keepdims=True) + fc2b_ref[...]
    o_ref[...] = out.reshape(1, 1, 1).astype(o_ref.dtype)


# ----------------------------------------------------------------------------
# Public wrapper (matches WGAN_VGG_discriminator.forward, NCHW input).
# ----------------------------------------------------------------------------
def wgan_vgg_discriminator(kparams, x_nchw):
    plan = kparams["plan"]
    t, Wc, P = plan["t"], plan["Wc"], plan["P"]
    n, c, h, w = x_nchw.shape
    assert c == 1 and h == t[0] and w == t[0]

    # Layer-0 im2col (layout plumbing): 9 shifted windows of the 1-channel
    # input, stacked on the lane axis, W zero-padded to the planned pitch.
    xw = jnp.pad(x_nchw[:, 0, :, :], ((0, 0), (0, 0), (0, P[0] - w)))
    xw = xw.astype(jnp.bfloat16)
    taps = [xw[:, kh:kh + t[1], kw:kw + Wc[0]]
            for kh in range(3) for kw in range(3)]
    x9 = jnp.stack(taps, axis=-1)                      # (N, t1, Wc0, 9)

    inputs = [x9]
    for wk, bk in kparams["convs"]:
        inputs += [wk, bk]
    inputs += list(kparams["sels"])
    inputs += [kparams["fc1_w"], kparams["fc1_b"],
               kparams["fc2_w"], kparams["fc2_b"]]

    kernel = functools.partial(
        _wgan_disc_kernel, plan=plan, n_sel=len(kparams["sels"]),
        neg_slope=NEG_SLOPE, out_size=kparams["output_size"])

    def _resident_spec(arr):
        nd = arr.ndim
        return pl.BlockSpec(arr.shape, lambda b, _nd=nd: (0,) * _nd)

    in_specs = [pl.BlockSpec((1,) + x9.shape[1:], lambda b: (b, 0, 0, 0))]
    in_specs += [_resident_spec(a) for a in inputs[1:]]

    out = pl.pallas_call(
        kernel,
        out_shape=jax.ShapeDtypeStruct((n, 1, 1), jnp.float32),
        grid=(n,),                                     # batch axis: 1 image / step
        in_specs=in_specs,
        out_specs=pl.BlockSpec((1, 1, 1), lambda b: (b, 0, 0)),
        compiler_params=pltpu.CompilerParams(
            # parallel -> v7x can shard grid steps across its 2 TensorCores.
            dimension_semantics=("parallel",),
            # ~9-12 MB footprint at this size; raise toward 96 MB on v5e/v6e
            # for large batch-blocks, keep well under 64 MiB physical on v7x.
            vmem_limit_bytes=32 * 1024 * 1024),
    )(*inputs)
    return out.reshape(n, 1)


# ----------------------------------------------------------------------------
# Pure-JAX reference that mimics the kernel's precision policy (bf16 weights /
# activations, f32 accumulation) so the tolerance can be tight.
# ----------------------------------------------------------------------------
def reference_forward(params, x_nchw):
    hi = jax.lax.Precision.HIGHEST

    def q(v):
        return v.astype(jnp.bfloat16).astype(jnp.float32)

    a = q(jnp.transpose(x_nchw, (0, 2, 3, 1)))
    for (w, b), (_, _, s) in zip(params["convs"], CH_STRIDE_SET):
        k = q(jnp.transpose(w, (2, 3, 1, 0)))          # HWIO
        a = jax.lax.conv_general_dilated(
            a, k, window_strides=(s, s), padding="VALID",
            dimension_numbers=("NHWC", "HWIO", "NHWC"), precision=hi)
        a = a + b.reshape(1, 1, 1, -1)
        a = jnp.where(a > 0, a, a * NEG_SLOPE)
        a = q(a)
    n = a.shape[0]
    feat = jnp.transpose(a, (0, 3, 1, 2)).reshape(n, -1)   # PyTorch NCHW flatten
    h1 = jnp.dot(feat, q(params["fc1_w"]).T, precision=hi) + params["fc1_b"][None, :]
    h1 = jnp.where(h1 > 0, h1, h1 * NEG_SLOPE)
    out = jnp.dot(h1, params["fc2_w"].T, precision=hi) + params["fc2_b"][None, :]
    return out


if __name__ == "__main__":
    INPUT_SIZE = 32   # smallest size for which the 6-conv stack reaches 1x1
    BATCH = 2

    key = jax.random.PRNGKey(0)
    key, kx = jax.random.split(key)
    x = jax.random.normal(kx, (BATCH, 1, INPUT_SIZE, INPUT_SIZE), jnp.float32)

    params = init_params(key, INPUT_SIZE)
    kparams = prepare_params(params, INPUT_SIZE)

    fwd = jax.jit(functools.partial(wgan_vgg_discriminator, kparams))
    out = fwd(x)
    jax.block_until_ready(out)

    assert out.shape == (BATCH, 1), out.shape
    assert bool(jnp.all(jnp.isfinite(out)))

    ref = reference_forward(params, x)
    err = float(jnp.max(jnp.abs(out - ref)))
    assert err < 5e-4, f"kernel/reference mismatch: max abs err = {err}"
    print("KERNEL_OK")
</pallas_src>

<mosaic_0001>
module attributes {stable_mosaic.version = 11 : i64} {
  func.func @_wgan_disc_kernel(%arg0: i32, %arg1: memref<1x30x40x9xbf16, #tpu.memory_space<vmem>>, %arg2: memref<9x64xbf16, #tpu.memory_space<vmem>>, %arg3: memref<1x64xf32, #tpu.memory_space<vmem>>, %arg4: memref<576x64xbf16, #tpu.memory_space<vmem>>, %arg5: memref<1x64xf32, #tpu.memory_space<vmem>>, %arg6: memref<576x128xbf16, #tpu.memory_space<vmem>>, %arg7: memref<1x128xf32, #tpu.memory_space<vmem>>, %arg8: memref<1152x128xbf16, #tpu.memory_space<vmem>>, %arg9: memref<1x128xf32, #tpu.memory_space<vmem>>, %arg10: memref<1152x256xbf16, #tpu.memory_space<vmem>>, %arg11: memref<1x256xf32, #tpu.memory_space<vmem>>, %arg12: memref<2304x256xbf16, #tpu.memory_space<vmem>>, %arg13: memref<1x256xf32, #tpu.memory_space<vmem>>, %arg14: memref<14x32x32xbf16, #tpu.memory_space<vmem>>, %arg15: memref<5x24x16xbf16, #tpu.memory_space<vmem>>, %arg16: memref<1x8x8xbf16, #tpu.memory_space<vmem>>, %arg17: memref<256x1024xbf16, #tpu.memory_space<vmem>>, %arg18: memref<1x1024xf32, #tpu.memory_space<vmem>>, %arg19: memref<1x1024xf32, #tpu.memory_space<vmem>>, %arg20: memref<1x1xf32, #tpu.memory_space<vmem>>, %arg21: memref<1x1x1xf32, #tpu.memory_space<vmem>>) attributes {dimension_semantics = [#tpu.dimension_semantics<parallel>], iteration_bounds = array<i64: 2>, scalar_prefetch = 0 : i64, scratch_operands = 0 : i64, tpu.core_type = #tpu.core_type<tc>, window_params = [{transform_indices = @transform_0, window_bounds = array<i64: 1, 30, 40, 9>}, {pipeline_mode = #tpu.pipeline_mode<synchronous>, transform_indices = @transform_1, window_bounds = array<i64: 9, 64>}, {pipeline_mode = #tpu.pipeline_mode<synchronous>, transform_indices = @transform_2, window_bounds = array<i64: 1, 64>}, {pipeline_mode = #tpu.pipeline_mode<synchronous>, transform_indices = @transform_3, window_bounds = array<i64: 576, 64>}, {pipeline_mode = #tpu.pipeline_mode<synchronous>, transform_indices = @transform_4, window_bounds = array<i64: 1, 64>}, {pipeline_mode = #tpu.pipeline_mode<synchronous>, transform_indices = @transform_5, window_bounds = array<i64: 576, 128>}, {pipeline_mode = #tpu.pipeline_mode<synchronous>, transform_indices = @transform_6, window_bounds = array<i64: 1, 128>}, {pipeline_mode = #tpu.pipeline_mode<synchronous>, transform_indices = @transform_7, window_bounds = array<i64: 1152, 128>}, {pipeline_mode = #tpu.pipeline_mode<synchronous>, transform_indices = @transform_8, window_bounds = array<i64: 1, 128>}, {pipeline_mode = #tpu.pipeline_mode<synchronous>, transform_indices = @transform_9, window_bounds = array<i64: 1152, 256>}, {pipeline_mode = #tpu.pipeline_mode<synchronous>, transform_indices = @transform_10, window_bounds = array<i64: 1, 256>}, {pipeline_mode = #tpu.pipeline_mode<synchronous>, transform_indices = @transform_11, window_bounds = array<i64: 2304, 256>}, {pipeline_mode = #tpu.pipeline_mode<synchronous>, transform_indices = @transform_12, window_bounds = array<i64: 1, 256>}, {pipeline_mode = #tpu.pipeline_mode<synchronous>, transform_indices = @transform_13, window_bounds = array<i64: 14, 32, 32>}, {pipeline_mode = #tpu.pipeline_mode<synchronous>, transform_indices = @transform_14, window_bounds = array<i64: 5, 24, 16>}, {pipeline_mode = #tpu.pipeline_mode<synchronous>, transform_indices = @transform_15, window_bounds = array<i64: 1, 8, 8>}, {pipeline_mode = #tpu.pipeline_mode<synchronous>, transform_indices = @transform_16, window_bounds = array<i64: 256, 1024>}, {pipeline_mode = #tpu.pipeline_mode<synchronous>, transform_indices = @transform_17, window_bounds = array<i64: 1, 1024>}, {pipeline_mode = #tpu.pipeline_mode<synchronous>, transform_indices = @transform_18, window_bounds = array<i64: 1, 1024>}, {pipeline_mode = #tpu.pipeline_mode<synchronous>, transform_indices = @transform_19, window_bounds = array<i64: 1, 1>}, {transform_indices = @transform_20, window_bounds = array<i64: 1, 1, 1>}]} {
    %c0 = arith.constant 0 : index
    %c0_0 = arith.constant 0 : index
    %c0_1 = arith.constant 0 : index
    %c0_2 = arith.constant 0 : index
    %0 = vector.load %arg1[%c0, %c0_0, %c0_1, %c0_2] : memref<1x30x40x9xbf16, #tpu.memory_space<vmem>>, vector<1x30x40x9xbf16>
    %1 = vector.shape_cast %0 : vector<1x30x40x9xbf16> to vector<30x40x9xbf16>
    %c0_3 = arith.constant 0 : index
    %c0_4 = arith.constant 0 : index
    %2 = vector.load %arg2[%c0_3, %c0_4] : memref<9x64xbf16, #tpu.memory_space<vmem>>, vector<9x64xbf16>
    %c0_5 = arith.constant 0 : index
    %c0_6 = arith.constant 0 : index
    %3 = vector.load %arg3[%c0_5, %c0_6] : memref<1x64xf32, #tpu.memory_space<vmem>>, vector<1x64xf32>
    %4 = vector.shape_cast %1 : vector<30x40x9xbf16> to vector<1200x9xbf16>
    %cst = arith.constant dense<0.000000e+00> : vector<1200x64xf32>
    %5 = tpu.matmul %4, %2, %cst {dimension_numbers = #tpu.dot_dimension_numbers<[1], [0], [0], [1], [0, 0, 1, 1], [], []>} : vector<1200x9xbf16>, vector<9x64xbf16>, vector<1200x64xf32> -> vector<1200x64xf32>
    %6 = vector.broadcast %3 : vector<1x64xf32> to vector<1200x64xf32>
    %7 = arith.addf %5, %6 : vector<1200x64xf32>
    %cst_7 = arith.constant 0.000000e+00 : f32
    %8 = vector.broadcast %cst_7 : f32 to vector<1200x64xf32>
    %9 = arith.cmpf ogt, %7, %8 : vector<1200x64xf32>
    %cst_8 = arith.constant 0.00999999977 : f32
    %10 = vector.broadcast %cst_8 : f32 to vector<1200x64xf32>
    %11 = arith.mulf %7, %10 : vector<1200x64xf32>
    %12 = arith.select %9, %7, %11 : vector<1200x64xi1>, vector<1200x64xf32>
    %13 = arith.truncf %12 : vector<1200x64xf32> to vector<1200x64xbf16>
    %14 = vector.shape_cast %13 : vector<1200x64xbf16> to vector<30x40x64xbf16>
    %c0_9 = arith.constant 0 : index
    %c0_10 = arith.constant 0 : index
    %15 = vector.load %arg4[%c0_9, %c0_10] : memref<576x64xbf16, #tpu.memory_space<vmem>>, vector<576x64xbf16>
    %c0_11 = arith.constant 0 : index
    %c0_12 = arith.constant 0 : index
    %16 = vector.load %arg5[%c0_11, %c0_12] : memref<1x64xf32, #tpu.memory_space<vmem>>, vector<1x64xf32>
    %17 = vector.shape_cast %14 : vector<30x40x64xbf16> to vector<15x2x40x64xbf16>
    %18 = vector.extract_strided_slice %17 {offsets = [0, 0, 0, 0], sizes = [14, 1, 40, 64], strides = [1, 1, 1, 1]} : vector<15x2x40x64xbf16> to vector<14x1x40x64xbf16>
    %19 = vector.shape_cast %18 : vector<14x1x40x64xbf16> to vector<14x40x64xbf16>
    %20 = vector.extract_strided_slice %19 {offsets = [0, 0, 0], sizes = [14, 32, 64], strides = [1, 1, 1]} : vector<14x40x64xbf16> to vector<14x32x64xbf16>
    %21 = vector.extract_strided_slice %19 {offsets = [0, 1, 0], sizes = [14, 32, 64], strides = [1, 1, 1]} : vector<14x40x64xbf16> to vector<14x32x64xbf16>
    %22 = vector.extract_strided_slice %19 {offsets = [0, 2, 0], sizes = [14, 32, 64], strides = [1, 1, 1]} : vector<14x40x64xbf16> to vector<14x32x64xbf16>
    %23 = vector.extract_strided_slice %17 {offsets = [0, 1, 0, 0], sizes = [14, 1, 40, 64], strides = [1, 1, 1, 1]} : vector<15x2x40x64xbf16> to vector<14x1x40x64xbf16>
    %24 = vector.shape_cast %23 : vector<14x1x40x64xbf16> to vector<14x40x64xbf16>
    %25 = vector.extract_strided_slice %24 {offsets = [0, 0, 0], sizes = [14, 32, 64], strides = [1, 1, 1]} : vector<14x40x64xbf16> to vector<14x32x64xbf16>
    %26 = vector.extract_strided_slice %24 {offsets = [0, 1, 0], sizes = [14, 32, 64], strides = [1, 1, 1]} : vector<14x40x64xbf16> to vector<14x32x64xbf16>
    %27 = vector.extract_strided_slice %24 {offsets = [0, 2, 0], sizes = [14, 32, 64], strides = [1, 1, 1]} : vector<14x40x64xbf16> to vector<14x32x64xbf16>
    %28 = vector.extract_strided_slice %17 {offsets = [1, 0, 0, 0], sizes = [14, 1, 40, 64], strides = [1, 1, 1, 1]} : vector<15x2x40x64xbf16> to vector<14x1x40x64xbf16>
    %29 = vector.shape_cast %28 : vector<14x1x40x64xbf16> to vector<14x40x64xbf16>
    %30 = vector.extract_strided_slice %29 {offsets = [0, 0, 0], sizes = [14, 32, 64], strides = [1, 1, 1]} : vector<14x40x64xbf16> to vector<14x32x64xbf16>
    %31 = vector.extract_strided_slice %29 {offsets = [0, 1, 0], sizes = [14, 32, 64], strides = [1, 1, 1]} : vector<14x40x64xbf16> to vector<14x32x64xbf16>
    %32 = vector.extract_strided_slice %29 {offsets = [0, 2, 0], sizes = [14, 32, 64], strides = [1, 1, 1]} : vector<14x40x64xbf16> to vector<14x32x64xbf16>
    %33 = tpu.concatenate %20, %21, %22, %25, %26, %27, %30, %31, %32 in 2 : vector<14x32x64xbf16>, vector<14x32x64xbf16>, vector<14x32x64xbf16>, vector<14x32x64xbf16>, vector<14x32x64xbf16>, vector<14x32x64xbf16>, vector<14x32x64xbf16>, vector<14x32x64xbf16>, vector<14x32x64xbf16> -> vector<14x32x576xbf16>
    %34 = vector.shape_cast %33 : vector<14x32x576xbf16> to vector<448x576xbf16>
    %cst_13 = arith.constant dense<0.000000e+00> : vector<448x64xf32>
    %35 = tpu.matmul %34, %15, %cst_13 {dimension_numbers = #tpu.dot_dimension_numbers<[1], [0], [0], [1], [0, 0, 1, 1], [], []>} : vector<448x576xbf16>, vector<576x64xbf16>, vector<448x64xf32> -> vector<448x64xf32>
    %36 = vector.broadcast %16 : vector<1x64xf32> to vector<448x64xf32>
    %37 = arith.addf %35, %36 : vector<448x64xf32>
    %cst_14 = arith.constant 0.000000e+00 : f32
    %38 = vector.broadcast %cst_14 : f32 to vector<448x64xf32>
    %39 = arith.cmpf ogt, %37, %38 : vector<448x64xf32>
    %cst_15 = arith.constant 0.00999999977 : f32
    %40 = vector.broadcast %cst_15 : f32 to vector<448x64xf32>
    %41 = arith.mulf %37, %40 : vector<448x64xf32>
    %42 = arith.select %39, %37, %41 : vector<448x64xi1>, vector<448x64xf32>
    %43 = arith.truncf %42 : vector<448x64xf32> to vector<448x64xbf16>
    %44 = vector.shape_cast %43 : vector<448x64xbf16> to vector<14x32x64xbf16>
    %c0_16 = arith.constant 0 : index
    %c0_17 = arith.constant 0 : index
    %c0_18 = arith.constant 0 : index
    %45 = vector.load %arg14[%c0_16, %c0_17, %c0_18] : memref<14x32x32xbf16, #tpu.memory_space<vmem>>, vector<14x32x32xbf16>
    "tpu.trace_start"() <{level = 10 : i32, message = "how,hwc->hoc"}> : () -> ()
    %cst_19 = arith.constant dense<0.000000e+00> : vector<14x32x64xf32>
    %46 = tpu.matmul %45, %44, %cst_19 {dimension_numbers = #tpu.dot_dimension_numbers<[2], [1], [1], [2], [0, 0, 0, 1, 1, 2], [0], [0]>} : vector<14x32x32xbf16>, vector<14x32x64xbf16>, vector<14x32x64xf32> -> vector<14x32x64xf32>
    "tpu.trace_stop"() : () -> ()
    %47 = arith.truncf %46 : vector<14x32x64xf32> to vector<14x32x64xbf16>
    %c0_20 = arith.constant 0 : index
    %c0_21 = arith.constant 0 : index
    %48 = vector.load %arg6[%c0_20, %c0_21] : memref<576x128xbf16, #tpu.memory_space<vmem>>, vector<576x128xbf16>
    %c0_22 = arith.constant 0 : index
    %c0_23 = arith.constant 0 : index
    %49 = vector.load %arg7[%c0_22, %c0_23] : memref<1x128xf32, #tpu.memory_space<vmem>>, vector<1x128xf32>
    %50 = vector.extract_strided_slice %47 {offsets = [0, 0, 0], sizes = [12, 24, 64], strides = [1, 1, 1]} : vector<14x32x64xbf16> to vector<12x24x64xbf16>
    %51 = vector.extract_strided_slice %47 {offsets = [0, 1, 0], sizes = [12, 24, 64], strides = [1, 1, 1]} : vector<14x32x64xbf16> to vector<12x24x64xbf16>
    %52 = vector.extract_strided_slice %47 {offsets = [0, 2, 0], sizes = [12, 24, 64], strides = [1, 1, 1]} : vector<14x32x64xbf16> to vector<12x24x64xbf16>
    %53 = vector.extract_strided_slice %47 {offsets = [1, 0, 0], sizes = [12, 24, 64], strides = [1, 1, 1]} : vector<14x32x64xbf16> to vector<12x24x64xbf16>
    %54 = vector.extract_strided_slice %47 {offsets = [1, 1, 0], sizes = [12, 24, 64], strides = [1, 1, 1]} : vector<14x32x64xbf16> to vector<12x24x64xbf16>
    %55 = vector.extract_strided_slice %47 {offsets = [1, 2, 0], sizes = [12, 24, 64], strides = [1, 1, 1]} : vector<14x32x64xbf16> to vector<12x24x64xbf16>
    %56 = vector.extract_strided_slice %47 {offsets = [2, 0, 0], sizes = [12, 24, 64], strides = [1, 1, 1]} : vector<14x32x64xbf16> to vector<12x24x64xbf16>
    %57 = vector.extract_strided_slice %47 {offsets = [2, 1, 0], sizes = [12, 24, 64], strides = [1, 1, 1]} : vector<14x32x64xbf16> to vector<12x24x64xbf16>
    %58 = vector.extract_strided_slice %47 {offsets = [2, 2, 0], sizes = [12, 24, 64], strides = [1, 1, 1]} : vector<14x32x64xbf16> to vector<12x24x64xbf16>
    %59 = tpu.concatenate %50, %51, %52, %53, %54, %55, %56, %57, %58 in 2 : vector<12x24x64xbf16>, vector<12x24x64xbf16>, vector<12x24x64xbf16>, vector<12x24x64xbf16>, vector<12x24x64xbf16>, vector<12x24x64xbf16>, vector<12x24x64xbf16>, vector<12x24x64xbf16>, vector<12x24x64xbf16> -> vector<12x24x576xbf16>
    %60 = vector.shape_cast %59 : vector<12x24x576xbf16> to vector<288x576xbf16>
    %cst_24 = arith.constant dense<0.000000e+00> : vector<288x128xf32>
    %61 = tpu.matmul %60, %48, %cst_24 {dimension_numbers = #tpu.dot_dimension_numbers<[1], [0], [0], [1], [0, 0, 1, 1], [], []>} : vector<288x576xbf16>, vector<576x128xbf16>, vector<288x128xf32> -> vector<288x128xf32>
    %62 = vector.broadcast %49 : vector<1x128xf32> to vector<288x128xf32>
    %63 = arith.addf %61, %62 : vector<288x128xf32>
    %cst_25 = arith.constant 0.000000e+00 : f32
    %64 = vector.broadcast %cst_25 : f32 to vector<288x128xf32>
    %65 = arith.cmpf ogt, %63, %64 : vector<288x128xf32>
    %cst_26 = arith.constant 0.00999999977 : f32
    %66 = vector.broadcast %cst_26 : f32 to vector<288x128xf32>
    %67 = arith.mulf %63, %66 : vector<288x128xf32>
    %68 = arith.select %65, %63, %67 : vector<288x128xi1>, vector<288x128xf32>
    %69 = arith.truncf %68 : vector<288x128xf32> to vector<288x128xbf16>
    %70 = vector.shape_cast %69 : vector<288x128xbf16> to vector<12x24x128xbf16>
    %c0_27 = arith.constant 0 : index
    %c0_28 = arith.constant 0 : index
    %71 = vector.load %arg8[%c0_27, %c0_28] : memref<1152x128xbf16, #tpu.memory_space<vmem>>, vector<1152x128xbf16>
    %c0_29 = arith.constant 0 : index
    %c0_30 = arith.constant 0 : index
    %72 = vector.load %arg9[%c0_29, %c0_30] : memref<1x128xf32, #tpu.memory_space<vmem>>, vector<1x128xf32>
    %73 = vector.shape_cast %70 : vector<12x24x128xbf16> to vector<6x2x24x128xbf16>
    %74 = vector.extract_strided_slice %73 {offsets = [0, 0, 0, 0], sizes = [5, 1, 24, 128], strides = [1, 1, 1, 1]} : vector<6x2x24x128xbf16> to vector<5x1x24x128xbf16>
    %75 = vector.shape_cast %74 : vector<5x1x24x128xbf16> to vector<5x24x128xbf16>
    %76 = vector.extract_strided_slice %75 {offsets = [0, 0, 0], sizes = [5, 16, 128], strides = [1, 1, 1]} : vector<5x24x128xbf16> to vector<5x16x128xbf16>
    %77 = vector.extract_strided_slice %75 {offsets = [0, 1, 0], sizes = [5, 16, 128], strides = [1, 1, 1]} : vector<5x24x128xbf16> to vector<5x16x128xbf16>
    %78 = vector.extract_strided_slice %75 {offsets = [0, 2, 0], sizes = [5, 16, 128], strides = [1, 1, 1]} : vector<5x24x128xbf16> to vector<5x16x128xbf16>
    %79 = vector.extract_strided_slice %73 {offsets = [0, 1, 0, 0], sizes = [5, 1, 24, 128], strides = [1, 1, 1, 1]} : vector<6x2x24x128xbf16> to vector<5x1x24x128xbf16>
    %80 = vector.shape_cast %79 : vector<5x1x24x128xbf16> to vector<5x24x128xbf16>
    %81 = vector.extract_strided_slice %80 {offsets = [0, 0, 0], sizes = [5, 16, 128], strides = [1, 1, 1]} : vector<5x24x128xbf16> to vector<5x16x128xbf16>
    %82 = vector.extract_strided_slice %80 {offsets = [0, 1, 0], sizes = [5, 16, 128], strides = [1, 1, 1]} : vector<5x24x128xbf16> to vector<5x16x128xbf16>
    %83 = vector.extract_strided_slice %80 {offsets = [0, 2, 0], sizes = [5, 16, 128], strides = [1, 1, 1]} : vector<5x24x128xbf16> to vector<5x16x128xbf16>
    %84 = vector.extract_strided_slice %73 {offsets = [1, 0, 0, 0], sizes = [5, 1, 24, 128], strides = [1, 1, 1, 1]} : vector<6x2x24x128xbf16> to vector<5x1x24x128xbf16>
    %85 = vector.shape_cast %84 : vector<5x1x24x128xbf16> to vector<5x24x128xbf16>
    %86 = vector.extract_strided_slice %85 {offsets = [0, 0, 0], sizes = [5, 16, 128], strides = [1, 1, 1]} : vector<5x24x128xbf16> to vector<5x16x128xbf16>
    %87 = vector.extract_strided_slice %85 {offsets = [0, 1, 0], sizes = [5, 16, 128], strides = [1, 1, 1]} : vector<5x24x128xbf16> to vector<5x16x128xbf16>
    %88 = vector.extract_strided_slice %85 {offsets = [0, 2, 0], sizes = [5, 16, 128], strides = [1, 1, 1]} : vector<5x24x128xbf16> to vector<5x16x128xbf16>
    %89 = tpu.concatenate %76, %77, %78, %81, %82, %83, %86, %87, %88 in 2 : vector<5x16x128xbf16>, vector<5x16x128xbf16>, vector<5x16x128xbf16>, vector<5x16x128xbf16>, vector<5x16x128xbf16>, vector<5x16x128xbf16>, vector<5x16x128xbf16>, vector<5x16x128xbf16>, vector<5x16x128xbf16> -> vector<5x16x1152xbf16>
    %90 = vector.shape_cast %89 : vector<5x16x1152xbf16> to vector<80x1152xbf16>
    %cst_31 = arith.constant dense<0.000000e+00> : vector<80x128xf32>
    %91 = tpu.matmul %90, %71, %cst_31 {dimension_numbers = #tpu.dot_dimension_numbers<[1], [0], [0], [1], [0, 0, 1, 1], [], []>} : vector<80x1152xbf16>, vector<1152x128xbf16>, vector<80x128xf32> -> vector<80x128xf32>
    %92 = vector.broadcast %72 : vector<1x128xf32> to vector<80x128xf32>
    %93 = arith.addf %91, %92 : vector<80x128xf32>
    %cst_32 = arith.constant 0.000000e+00 : f32
    %94 = vector.broadcast %cst_32 : f32 to vector<80x128xf32>
    %95 = arith.cmpf ogt, %93, %94 : vector<80x128xf32>
    %cst_33 = arith.constant 0.00999999977 : f32
    %96 = vector.broadcast %cst_33 : f32 to vector<80x128xf32>
    %97 = arith.mulf %93, %96 : vector<80x128xf32>
    %98 = arith.select %95, %93, %97 : vector<80x128xi1>, vector<80x128xf32>
    %99 = arith.truncf %98 : vector<80x128xf32> to vector<80x128xbf16>
    %100 = vector.shape_cast %99 : vector<80x128xbf16> to vector<5x16x128xbf16>
    %c0_34 = arith.constant 0 : index
    %c0_35 = arith.constant 0 : index
    %c0_36 = arith.constant 0 : index
    %101 = vector.load %arg15[%c0_34, %c0_35, %c0_36] : memref<5x24x16xbf16, #tpu.memory_space<vmem>>, vector<5x24x16xbf16>
    "tpu.trace_start"() <{level = 10 : i32, message = "how,hwc->hoc"}> : () -> ()
    %cst_37 = arith.constant dense<0.000000e+00> : vector<5x24x128xf32>
    %102 = tpu.matmul %101, %100, %cst_37 {dimension_numbers = #tpu.dot_dimension_numbers<[2], [1], [1], [2], [0, 0, 0, 1, 1, 2], [0], [0]>} : vector<5x24x16xbf16>, vector<5x16x128xbf16>, vector<5x24x128xf32> -> vector<5x24x128xf32>
    "tpu.trace_stop"() : () -> ()
    %103 = arith.truncf %102 : vector<5x24x128xf32> to vector<5x24x128xbf16>
    %c0_38 = arith.constant 0 : index
    %c0_39 = arith.constant 0 : index
    %104 = vector.load %arg10[%c0_38, %c0_39] : memref<1152x256xbf16, #tpu.memory_space<vmem>>, vector<1152x256xbf16>
    %c0_40 = arith.constant 0 : index
    %c0_41 = arith.constant 0 : index
    %105 = vector.load %arg11[%c0_40, %c0_41] : memref<1x256xf32, #tpu.memory_space<vmem>>, vector<1x256xf32>
    %106 = vector.extract_strided_slice %103 {offsets = [0, 0, 0], sizes = [3, 16, 128], strides = [1, 1, 1]} : vector<5x24x128xbf16> to vector<3x16x128xbf16>
    %107 = vector.extract_strided_slice %103 {offsets = [0, 1, 0], sizes = [3, 16, 128], strides = [1, 1, 1]} : vector<5x24x128xbf16> to vector<3x16x128xbf16>
    %108 = vector.extract_strided_slice %103 {offsets = [0, 2, 0], sizes = [3, 16, 128], strides = [1, 1, 1]} : vector<5x24x128xbf16> to vector<3x16x128xbf16>
    %109 = vector.extract_strided_slice %103 {offsets = [1, 0, 0], sizes = [3, 16, 128], strides = [1, 1, 1]} : vector<5x24x128xbf16> to vector<3x16x128xbf16>
    %110 = vector.extract_strided_slice %103 {offsets = [1, 1, 0], sizes = [3, 16, 128], strides = [1, 1, 1]} : vector<5x24x128xbf16> to vector<3x16x128xbf16>
    %111 = vector.extract_strided_slice %103 {offsets = [1, 2, 0], sizes = [3, 16, 128], strides = [1, 1, 1]} : vector<5x24x128xbf16> to vector<3x16x128xbf16>
    %112 = vector.extract_strided_slice %103 {offsets = [2, 0, 0], sizes = [3, 16, 128], strides = [1, 1, 1]} : vector<5x24x128xbf16> to vector<3x16x128xbf16>
    %113 = vector.extract_strided_slice %103 {offsets = [2, 1, 0], sizes = [3, 16, 128], strides = [1, 1, 1]} : vector<5x24x128xbf16> to vector<3x16x128xbf16>
    %114 = vector.extract_strided_slice %103 {offsets = [2, 2, 0], sizes = [3, 16, 128], strides = [1, 1, 1]} : vector<5x24x128xbf16> to vector<3x16x128xbf16>
    %115 = tpu.concatenate %106, %107, %108, %109, %110, %111, %112, %113, %114 in 2 : vector<3x16x128xbf16>, vector<3x16x128xbf16>, vector<3x16x128xbf16>, vector<3x16x128xbf16>, vector<3x16x128xbf16>, vector<3x16x128xbf16>, vector<3x16x128xbf16>, vector<3x16x128xbf16>, vector<3x16x128xbf16> -> vector<3x16x1152xbf16>
    %116 = vector.shape_cast %115 : vector<3x16x1152xbf16> to vector<48x1152xbf16>
    %cst_42 = arith.constant dense<0.000000e+00> : vector<48x256xf32>
    %117 = tpu.matmul %116, %104, %cst_42 {dimension_numbers = #tpu.dot_dimension_numbers<[1], [0], [0], [1], [0, 0, 1, 1], [], []>} : vector<48x1152xbf16>, vector<1152x256xbf16>, vector<48x256xf32> -> vector<48x256xf32>
    %118 = vector.broadcast %105 : vector<1x256xf32> to vector<48x256xf32>
    %119 = arith.addf %117, %118 : vector<48x256xf32>
    %cst_43 = arith.constant 0.000000e+00 : f32
    %120 = vector.broadcast %cst_43 : f32 to vector<48x256xf32>
    %121 = arith.cmpf ogt, %119, %120 : vector<48x256xf32>
    %cst_44 = arith.constant 0.00999999977 : f32
    %122 = vector.broadcast %cst_44 : f32 to vector<48x256xf32>
    %123 = arith.mulf %119, %122 : vector<48x256xf32>
    %124 = arith.select %121, %119, %123 : vector<48x256xi1>, vector<48x256xf32>
    %125 = arith.truncf %124 : vector<48x256xf32> to vector<48x256xbf16>
    %126 = vector.shape_cast %125 : vector<48x256xbf16> to vector<3x16x256xbf16>
    %c0_45 = arith.constant 0 : index
    %c0_46 = arith.constant 0 : index
    %127 = vector.load %arg12[%c0_45, %c0_46] : memref<2304x256xbf16, #tpu.memory_space<vmem>>, vector<2304x256xbf16>
    %c0_47 = arith.constant 0 : index
    %c0_48 = arith.constant 0 : index
    %128 = vector.load %arg13[%c0_47, %c0_48] : memref<1x256xf32, #tpu.memory_space<vmem>>, vector<1x256xf32>
    %cst_49 = arith.constant 0.000000e+00 : bf16
    %129 = vector.broadcast %cst_49 : bf16 to vector<1x16x256xbf16>
    %130 = tpu.concatenate %126, %129 in 0 : vector<3x16x256xbf16>, vector<1x16x256xbf16> -> vector<4x16x256xbf16>
    %131 = vector.shape_cast %130 : vector<4x16x256xbf16> to vector<2x2x16x256xbf16>
    %132 = vector.extract_strided_slice %131 {offsets = [0, 0, 0, 0], sizes = [1, 1, 16, 256], strides = [1, 1, 1, 1]} : vector<2x2x16x256xbf16> to vector<1x1x16x256xbf16>
    %133 = vector.shape_cast %132 : vector<1x1x16x256xbf16> to vector<1x16x256xbf16>
    %134 = vector.extract_strided_slice %133 {offsets = [0, 0, 0], sizes = [1, 8, 256], strides = [1, 1, 1]} : vector<1x16x256xbf16> to vector<1x8x256xbf16>
    %135 = vector.extract_strided_slice %133 {offsets = [0, 1, 0], sizes = [1, 8, 256], strides = [1, 1, 1]} : vector<1x16x256xbf16> to vector<1x8x256xbf16>
    %136 = vector.extract_strided_slice %133 {offsets = [0, 2, 0], sizes = [1, 8, 256], strides = [1, 1, 1]} : vector<1x16x256xbf16> to vector<1x8x256xbf16>
    %137 = vector.extract_strided_slice %131 {offsets = [0, 1, 0, 0], sizes = [1, 1, 16, 256], strides = [1, 1, 1, 1]} : vector<2x2x16x256xbf16> to vector<1x1x16x256xbf16>
    %138 = vector.shape_cast %137 : vector<1x1x16x256xbf16> to vector<1x16x256xbf16>
    %139 = vector.extract_strided_slice %138 {offsets = [0, 0, 0], sizes = [1, 8, 256], strides = [1, 1, 1]} : vector<1x16x256xbf16> to vector<1x8x256xbf16>
    %140 = vector.extract_strided_slice %138 {offsets = [0, 1, 0], sizes = [1, 8, 256], strides = [1, 1, 1]} : vector<1x16x256xbf16> to vector<1x8x256xbf16>
    %141 = vector.extract_strided_slice %138 {offsets = [0, 2, 0], sizes = [1, 8, 256], strides = [1, 1, 1]} : vector<1x16x256xbf16> to vector<1x8x256xbf16>
    %142 = vector.extract_strided_slice %131 {offsets = [1, 0, 0, 0], sizes = [1, 1, 16, 256], strides = [1, 1, 1, 1]} : vector<2x2x16x256xbf16> to vector<1x1x16x256xbf16>
    %143 = vector.shape_cast %142 : vector<1x1x16x256xbf16> to vector<1x16x256xbf16>
    %144 = vector.extract_strided_slice %143 {offsets = [0, 0, 0], sizes = [1, 8, 256], strides = [1, 1, 1]} : vector<1x16x256xbf16> to vector<1x8x256xbf16>
    %145 = vector.extract_strided_slice %143 {offsets = [0, 1, 0], sizes = [1, 8, 256], strides = [1, 1, 1]} : vector<1x16x256xbf16> to vector<1x8x256xbf16>
    %146 = vector.extract_strided_slice %143 {offsets = [0, 2, 0], sizes = [1, 8, 256], strides = [1, 1, 1]} : vector<1x16x256xbf16> to vector<1x8x256xbf16>
    %147 = tpu.concatenate %134, %135, %136, %139, %140, %141, %144, %145, %146 in 2 : vector<1x8x256xbf16>, vector<1x8x256xbf16>, vector<1x8x256xbf16>, vector<1x8x256xbf16>, vector<1x8x256xbf16>, vector<1x8x256xbf16>, vector<1x8x256xbf16>, vector<1x8x256xbf16>, vector<1x8x256xbf16> -> vector<1x8x2304xbf16>
    %148 = vector.shape_cast %147 : vector<1x8x2304xbf16> to vector<8x2304xbf16>
    %cst_50 = arith.constant dense<0.000000e+00> : vector<8x256xf32>
    %149 = tpu.matmul %148, %127, %cst_50 {dimension_numbers = #tpu.dot_dimension_numbers<[1], [0], [0], [1], [0, 0, 1, 1], [], []>} : vector<8x2304xbf16>, vector<2304x256xbf16>, vector<8x256xf32> -> vector<8x256xf32>
    %150 = vector.broadcast %128 : vector<1x256xf32> to vector<8x256xf32>
    %151 = arith.addf %149, %150 : vector<8x256xf32>
    %cst_51 = arith.constant 0.000000e+00 : f32
    %152 = vector.broadcast %cst_51 : f32 to vector<8x256xf32>
    %153 = arith.cmpf ogt, %151, %152 : vector<8x256xf32>
    %cst_52 = arith.constant 0.00999999977 : f32
    %154 = vector.broadcast %cst_52 : f32 to vector<8x256xf32>
    %155 = arith.mulf %151, %154 : vector<8x256xf32>
    %156 = arith.select %153, %151, %155 : vector<8x256xi1>, vector<8x256xf32>
    %157 = arith.truncf %156 : vector<8x256xf32> to vector<8x256xbf16>
    %158 = vector.shape_cast %157 : vector<8x256xbf16> to vector<1x8x256xbf16>
    %c0_53 = arith.constant 0 : index
    %c0_54 = arith.constant 0 : index
    %c0_55 = arith.constant 0 : index
    %159 = vector.load %arg16[%c0_53, %c0_54, %c0_55] : memref<1x8x8xbf16, #tpu.memory_space<vmem>>, vector<1x8x8xbf16>
    "tpu.trace_start"() <{level = 10 : i32, message = "how,hwc->hoc"}> : () -> ()
    %cst_56 = arith.constant dense<0.000000e+00> : vector<1x8x256xf32>
    %160 = tpu.matmul %159, %158, %cst_56 {dimension_numbers = #tpu.dot_dimension_numbers<[2], [1], [1], [2], [0, 0, 0, 1, 1, 2], [0], [0]>} : vector<1x8x8xbf16>, vector<1x8x256xbf16>, vector<1x8x256xf32> -> vector<1x8x256xf32>
    "tpu.trace_stop"() : () -> ()
    %161 = arith.truncf %160 : vector<1x8x256xf32> to vector<1x8x256xbf16>
    %162 = vector.extract_strided_slice %161 {offsets = [0, 0, 0], sizes = [1, 1, 256], strides = [1, 1, 1]} : vector<1x8x256xbf16> to vector<1x1x256xbf16>
    %163 = vector.shape_cast %162 : vector<1x1x256xbf16> to vector<1x256xbf16>
    %c0_57 = arith.constant 0 : index
    %c0_58 = arith.constant 0 : index
    %164 = vector.load %arg17[%c0_57, %c0_58] : memref<256x1024xbf16, #tpu.memory_space<vmem>>, vector<256x1024xbf16>
    %cst_59 = arith.constant dense<0.000000e+00> : vector<1x1024xf32>
    %165 = tpu.matmul %163, %164, %cst_59 {dimension_numbers = #tpu.dot_dimension_numbers<[1], [0], [0], [1], [0, 0, 1, 1], [], []>} : vector<1x256xbf16>, vector<256x1024xbf16>, vector<1x1024xf32> -> vector<1x1024xf32>
    %c0_60 = arith.constant 0 : index
    %c0_61 = arith.constant 0 : index
    %166 = vector.load %arg18[%c0_60, %c0_61] : memref<1x1024xf32, #tpu.memory_space<vmem>>, vector<1x1024xf32>
    %167 = arith.addf %165, %166 : vector<1x1024xf32>
    %cst_62 = arith.constant 0.000000e+00 : f32
    %168 = vector.broadcast %cst_62 : f32 to vector<1x1024xf32>
    %169 = arith.cmpf ogt, %167, %168 : vector<1x1024xf32>
    %cst_63 = arith.constant 0.00999999977 : f32
    %170 = vector.broadcast %cst_63 : f32 to vector<1x1024xf32>
    %171 = arith.mulf %167, %170 : vector<1x1024xf32>
    %172 = arith.select %169, %167, %171 : vector<1x1024xi1>, vector<1x1024xf32>
    %c0_64 = arith.constant 0 : index
    %c0_65 = arith.constant 0 : index
    %173 = vector.load %arg19[%c0_64, %c0_65] : memref<1x1024xf32, #tpu.memory_space<vmem>>, vector<1x1024xf32>
    %174 = arith.mulf %172, %173 : vector<1x1024xf32>
    %cst_66 = arith.constant dense<0.000000e+00> : vector<1xf32>
    %175 = vector.multi_reduction <add>, %174, %cst_66 [1] : vector<1x1024xf32> to vector<1xf32>
    %176 = vector.shape_cast %175 : vector<1xf32> to vector<1x1xf32>
    %c0_67 = arith.constant 0 : index
    %c0_68 = arith.constant 0 : index
    %177 = vector.load %arg20[%c0_67, %c0_68] : memref<1x1xf32, #tpu.memory_space<vmem>>, vector<1x1xf32>
    %178 = arith.addf %176, %177 : vector<1x1xf32>
    %179 = vector.shape_cast %178 : vector<1x1xf32> to vector<1x1x1xf32>
    %c0_69 = arith.constant 0 : index
    %c0_70 = arith.constant 0 : index
    %c0_71 = arith.constant 0 : index
    %180 = vector.load %arg21[%c0_69, %c0_70, %c0_71] : memref<1x1x1xf32, #tpu.memory_space<vmem>>, vector<1x1x1xf32>
    tpu.vector_store %arg21[%c0_69, %c0_70, %c0_71], %179 {strides = array<i32>} : memref<1x1x1xf32, #tpu.memory_space<vmem>>, vector<1x1x1xf32>,
    return
  }
  func.func @transform_0(%arg0: i32) -> (i32, i32, i32, i32) {
    %c0_i32 = arith.constant 0 : i32
    %c0_i32_0 = arith.constant 0 : i32
    %c0_i32_1 = arith.constant 0 : i32
    %c0_i32_2 = arith.constant 0 : i32
    return %arg0, %c0_i32, %c0_i32_0, %c0_i32_1 : i32, i32, i32, i32
  }
  func.func @transform_1(%arg0: i32) -> (i32, i32) {
    %c0_i32 = arith.constant 0 : i32
    %c0_i32_0 = arith.constant 0 : i32
    %c0_i32_1 = arith.constant 0 : i32
    return %c0_i32, %c0_i32_0 : i32, i32
  }
  func.func @transform_2(%arg0: i32) -> (i32, i32) {
    %c0_i32 = arith.constant 0 : i32
    %c0_i32_0 = arith.constant 0 : i32
    %c0_i32_1 = arith.constant 0 : i32
    return %c0_i32, %c0_i32_0 : i32, i32
  }
  func.func @transform_3(%arg0: i32) -> (i32, i32) {
    %c0_i32 = arith.constant 0 : i32
    %c0_i32_0 = arith.constant 0 : i32
    %c0_i32_1 = arith.constant 0 : i32
    return %c0_i32, %c0_i32_0 : i32, i32
  }
  func.func @transform_4(%arg0: i32) -> (i32, i32) {
    %c0_i32 = arith.constant 0 : i32
    %c0_i32_0 = arith.constant 0 : i32
    %c0_i32_1 = arith.constant 0 : i32
    return %c0_i32, %c0_i32_0 : i32, i32
  }
  func.func @transform_5(%arg0: i32) -> (i32, i32) {
    %c0_i32 = arith.constant 0 : i32
    %c0_i32_0 = arith.constant 0 : i32
    %c0_i32_1 = arith.constant 0 : i32
    return %c0_i32, %c0_i32_0 : i32, i32
  }
  func.func @transform_6(%arg0: i32) -> (i32, i32) {
    %c0_i32 = arith.constant 0 : i32
    %c0_i32_0 = arith.constant 0 : i32
    %c0_i32_1 = arith.constant 0 : i32
    return %c0_i32, %c0_i32_0 : i32, i32
  }
  func.func @transform_7(%arg0: i32) -> (i32, i32) {
    %c0_i32 = arith.constant 0 : i32
    %c0_i32_0 = arith.constant 0 : i32
    %c0_i32_1 = arith.constant 0 : i32
    return %c0_i32, %c0_i32_0 : i32, i32
  }
  func.func @transform_8(%arg0: i32) -> (i32, i32) {
    %c0_i32 = arith.constant 0 : i32
    %c0_i32_0 = arith.constant 0 : i32
    %c0_i32_1 = arith.constant 0 : i32
    return %c0_i32, %c0_i32_0 : i32, i32
  }
  func.func @transform_9(%arg0: i32) -> (i32, i32) {
    %c0_i32 = arith.constant 0 : i32
    %c0_i32_0 = arith.constant 0 : i32
    %c0_i32_1 = arith.constant 0 : i32
    return %c0_i32, %c0_i32_0 : i32, i32
  }
  func.func @transform_10(%arg0: i32) -> (i32, i32) {
    %c0_i32 = arith.constant 0 : i32
    %c0_i32_0 = arith.constant 0 : i32
    %c0_i32_1 = arith.constant 0 : i32
    return %c0_i32, %c0_i32_0 : i32, i32
  }
  func.func @transform_11(%arg0: i32) -> (i32, i32) {
    %c0_i32 = arith.constant 0 : i32
    %c0_i32_0 = arith.constant 0 : i32
    %c0_i32_1 = arith.constant 0 : i32
    return %c0_i32, %c0_i32_0 : i32, i32
  }
  func.func @transform_12(%arg0: i32) -> (i32, i32) {
    %c0_i32 = arith.constant 0 : i32
    %c0_i32_0 = arith.constant 0 : i32
    %c0_i32_1 = arith.constant 0 : i32
    return %c0_i32, %c0_i32_0 : i32, i32
  }
  func.func @transform_13(%arg0: i32) -> (i32, i32, i32) {
    %c0_i32 = arith.constant 0 : i32
    %c0_i32_0 = arith.constant 0 : i32
    %c0_i32_1 = arith.constant 0 : i32
    %c0_i32_2 = arith.constant 0 : i32
    return %c0_i32, %c0_i32_0, %c0_i32_1 : i32, i32, i32
  }
  func.func @transform_14(%arg0: i32) -> (i32, i32, i32) {
    %c0_i32 = arith.constant 0 : i32
    %c0_i32_0 = arith.constant 0 : i32
    %c0_i32_1 = arith.constant 0 : i32
    %c0_i32_2 = arith.constant 0 : i32
    return %c0_i32, %c0_i32_0, %c0_i32_1 : i32, i32, i32
  }
  func.func @transform_15(%arg0: i32) -> (i32, i32, i32) {
    %c0_i32 = arith.constant 0 : i32
    %c0_i32_0 = arith.constant 0 : i32
    %c0_i32_1 = arith.constant 0 : i32
    %c0_i32_2 = arith.constant 0 : i32
    return %c0_i32, %c0_i32_0, %c0_i32_1 : i32, i32, i32
  }
  func.func @transform_16(%arg0: i32) -> (i32, i32) {
    %c0_i32 = arith.constant 0 : i32
    %c0_i32_0 = arith.constant 0 : i32
    %c0_i32_1 = arith.constant 0 : i32
    return %c0_i32, %c0_i32_0 : i32, i32
  }
  func.func @transform_17(%arg0: i32) -> (i32, i32) {
    %c0_i32 = arith.constant 0 : i32
    %c0_i32_0 = arith.constant 0 : i32
    %c0_i32_1 = arith.constant 0 : i32
    return %c0_i32, %c0_i32_0 : i32, i32
  }
  func.func @transform_18(%arg0: i32) -> (i32, i32) {
    %c0_i32 = arith.constant 0 : i32
    %c0_i32_0 = arith.constant 0 : i32
    %c0_i32_1 = arith.constant 0 : i32
    return %c0_i32, %c0_i32_0 : i32, i32
  }
  func.func @transform_19(%arg0: i32) -> (i32, i32) {
    %c0_i32 = arith.constant 0 : i32
    %c0_i32_0 = arith.constant 0 : i32
    %c0_i32_1 = arith.constant 0 : i32
    return %c0_i32, %c0_i32_0 : i32, i32
  }
  func.func @transform_20(%arg0: i32) -> (i32, i32, i32) {
    %c0_i32 = arith.constant 0 : i32
    %c0_i32_0 = arith.constant 0 : i32
    %c0_i32_1 = arith.constant 0 : i32
    return %arg0, %c0_i32, %c0_i32_0 : i32, i32, i32
  }
}

</mosaic_0001>

<bundles_post_ra>
// kernel: wgan_vgg_discriminator.1
= control target key start
LH: loop header
LB: loop body
LE: loop exit
PB: predicated region body
PF: predicated region fallthrough
CT: control target
= control target key end

     0   :  { %s17788_s23 = smov 0   ;;  %s23601_s0 = inlined_call_operand.vmem [shape: bf16[2,30,40,9], index: 0, kind: input, shape index: {}]   ;;  %s23602_s1 = inlined_call_operand.vmem [shape: bf16[9,64], index: 1, kind: input, shape index: {}]   ;;  %s23603_s2 = inlined_call_operand.vmem [shape: f32[1,64], index: 2, kind: input, shape index: {}]   ;;  %s23604_s3 = inlined_call_operand.vmem [shape: bf16[576,64], index: 3, kind: input, shape index: {}]   ;;  %s23605_s4 = inlined_call_operand.vmem [shape: f32[1,64], index: 4, kind: input, shape index: {}]   ;;  %s23606_s5 = inlined_call_operand.vmem [shape: bf16[576,128], index: 5, kind: input, shape index: {}]   ;;  %s23607_s6 = inlined_call_operand.vmem [shape: f32[1,128], index: 6, kind: input, shape index: {}]   ;;  %s23608_s7 = inlined_call_operand.vmem [shape: bf16[1152,128], index: 7, kind: input, shape index: {}]   ;;  %s23609_s8 = inlined_call_operand.vmem [shape: f32[1,128], index: 8, kind: input, shape index: {}]   ;;  %s23610_s9 = inlined_call_operand.vmem [shape: bf16[1152,256], index: 9, kind: input, shape index: {}]   ;;  %s23611_s10 = inlined_call_operand.vmem [shape: f32[1,256], index: 10, kind: input, shape index: {}]   ;;  %s23612_s11 = inlined_call_operand.vmem [shape: bf16[2304,256], index: 11, kind: input, shape index: {}]   ;;  %s23613_s12 = inlined_call_operand.vmem [shape: f32[1,256], index: 12, kind: input, shape index: {}]   ;;  %s23614_s13 = inlined_call_operand.vmem [shape: bf16[14,32,32], index: 13, kind: input, shape index: {}]   ;;  %s23615_s14 = inlined_call_operand.vmem [shape: bf16[5,24,16], index: 14, kind: input, shape index: {}]   ;;  %s23616_s15 = inlined_call_operand.vmem [shape: bf16[1,8,8], index: 15, kind: input, shape index: {}]   ;;  %s23617_s16 = inlined_call_operand.vmem [shape: bf16[256,1024], index: 16, kind: input, shape index: {}]   ;;  %s23618_s17 = inlined_call_operand.vmem [shape: f32[1,1024], index: 17, kind: input, shape index: {}]   ;;  %s23619_s18 = inlined_call_operand.vmem [shape: f32[1,1024], index: 18, kind: input, shape index: {}]   ;;  %s23620_s19 = inlined_call_operand.<no memory space> [shape: f32[1,1], index: 19, kind: input, shape index: {}]   ;;  %s23621_s20 = inlined_call_operand.vmem [shape: f32[2,1,1], index: 20, kind: output, shape index: {}]  }
   0x1   :  { %23699 = sst [smem:[#allocation90_spill]] %s23601_s0  ;;  %v25_v0 = vstv %s23620_s19 }
   0x2   :  { %23700 = sst [smem:[#allocation91_spill]] %s23602_s1  ;;  %26 = vst [vmem:[#allocation2] sm:$0x1] %v25_v0 }
   0x3   :  { %23701 = sst [smem:[#allocation92_spill]] %s23603_s2 }
   0x4   :  { %23702 = sst [smem:[#allocation93_spill]] %s23604_s3 }
   0x5   :  { %23703 = sst [smem:[#allocation94_spill]] %s23605_s4 }
   0x6 LB: > { %s14629_s24 = sadd.s32 4294967295, %s17673_s23   ;;  %p14633_p0 = scmp.ge.s32.totalorder %s17673_s23, 1  ;;  %s17673_s23 = sphi %s17788_s23, %s32_s23  }
   0x7   : > { %p564_p1 = scmp.lt.s32.totalorder %s17673_s23, 3 }
   0x9   : > { %p565_p2 = pnand %p14633_p0, %p564_p1 }
   0xb   : > { %568 = sbr.rel (%p565_p2) target bundleno = 3941 (0xf65), region = 100 }
  0x10   : > { %vm1394_vm0 = vcmask 1043456   ;;  %v23628_v1 = vmov 0.0   ;;  %s23704_s25 = sld [smem:[#allocation91_spill]]  ;;  %vm1395_vm1 = vcmask 1044480   ;;  %p620_p3 = scmp.lt.s32.totalorder %s14629_s24, 1  ;;  %v17676_v3 = vmov 65535  }
  0x11   : > { %16123 = vmatprep.subr.bf16.mxu0 %v23628_v1  ;;  %v1396_v4 = vsel %vm1394_vm0, 4294967295, %v17676_v3  ;;  %vm17677_vm2 = vmmov 0   ;;  %vm1168_vm3 = vcmask 72704   ;;  %s23705_s28 = sld [smem:[#allocation90_spill]]  ;;  %v23626_v30 = vmov 0   ;;  %s17679_s30 = smov 64  }
  0x12   : > { %16125 = vmatprep.mubr.msk.bf16.mxu0 %vm17677_vm2, %v23628_v1  ;;  %v1397_v5 = vsel %vm1395_vm1, %v1396_v4, 0  ;;  %s23969_s24 = smov (!%p620_p3, %s14629_s24), 1  ;;  %s23706_s0 = sld [smem:[#allocation93_spill]]  ;;  %16711 = vmatprep.subr.bf16.mxu1 %v23626_v30  ;;  %vm2874_vm14 = vsmask.f32 7424  ;;  %vm3211_vm15 = vcmask 1046528  }
  0x13   : > { %s16743_s3 = smul.u32 600, %s23969_s24  ;;  %s23707_s29 = sld [smem:[#allocation92_spill]] }
  0x16   : > { %v16757_v2 = vld [vmem:[%s23704_s25] sm:$0x1f]  }
  0x17   : > { %v1399_v6 = vand.u32 %v16757_v2, %v1397_v5  ;;  %s17809_s4 = scalar_lea.vmem %s23705_s28, %s16743_s3  ;;  %s23846_s28 = sld [smem:[#allocation94_spill]] }
  0x18   : > { %v16758_v7 = vld [vmem:[%s17809_s4] sm:$0xff]   ;;  %v16759_v8 = vld [vmem:[%s17809_s4 + $0x8] sm:$0xff]   ;;  %v16760_v9 = vld [vmem:[%s17809_s4 + $0x10] sm:$0xff]  }
  0x19   : > { %16124 = vmatpush3.bf16.msra.mxu0 %v1399_v6  ;;  %v16761_v10 = vld [vmem:[%s17809_s4 + $0x18] sm:$0xff]   ;;  %v16762_v11 = vld [vmem:[%s17809_s4 + $0x20] sm:$0xff]   ;;  %v16763_v12 = vld [vmem:[%s17809_s4 + $0x28] sm:$0xff]  }
  0x1a   : > { %v16764_v13 = vld [vmem:[%s17809_s4 + $0x30] sm:$0xff]   ;;  %v16765_v14 = vld [vmem:[%s17809_s4 + $0x38] sm:$0xff]   ;;  %v16766_v15 = vld [vmem:[%s17809_s4 + $0x40] sm:$0xff]   ;;  %4413 = vmatprep.subr.bf16.mxu0 %v23626_v30 }
  0x1b   : > { %v16767_v16 = vld [vmem:[%s17809_s4 + $0x48] sm:$0xff]   ;;  %v16768_v17 = vld [vmem:[%s17809_s4 + $0x50] sm:$0xff]   ;;  %v16769_v18 = vld [vmem:[%s17809_s4 + $0x58] sm:$0xff]  }
  0x1c   : > { %16126 = vmatmul.mubr.msk.bf16.vlgmr.msra.gmra.mxu0 %vm1168_vm3, %v16758_v7  ;;  %v16770_v19 = vld [vmem:[%s17809_s4 + $0x60] sm:$0xff]   ;;  %v16771_v20 = vld [vmem:[%s17809_s4 + $0x68] sm:$0xff]   ;;  %v16772_v21 = vld [vmem:[%s17809_s4 + $0x70] sm:$0xff]  }
  0x1d   : > { %16129 = vmatprep.mubr.msk.bf16.mxu0 %vm17677_vm2, %v23628_v1  ;;  %v16773_v22 = vld [vmem:[%s17809_s4 + $0x78] sm:$0xff]   ;;  %v16774_v23 = vld [vmem:[%s17809_s4 + $0x80] sm:$0xff]   ;;  %v16775_v24 = vld [vmem:[%s17809_s4 + $0x88] sm:$0xff]  }
  0x1e   : > { %v16776_v25 = vld [vmem:[%s17809_s4 + $0x90] sm:$0xff]   ;;  %v16777_v26 = vld [vmem:[%s17809_s4 + $0x98] sm:$0xff]   ;;  %v16778_v27 = vld [vmem:[%s17809_s4 + $0xa0] sm:$0xff]  }
  0x1f   : > { %v16779_v28 = vld [vmem:[%s17809_s4 + $0xa8] sm:$0xff]   ;;  %v16796_v29 = vld [vmem:[%s23706_s0 + $0x38] sm:$0xff]   ;;  %v16780_v31 = vld [vmem:[%s17809_s4 + $0xb0] sm:$0xff]  }
  0x20   : > { %16727 = vmatpush1.bf16.msra.mxu1 %v16796_v29  ;;  %4414 = vmatpush1.bf16.msra.mxu0 %v16796_v29  ;;  %v16797_v32 = vld [vmem:[%s23706_s0 + $0x30] sm:$0xff]   ;;  %v16799_v33 = vld [vmem:[%s23706_s0 + $0x28] sm:$0xff]   ;;  %v16781_v34 = vld [vmem:[%s17809_s4 + $0xb8] sm:$0xff]  }
  0x21   : > { %16712 = vmatprep.subr.bf16.mxu1 %v23626_v30  ;;  %4415 = vmatprep.subr.bf16.mxu0 %v23626_v30  ;;  %v16800_v35 = vld [vmem:[%s23706_s0 + $0x20] sm:$0xff]   ;;  %v16802_v36 = vld [vmem:[%s23706_s0 + $0x18] sm:$0xff]   ;;  %v16803_v39 = vld [vmem:[%s23706_s0 + $0x10] sm:$0xff]  }
  0x22   : > { %v16782_v37 = vld [vmem:[%s17809_s4 + $0xc0] sm:$0xff]   ;;  %v16805_v41 = vld [vmem:[%s23706_s0 + $0x8] sm:$0xff]   ;;  %v16808_v52 = vld [vmem:[%s23706_s0 + $0x78] sm:$0xff]  }
  0x23   : > { %v17937_v38 = vld [vmem:[%s23707_s29] ss:$0 sm:$0xff]  ;;  %v16783_v44 = vld [vmem:[%s17809_s4 + $0xc8] sm:$0xff]   ;;  %v16784_v57 = vld [vmem:[%s17809_s4 + $0xd0] sm:$0xff]  }
  0x24   : > { %16130 = vmatmul.mubr.msk.bf16.gmra.mxu0 %vm1168_vm3, %v16759_v8  ;;  %16728 = vmatpush1.bf16.msra.mxu1 %v16797_v32  ;;  %v16806_v46 = vld [vmem:[%s23706_s0] sm:$0xff]   ;;  %v16809_v59 = vld [vmem:[%s23706_s0 + $0x70] sm:$0xff]   ;;  %v16811_v62 = vld [vmem:[%s23706_s0 + $0x68] sm:$0xff]  }
  0x25   : > { %16133 = vmatprep.mubr.msk.bf16.mxu0 %vm17677_vm2, %v23628_v1  ;;  %16713 = vmatprep.subr.bf16.mxu1 %v23626_v30  ;;  %v16785_v2 = vld [vmem:[%s17809_s4 + $0xd8] sm:$0xff]   ;;  %v16812_v4 = vld [vmem:[%s23706_s0 + $0x60] sm:$0xff]  }
  0x26   : > { %4416 = vmatpush1.bf16.msra.mxu0 %v16797_v32 }
  0x27   : > { %4417 = vmatprep.subr.bf16.mxu0 %v23626_v30 }
  0x28   : > { %16729 = vmatpush1.bf16.msra.mxu1 %v16799_v33 }
  0x29   : > { %16714 = vmatprep.subr.bf16.mxu1 %v23626_v30 }
  0x2a   : > { %4418 = vmatpush1.bf16.msra.mxu0 %v16799_v33 }
  0x2b   : > { %4419 = vmatprep.subr.bf16.mxu0 %v23626_v30 }
  0x2c   : > { %16134 = vmatmul.mubr.msk.bf16.gmra.mxu0 %vm1168_vm3, %v16760_v9  ;;  %16730 = vmatpush1.bf16.msra.mxu1 %v16800_v35 }
  0x2d   : > { %16137 = vmatprep.mubr.msk.bf16.mxu0 %vm17677_vm2, %v23628_v1  ;;  %16715 = vmatprep.subr.bf16.mxu1 %v23626_v30 }
  0x2e   : > { %4420 = vmatpush1.bf16.msra.mxu0 %v16800_v35 }
  0x2f   : > { %4421 = vmatprep.subr.bf16.mxu0 %v23626_v30 }
  0x30   : > { %16731 = vmatpush1.bf16.msra.mxu1 %v16802_v36 }
  0x31   : > { %16716 = vmatprep.subr.bf16.mxu1 %v23626_v30 }
  0x32   : > { %4422 = vmatpush1.bf16.msra.mxu0 %v16802_v36  ;;  %v16787_v36 = vld [vmem:[%s17809_s4 + $0xe8] sm:$0xff]  }
  0x33   : > { %4423 = vmatprep.subr.bf16.mxu0 %v23626_v30 }
  0x34   : > { %16138 = vmatmul.mubr.msk.bf16.gmra.mxu0 %vm1168_vm3, %v16761_v10  ;;  %16732 = vmatpush1.bf16.msra.mxu1 %v16803_v39  ;;  %v16814_v10 = vld [vmem:[%s23706_s0 + $0x58] sm:$0xff]  }
  0x35   : > { %16141 = vmatprep.mubr.msk.bf16.mxu0 %vm17677_vm2, %v23628_v1  ;;  %16717 = vmatprep.subr.bf16.mxu1 %v23626_v30 }
  0x36   : > { %4424 = vmatpush1.bf16.msra.mxu0 %v16803_v39 }
  0x37   : > { %4425 = vmatprep.subr.bf16.mxu0 %v23626_v30 }
  0x38   : > { %16733 = vmatpush1.bf16.msra.mxu1 %v16805_v41 }
  0x39   : > { %16718 = vmatprep.subr.bf16.mxu1 %v23626_v30 }
  0x3a   : > { %4426 = vmatpush1.bf16.msra.mxu0 %v16805_v41 }
  0x3b   : > { %4427 = vmatprep.subr.bf16.mxu0 %v23626_v30 }
  0x3c   : > { %16142 = vmatmul.mubr.msk.bf16.gmra.mxu0 %vm1168_vm3, %v16762_v11  ;;  %16734 = vmatpush1.bf16.msra.mxu1 %v16806_v46 }
  0x3d   : > { %16145 = vmatprep.mubr.msk.bf16.mxu0 %vm17677_vm2, %v23628_v1  ;;  %16719 = vmatprep.subr.bf16.mxu1 %v23626_v30 }
  0x3e   : > { %4428 = vmatpush1.bf16.msra.mxu0 %v16806_v46 }
  0x3f   : > { %4429 = vmatprep.subr.bf16.mxu0 %v23626_v30 }
  0x40   : > { %16735 = vmatpush2.bf16.msra.mxu1 %v16808_v52 }
  0x41   : > { %16720 = vmatprep.subr.bf16.mxu1 %v23626_v30 }
  0x42   : > { %4430 = vmatpush2.bf16.msra.mxu0 %v16808_v52 }
  0x43   : > { %4431 = vmatprep.subr.bf16.mxu0 %v23626_v30 }
  0x44   : > { %16146 = vmatmul.mubr.msk.bf16.gmra.mxu0 %vm1168_vm3, %v16763_v12  ;;  %16736 = vmatpush2.bf16.msra.mxu1 %v16809_v59 }
  0x45   : > { %16149 = vmatprep.mubr.msk.bf16.mxu0 %vm17677_vm2, %v23628_v1  ;;  %16721 = vmatprep.subr.bf16.mxu1 %v23626_v30 }
  0x46   : > { %4432 = vmatpush2.bf16.msra.mxu0 %v16809_v59 }
  0x47   : > { %4433 = vmatprep.subr.bf16.mxu0 %v23626_v30 }
  0x48   : > { %16737 = vmatpush2.bf16.msra.mxu1 %v16811_v62 }
  0x49   : > { %16722 = vmatprep.subr.bf16.mxu1 %v23626_v30 }
  0x4a   : > { %4434 = vmatpush2.bf16.msra.mxu0 %v16811_v62 }
  0x4b   : > { %4435 = vmatprep.subr.bf16.mxu0 %v23626_v30 }
  0x4c   : > { %16150 = vmatmul.mubr.msk.bf16.gmra.mxu0 %vm1168_vm3, %v16764_v13  ;;  %16738 = vmatpush2.bf16.msra.mxu1 %v16812_v4 }
  0x4d   : > { %16153 = vmatprep.mubr.msk.bf16.mxu0 %vm17677_vm2, %v23628_v1  ;;  %16723 = vmatprep.subr.bf16.mxu1 %v23626_v30 }
  0x4e   : > { %4436 = vmatpush2.bf16.msra.mxu0 %v16812_v4 }
  0x4f   : > { %4437 = vmatprep.subr.bf16.mxu0 %v23626_v30 }
  0x50   : > { %16739 = vmatpush2.bf16.msra.mxu1 %v16814_v10 }
  0x51   : > { %16724 = vmatprep.subr.bf16.mxu1 %v23626_v30 }
  0x52   : > { %4438 = vmatpush2.bf16.msra.mxu0 %v16814_v10 }
  0x53   : > { %4439 = vmatprep.subr.bf16.mxu0 %v23626_v30 }
  0x54   : > { %16154 = vmatmul.mubr.msk.bf16.gmra.mxu0 %vm1168_vm3, %v16765_v14 }
  0x55   : > { %16157 = vmatprep.mubr.msk.bf16.mxu0 %vm17677_vm2, %v23628_v1 }
  0x5c   : > { %16158 = vmatmul.mubr.msk.bf16.gmra.mxu0 %vm1168_vm3, %v16766_v15 }
  0x5d   : > { %16161 = vmatprep.mubr.msk.bf16.mxu0 %vm17677_vm2, %v23628_v1 }
  0x64   : > { %16162 = vmatmul.mubr.msk.bf16.gmra.mxu0 %vm1168_vm3, %v16767_v16 }
  0x65   : > { %16165 = vmatprep.mubr.msk.bf16.mxu0 %vm17677_vm2, %v23628_v1 }
  0x6c   : > { %16166 = vmatmul.mubr.msk.bf16.gmra.mxu0 %vm1168_vm3, %v16768_v17  ;;  %v16786_v17 = vld [vmem:[%s17809_s4 + $0xe0] sm:$0xff]  }
  0x6d   : > { %16169 = vmatprep.mubr.msk.bf16.mxu0 %vm17677_vm2, %v23628_v1 }
  0x74   : > { %16170 = vmatmul.mubr.msk.bf16.gmra.mxu0 %vm1168_vm3, %v16769_v18 }
  0x75   : > { %16173 = vmatprep.mubr.msk.bf16.mxu0 %vm17677_vm2, %v23628_v1 }
  0x7c   : > { %16174 = vmatmul.mubr.msk.bf16.gmra.mxu0 %vm1168_vm3, %v16770_v19 }
  0x7d   : > { %16177 = vmatprep.mubr.msk.bf16.mxu0 %vm17677_vm2, %v23628_v1 }
  0x84   : > { %16178 = vmatmul.mubr.msk.bf16.gmra.mxu0 %vm1168_vm3, %v16771_v20  ;;  %v16815_v20 = vld [vmem:[%s23706_s0 + $0x50] sm:$0xff]  }
  0x85   : > { %16181 = vmatprep.mubr.msk.bf16.mxu0 %vm17677_vm2, %v23628_v1  ;;  %16740 = vmatpush2.bf16.msra.mxu1 %v16815_v20 }
  0x86   : > { %16725 = vmatprep.subr.bf16.mxu1 %v23626_v30  ;;  %4440 = vmatpush2.bf16.msra.mxu0 %v16815_v20 }
  0x87   : > { %4441 = vmatprep.subr.bf16.mxu0 %v23626_v30 }
  0x8c   : > { %16182 = vmatmul.mubr.msk.bf16.gmra.mxu0 %vm1168_vm3, %v16772_v21 }
  0x8d   : > { %16185 = vmatprep.mubr.msk.bf16.mxu0 %vm17677_vm2, %v23628_v1 }
  0x94   : > { %16186 = vmatmul.mubr.msk.bf16.gmra.mxu0 %vm1168_vm3, %v16773_v22 }
  0x95   : > { %16189 = vmatprep.mubr.msk.bf16.mxu0 %vm17677_vm2, %v23628_v1 }
  0x9c   : > { %16190 = vmatmul.mubr.msk.bf16.gmra.mxu0 %vm1168_vm3, %v16774_v23 }
  0x9d   : > { %16193 = vmatprep.mubr.msk.bf16.mxu0 %vm17677_vm2, %v23628_v1 }
  0xa4   : > { %16194 = vmatmul.mubr.msk.bf16.gmra.mxu0 %vm1168_vm3, %v16775_v24 }
  0xa5   : > { %16197 = vmatprep.mubr.msk.bf16.mxu0 %vm17677_vm2, %v23628_v1 }
  0xac   : > { %16198 = vmatmul.mubr.msk.bf16.gmra.mxu0 %vm1168_vm3, %v16776_v25 }
  0xad   : > { %16201 = vmatprep.mubr.msk.bf16.mxu0 %vm17677_vm2, %v23628_v1 }
  0xb4   : > { %16202 = vmatmul.mubr.msk.bf16.gmra.mxu0 %vm1168_vm3, %v16777_v26 }
  0xb5   : > { %16205 = vmatprep.mubr.msk.bf16.mxu0 %vm17677_vm2, %v23628_v1 }
  0xbc   : > { %16206 = vmatmul.mubr.msk.bf16.gmra.mxu0 %vm1168_vm3, %v16778_v27 }
  0xbd   : > { %16209 = vmatprep.mubr.msk.bf16.mxu0 %vm17677_vm2, %v23628_v1 }
  0xc4   : > { %16210 = vmatmul.mubr.msk.bf16.gmra.mxu0 %vm1168_vm3, %v16779_v28  ;;  %v16817_v28 = vld [vmem:[%s23706_s0 + $0x48] sm:$0xff]  }
  0xc5   : > { %16213 = vmatprep.mubr.msk.bf16.mxu0 %vm17677_vm2, %v23628_v1  ;;  %16741 = vmatpush2.bf16.msra.mxu1 %v16817_v28 }
  0xc6   : > { %16726 = vmatprep.subr.bf16.mxu1 %v23626_v30  ;;  %4442 = vmatpush2.bf16.msra.mxu0 %v16817_v28 }
  0xc7   : > { %4443 = vmatprep.subr.bf16.mxu0 %v23626_v30 }
  0xcc   : > { %16214 = vmatmul.mubr.msk.bf16.gmra.mxu0 %vm1168_vm3, %v16780_v31 }
  0xcd   : > { %16217 = vmatprep.mubr.msk.bf16.mxu0 %vm17677_vm2, %v23628_v1 }
  0xd4   : > { %16218 = vmatmul.mubr.msk.bf16.gmra.mxu0 %vm1168_vm3, %v16781_v34 }
  0xd5   : > { %16221 = vmatprep.mubr.msk.bf16.mxu0 %vm17677_vm2, %v23628_v1 }
  0xdc   : > { %v1435_v40 = vpop.f32.mrf.mxu0  ;;  %16222 = vmatmul.mubr.msk.bf16.gmra.mxu0 %vm1168_vm3, %v16782_v37 }
  0xdd   : > { %v1436_v42 = vadd.f32 %v17937_v38, %v1435_v40  ;;  %16225 = vmatprep.mubr.msk.bf16.mxu0 %vm17677_vm2, %v23628_v1 }
  0xde   : > { %v16127_v43 = vpop.f32.mrf.mxu0 }
  0xdf   : > { %v2176_v47 = vmul.f32 0.01, %v1436_v42  ;;  %vm2030_vm4 = vcmp.gt.f32.partialorder %v1436_v42, 0.0 }
  0xe0   : > { %v1438_v45 = vpop.f32.mrf.mxu0 }
  0xe1   : > { %v1439_v48 = vadd.f32 %v17937_v38, %v1438_v45  ;;  %v2322_v53 = vsel %vm2030_vm4, %v1436_v42, %v2176_v47  ;;  %v16818_v42 = vld [vmem:[%s23706_s0 + $0x40] sm:$0xff]  }
  0xe2   : > { %v16128_v49 = vpop.f32.mrf.mxu0  ;;  %16742 = vmatpush2.bf16.msra.mxu1 %v16818_v42  ;;  %4444 = vmatpush2.bf16.msra.mxu0 %v16818_v42 }
  0xe3   : > { %vm2031_vm5 = vcmp.gt.f32.partialorder %v1439_v48, 0.0  ;;  %v2177_v50 = vmul.f32 0.01, %v1439_v48  ;;  %4670 = vmatprep.subr.bf16.mxu1 %v23626_v30 }
  0xe4   : > { %v1443_v51 = vpop.f32.mrf.mxu0  ;;  %16226 = vmatmul.mubr.msk.bf16.gmra.mxu0 %vm1168_vm3, %v16783_v44 }
  0xe5   : > { %v2323_v54 = vsel %vm2031_vm5, %v1439_v48, %v2177_v50  ;;  %16229 = vmatprep.mubr.msk.bf16.mxu0 %vm17677_vm2, %v23628_v1  ;;  %v1444_v18 = vadd.f32 %v17937_v38, %v1443_v51 }
  0xe6   : > { %v17967_v55 = vpack.c.bf16 %v2323_v54, %v2322_v53  ;;  %v16131_v56 = vpop.f32.mrf.mxu0 }
  0xe7   : > { %v2178_v26 = vmul.f32 0.01, %v1444_v18  ;;  %vm2032_vm11 = vcmp.gt.f32.partialorder %v1444_v18, 0.0 }
  0xe8   : > { %v1446_v58 = vpop.f32.mrf.mxu0 }
  0xe9   : > { %v1447_v14 = vadd.f32 %v17937_v38, %v1446_v58  ;;  %v2324_v37 = vsel %vm2032_vm11, %v1444_v18, %v2178_v26  ;;  %v16790_v26 = vld [vmem:[%s17809_s4 + $0x100] sm:$0xff]  }
  0xea   : > { %v16132_v60 = vpop.f32.mrf.mxu0 }
  0xeb   : > { %v2179_v23 = vmul.f32 0.01, %v1447_v14  ;;  %vm2033_vm9 = vcmp.gt.f32.partialorder %v1447_v14, 0.0 }
  0xec   : > { %v1451_v61 = vpop.f32.mrf.mxu0  ;;  %16230 = vmatmul.mubr.msk.bf16.gmra.mxu0 %vm1168_vm3, %v16784_v57  ;;  %v16788_v57 = vld [vmem:[%s17809_s4 + $0xf0] sm:$0xff]  }
  0xed   : > { %v1452_v63 = vadd.f32 %v17937_v38, %v1451_v61  ;;  %16233 = vmatprep.mubr.msk.bf16.mxu0 %vm17677_vm2, %v23628_v1  ;;  %v2325_v33 = vsel %vm2033_vm9, %v1447_v14, %v2179_v23 }
  0xee   : > { %v16135_v0 = vpop.f32.mrf.mxu0  ;;  %v18024_v43 = vpack.c.bf16 %v2325_v33, %v2324_v37 }
  0xef   : > { %v2180_v5 = vmul.f32 0.01, %v1452_v63  ;;  %vm2034_vm6 = vcmp.gt.f32.partialorder %v1452_v63, 0.0 }
  0xf0   : > { %v1454_v3 = vpop.f32.mrf.mxu0  ;;  %23708 = vst [vmem:[#allocation3_spill] sm:$0xff] %v18024_v43  ;;  %v2883_v53 = vshll.u32 %v18024_v43, 16  ;;  %v2887_v4 = vshrl.u32 %v18024_v43, 16 }
  0xf1   : > { %v1455_v6 = vadd.f32 %v17937_v38, %v1454_v3  ;;  %v2326_v11 = vsel %vm2034_vm6, %v1452_v63, %v2180_v5 }
  0xf2   : > { %v16136_v7 = vpop.f32.mrf.mxu0  ;;  %v18029_v48 = vpack.c.bf16 %v2326_v11, %v2326_v11  ;;  %v18038_v63 = vrot.slane %v2883_v53, 1 }
  0xf3   : > { %vm2035_vm7 = vcmp.gt.f32.partialorder %v1455_v6, 0.0  ;;  %v2181_v8 = vmul.f32 0.01, %v1455_v6 }
  0xf4   : > { %v1459_v9 = vpop.f32.mrf.mxu0  ;;  %16234 = vmatmul.mubr.msk.bf16.gmra.mxu0 %vm1168_vm3, %v16785_v2  ;;  %v2891_v59 = vshll.u32 %v18029_v48, 16  ;;  %v2889_v10 = vor.u32 %v2887_v4, %v18038_v63 }
  0xf5   : > { %v2327_v12 = vsel %vm2035_vm7, %v1455_v6, %v2181_v8  ;;  %v1460_v13 = vadd.f32 %v17937_v38, %v1459_v9  ;;  %16237 = vmatprep.mubr.msk.bf16.mxu0 %vm17677_vm2, %v23628_v1 }
  0xf6   : > { %v2470_v15 = vpack.c.bf16 %v2327_v12, %v2326_v11  ;;  %v16139_v16 = vpop.f32.mrf.mxu0  ;;  %v2893_v5 = vrot.slane %v2891_v59, 1  ;;  %v16789_v12 = vld [vmem:[%s17809_s4 + $0xf8] sm:$0xff]  }
  0xf7   : > { %v2182_v21 = vmul.f32 0.01, %v1460_v13  ;;  %vm2036_vm8 = vcmp.gt.f32.partialorder %v1460_v13, 0.0 }
  0xf8   : > { %v1462_v19 = vpop.f32.mrf.mxu0  ;;  %v2692_v39 = vunpack.c.h.b16 %v2470_v15  ;;  %v2894_v16 = vsel %vm2874_vm14, %v2889_v10, %v2893_v5  ;;  %v16792_v10 = vld [vmem:[%s17809_s4 + $0x110] sm:$0xff]  }
  0xf9   : > { %v1463_v22 = vadd.f32 %v17937_v38, %v1462_v19  ;;  %v2328_v29 = vsel %vm2036_vm8, %v1460_v13, %v2182_v21 }
  0xfa   : > { %v16140_v24 = vpop.f32.mrf.mxu0 }
  0xfb   : > { %vm2037_vm10 = vcmp.gt.f32.partialorder %v1463_v22, 0.0  ;;  %v2183_v25 = vmul.f32 0.01, %v1463_v22 }
  0xfc   : > { %v1467_v27 = vpop.f32.mrf.mxu0  ;;  %16238 = vmatmul.mubr.msk.bf16.gmra.mxu0 %vm1168_vm3, %v16786_v17 }
  0xfd   : > { %v2329_v31 = vsel %vm2037_vm10, %v1463_v22, %v2183_v25  ;;  %v1468_v32 = vadd.f32 %v17937_v38, %v1467_v27  ;;  %16241 = vmatprep.mubr.msk.bf16.mxu0 %vm17677_vm2, %v23628_v1 }
  0xfe   : > { %v2471_v34 = vpack.c.bf16 %v2329_v31, %v2328_v29  ;;  %v16143_v35 = vpop.f32.mrf.mxu0 }
  0xff   : > { %v2184_v44 = vmul.f32 0.01, %v1468_v32  ;;  %vm2038_vm12 = vcmp.gt.f32.partialorder %v1468_v32, 0.0 }
 0x100   : > { %v2693_v40 = vunpack.c.l.b16 %v2471_v34  ;;  %v1470_v41 = vpop.f32.mrf.mxu0  ;;  %v2694_v60 = vunpack.c.h.b16 %v2471_v34 }
 0x101   : > { %v1471_v45 = vadd.f32 %v17937_v38, %v1470_v41  ;;  %v2330_v51 = vsel %vm2038_vm12, %v1468_v32, %v2184_v44 }
 0x102   : > { %v18027_v46 = vpack.c.b16 %v2693_v40, %v2692_v39  ;;  %v16144_v47 = vpop.f32.mrf.mxu0 }
 0x103   : > { %vm2039_vm13 = vcmp.gt.f32.partialorder %v1471_v45, 0.0  ;;  %v2185_v49 = vmul.f32 0.01, %v1471_v45 }
 0x104   : > { %v1475_v50 = vpop.f32.mrf.mxu0  ;;  %16242 = vmatmul.mubr.msk.bf16.gmra.mxu0 %vm1168_vm3, %v16787_v36 }
 0x105   : > { %v2331_v52 = vsel %vm2039_vm13, %v1471_v45, %v2185_v49  ;;  %16245 = vmatprep.mubr.msk.bf16.mxu0 %vm17677_vm2, %v23628_v1  ;;  %v1476_v24 = vadd.f32 %v17937_v38, %v1475_v50  ;;  %v16791_v45 = vld [vmem:[%s17809_s4 + $0x108] sm:$0xff]  }
 0x106   : > { %v2472_v54 = vpack.c.bf16 %v2331_v52, %v2330_v51  ;;  %v16147_v56 = vpop.f32.mrf.mxu0  ;;  %v15699_v58 = vpack.c.bf16 %v2331_v52, %v2331_v52 }
 0x107   : > { %vm2040_vm1 = vcmp.gt.f32.partialorder %v1476_v24, 0.0  ;;  %v2186_v34 = vmul.f32 0.01, %v1476_v24 }
 0x108   : > { %v2695_v61 = vunpack.c.l.b16 %v2472_v54  ;;  %v1478_v62 = vpop.f32.mrf.mxu0  ;;  %v3396_v3 = vshll.u32 %v15699_v58, 16  ;;  %v3663_v8 = vrot.slane %v15699_v58, 1 }
 0x109   : > { %v1479_v23 = vadd.f32 %v17937_v38, %v1478_v62  ;;  %v2332_v47 = vsel %vm2040_vm1, %v1476_v24, %v2186_v34 }
 0x10a   : > { %v16148_v0 = vpop.f32.mrf.mxu0  ;;  %v18040_v2 = vpack.c.b16 %v2695_v61, %v2694_v60  ;;  %v3398_v19 = vrot.slane %v3396_v3, 1 }
 0x10b   : > { %v2187_v31 = vmul.f32 0.01, %v1479_v23  ;;  %vm2041_vm4 = vcmp.gt.f32.partialorder %v1479_v23, 0.0 }
 0x10c   : > { %16246 = vmatmul.mubr.msk.bf16.gmra.mxu0 %vm1168_vm3, %v16788_v57  ;;  %3312 = vrot.lane.b32.xlu0 %v18040_v2, %s17679_s30  ;;  %v1483_v6 = vpop.f32.mrf.mxu0  ;;  %v23625_v7 = vrot.slane %v18040_v2, 1  ;;  %v3388_v9 = vshll.u32 %v18040_v2, 16  ;;  %v3392_v15 = vshrl.u32 %v18040_v2, 16 }
 0x10d   : > { %16249 = vmatprep.mubr.msk.bf16.mxu0 %vm17677_vm2, %v23628_v1  ;;  %v1484_v28 = vadd.f32 %v17937_v38, %v1483_v6  ;;  %v2333_v40 = vsel %vm2041_vm4, %v1479_v23, %v2187_v31 }
 0x10e   : > { %v16151_v11 = vpop.f32.mrf.mxu0  ;;  %v18055_v13 = vsel %vm3211_vm15, %v23625_v7, %v3663_v8  ;;  %v18057_v14 = vrot.slane %v3388_v9, 1  ;;  %v18082_v51 = vpack.c.bf16 %v2333_v40, %v2332_v47 }
 0x10f   : > { %v2188_v37 = vmul.f32 0.01, %v1484_v28  ;;  %vm2042_vm6 = vcmp.gt.f32.partialorder %v1484_v28, 0.0 }
 0x110   : > { %23709 = vst [vmem:[#allocation4_spill] sm:$0xff] %v18057_v14  ;;  %3157 = vrot.lane.b32.xlu0 %v2894_v16, %s17679_s30  ;;  %v1486_v17 = vpop.f32.mrf.mxu0  ;;  %v3394_v18 = vor.u32 %v3392_v15, %v18057_v14  ;;  %v2898_v6 = vshll.u32 %v18082_v51, 16  ;;  %v2896_v24 = vshrl.u32 %v18082_v51, 16 }
 0x111   : > { %v1487_v27 = vadd.f32 %v17937_v38, %v1486_v17  ;;  %v2334_v53 = vsel %vm2042_vm6, %v1484_v28, %v2188_v37 }
 0x112   : > { %v16152_v20 = vpop.f32.mrf.mxu0  ;;  %v18064_v21 = vsel %vm2874_vm14, %v3394_v18, %v3398_v19 }
 0x113   : > { %23710 = vst [vmem:[#allocation5_spill] sm:$0xff] %v18064_v21  ;;  %v2189_v35 = vmul.f32 0.01, %v1487_v27  ;;  %vm2043_vm5 = vcmp.gt.f32.partialorder %v1487_v27, 0.0  ;;  %v2900_v20 = vrot.slane %v2898_v6, 1 }
 0x114   : > { %v1491_v22 = vpop.f32.mrf.mxu0  ;;  %16250 = vmatmul.mubr.msk.bf16.gmra.mxu0 %vm1168_vm3, %v16789_v12 }
 0x115   : > { %16253 = vmatprep.mubr.msk.bf16.mxu0 %vm17677_vm2, %v23628_v1  ;;  %v1492_v36 = vadd.f32 %v17937_v38, %v1491_v22  ;;  %v2335_v49 = vsel %vm2043_vm5, %v1487_v27, %v2189_v35 }
 0x116   : > { %v16155_v25 = vpop.f32.mrf.mxu0  ;;  %v18085_v58 = vpack.c.bf16 %v2335_v49, %v2334_v53  ;;  %v18111_v49 = vld [vmem:[%s23707_s29] ss:$0 sm:$0xff] }
 0x117   : > { %v2190_v50 = vmul.f32 0.01, %v1492_v36  ;;  %vm2044_vm8 = vcmp.gt.f32.partialorder %v1492_v36, 0.0 }
 0x118   : > { %v1494_v29 = vpop.f32.mrf.mxu0  ;;  %v2903_v11 = vshll.u32 %v18085_v58, 16 }
 0x119   : > { %v1495_v32 = vadd.f32 %v17937_v38, %v1494_v29  ;;  %v2336_v60 = vsel %vm2044_vm8, %v1492_v36, %v2190_v50  ;;  %v16793_v36 = vld [vmem:[%s17809_s4 + $0x118] sm:$0xff]  }
 0x11a   : > { %v16156_v33 = vpop.f32.mrf.mxu0  ;;  %v18094_v12 = vpack.c.bf16 %v2336_v60, %v2336_v60  ;;  %v2905_v25 = vrot.slane %v2903_v11, 1 }
 0x11b   : > { %v2191_v41 = vmul.f32 0.01, %v1495_v32  ;;  %vm2045_vm7 = vcmp.gt.f32.partialorder %v1495_v32, 0.0  ;;  %v2901_v33 = vor.u32 %v2900_v20, %v2896_v24 }
 0x11c   : > { %v1499_v39 = vpop.f32.mrf.mxu0  ;;  %16254 = vmatmul.mubr.msk.bf16.gmra.mxu0 %vm1168_vm3, %v16790_v26  ;;  %v2911_v27 = vshll.u32 %v18094_v12, 16 }
 0x11d   : > { %v1500_v42 = vadd.f32 %v17937_v38, %v1499_v39  ;;  %16257 = vmatprep.mubr.msk.bf16.mxu0 %vm17677_vm2, %v23628_v1  ;;  %v2337_v54 = vsel %vm2045_vm7, %v1495_v32, %v2191_v41  ;;  %v2906_v40 = vsel %vm2874_vm14, %v2901_v33, %v2905_v25  ;;  %v2907_v41 = vshrl.u32 %v18085_v58, 16 }
 0x11e   : > { %v16159_v44 = vpop.f32.mrf.mxu0  ;;  %v2475_v62 = vpack.c.bf16 %v2337_v54, %v2336_v60 }
 0x11f   : > { %v2192_v56 = vmul.f32 0.01, %v1500_v42  ;;  %vm2046_vm9 = vcmp.gt.f32.partialorder %v1500_v42, 0.0 }
 0x120   : > { %v1502_v52 = vpop.f32.mrf.mxu0  ;;  %v2702_v15 = vunpack.c.h.b16 %v2475_v62 }
 0x121   : > { %v1503_v57 = vadd.f32 %v17937_v38, %v1502_v52  ;;  %v2338_v3 = vsel %vm2046_vm9, %v1500_v42, %v2192_v56  ;;  %v2913_v42 = vrot.slane %v2911_v27, 1  ;;  %v2909_v52 = vor.u32 %v2907_v41, %v2905_v25 }
 0x122   : > { %v16160_v59 = vpop.f32.mrf.mxu0 }
 0x123   : > { %vm2047_vm10 = vcmp.gt.f32.partialorder %v1503_v57, 0.0  ;;  %v2193_v61 = vmul.f32 0.01, %v1503_v57  ;;  %v2914_v62 = vsel %vm2874_vm14, %v2909_v52, %v2913_v42 }
 0x124   : > { %v1507_v0 = vpop.f32.mrf.mxu0  ;;  %16258 = vmatmul.mubr.msk.bf16.gmra.mxu0 %vm1168_vm3, %v16791_v45 }
 0x125   : > { %v2339_v4 = vsel %vm2047_vm10, %v1503_v57, %v2193_v61  ;;  %v1508_v5 = vadd.f32 %v17937_v38, %v1507_v0  ;;  %16261 = vmatprep.mubr.msk.bf16.mxu0 %vm17677_vm2, %v23628_v1 }
 0x126   : > { %v2476_v8 = vpack.c.bf16 %v2339_v4, %v2338_v3  ;;  %v16163_v9 = vpop.f32.mrf.mxu0 }
 0x127   : > { %v2194_v18 = vmul.f32 0.01, %v1508_v5  ;;  %vm2048_vm11 = vcmp.gt.f32.partialorder %v1508_v5, 0.0 }
 0x128   : > { %v2703_v16 = vunpack.c.l.b16 %v2476_v8  ;;  %v1510_v17 = vpop.f32.mrf.mxu0  ;;  %v2704_v44 = vunpack.c.h.b16 %v2476_v8 }
 0x129   : > { %v1511_v19 = vadd.f32 %v17937_v38, %v1510_v17  ;;  %v2340_v29 = vsel %vm2048_vm11, %v1508_v5, %v2194_v18 }
 0x12a   : > { %v16164_v22 = vpop.f32.mrf.mxu0  ;;  %v3284_v23 = vpack.c.b16 %v2703_v16, %v2702_v15  ;;  %v16794_v16 = vld [vmem:[%s17809_s4 + $0x120] sm:$0xff]  }
 0x12b   : > { %vm2049_vm12 = vcmp.gt.f32.partialorder %v1511_v19, 0.0  ;;  %v2195_v26 = vmul.f32 0.01, %v1511_v19 }
 0x12c   : > { %16262 = vmatmul.mubr.msk.bf16.gmra.mxu0 %vm1168_vm3, %v16792_v10  ;;  %3314 = vrot.lane.b32.xlu1 %v3284_v23, %s17679_s30  ;;  %v1515_v28 = vpop.f32.mrf.mxu0  ;;  %v3403_v37 = vshll.u32 %v3284_v23, 16  ;;  %v3665_v53 = vrot.slane %v3284_v23, 1  ;;  %v3401_v57 = vshrl.u32 %v3284_v23, 16 }
 0x12d   : > { %v2341_v31 = vsel %vm2049_vm12, %v1511_v19, %v2195_v26  ;;  %v1516_v32 = vadd.f32 %v17937_v38, %v1515_v28  ;;  %16265 = vmatprep.mubr.msk.bf16.mxu0 %vm17677_vm2, %v23628_v1 }
 0x12e   : > { %v2477_v34 = vpack.c.bf16 %v2341_v31, %v2340_v29  ;;  %v16167_v35 = vpop.f32.mrf.mxu0  ;;  %v15700_v39 = vpack.c.bf16 %v2341_v31, %v2341_v31  ;;  %v3405_v59 = vrot.slane %v3403_v37, 1 }
 0x12f   : > { %v2196_v38 = vmul.f32 0.01, %v1516_v32  ;;  %vm2050_vm13 = vcmp.gt.f32.partialorder %v1516_v32, 0.0 }
 0x130   : > { %v2705_v45 = vunpack.c.l.b16 %v2477_v34  ;;  %3159 = vrot.lane.b32.xlu1 %v2906_v40, %s17679_s30  ;;  %v1518_v47 = vpop.f32.mrf.mxu0  ;;  %v3416_v60 = vshll.u32 %v15700_v39, 16  ;;  %v3668_v4 = vrot.slane %v15700_v39, 1  ;;  %v3406_v20 = vor.u32 %v3405_v59, %v3401_v57  ;;  %v16795_v40 = vld [vmem:[%s17809_s4 + $0x128] sm:$0xff]  }
 0x131   : > { %v1519_v50 = vadd.f32 %v18111_v49, %v1518_v47  ;;  %v2342_v6 = vsel %vm2050_vm13, %v1516_v32, %v2196_v38 }
 0x132   : > { %v16168_v54 = vpop.f32.mrf.mxu0  ;;  %v3285_v56 = vpack.c.b16 %v2705_v45, %v2704_v44  ;;  %v3418_v24 = vrot.slane %v3416_v60, 1 }
 0x133   : > { %vm2051_vm1 = vcmp.gt.f32.partialorder %v1519_v50, 0.0  ;;  %v2197_v61 = vmul.f32 0.01, %v1519_v50 }
 0x134   : > { %16266 = vmatmul.mubr.msk.bf16.gmra.mxu0 %vm1168_vm3, %v16793_v36  ;;  %3161 = vrot.lane.b32.xlu1 %v2914_v62, %s17679_s30  ;;  %v1523_v0 = vpop.f32.mrf.mxu0  ;;  %v3666_v3 = vrot.slane %v3285_v56, 1  ;;  %v3408_v5 = vshll.u32 %v3285_v56, 16  ;;  %v3412_v10 = vshrl.u32 %v3285_v56, 16 }
 0x135   : > { %v2343_v8 = vsel %vm2051_vm1, %v1519_v50, %v2197_v61  ;;  %3316 = vrot.lane.b32.xlu0 %v3285_v56, %s17679_s30  ;;  %v1524_v9 = vadd.f32 %v18111_v49, %v1523_v0  ;;  %16269 = vmatprep.mubr.msk.bf16.mxu0 %vm17677_vm2, %v23628_v1 }
 0x136   : > { %v18121_v11 = vpack.c.bf16 %v2343_v8, %v2342_v6  ;;  %v16171_v15 = vpop.f32.mrf.mxu0  ;;  %v18125_v17 = vsel %vm3211_vm15, %v3666_v3, %v3668_v4  ;;  %v18128_v18 = vsel %vm3211_vm15, %v3665_v53, %v3666_v3  ;;  %v3410_v19 = vrot.slane %v3408_v5, 1  ;;  %v16798_v6 = vld [vmem:[%s17809_s4 + $0x130] sm:$0xff]  }
 0x137   : > { %v2198_v25 = vmul.f32 0.01, %v1524_v9  ;;  %vm2052_vm4 = vcmp.gt.f32.partialorder %v1524_v9, 0.0 }
 0x138   : > { %v1526_v22 = vpop.f32.mrf.mxu0  ;;  %v3414_v23 = vor.u32 %v3412_v10, %v3410_v19  ;;  %v18132_v27 = vsel %vm2874_vm14, %v3406_v20, %v3410_v19  ;;  %v2918_v29 = vshll.u32 %v18121_v11, 16  ;;  %v2916_v45 = vshrl.u32 %v18121_v11, 16 }
 0x139   : > { %v1527_v26 = vadd.f32 %v18111_v49, %v1526_v22  ;;  %23711 = vst [vmem:[#allocation6_spill] sm:$0xff] %v18132_v27  ;;  %v2344_v34 = vsel %vm2052_vm4, %v1524_v9, %v2198_v25 }
 0x13a   : > { %v16172_v28 = vpop.f32.mrf.mxu0  ;;  %v18136_v31 = vsel %vm2874_vm14, %v3414_v23, %v3418_v24  ;;  %v2920_v41 = vrot.slane %v2918_v29, 1 }
 0x13b   : > { %23712 = vst [vmem:[#allocation7_spill] sm:$0xff] %v18136_v31  ;;  %vm2053_vm5 = vcmp.gt.f32.partialorder %v1527_v26, 0.0  ;;  %v2199_v32 = vmul.f32 0.01, %v1527_v26 }
 0x13c   : > { %v1531_v33 = vpop.f32.mrf.mxu0  ;;  %16270 = vmatmul.mubr.msk.bf16.gmra.mxu0 %vm1168_vm3, %v16794_v16  ;;  %v2921_v54 = vor.u32 %v2920_v41, %v2916_v45 }
 0x13d   : > { %v2345_v35 = vsel %vm2053_vm5, %v1527_v26, %v2199_v32  ;;  %v1532_v36 = vadd.f32 %v18111_v49, %v1531_v33  ;;  %16273 = vmatprep.mubr.msk.bf16.mxu0 %vm17677_vm2, %v23628_v1  ;;  %v16801_v32 = vld [vmem:[%s17809_s4 + $0x138] sm:$0xff]  }
 0x13e   : > { %v18142_v37 = vpack.c.bf16 %v2345_v35, %v2344_v34  ;;  %v16175_v39 = vpop.f32.mrf.mxu0 }
 0x13f   : > { %vm2054_vm6 = vcmp.gt.f32.partialorder %v1532_v36, 0.0  ;;  %v2200_v42 = vmul.f32 0.01, %v1532_v36 }
 0x140   : > { %v1534_v44 = vpop.f32.mrf.mxu0  ;;  %v2923_v47 = vshll.u32 %v18142_v37, 16  ;;  %v2927_v60 = vshrl.u32 %v18142_v37, 16 }
 0x141   : > { %v2346_v38 = vsel %vm2054_vm6, %v1532_v36, %v2200_v42  ;;  %v1535_v50 = vadd.f32 %v18111_v49, %v1534_v44 }
 0x142   : > { %v18148_v52 = vpack.c.bf16 %v2346_v38, %v2346_v38  ;;  %v16176_v53 = vpop.f32.mrf.mxu0  ;;  %v2925_v56 = vrot.slane %v2923_v47, 1 }
 0x143   : > { %v2201_v62 = vmul.f32 0.01, %v1535_v50  ;;  %vm2055_vm7 = vcmp.gt.f32.partialorder %v1535_v50, 0.0 }
 0x144   : > { %v1539_v57 = vpop.f32.mrf.mxu0  ;;  %16274 = vmatmul.mubr.msk.bf16.gmra.mxu0 %vm1168_vm3, %v16795_v40  ;;  %v2926_v59 = vsel %vm2874_vm14, %v2921_v54, %v2925_v56  ;;  %v2931_v61 = vshll.u32 %v18148_v52, 16  ;;  %v2929_v4 = vor.u32 %v2927_v60, %v2925_v56  ;;  %v16804_v54 = vld [vmem:[%s17809_s4 + $0x140] sm:$0xff]  }
 0x145   : > { %v1540_v0 = vadd.f32 %v18111_v49, %v1539_v57  ;;  %3163 = vrot.lane.b32.xlu1 %v2926_v59, %s17679_s30  ;;  %16277 = vmatprep.mubr.msk.bf16.mxu0 %vm17677_vm2, %v23628_v1  ;;  %v2347_v10 = vsel %vm2055_vm7, %v1535_v50, %v2201_v62 }
 0x146   : > { %v16179_v3 = vpop.f32.mrf.mxu0  ;;  %v2933_v5 = vrot.slane %v2931_v61, 1  ;;  %v2480_v22 = vpack.c.bf16 %v2347_v10, %v2346_v38 }
 0x147   : > { %v2202_v15 = vmul.f32 0.01, %v1540_v0  ;;  %vm2056_vm8 = vcmp.gt.f32.partialorder %v1540_v0, 0.0 }
 0x148   : > { %v1542_v8 = vpop.f32.mrf.mxu0  ;;  %v2934_v9 = vsel %vm2874_vm14, %v2929_v4, %v2933_v5  ;;  %v2712_v33 = vunpack.c.h.b16 %v2480_v22 }
 0x149   : > { %v1543_v16 = vadd.f32 %v18111_v49, %v1542_v8  ;;  %3165 = vrot.lane.b32.xlu1 %v2934_v9, %s17679_s30  ;;  %v2348_v24 = vsel %vm2056_vm8, %v1540_v0, %v2202_v15 }
 0x14a   : > { %v16180_v19 = vpop.f32.mrf.mxu0 }
 0x14b   : > { %vm2057_vm9 = vcmp.gt.f32.partialorder %v1543_v16, 0.0  ;;  %v2203_v20 = vmul.f32 0.01, %v1543_v16 }
 0x14c   : > { %v1547_v23 = vpop.f32.mrf.mxu0  ;;  %16278 = vmatmul.mubr.msk.bf16.gmra.mxu0 %vm1168_vm3, %v16798_v6 }
 0x14d   : > { %v2349_v25 = vsel %vm2057_vm9, %v1543_v16, %v2203_v20  ;;  %v1548_v26 = vadd.f32 %v18111_v49, %v1547_v23  ;;  %16281 = vmatprep.mubr.msk.bf16.mxu0 %vm17677_vm2, %v23628_v1 }
 0x14e   : > { %v2481_v28 = vpack.c.bf16 %v2349_v25, %v2348_v24  ;;  %v16183_v29 = vpop.f32.mrf.mxu0 }
 0x14f   : > { %v2204_v36 = vmul.f32 0.01, %v1548_v26  ;;  %vm2058_vm10 = vcmp.gt.f32.partialorder %v1548_v26, 0.0  ;;  %v16807_v29 = vld [vmem:[%s17809_s4 + $0x148] sm:$0xff]  }
 0x150   : > { %v2713_v34 = vunpack.c.l.b16 %v2481_v28  ;;  %v1550_v35 = vpop.f32.mrf.mxu0  ;;  %v2714_v59 = vunpack.c.h.b16 %v2481_v28 }
 0x151   : > { %v1551_v39 = vadd.f32 %v18111_v49, %v1550_v35  ;;  %v2350_v45 = vsel %vm2058_vm10, %v1548_v26, %v2204_v36 }
 0x152   : > { %v16184_v40 = vpop.f32.mrf.mxu0  ;;  %v3286_v41 = vpack.c.b16 %v2713_v34, %v2712_v33 }
 0x153   : > { %vm2059_vm11 = vcmp.gt.f32.partialorder %v1551_v39, 0.0  ;;  %v2205_v42 = vmul.f32 0.01, %v1551_v39 }
 0x154   : > { %16282 = vmatmul.mubr.msk.bf16.gmra.mxu0 %vm1168_vm3, %v16801_v32  ;;  %3318 = vrot.lane.b32.xlu0 %v3286_v41, %s17679_s30  ;;  %v1555_v44 = vpop.f32.mrf.mxu0  ;;  %v3423_v56 = vshll.u32 %v3286_v41, 16  ;;  %v3670_v3 = vrot.slane %v3286_v41, 1  ;;  %v3421_v6 = vshrl.u32 %v3286_v41, 16 }
 0x155   : > { %v2351_v47 = vsel %vm2059_vm11, %v1551_v39, %v2205_v42  ;;  %v1556_v38 = vadd.f32 %v18111_v49, %v1555_v44  ;;  %16285 = vmatprep.mubr.msk.bf16.mxu0 %vm17677_vm2, %v23628_v1  ;;  %vm3818_vm11 = vcmask 523264  }
 0x156   : > { %v2482_v50 = vpack.c.bf16 %v2351_v47, %v2350_v45  ;;  %v16187_v53 = vpop.f32.mrf.mxu0  ;;  %v15701_v57 = vpack.c.bf16 %v2351_v47, %v2351_v47  ;;  %v3425_v8 = vrot.slane %v3423_v56, 1 }
 0x157   : > { %v2206_v62 = vmul.f32 0.01, %v1556_v38  ;;  %vm2060_vm12 = vcmp.gt.f32.partialorder %v1556_v38, 0.0 }
 0x158   : > { %v2715_v60 = vunpack.c.l.b16 %v2482_v50  ;;  %v1558_v61 = vpop.f32.mrf.mxu0  ;;  %v3436_v9 = vshll.u32 %v15701_v57, 16  ;;  %v3673_v19 = vrot.slane %v15701_v57, 1  ;;  %v3426_v35 = vor.u32 %v3425_v8, %v3421_v6 }
 0x159   : > { %v1559_v0 = vadd.f32 %v18111_v49, %v1558_v61  ;;  %v2352_v22 = vsel %vm2060_vm12, %v1556_v38, %v2206_v62 }
 0x15a   : > { %v16188_v4 = vpop.f32.mrf.mxu0  ;;  %v3287_v5 = vpack.c.b16 %v2715_v60, %v2714_v59  ;;  %v3438_v40 = vrot.slane %v3436_v9, 1 }
 0x15b   : > { %vm2061_vm13 = vcmp.gt.f32.partialorder %v1559_v0, 0.0  ;;  %v2207_v10 = vmul.f32 0.01, %v1559_v0 }
 0x15c   : > { %16286 = vmatmul.mubr.msk.bf16.gmra.mxu0 %vm1168_vm3, %v16804_v54  ;;  %3320 = vrot.lane.b32.xlu0 %v3287_v5, %s17679_s30  ;;  %v1563_v15 = vpop.f32.mrf.mxu0  ;;  %v3671_v16 = vrot.slane %v3287_v5, 1  ;;  %v3428_v20 = vshll.u32 %v3287_v5, 16  ;;  %v3432_v25 = vshrl.u32 %v3287_v5, 16 }
 0x15d   : > { %v2353_v23 = vsel %vm2061_vm13, %v1559_v0, %v2207_v10  ;;  %v1564_v24 = vadd.f32 %v18111_v49, %v1563_v15  ;;  %16289 = vmatprep.mubr.msk.bf16.mxu0 %vm17677_vm2, %v23628_v1 }
 0x15e   : > { %v18180_v26 = vpack.c.bf16 %v2353_v23, %v2352_v22  ;;  %v16191_v28 = vpop.f32.mrf.mxu0  ;;  %v18184_v32 = vsel %vm3211_vm15, %v3671_v16, %v3673_v19  ;;  %v18187_v33 = vsel %vm3211_vm15, %v3670_v3, %v3671_v16  ;;  %v3430_v34 = vrot.slane %v3428_v20, 1  ;;  %v16810_v3 = vld [vmem:[%s17809_s4 + $0x150] sm:$0xff]  }
 0x15f   : > { %v2208_v41 = vmul.f32 0.01, %v1564_v24  ;;  %vm2062_vm1 = vcmp.gt.f32.partialorder %v1564_v24, 0.0 }
 0x160   : > { %v1566_v36 = vpop.f32.mrf.mxu0  ;;  %v3434_v39 = vor.u32 %v3432_v25, %v3430_v34  ;;  %v18191_v44 = vsel %vm2874_vm14, %v3426_v35, %v3430_v34  ;;  %v2938_v47 = vshll.u32 %v18180_v26, 16  ;;  %v2936_v4 = vshrl.u32 %v18180_v26, 16 }
 0x161   : > { %v1567_v42 = vadd.f32 %v18111_v49, %v1566_v36  ;;  %23713 = vst [vmem:[#allocation8_spill] sm:$0xff] %v18191_v44  ;;  %v2354_v54 = vsel %vm2062_vm1, %v1564_v24, %v2208_v41 }
 0x162   : > { %v16192_v45 = vpop.f32.mrf.mxu0  ;;  %v18195_v38 = vsel %vm2874_vm14, %v3434_v39, %v3438_v40  ;;  %v2940_v61 = vrot.slane %v2938_v47, 1  ;;  %v16813_v39 = vld [vmem:[%s17809_s4 + $0x158] sm:$0xff]  }
 0x163   : > { %23714 = vst [vmem:[#allocation9_spill] sm:$0xff] %v18195_v38  ;;  %vm2063_vm4 = vcmp.gt.f32.partialorder %v1567_v42, 0.0  ;;  %v2209_v50 = vmul.f32 0.01, %v1567_v42 }
 0x164   : > { %v1571_v53 = vpop.f32.mrf.mxu0  ;;  %16290 = vmatmul.mubr.msk.bf16.gmra.mxu0 %vm1168_vm3, %v16807_v29  ;;  %v2941_v15 = vor.u32 %v2940_v61, %v2936_v4  ;;  %v16816_v4 = vld [vmem:[%s17809_s4 + $0x160] sm:$0xff]  }
 0x165   : > { %v2355_v56 = vsel %vm2063_vm4, %v1567_v42, %v2209_v50  ;;  %v1572_v57 = vadd.f32 %v18111_v49, %v1571_v53  ;;  %16293 = vmatprep.mubr.msk.bf16.mxu0 %vm17677_vm2, %v23628_v1 }
 0x166   : > { %v18201_v59 = vpack.c.bf16 %v2355_v56, %v2354_v54  ;;  %v16195_v60 = vpop.f32.mrf.mxu0 }
 0x167   : > { %vm2064_vm5 = vcmp.gt.f32.partialorder %v1572_v57, 0.0  ;;  %v2210_v62 = vmul.f32 0.01, %v1572_v57 }
 0x168   : > { %v1574_v0 = vpop.f32.mrf.mxu0  ;;  %v2943_v5 = vshll.u32 %v18201_v59, 16  ;;  %v2947_v22 = vshrl.u32 %v18201_v59, 16 }
 0x169   : > { %v2356_v6 = vsel %vm2064_vm5, %v1572_v57, %v2210_v62  ;;  %v1575_v8 = vadd.f32 %v18111_v49, %v1574_v0 }
 0x16a   : > { %v18207_v9 = vpack.c.bf16 %v2356_v6, %v2356_v6  ;;  %v16196_v10 = vpop.f32.mrf.mxu0  ;;  %v2945_v16 = vrot.slane %v2943_v5, 1 }
 0x16b   : > { %v2211_v24 = vmul.f32 0.01, %v1575_v8  ;;  %vm2065_vm6 = vcmp.gt.f32.partialorder %v1575_v8, 0.0 }
 0x16c   : > { %v1579_v19 = vpop.f32.mrf.mxu0  ;;  %16294 = vmatmul.mubr.msk.bf16.gmra.mxu0 %vm1168_vm3, %v16810_v3  ;;  %v2946_v20 = vsel %vm2874_vm14, %v2941_v15, %v2945_v16  ;;  %v2951_v23 = vshll.u32 %v18207_v9, 16  ;;  %v2949_v29 = vor.u32 %v2947_v22, %v2945_v16  ;;  %v3215_v15 = vrot.slane %v18029_v48, 1 }
 0x16d   : > { %v1580_v25 = vadd.f32 %v18111_v49, %v1579_v19  ;;  %3167 = vrot.lane.b32.xlu1 %v2946_v20, %s17679_s30  ;;  %16297 = vmatprep.mubr.msk.bf16.mxu0 %vm17677_vm2, %v23628_v1  ;;  %v2357_v40 = vsel %vm2065_vm6, %v1575_v8, %v2211_v24  ;;  %v23624_v20 = vrot.slane %v18024_v43, 1 }
 0x16e   : > { %v16199_v28 = vpop.f32.mrf.mxu0  ;;  %v2953_v34 = vrot.slane %v2951_v23, 1  ;;  %v2485_v50 = vpack.c.bf16 %v2357_v40, %v2356_v6 }
 0x16f   : > { %v2212_v41 = vmul.f32 0.01, %v1580_v25  ;;  %vm2066_vm7 = vcmp.gt.f32.partialorder %v1580_v25, 0.0 }
 0x170   : > { %v1582_v35 = vpop.f32.mrf.mxu0  ;;  %v2954_v36 = vsel %vm2874_vm14, %v2949_v29, %v2953_v34  ;;  %v2722_v62 = vunpack.c.h.b16 %v2485_v50  ;;  %v3216_v29 = vsel %vm3211_vm15, %v23624_v20, %v3215_v15 }
 0x171   : > { %v1583_v42 = vadd.f32 %v18111_v49, %v1582_v35  ;;  %3169 = vrot.lane.b32.xlu1 %v2954_v36, %s17679_s30  ;;  %v2358_v54 = vsel %vm2066_vm7, %v1580_v25, %v2212_v41 }
 0x172   : > { %v16200_v45 = vpop.f32.mrf.mxu0 }
 0x173   : > { %vm2067_vm8 = vcmp.gt.f32.partialorder %v1583_v42, 0.0  ;;  %v2213_v47 = vmul.f32 0.01, %v1583_v42 }
 0x174   : > { %v1587_v53 = vpop.f32.mrf.mxu0  ;;  %16298 = vmatmul.mubr.msk.bf16.gmra.mxu0 %vm1168_vm3, %v16813_v39 }
 0x175   : > { %v2359_v56 = vsel %vm2067_vm8, %v1583_v42, %v2213_v47  ;;  %v1588_v57 = vadd.f32 %v18111_v49, %v1587_v53  ;;  %16301 = vmatprep.mubr.msk.bf16.mxu0 %vm17677_vm2, %v23628_v1  ;;  %v16819_v42 = vld [vmem:[%s17809_s4 + $0x168] sm:$0xff]  }
 0x176   : > { %v2486_v60 = vpack.c.bf16 %v2359_v56, %v2358_v54  ;;  %v16203_v61 = vpop.f32.mrf.mxu0 }
 0x177   : > { %v2214_v5 = vmul.f32 0.01, %v1588_v57  ;;  %vm2068_vm9 = vcmp.gt.f32.partialorder %v1588_v57, 0.0 }
 0x178   : > { %v2723_v0 = vunpack.c.l.b16 %v2486_v60  ;;  %v1590_v3 = vpop.f32.mrf.mxu0  ;;  %v2724_v36 = vunpack.c.h.b16 %v2486_v60 }
 0x179   : > { %v1591_v8 = vadd.f32 %v18111_v49, %v1590_v3  ;;  %v2360_v22 = vsel %vm2068_vm9, %v1588_v57, %v2214_v5 }
 0x17a   : > { %v16204_v6 = vpop.f32.mrf.mxu0  ;;  %v3288_v10 = vpack.c.b16 %v2723_v0, %v2722_v62 }
 0x17b   : > { %vm2069_vm10 = vcmp.gt.f32.partialorder %v1591_v8, 0.0  ;;  %v2215_v16 = vmul.f32 0.01, %v1591_v8 }
 0x17c   : > { %16302 = vmatmul.mubr.msk.bf16.gmra.mxu0 %vm1168_vm3, %v16816_v4  ;;  %3322 = vrot.lane.b32.xlu0 %v3288_v10, %s17679_s30  ;;  %v1595_v19 = vpop.f32.mrf.mxu0  ;;  %v3443_v35 = vshll.u32 %v3288_v10, 16  ;;  %v3675_v56 = vrot.slane %v3288_v10, 1  ;;  %v3441_v57 = vshrl.u32 %v3288_v10, 16 }
 0x17d   : > { %v2361_v23 = vsel %vm2069_vm10, %v1591_v8, %v2215_v16  ;;  %v1596_v24 = vadd.f32 %v18111_v49, %v1595_v19  ;;  %16305 = vmatprep.mubr.msk.bf16.mxu0 %vm17677_vm2, %v23628_v1 }
 0x17e   : > { %v2487_v25 = vpack.c.bf16 %v2361_v23, %v2360_v22  ;;  %v3313_v48 = vpop.permute.xlu0 %3312  ;;  %v16207_v28 = vpop.f32.mrf.mxu0  ;;  %v15702_v40 = vpack.c.bf16 %v2361_v23, %v2361_v23  ;;  %v3445_v60 = vrot.slane %v3443_v35, 1 }
 0x17f   : > { %v3909_v34 = vsel %vm3818_vm11, %v3216_v29, %v3313_v48  ;;  %v2216_v45 = vmul.f32 0.01, %v1596_v24  ;;  %vm2070_vm12 = vcmp.gt.f32.partialorder %v1596_v24, 0.0  ;;  %v16820_v29 = vld [vmem:[%s17809_s4 + $0x170] sm:$0xff]  }
 0x180   : > { %v2725_v39 = vunpack.c.l.b16 %v2487_v25  ;;  %v1598_v41 = vpop.f32.mrf.mxu0  ;;  %4453 = vmatprep.mubr.bf16.mxu1 %v3909_v34  ;;  %v3456_v0 = vshll.u32 %v15702_v40, 16  ;;  %v3678_v5 = vrot.slane %v15702_v40, 1 }
 0x181   : > { %v1599_v47 = vadd.f32 %v18111_v49, %v1598_v41  ;;  %v2362_v6 = vsel %vm2070_vm12, %v1596_v24, %v2216_v45  ;;  %v3446_v24 = vor.u32 %v3445_v60, %v3441_v57 }
 0x182   : > { %v3158_v50 = vpop.permute.xlu0 %3157  ;;  %v16208_v53 = vpop.f32.mrf.mxu0  ;;  %v3289_v54 = vpack.c.b16 %v2725_v39, %v2724_v36  ;;  %v3458_v35 = vrot.slane %v3456_v0, 1 }
 0x183   : > { %vm2071_vm13 = vcmp.gt.f32.partialorder %v1599_v47, 0.0  ;;  %v2217_v61 = vmul.f32 0.01, %v1599_v47  ;;  %v3823_v62 = vsel %vm3818_vm11, %v18024_v43, %v3158_v50 }
 0x184   : > { %16306 = vmatmul.mubr.msk.bf16.gmra.mxu0 %vm1168_vm3, %v16819_v42  ;;  %4454 = vmatmul.mubr.bf16.vlgmr.msra.gmra.mxu1 %v3823_v62  ;;  %v1603_v3 = vpop.f32.mrf.mxu0  ;;  %v3676_v4 = vrot.slane %v3289_v54, 1  ;;  %v3448_v8 = vshll.u32 %v3289_v54, 16  ;;  %v3452_v16 = vshrl.u32 %v3289_v54, 16 }
 0x185   : > { %v2363_v15 = vsel %vm2071_vm13, %v1599_v47, %v2217_v61  ;;  %3324 = vrot.lane.b32.xlu0 %v3289_v54, %s17679_s30  ;;  %v1604_v10 = vadd.f32 %v18111_v49, %v1603_v3  ;;  %16309 = vmatprep.mubr.msk.bf16.mxu0 %vm17677_vm2, %v23628_v1  ;;  %v16821_v3 = vld [vmem:[%s17809_s4 + $0x178] sm:$0xff]  }
 0x186   : > { %v18248_v19 = vpack.c.bf16 %v2363_v15, %v2362_v6  ;;  %v16211_v22 = vpop.f32.mrf.mxu0  ;;  %v18251_v23 = vsel %vm3211_vm15, %v3676_v4, %v3678_v5  ;;  %v18254_v25 = vsel %vm3211_vm15, %v3675_v56, %v3676_v4  ;;  %v3450_v48 = vrot.slane %v3448_v8, 1 }
 0x187   : > { %v2218_v36 = vmul.f32 0.01, %v1604_v10  ;;  %vm2072_vm1 = vcmp.gt.f32.partialorder %v1604_v10, 0.0 }
 0x188   : > { %v1606_v28 = vpop.f32.mrf.mxu0  ;;  %v3454_v34 = vor.u32 %v3452_v16, %v3450_v48  ;;  %v18259_v40 = vsel %vm2874_vm14, %v3446_v24, %v3450_v48  ;;  %v2958_v42 = vshll.u32 %v18248_v19, 16  ;;  %v2956_v4 = vshrl.u32 %v18248_v19, 16 }
 0x189   : > { %v1607_v39 = vadd.f32 %v18111_v49, %v1606_v28  ;;  %23715 = vst [vmem:[#allocation10_spill] sm:$0xff] %v18259_v40  ;;  %v2364_v53 = vsel %vm2072_vm1, %v1604_v10, %v2218_v36 }
 0x18a   : > { %v16212_v41 = vpop.f32.mrf.mxu0  ;;  %v18263_v45 = vsel %vm2874_vm14, %v3454_v34, %v3458_v35  ;;  %v2960_v62 = vrot.slane %v2958_v42, 1 }
 0x18b   : > { %23716 = vst [vmem:[#allocation11_spill] sm:$0xff] %v18263_v45  ;;  %vm2073_vm4 = vcmp.gt.f32.partialorder %v1607_v39, 0.0  ;;  %v2219_v47 = vmul.f32 0.01, %v1607_v39 }
 0x18c   : > { %v1611_v50 = vpop.f32.mrf.mxu0  ;;  %16310 = vmatmul.mubr.msk.bf16.gmra.mxu0 %vm1168_vm3, %v16820_v29  ;;  %v2961_v16 = vor.u32 %v2960_v62, %v2956_v4  ;;  %v3218_v62 = vrot.slane %v18085_v58, 1  ;;  %v3217_v4 = vrot.slane %v18082_v51, 1 }
 0x18d   : > { %v2365_v54 = vsel %vm2073_vm4, %v1607_v39, %v2219_v47  ;;  %v1612_v56 = vadd.f32 %v18111_v49, %v1611_v50  ;;  %16313 = vmatprep.mubr.msk.bf16.mxu0 %vm17677_vm2, %v23628_v1  ;;  %v16822_v50 = vld [vmem:[%s17809_s4 + $0x180] sm:$0xff]  }
 0x18e   : > { %v18269_v57 = vpack.c.bf16 %v2365_v54, %v2364_v53  ;;  %v16215_v61 = vpop.f32.mrf.mxu0 }
 0x18f   : > { %vm2074_vm5 = vcmp.gt.f32.partialorder %v1612_v56, 0.0  ;;  %v2220_v60 = vmul.f32 0.01, %v1612_v56 }
 0x190   : > { %v1614_v0 = vpop.f32.mrf.mxu0  ;;  %v2963_v5 = vshll.u32 %v18269_v57, 16  ;;  %v2967_v28 = vshrl.u32 %v18269_v57, 16  ;;  %v3233_v38 = vrot.slane %v18269_v57, 1 }
 0x191   : > { %v2366_v8 = vsel %vm2074_vm5, %v1612_v56, %v2220_v60  ;;  %v1615_v6 = vadd.f32 %v18111_v49, %v1614_v0 }
 0x192   : > { %v18275_v15 = vpack.c.bf16 %v2366_v8, %v2366_v8  ;;  %v16216_v10 = vpop.f32.mrf.mxu0  ;;  %v2965_v22 = vrot.slane %v2963_v5, 1 }
 0x193   : > { %v2221_v34 = vmul.f32 0.01, %v1615_v6  ;;  %vm2075_vm6 = vcmp.gt.f32.partialorder %v1615_v6, 0.0 }
 0x194   : > { %v1619_v48 = vpop.f32.mrf.mxu0  ;;  %16314 = vmatmul.mubr.msk.bf16.gmra.mxu0 %vm1168_vm3, %v16821_v3  ;;  %v2966_v24 = vsel %vm2874_vm14, %v2961_v16, %v2965_v22  ;;  %v2971_v29 = vshll.u32 %v18275_v15, 16  ;;  %v2969_v39 = vor.u32 %v2967_v28, %v2965_v22 }
 0x195   : > { %v1620_v35 = vadd.f32 %v18111_v49, %v1619_v48  ;;  %3171 = vrot.lane.b32.xlu1 %v2966_v24, %s17679_s30  ;;  %16317 = vmatprep.mubr.msk.bf16.mxu0 %vm17677_vm2, %v23628_v1  ;;  %v2367_v53 = vsel %vm2075_vm6, %v1615_v6, %v2221_v34  ;;  %v18296_v24 = vsel %vm3211_vm15, %v3217_v4, %v3218_v62 }
 0x196   : > { %v16219_v36 = vpop.f32.mrf.mxu0  ;;  %v2973_v41 = vrot.slane %v2971_v29, 1  ;;  %v2490_v0 = vpack.c.bf16 %v2367_v53, %v2366_v8  ;;  %23717 = vst [vmem:[#allocation12_spill] sm:$0xff] %v18296_v24 }
 0x197   : > { %v2222_v54 = vmul.f32 0.01, %v1620_v35  ;;  %vm2076_vm7 = vcmp.gt.f32.partialorder %v1620_v35, 0.0 }
 0x198   : > { %v1622_v42 = vpop.f32.mrf.mxu0  ;;  %v2974_v47 = vsel %vm2874_vm14, %v2969_v39, %v2973_v41  ;;  %v2732_v28 = vunpack.c.h.b16 %v2490_v0 }
 0x199   : > { %v1623_v56 = vadd.f32 %v18111_v49, %v1622_v42  ;;  %3173 = vrot.lane.b32.xlu1 %v2974_v47, %s17679_s30  ;;  %v2368_v5 = vsel %vm2076_vm7, %v1620_v35, %v2222_v54  ;;  %v16823_v35 = vld [vmem:[%s17809_s4 + $0x188] sm:$0xff]  }
 0x19a   : > { %v16220_v61 = vpop.f32.mrf.mxu0 }
 0x19b   : > { %vm2077_vm8 = vcmp.gt.f32.partialorder %v1623_v56, 0.0  ;;  %v2223_v60 = vmul.f32 0.01, %v1623_v56 }
 0x19c   : > { %v1627_v3 = vpop.f32.mrf.mxu0  ;;  %16318 = vmatmul.mubr.msk.bf16.gmra.mxu0 %vm1168_vm3, %v16822_v50  ;;  %v3220_v50 = vrot.slane %v18094_v12, 1 }
 0x19d   : > { %v2369_v6 = vsel %vm2077_vm8, %v1623_v56, %v2223_v60  ;;  %v1628_v10 = vadd.f32 %v18111_v49, %v1627_v3  ;;  %16321 = vmatprep.mubr.msk.bf16.mxu0 %vm17677_vm2, %v23628_v1  ;;  %v18304_v49 = vld [vmem:[%s23707_s29] ss:$0 sm:$0xff] }
 0x19e   : > { %v2491_v16 = vpack.c.bf16 %v2369_v6, %v2368_v5  ;;  %v3315_v22 = vpop.permute.xlu1 %3314  ;;  %v16223_v48 = vpop.f32.mrf.mxu0 }
 0x19f   : > { %v3913_v8 = vsel %vm3818_vm11, %v18296_v24, %v3315_v22  ;;  %v2224_v36 = vmul.f32 0.01, %v1628_v10  ;;  %vm2078_vm9 = vcmp.gt.f32.partialorder %v1628_v10, 0.0 }
 0x1a0   : > { %v2733_v29 = vunpack.c.l.b16 %v2491_v16  ;;  %v1630_v34 = vpop.f32.mrf.mxu0  ;;  %4461 = vmatprep.mubr.bf16.mxu1 %v3913_v8  ;;  %v2734_v6 = vunpack.c.h.b16 %v2491_v16 }
 0x1a1   : > { %v1631_v39 = vadd.f32 %v18304_v49, %v1630_v34  ;;  %v2370_v61 = vsel %vm2078_vm9, %v1628_v10, %v2224_v36 }
 0x1a2   : > { %v3160_v41 = vpop.permute.xlu1 %3159  ;;  %v16224_v42 = vpop.f32.mrf.mxu0  ;;  %v3290_v47 = vpack.c.b16 %v2733_v29, %v2732_v28  ;;  %v16824_v29 = vld [vmem:[%s17809_s4 + $0x190] sm:$0xff]  }
 0x1a3   : > { %vm2079_vm10 = vcmp.gt.f32.partialorder %v1631_v39, 0.0  ;;  %v2225_v53 = vmul.f32 0.01, %v1631_v39  ;;  %v18310_v54 = vsel %vm3818_vm11, %v18082_v51, %v3160_v41  ;;  %v18319_v51 = vsel %vm3211_vm15, %v3218_v62, %v3220_v50 }
 0x1a4   : > { %23718 = vst [vmem:[#allocation13_spill] sm:$0xff] %v18310_v54  ;;  %16322 = vmatmul.mubr.msk.bf16.gmra.mxu0 %vm1168_vm3, %v16823_v35  ;;  %4462 = vmatmul.mubr.bf16.gmra.mxu1 %v18310_v54  ;;  %v1635_v56 = vpop.f32.mrf.mxu0  ;;  %23719 = vst [vmem:[#allocation14_spill] sm:$0xff] %v18319_v51  ;;  %v3463_v5 = vshll.u32 %v3290_v47, 16  ;;  %v3680_v41 = vrot.slane %v3290_v47, 1  ;;  %v3461_v62 = vshrl.u32 %v3290_v47, 16 }
 0x1a5   : > { %v2371_v60 = vsel %vm2079_vm10, %v1631_v39, %v2225_v53  ;;  %3326 = vrot.lane.b32.xlu0 %v3290_v47, %s17679_s30  ;;  %v1636_v0 = vadd.f32 %v18304_v49, %v1635_v56  ;;  %16325 = vmatprep.mubr.msk.bf16.mxu0 %vm17677_vm2, %v23628_v1 }
 0x1a6   : > { %v2492_v12 = vpack.c.bf16 %v2371_v60, %v2370_v61  ;;  %v16227_v3 = vpop.f32.mrf.mxu0  ;;  %v15703_v48 = vpack.c.bf16 %v2371_v60, %v2371_v60  ;;  %v3162_v10 = vpop.permute.xlu1 %3161  ;;  %v3465_v50 = vrot.slane %v3463_v5, 1 }
 0x1a7   : > { %v3317_v4 = vpop.permute.xlu0 %3316  ;;  %v2226_v34 = vmul.f32 0.01, %v1636_v0  ;;  %vm2080_vm12 = vcmp.gt.f32.partialorder %v1636_v0, 0.0  ;;  %v18327_v16 = vsel %vm3818_vm11, %v18085_v58, %v3162_v10 }
 0x1a8   : > { %v2735_v22 = vunpack.c.l.b16 %v2492_v12  ;;  %v1638_v8 = vpop.f32.mrf.mxu0  ;;  %v3917_v28 = vsel %vm3818_vm11, %v18319_v51, %v3317_v4  ;;  %23720 = vst [vmem:[#allocation15_spill] sm:$0xff] %v18327_v16  ;;  %v3476_v53 = vshll.u32 %v15703_v48, 16  ;;  %v3683_v60 = vrot.slane %v15703_v48, 1 }
 0x1a9   : > { %v1639_v35 = vadd.f32 %v18304_v49, %v1638_v8  ;;  %4469 = vmatprep.mubr.bf16.mxu1 %v3917_v28  ;;  %v2372_v3 = vsel %vm2080_vm12, %v1636_v0, %v2226_v34  ;;  %v3466_v0 = vor.u32 %v3465_v50, %v3461_v62  ;;  %v16825_v28 = vld [vmem:[%s17809_s4 + $0x198] sm:$0xff]  }
 0x1aa   : > { %v16228_v36 = vpop.f32.mrf.mxu0  ;;  %v3291_v39 = vpack.c.b16 %v2735_v22, %v2734_v6  ;;  %v3478_v34 = vrot.slane %v3476_v53, 1 }
 0x1ab   : > { %vm2081_vm13 = vcmp.gt.f32.partialorder %v1639_v35, 0.0  ;;  %v2227_v42 = vmul.f32 0.01, %v1639_v35 }
 0x1ac   : > { %16326 = vmatmul.mubr.msk.bf16.gmra.mxu0 %vm1168_vm3, %v16824_v29  ;;  %4470 = vmatmul.mubr.bf16.gmra.mxu1 %v18327_v16  ;;  %v1643_v56 = vpop.f32.mrf.mxu0  ;;  %v3681_v61 = vrot.slane %v3291_v39, 1  ;;  %v3468_v12 = vshll.u32 %v3291_v39, 16  ;;  %v3472_v58 = vshrl.u32 %v3291_v39, 16 }
 0x1ad   : > { %v2373_v47 = vsel %vm2081_vm13, %v1639_v35, %v2227_v42  ;;  %3328 = vrot.lane.b32.xlu0 %v3291_v39, %s17679_s30  ;;  %v1644_v4 = vadd.f32 %v18304_v49, %v1643_v56  ;;  %16329 = vmatprep.mubr.msk.bf16.mxu0 %vm17677_vm2, %v23628_v1 }
 0x1ae   : > { %v18336_v5 = vpack.c.bf16 %v2373_v47, %v2372_v3  ;;  %v16231_v6 = vpop.f32.mrf.mxu0  ;;  %v18339_v22 = vsel %vm3211_vm15, %v3681_v61, %v3683_v60  ;;  %v18342_v48 = vsel %vm3211_vm15, %v3680_v41, %v3681_v61  ;;  %v3470_v10 = vrot.slane %v3468_v12, 1 }
 0x1af   : > { %v2228_v35 = vmul.f32 0.01, %v1644_v4  ;;  %vm2082_vm1 = vcmp.gt.f32.partialorder %v1644_v4, 0.0 }
 0x1b0   : > { %v1646_v8 = vpop.f32.mrf.mxu0  ;;  %v3474_v29 = vor.u32 %v3472_v58, %v3470_v10  ;;  %v18347_v39 = vsel %vm2874_vm14, %v3466_v0, %v3470_v10  ;;  %v2978_v56 = vshll.u32 %v18336_v5, 16  ;;  %v16826_v10 = vld [vmem:[%s17809_s4 + $0x1a0] sm:$0xff]   ;;  %v2976_v0 = vshrl.u32 %v18336_v5, 16 }
 0x1b1   : > { %v1647_v36 = vadd.f32 %v18304_v49, %v1646_v8  ;;  %23721 = vst [vmem:[#allocation16_spill] sm:$0xff] %v18347_v39  ;;  %v2374_v53 = vsel %vm2082_vm1, %v1644_v4, %v2228_v35 }
 0x1b2   : > { %v16232_v42 = vpop.f32.mrf.mxu0  ;;  %v18351_v41 = vsel %vm2874_vm14, %v3474_v29, %v3478_v34  ;;  %v2980_v47 = vrot.slane %v2978_v56, 1 }
 0x1b3   : > { %23722 = vst [vmem:[#allocation17_spill] sm:$0xff] %v18351_v41  ;;  %vm2083_vm4 = vcmp.gt.f32.partialorder %v1647_v36, 0.0  ;;  %v2229_v62 = vmul.f32 0.01, %v1647_v36 }
 0x1b4   : > { %v1651_v50 = vpop.f32.mrf.mxu0  ;;  %16330 = vmatmul.mubr.msk.bf16.gmra.mxu0 %vm1168_vm3, %v16825_v28  ;;  %v2981_v35 = vor.u32 %v2980_v47, %v2976_v0 }
 0x1b5   : > { %v2375_v61 = vsel %vm2083_vm4, %v1647_v36, %v2229_v62  ;;  %v1652_v60 = vadd.f32 %v18304_v49, %v1651_v50  ;;  %16333 = vmatprep.mubr.msk.bf16.mxu0 %vm17677_vm2, %v23628_v1 }
 0x1b6   : > { %v18357_v12 = vpack.c.bf16 %v2375_v61, %v2374_v53  ;;  %v16235_v3 = vpop.f32.mrf.mxu0 }
 0x1b7   : > { %vm2084_vm5 = vcmp.gt.f32.partialorder %v1652_v60, 0.0  ;;  %v2230_v58 = vmul.f32 0.01, %v1652_v60 }
 0x1b8   : > { %v1654_v6 = vpop.f32.mrf.mxu0  ;;  %v2983_v8 = vshll.u32 %v18357_v12, 16  ;;  %v2987_v62 = vshrl.u32 %v18357_v12, 16 }
 0x1b9   : > { %v2376_v28 = vsel %vm2084_vm5, %v1652_v60, %v2230_v58  ;;  %v1655_v4 = vadd.f32 %v18304_v49, %v1654_v6 }
 0x1ba   : > { %v18363_v29 = vpack.c.bf16 %v2376_v28, %v2376_v28  ;;  %v16236_v34 = vpop.f32.mrf.mxu0  ;;  %v2985_v36 = vrot.slane %v2983_v8, 1 }
 0x1bb   : > { %v2231_v53 = vmul.f32 0.01, %v1655_v4  ;;  %vm2085_vm6 = vcmp.gt.f32.partialorder %v1655_v4, 0.0 }
 0x1bc   : > { %v1659_v42 = vpop.f32.mrf.mxu0  ;;  %16334 = vmatmul.mubr.msk.bf16.gmra.mxu0 %vm1168_vm3, %v16826_v10  ;;  %v2986_v56 = vsel %vm2874_vm14, %v2981_v35, %v2985_v36  ;;  %v2991_v50 = vshll.u32 %v18363_v29, 16  ;;  %v2989_v3 = vor.u32 %v2987_v62, %v2985_v36  ;;  %v16827_v10 = vld [vmem:[%s17809_s4 + $0x1a8] sm:$0xff]   ;;  %v3222_v36 = vrot.slane %v18121_v11, 1  ;;  %v3164_v62 = vpop.permute.xlu1 %3163 }
 0x1bd   : > { %v1660_v61 = vadd.f32 %v18304_v49, %v1659_v42  ;;  %3175 = vrot.lane.b32.xlu1 %v2986_v56, %s17679_s30  ;;  %16337 = vmatprep.mubr.msk.bf16.mxu0 %vm17677_vm2, %v23628_v1  ;;  %v2377_v0 = vsel %vm2085_vm6, %v1655_v4, %v2231_v53  ;;  %v3223_v42 = vrot.slane %v18142_v37, 1 }
 0x1be   : > { %v16239_v60 = vpop.f32.mrf.mxu0  ;;  %v2993_v47 = vrot.slane %v2991_v50, 1  ;;  %v2495_v20 = vpack.c.bf16 %v2377_v0, %v2376_v28 }
 0x1bf   : > { %v2232_v8 = vmul.f32 0.01, %v1660_v61  ;;  %vm2086_vm7 = vcmp.gt.f32.partialorder %v1660_v61, 0.0 }
 0x1c0   : > { %v1662_v58 = vpop.f32.mrf.mxu0  ;;  %v2994_v6 = vsel %vm2874_vm14, %v2989_v3, %v2993_v47 }
 0x1c1   : > { %v1663_v34 = vadd.f32 %v18304_v49, %v1662_v58  ;;  %3177 = vrot.lane.b32.xlu1 %v2994_v6, %s17679_s30  ;;  %v2378_v4 = vsel %vm2086_vm7, %v1660_v61, %v2232_v8  ;;  %v18384_v6 = vsel %vm3211_vm15, %v3222_v36, %v3223_v42  ;;  %v18390_v61 = vsel %vm3818_vm11, %v18121_v11, %v3164_v62  ;;  %v16828_v8 = vld [vmem:[%s17809_s4 + $0x1b0] sm:$0xff]   ;;  %v3166_v11 = vpop.permute.xlu1 %3165 }
 0x1c2   : > { %v16240_v35 = vpop.f32.mrf.mxu0  ;;  %23723 = vst [vmem:[#allocation18_spill] sm:$0xff] %v18384_v6  ;;  %23724 = vst [vmem:[#allocation19_spill] sm:$0xff] %v18390_v61 }
 0x1c3   : > { %vm2087_vm8 = vcmp.gt.f32.partialorder %v1663_v34, 0.0  ;;  %v2233_v56 = vmul.f32 0.01, %v1663_v34 }
 0x1c4   : > { %v1667_v60 = vpop.f32.mrf.mxu0  ;;  %16338 = vmatmul.mubr.msk.bf16.gmra.mxu0 %vm1168_vm3, %v16827_v10  ;;  %v2742_v10 = vunpack.c.h.b16 %v2495_v20 }
 0x1c5   : > { %v2379_v50 = vsel %vm2087_vm8, %v1663_v34, %v2233_v56  ;;  %v1668_v53 = vadd.f32 %v18304_v49, %v1667_v60  ;;  %16341 = vmatprep.mubr.msk.bf16.mxu0 %vm17677_vm2, %v23628_v1  ;;  %v3225_v60 = vrot.slane %v18148_v52, 1 }
 0x1c6   : > { %v2496_v3 = vpack.c.bf16 %v2379_v50, %v2378_v4  ;;  %v3319_v47 = vpop.permute.xlu0 %3318  ;;  %v16243_v58 = vpop.f32.mrf.mxu0 }
 0x1c7   : > { %v3921_v28 = vsel %vm3818_vm11, %v18384_v6, %v3319_v47  ;;  %v2234_v34 = vmul.f32 0.01, %v1668_v53  ;;  %vm2088_vm9 = vcmp.gt.f32.partialorder %v1668_v53, 0.0 }
 0x1c8   : > { %v2743_v0 = vunpack.c.l.b16 %v2496_v3  ;;  %v1670_v35 = vpop.f32.mrf.mxu0  ;;  %4477 = vmatprep.mubr.bf16.mxu1 %v3921_v28 }
 0x1c9   : > { %v1671_v56 = vadd.f32 %v18304_v49, %v1670_v35  ;;  %4478 = vmatmul.mubr.bf16.gmra.mxu1 %v18390_v61  ;;  %v2380_v62 = vsel %vm2088_vm9, %v1668_v53, %v2234_v34 }
 0x1ca   : > { %v16244_v36 = vpop.f32.mrf.mxu0  ;;  %v3292_v4 = vpack.c.b16 %v2743_v0, %v2742_v10  ;;  %v18402_v10 = vsel %vm3211_vm15, %v3223_v42, %v3225_v60 }
 0x1cb   : > { %vm2089_vm10 = vcmp.gt.f32.partialorder %v1671_v56, 0.0  ;;  %v2235_v20 = vmul.f32 0.01, %v1671_v56  ;;  %23725 = vst [vmem:[#allocation20_spill] sm:$0xff] %v18402_v10  ;;  %v2744_v36 = vunpack.c.h.b16 %v2496_v3 }
 0x1cc   : > { %16342 = vmatmul.mubr.msk.bf16.gmra.mxu0 %vm1168_vm3, %v16828_v8  ;;  %3330 = vrot.lane.b32.xlu0 %v3292_v4, %s17679_s30  ;;  %v1675_v50 = vpop.f32.mrf.mxu0  ;;  %v3483_v8 = vshll.u32 %v3292_v4, 16 }
 0x1cd   : > { %v2381_v47 = vsel %vm2089_vm10, %v1671_v56, %v2235_v20  ;;  %v1676_v58 = vadd.f32 %v18304_v49, %v1675_v50  ;;  %16345 = vmatprep.mubr.msk.bf16.mxu0 %vm17677_vm2, %v23628_v1  ;;  %v18408_v56 = vsel %vm3818_vm11, %v18142_v37, %v3166_v11  ;;  %v16829_v20 = vld [vmem:[%s17809_s4 + $0x1b8] sm:$0xff]  }
 0x1ce   : > { %v2497_v52 = vpack.c.bf16 %v2381_v47, %v2380_v62  ;;  %v3321_v28 = vpop.permute.xlu0 %3320  ;;  %v16247_v35 = vpop.f32.mrf.mxu0  ;;  %v15704_v53 = vpack.c.bf16 %v2381_v47, %v2381_v47  ;;  %23726 = vst [vmem:[#allocation21_spill] sm:$0xff] %v18408_v56  ;;  %v3485_v47 = vrot.slane %v3483_v8, 1 }
 0x1cf   : > { %v3925_v0 = vsel %vm3818_vm11, %v18402_v10, %v3321_v28  ;;  %v2236_v50 = vmul.f32 0.01, %v1676_v58  ;;  %vm2090_vm12 = vcmp.gt.f32.partialorder %v1676_v58, 0.0  ;;  %v3685_v28 = vrot.slane %v3292_v4, 1 }
 0x1d0   : > { %v2745_v7 = vunpack.c.l.b16 %v2497_v52  ;;  %v1678_v34 = vpop.f32.mrf.mxu0  ;;  %4485 = vmatprep.mubr.bf16.mxu1 %v3925_v0  ;;  %v3481_v52 = vshrl.u32 %v3292_v4, 16  ;;  %v3496_v35 = vshll.u32 %v15704_v53, 16  ;;  %v3688_v0 = vrot.slane %v15704_v53, 1 }
 0x1d1   : > { %v1679_v62 = vadd.f32 %v18304_v49, %v1678_v34  ;;  %4486 = vmatmul.mubr.bf16.gmra.mxu1 %v18408_v56  ;;  %v2382_v30 = vsel %vm2090_vm12, %v1676_v58, %v2236_v50  ;;  %v16830_v58 = vld [vmem:[%s17809_s4 + $0x1c0] sm:$0xff]  }
 0x1d2   : > { %v16248_v42 = vpop.f32.mrf.mxu0  ;;  %v3293_v60 = vpack.c.b16 %v2745_v7, %v2744_v36  ;;  %v23727_v7 = vmov 0.0   ;;  %v3486_v53 = vor.u32 %v3485_v47, %v3481_v52 }
 0x1d3   : > { %vm2091_vm13 = vcmp.gt.f32.partialorder %v1679_v62, 0.0  ;;  %v2237_v3 = vmul.f32 0.01, %v1679_v62 }
 0x1d4   : > { %16346 = vmatmul.mubr.msk.bf16.gmra.mxu0 %vm1168_vm3, %v16829_v20  ;;  %3332 = vrot.lane.b32.xlu0 %v3293_v60, %s17679_s30  ;;  %v1683_v37 = vpop.f32.mrf.mxu0  ;;  %v3686_v11 = vrot.slane %v3293_v60, 1  ;;  %v3488_v34 = vshll.u32 %v3293_v60, 16  ;;  %v3492_v36 = vshrl.u32 %v3293_v60, 16 }
 0x1d5   : > { %v2383_v1 = vsel %vm2091_vm13, %v1679_v62, %v2237_v3  ;;  %v1684_v42 = vadd.f32 %v18304_v49, %v1683_v37  ;;  %16349 = vmatprep.mubr.msk.bf16.mxu0 %vm17677_vm2, %v23727_v7  ;;  %v3498_v62 = vrot.slane %v3496_v35, 1 }
 0x1d6   : > { %v18418_v4 = vpack.c.bf16 %v2383_v1, %v2382_v30  ;;  %v16251_v8 = vpop.f32.mrf.mxu0  ;;  %v18421_v20 = vsel %vm3211_vm15, %v3686_v11, %v3688_v0  ;;  %v18424_v10 = vsel %vm3211_vm15, %v3685_v28, %v3686_v11  ;;  %v3490_v6 = vrot.slane %v3488_v34, 1 }
 0x1d7   : > { %v2238_v3 = vmul.f32 0.01, %v1684_v42  ;;  %vm2092_vm1 = vcmp.gt.f32.partialorder %v1684_v42, 0.0 }
 0x1d8   : > { %v1686_v51 = vpop.f32.mrf.mxu0  ;;  %v3494_v50 = vor.u32 %v3492_v36, %v3490_v6  ;;  %v18429_v60 = vsel %vm2874_vm14, %v3486_v53, %v3490_v6  ;;  %v2998_v30 = vshll.u32 %v18418_v4, 16  ;;  %v16831_v53 = vld [vmem:[%s17809_s4 + $0x1c8] sm:$0xff]  }
 0x1d9   : > { %v1687_v37 = vadd.f32 %v18304_v49, %v1686_v51  ;;  %23728 = vst [vmem:[#allocation22_spill] sm:$0xff] %v18429_v60  ;;  %v2384_v35 = vsel %vm2092_vm1, %v1684_v42, %v2238_v3 }
 0x1da   : > { %v16252_v1 = vpop.f32.mrf.mxu0  ;;  %v18433_v28 = vsel %vm2874_vm14, %v3494_v50, %v3498_v62  ;;  %v3000_v34 = vrot.slane %v2998_v30, 1  ;;  %v2996_v50 = vshrl.u32 %v18418_v4, 16 }
 0x1db   : > { %23729 = vst [vmem:[#allocation23_spill] sm:$0xff] %v18433_v28  ;;  %vm2093_vm4 = vcmp.gt.f32.partialorder %v1687_v37, 0.0  ;;  %v2239_v52 = vmul.f32 0.01, %v1687_v37 }
 0x1dc   : > { %v1691_v47 = vpop.f32.mrf.mxu0  ;;  %16350 = vmatmul.mubr.msk.bf16.gmra.mxu0 %vm1168_vm3, %v16830_v58  ;;  %v3001_v1 = vor.u32 %v3000_v34, %v2996_v50 }
 0x1dd   : > { %v2385_v11 = vsel %vm2093_vm4, %v1687_v37, %v2239_v52  ;;  %v1692_v51 = vadd.f32 %v18304_v49, %v1691_v47  ;;  %16353 = vmatprep.mubr.msk.bf16.mxu0 %vm17677_vm2, %v23727_v7 }
 0x1de   : > { %v18439_v6 = vpack.c.bf16 %v2385_v11, %v2384_v35  ;;  %v16255_v0 = vpop.f32.mrf.mxu0 }
 0x1df   : > { %vm2094_vm5 = vcmp.gt.f32.partialorder %v1692_v51, 0.0  ;;  %v2240_v36 = vmul.f32 0.01, %v1692_v51 }
 0x1e0   : > { %v1694_v8 = vpop.f32.mrf.mxu0  ;;  %v3003_v62 = vshll.u32 %v18439_v6, 16  ;;  %v3007_v35 = vshrl.u32 %v18439_v6, 16 }
 0x1e1   : > { %v2386_v58 = vsel %vm2094_vm5, %v1692_v51, %v2240_v36  ;;  %v1695_v42 = vadd.f32 %v18304_v49, %v1694_v8 }
 0x1e2   : > { %v18445_v3 = vpack.c.bf16 %v2386_v58, %v2386_v58  ;;  %v16256_v37 = vpop.f32.mrf.mxu0  ;;  %v3005_v52 = vrot.slane %v3003_v62, 1  ;;  %v16832_v62 = vld [vmem:[%s17809_s4 + $0x1d0] sm:$0xff]  }
 0x1e3   : > { %v2241_v0 = vmul.f32 0.01, %v1695_v42  ;;  %vm2095_vm6 = vcmp.gt.f32.partialorder %v1695_v42, 0.0 }
 0x1e4   : > { %v1699_v47 = vpop.f32.mrf.mxu0  ;;  %16354 = vmatmul.mubr.msk.bf16.gmra.mxu0 %vm1168_vm3, %v16831_v53  ;;  %v3006_v30 = vsel %vm2874_vm14, %v3001_v1, %v3005_v52  ;;  %v3011_v11 = vshll.u32 %v18445_v3, 16  ;;  %v3009_v36 = vor.u32 %v3007_v35, %v3005_v52  ;;  %v3227_v52 = vrot.slane %v18180_v26, 1  ;;  %v3168_v35 = vpop.permute.xlu1 %3167 }
 0x1e5   : > { %v1700_v51 = vadd.f32 %v18304_v49, %v1699_v47  ;;  %3179 = vrot.lane.b32.xlu1 %v3006_v30, %s17679_s30  ;;  %16357 = vmatprep.mubr.msk.bf16.mxu0 %vm17677_vm2, %v23727_v7  ;;  %v2387_v37 = vsel %vm2095_vm6, %v1695_v42, %v2241_v0  ;;  %v3228_v30 = vrot.slane %v18201_v59, 1 }
 0x1e6   : > { %v16259_v34 = vpop.f32.mrf.mxu0  ;;  %v3013_v8 = vrot.slane %v3011_v11, 1  ;;  %v2500_v41 = vpack.c.bf16 %v2387_v37, %v2386_v58 }
 0x1e7   : > { %v2242_v1 = vmul.f32 0.01, %v1700_v51  ;;  %vm2096_vm7 = vcmp.gt.f32.partialorder %v1700_v51, 0.0 }
 0x1e8   : > { %v1702_v50 = vpop.f32.mrf.mxu0  ;;  %v3014_v53 = vsel %vm2874_vm14, %v3009_v36, %v3013_v8 }
 0x1e9   : > { %v1703_v24 = vadd.f32 %v18304_v49, %v1702_v50  ;;  %3181 = vrot.lane.b32.xlu1 %v3014_v53, %s17679_s30  ;;  %v2388_v42 = vsel %vm2096_vm7, %v1700_v51, %v2242_v1  ;;  %v18466_v53 = vsel %vm3211_vm15, %v3227_v52, %v3228_v30 }
 0x1ea   : > { %v16260_v47 = vpop.f32.mrf.mxu0  ;;  %23730 = vst [vmem:[#allocation24_spill] sm:$0xff] %v18466_v53 }
 0x1eb   : > { %vm2097_vm8 = vcmp.gt.f32.partialorder %v1703_v24, 0.0  ;;  %v2243_v60 = vmul.f32 0.01, %v1703_v24 }
 0x1ec   : > { %v1707_v34 = vpop.f32.mrf.mxu0  ;;  %16358 = vmatmul.mubr.msk.bf16.gmra.mxu0 %vm1168_vm3, %v16832_v62  ;;  %v2752_v62 = vunpack.c.h.b16 %v2500_v41 }
 0x1ed   : > { %v2389_v11 = vsel %vm2097_vm8, %v1703_v24, %v2243_v60  ;;  %v1708_v0 = vadd.f32 %v18304_v49, %v1707_v34  ;;  %16361 = vmatprep.mubr.msk.bf16.mxu0 %vm17677_vm2, %v23727_v7  ;;  %v18472_v24 = vsel %vm3818_vm11, %v18180_v26, %v3168_v35  ;;  %v16833_v60 = vld [vmem:[%s17809_s4 + $0x1d8] sm:$0xff]  }
 0x1ee   : > { %v2501_v36 = vpack.c.bf16 %v2389_v11, %v2388_v42  ;;  %v3323_v8 = vpop.permute.xlu0 %3322  ;;  %v16263_v50 = vpop.f32.mrf.mxu0  ;;  %23731 = vst [vmem:[#allocation25_spill] sm:$0xff] %v18472_v24  ;;  %v3230_v42 = vrot.slane %v18207_v9, 1 }
 0x1ef   : > { %v3929_v58 = vsel %vm3818_vm11, %v18466_v53, %v3323_v8  ;;  %v2244_v51 = vmul.f32 0.01, %v1708_v0  ;;  %vm2098_vm9 = vcmp.gt.f32.partialorder %v1708_v0, 0.0  ;;  %v3170_v50 = vpop.permute.xlu1 %3169 }
 0x1f0   : > { %v2753_v37 = vunpack.c.l.b16 %v2501_v36  ;;  %v1710_v47 = vpop.f32.mrf.mxu0  ;;  %4493 = vmatprep.mubr.bf16.mxu1 %v3929_v58  ;;  %v18484_v9 = vsel %vm3211_vm15, %v3228_v30, %v3230_v42 }
 0x1f1   : > { %v1711_v1 = vadd.f32 %v18304_v49, %v1710_v47  ;;  %4494 = vmatmul.mubr.bf16.gmra.mxu1 %v18472_v24  ;;  %v2390_v26 = vsel %vm2098_vm9, %v1708_v0, %v2244_v51  ;;  %23732 = vst [vmem:[#allocation26_spill] sm:$0xff] %v18484_v9  ;;  %v16834_v51 = vld [vmem:[%s17809_s4 + $0x1e0] sm:$0xff]  }
 0x1f2   : > { %v16264_v34 = vpop.f32.mrf.mxu0  ;;  %v3294_v52 = vpack.c.b16 %v2753_v37, %v2752_v62 }
 0x1f3   : > { %vm2099_vm10 = vcmp.gt.f32.partialorder %v1711_v1, 0.0  ;;  %v2245_v41 = vmul.f32 0.01, %v1711_v1 }
 0x1f4   : > { %16362 = vmatmul.mubr.msk.bf16.gmra.mxu0 %vm1168_vm3, %v16833_v60  ;;  %3334 = vrot.lane.b32.xlu0 %v3294_v52, %s17679_s30  ;;  %v1715_v11 = vpop.f32.mrf.mxu0  ;;  %v3503_v47 = vshll.u32 %v3294_v52, 16  ;;  %v2754_v60 = vunpack.c.h.b16 %v2501_v36  ;;  %v3690_v42 = vrot.slane %v3294_v52, 1 }
 0x1f5   : > { %v2391_v35 = vsel %vm2099_vm10, %v1711_v1, %v2245_v41  ;;  %v1716_v8 = vadd.f32 %v18304_v49, %v1715_v11  ;;  %16365 = vmatprep.mubr.msk.bf16.mxu0 %vm17677_vm2, %v23727_v7  ;;  %v18492_v11 = vsel %vm3818_vm11, %v18201_v59, %v3170_v50 }
 0x1f6   : > { %v2502_v58 = vpack.c.bf16 %v2391_v35, %v2390_v26  ;;  %v16267_v62 = vpop.f32.mrf.mxu0  ;;  %v15705_v53 = vpack.c.bf16 %v2391_v35, %v2391_v35  ;;  %23733 = vst [vmem:[#allocation27_spill] sm:$0xff] %v18492_v11  ;;  %v3501_v35 = vshrl.u32 %v3294_v52, 16 }
 0x1f7   : > { %v3325_v37 = vpop.permute.xlu0 %3324  ;;  %v2246_v1 = vmul.f32 0.01, %v1716_v8  ;;  %vm2100_vm12 = vcmp.gt.f32.partialorder %v1716_v8, 0.0 }
 0x1f8   : > { %v2755_v34 = vunpack.c.l.b16 %v2502_v58  ;;  %v1718_v39 = vpop.f32.mrf.mxu0  ;;  %v3933_v0 = vsel %vm3818_vm11, %v18484_v9, %v3325_v37  ;;  %v3505_v58 = vrot.slane %v3503_v47, 1  ;;  %v3516_v62 = vshll.u32 %v15705_v53, 16 }
 0x1f9   : > { %v1719_v41 = vadd.f32 %v18304_v49, %v1718_v39  ;;  %4501 = vmatprep.mubr.bf16.mxu1 %v3933_v0  ;;  %v3693_v59 = vrot.slane %v15705_v53, 1  ;;  %v2392_v0 = vsel %vm2100_vm12, %v1716_v8, %v2246_v1  ;;  %v16835_v8 = vld [vmem:[%s17809_s4 + $0x1e8] sm:$0xff]  }
 0x1fa   : > { %4502 = vmatmul.mubr.bf16.gmra.mxu1 %v18492_v11  ;;  %v16268_v30 = vpop.f32.mrf.mxu0  ;;  %v3295_v36 = vpack.c.b16 %v2755_v34, %v2754_v60  ;;  %v3506_v45 = vor.u32 %v3505_v58, %v3501_v35 }
 0x1fb   : > { %vm2101_vm13 = vcmp.gt.f32.partialorder %v1719_v41, 0.0  ;;  %v2247_v26 = vmul.f32 0.01, %v1719_v41 }
 0x1fc   : > { %16366 = vmatmul.mubr.msk.bf16.gmra.mxu0 %vm1168_vm3, %v16834_v51  ;;  %3336 = vrot.lane.b32.xlu0 %v3295_v36, %s17679_s30  ;;  %v1723_v39 = vpop.f32.mrf.mxu0  ;;  %v3691_v37 = vrot.slane %v3295_v36, 1  ;;  %v3508_v50 = vshll.u32 %v3295_v36, 16  ;;  %v3512_v52 = vshrl.u32 %v3295_v36, 16 }
 0x1fd   : > { %v2393_v9 = vsel %vm2101_vm13, %v1719_v41, %v2247_v26  ;;  %v1724_v60 = vadd.f32 %v18304_v49, %v1723_v39  ;;  %16369 = vmatprep.mubr.msk.bf16.mxu0 %vm17677_vm2, %v23727_v7  ;;  %v3518_v41 = vrot.slane %v3516_v62, 1 }
 0x1fe   : > { %v18501_v47 = vpack.c.bf16 %v2393_v9, %v2392_v0  ;;  %v16271_v34 = vpop.f32.mrf.mxu0  ;;  %v18504_v51 = vsel %vm3211_vm15, %v3691_v37, %v3693_v59  ;;  %v18507_v30 = vsel %vm3211_vm15, %v3690_v42, %v3691_v37  ;;  %v3510_v53 = vrot.slane %v3508_v50, 1 }
 0x1ff   : > { %v2248_v26 = vmul.f32 0.01, %v1724_v60  ;;  %vm2102_vm1 = vcmp.gt.f32.partialorder %v1724_v60, 0.0 }
 0x200   : > { %v1726_v43 = vpop.f32.mrf.mxu0  ;;  %v3514_v1 = vor.u32 %v3512_v52, %v3510_v53  ;;  %v18512_v36 = vsel %vm2874_vm14, %v3506_v45, %v3510_v53  ;;  %v3018_v59 = vshll.u32 %v18501_v47, 16  ;;  %v16836_v53 = vld [vmem:[%s17809_s4 + $0x1f0] sm:$0xff]  }
 0x201   : > { %v1727_v39 = vadd.f32 %v18304_v49, %v1726_v43  ;;  %23734 = vst [vmem:[#allocation28_spill] sm:$0xff] %v18512_v36  ;;  %v2394_v62 = vsel %vm2102_vm1, %v1724_v60, %v2248_v26 }
 0x202   : > { %v16272_v9 = vpop.f32.mrf.mxu0  ;;  %v18516_v42 = vsel %vm2874_vm14, %v3514_v1, %v3518_v41  ;;  %v3020_v0 = vrot.slane %v3018_v59, 1  ;;  %v3016_v1 = vshrl.u32 %v18501_v47, 16 }
 0x203   : > { %23735 = vst [vmem:[#allocation29_spill] sm:$0xff] %v18516_v42  ;;  %vm2103_vm4 = vcmp.gt.f32.partialorder %v1727_v39, 0.0  ;;  %v2249_v35 = vmul.f32 0.01, %v1727_v39 }
 0x204   : > { %v1731_v58 = vpop.f32.mrf.mxu0  ;;  %16370 = vmatmul.mubr.msk.bf16.gmra.mxu0 %vm1168_vm3, %v16835_v8  ;;  %v3021_v9 = vor.u32 %v3020_v0, %v3016_v1 }
 0x205   : > { %v2395_v37 = vsel %vm2103_vm4, %v1727_v39, %v2249_v35  ;;  %v1732_v43 = vadd.f32 %v18304_v49, %v1731_v58  ;;  %16373 = vmatprep.mubr.msk.bf16.mxu0 %vm17677_vm2, %v23727_v7 }
 0x206   : > { %v18522_v45 = vpack.c.bf16 %v2395_v37, %v2394_v62  ;;  %v16275_v50 = vpop.f32.mrf.mxu0 }
 0x207   : > { %vm2104_vm5 = vcmp.gt.f32.partialorder %v1732_v43, 0.0  ;;  %v2250_v52 = vmul.f32 0.01, %v1732_v43 }
 0x208   : > { %v1734_v34 = vpop.f32.mrf.mxu0  ;;  %v3023_v41 = vshll.u32 %v18522_v45, 16  ;;  %v3027_v62 = vshrl.u32 %v18522_v45, 16 }
 0x209   : > { %v2396_v8 = vsel %vm2104_vm5, %v1732_v43, %v2250_v52  ;;  %v1735_v60 = vadd.f32 %v18304_v49, %v1734_v34 }
 0x20a   : > { %v18528_v26 = vpack.c.bf16 %v2396_v8, %v2396_v8  ;;  %v16276_v39 = vpop.f32.mrf.mxu0  ;;  %v3025_v35 = vrot.slane %v3023_v41, 1  ;;  %v16837_v41 = vld [vmem:[%s17809_s4 + $0x1f8] sm:$0xff]  }
 0x20b   : > { %v2251_v50 = vmul.f32 0.01, %v1735_v60  ;;  %vm2105_vm6 = vcmp.gt.f32.partialorder %v1735_v60, 0.0 }
 0x20c   : > { %v1739_v58 = vpop.f32.mrf.mxu0  ;;  %16374 = vmatmul.mubr.msk.bf16.gmra.mxu0 %vm1168_vm3, %v16836_v53  ;;  %v3026_v59 = vsel %vm2874_vm14, %v3021_v9, %v3025_v35  ;;  %v3031_v37 = vshll.u32 %v18528_v26, 16  ;;  %v3029_v52 = vor.u32 %v3027_v62, %v3025_v35 }
 0x20d   : > { %v1740_v43 = vadd.f32 %v18304_v49, %v1739_v58  ;;  %3183 = vrot.lane.b32.xlu1 %v3026_v59, %s17679_s30  ;;  %16377 = vmatprep.mubr.msk.bf16.mxu0 %vm17677_vm2, %v23727_v7  ;;  %v2397_v39 = vsel %vm2105_vm6, %v1735_v60, %v2251_v50  ;;  %v3172_v50 = vpop.permute.xlu1 %3171 }
 0x20e   : > { %v16279_v0 = vpop.f32.mrf.mxu0  ;;  %v3033_v34 = vrot.slane %v3031_v37, 1  ;;  %v2505_v11 = vpack.c.bf16 %v2397_v39, %v2396_v8  ;;  %v3232_v37 = vrot.slane %v18248_v19, 1 }
 0x20f   : > { %v2252_v9 = vmul.f32 0.01, %v1740_v43  ;;  %vm2106_vm7 = vcmp.gt.f32.partialorder %v1740_v43, 0.0 }
 0x210   : > { %v1742_v1 = vpop.f32.mrf.mxu0  ;;  %v3034_v53 = vsel %vm2874_vm14, %v3029_v52, %v3033_v34  ;;  %v2762_v8 = vunpack.c.h.b16 %v2505_v11  ;;  %v3235_v11 = vrot.slane %v18275_v15, 1 }
 0x211   : > { %v1743_v40 = vadd.f32 %v18304_v49, %v1742_v1  ;;  %3185 = vrot.lane.b32.xlu1 %v3034_v53, %s17679_s30  ;;  %v2398_v35 = vsel %vm2106_vm7, %v1740_v43, %v2252_v9  ;;  %v18549_v53 = vsel %vm3211_vm15, %v3232_v37, %v3233_v38  ;;  %v16838_v43 = vld [vmem:[%s17809_s4 + $0x200] sm:$0xff]  }
 0x212   : > { %v16280_v58 = vpop.f32.mrf.mxu0  ;;  %23736 = vst [vmem:[#allocation30_spill] sm:$0xff] %v18549_v53  ;;  %v18567_v15 = vsel %vm3211_vm15, %v3233_v38, %v3235_v11 }
 0x213   : > { %vm2107_vm8 = vcmp.gt.f32.partialorder %v1743_v40, 0.0  ;;  %v2253_v59 = vmul.f32 0.01, %v1743_v40  ;;  %23738 = vst [vmem:[#allocation32_spill] sm:$0xff] %v18567_v15 }
 0x214   : > { %v1747_v0 = vpop.f32.mrf.mxu0  ;;  %16378 = vmatmul.mubr.msk.bf16.gmra.mxu0 %vm1168_vm3, %v16837_v41 }
 0x215   : > { %v2399_v62 = vsel %vm2107_vm8, %v1743_v40, %v2253_v59  ;;  %v1748_v60 = vadd.f32 %v18304_v49, %v1747_v0  ;;  %16381 = vmatprep.mubr.msk.bf16.mxu0 %vm17677_vm2, %v23727_v7  ;;  %v18557_v59 = vsel %vm3818_vm11, %v18248_v19, %v3172_v50  ;;  %v3174_v50 = vpop.permute.xlu1 %3173 }
 0x216   : > { %v2506_v52 = vpack.c.bf16 %v2399_v62, %v2398_v35  ;;  %v16283_v34 = vpop.f32.mrf.mxu0  ;;  %23737 = vst [vmem:[#allocation31_spill] sm:$0xff] %v18557_v59 }
 0x217   : > { %v3327_v1 = vpop.permute.xlu0 %3326  ;;  %v2254_v41 = vmul.f32 0.01, %v1748_v60  ;;  %vm2108_vm9 = vcmp.gt.f32.partialorder %v1748_v60, 0.0 }
 0x218   : > { %v2763_v39 = vunpack.c.l.b16 %v2506_v52  ;;  %v1750_v58 = vpop.f32.mrf.mxu0  ;;  %v3937_v40 = vsel %vm3818_vm11, %v18549_v53, %v3327_v1 }
 0x219   : > { %v1751_v9 = vadd.f32 %v18304_v49, %v1750_v58  ;;  %4509 = vmatprep.mubr.bf16.mxu1 %v3937_v40  ;;  %v2400_v34 = vsel %vm2108_vm9, %v1748_v60, %v2254_v41  ;;  %v16839_v41 = vld [vmem:[%s17809_s4 + $0x208] sm:$0xff]  }
 0x21a   : > { %4510 = vmatmul.mubr.bf16.gmra.mxu1 %v18557_v59  ;;  %v16284_v0 = vpop.f32.mrf.mxu0  ;;  %v3296_v35 = vpack.c.b16 %v2763_v39, %v2762_v8 }
 0x21b   : > { %vm2109_vm10 = vcmp.gt.f32.partialorder %v1751_v9, 0.0  ;;  %v2255_v62 = vmul.f32 0.01, %v1751_v9 }
 0x21c   : > { %16382 = vmatmul.mubr.msk.bf16.gmra.mxu0 %vm1168_vm3, %v16838_v43  ;;  %3338 = vrot.lane.b32.xlu0 %v3296_v35, %s17679_s30  ;;  %v1755_v37 = vpop.f32.mrf.mxu0  ;;  %v3523_v40 = vshll.u32 %v3296_v35, 16  ;;  %v2764_v43 = vunpack.c.h.b16 %v2506_v52  ;;  %v3695_v11 = vrot.slane %v3296_v35, 1 }
 0x21d   : > { %v2401_v1 = vsel %vm2109_vm10, %v1751_v9, %v2255_v62  ;;  %v1756_v19 = vadd.f32 %v18304_v49, %v1755_v37  ;;  %16385 = vmatprep.mubr.msk.bf16.mxu0 %vm17677_vm2, %v23727_v7  ;;  %v18575_v37 = vsel %vm3818_vm11, %v18269_v57, %v3174_v50 }
 0x21e   : > { %v2507_v58 = vpack.c.bf16 %v2401_v1, %v2400_v34  ;;  %v16287_v8 = vpop.f32.mrf.mxu0  ;;  %v15706_v53 = vpack.c.bf16 %v2401_v1, %v2401_v1  ;;  %23739 = vst [vmem:[#allocation33_spill] sm:$0xff] %v18575_v37  ;;  %v3521_v1 = vshrl.u32 %v3296_v35, 16 }
 0x21f   : > { %v3329_v39 = vpop.permute.xlu0 %3328  ;;  %v2256_v9 = vmul.f32 0.01, %v1756_v19  ;;  %vm2110_vm12 = vcmp.gt.f32.partialorder %v1756_v19, 0.0 }
 0x220   : > { %v2765_v0 = vunpack.c.l.b16 %v2507_v58  ;;  %v1758_v59 = vpop.f32.mrf.mxu0  ;;  %v3941_v60 = vsel %vm3818_vm11, %v18567_v15, %v3329_v39  ;;  %v3525_v58 = vrot.slane %v3523_v40, 1  ;;  %v3536_v8 = vshll.u32 %v15706_v53, 16 }
 0x221   : > { %v1759_v62 = vadd.f32 %v18304_v49, %v1758_v59  ;;  %4517 = vmatprep.mubr.bf16.mxu1 %v3941_v60  ;;  %v3698_v57 = vrot.slane %v15706_v53, 1  ;;  %v2402_v60 = vsel %vm2110_vm12, %v1756_v19, %v2256_v9  ;;  %v16840_v19 = vld [vmem:[%s17809_s4 + $0x210] sm:$0xff]  }
 0x222   : > { %4518 = vmatmul.mubr.bf16.gmra.mxu1 %v18575_v37  ;;  %v16288_v38 = vpop.f32.mrf.mxu0  ;;  %v3297_v52 = vpack.c.b16 %v2765_v0, %v2764_v43  ;;  %v3526_v37 = vor.u32 %v3525_v58, %v3521_v1 }
 0x223   : > { %vm2111_vm13 = vcmp.gt.f32.partialorder %v1759_v62, 0.0  ;;  %v2257_v34 = vmul.f32 0.01, %v1759_v62 }
 0x224   : > { %16386 = vmatmul.mubr.msk.bf16.gmra.mxu0 %vm1168_vm3, %v16839_v41  ;;  %3340 = vrot.lane.b32.xlu0 %v3297_v52, %s17679_s30  ;;  %v1763_v59 = vpop.f32.mrf.mxu0  ;;  %v3696_v39 = vrot.slane %v3297_v52, 1  ;;  %v3528_v50 = vshll.u32 %v3297_v52, 16  ;;  %v3532_v35 = vshrl.u32 %v3297_v52, 16 }
 0x225   : > { %v2403_v15 = vsel %vm2111_vm13, %v1759_v62, %v2257_v34  ;;  %v1764_v43 = vadd.f32 %v18304_v49, %v1763_v59  ;;  %16389 = vmatprep.mubr.msk.bf16.mxu0 %vm17677_vm2, %v23727_v7  ;;  %v3538_v62 = vrot.slane %v3536_v8, 1 }
 0x226   : > { %v18584_v40 = vpack.c.bf16 %v2403_v15, %v2402_v60  ;;  %v16291_v0 = vpop.f32.mrf.mxu0  ;;  %v18587_v41 = vsel %vm3211_vm15, %v3696_v39, %v3698_v57  ;;  %v18590_v38 = vsel %vm3211_vm15, %v3695_v11, %v3696_v39  ;;  %v3530_v53 = vrot.slane %v3528_v50, 1 }
 0x227   : > { %v2258_v34 = vmul.f32 0.01, %v1764_v43  ;;  %vm2112_vm1 = vcmp.gt.f32.partialorder %v1764_v43, 0.0 }
 0x228   : > { %v1766_v44 = vpop.f32.mrf.mxu0  ;;  %v3534_v9 = vor.u32 %v3532_v35, %v3530_v53  ;;  %v18595_v52 = vsel %vm2874_vm14, %v3526_v37, %v3530_v53  ;;  %v3038_v57 = vshll.u32 %v18584_v40, 16  ;;  %v16841_v53 = vld [vmem:[%s17809_s4 + $0x218] sm:$0xff]  }
 0x229   : > { %v1767_v59 = vadd.f32 %v18304_v49, %v1766_v44  ;;  %23740 = vst [vmem:[#allocation34_spill] sm:$0xff] %v18595_v52  ;;  %v2404_v8 = vsel %vm2112_vm1, %v1764_v43, %v2258_v34 }
 0x22a   : > { %v16292_v15 = vpop.f32.mrf.mxu0  ;;  %v18599_v11 = vsel %vm2874_vm14, %v3534_v9, %v3538_v62  ;;  %v3040_v60 = vrot.slane %v3038_v57, 1  ;;  %v3036_v9 = vshrl.u32 %v18584_v40, 16 }
 0x22b   : > { %23741 = vst [vmem:[#allocation35_spill] sm:$0xff] %v18599_v11  ;;  %vm2113_vm4 = vcmp.gt.f32.partialorder %v1767_v59, 0.0  ;;  %v2259_v1 = vmul.f32 0.01, %v1767_v59 }
 0x22c   : > { %v1771_v58 = vpop.f32.mrf.mxu0  ;;  %16390 = vmatmul.mubr.msk.bf16.gmra.mxu0 %vm1168_vm3, %v16840_v19  ;;  %v3041_v15 = vor.u32 %v3040_v60, %v3036_v9 }
 0x22d   : > { %v2405_v39 = vsel %vm2113_vm4, %v1767_v59, %v2259_v1  ;;  %v1772_v44 = vadd.f32 %v18304_v49, %v1771_v58  ;;  %16393 = vmatprep.mubr.msk.bf16.mxu0 %vm17677_vm2, %v23727_v7 }
 0x22e   : > { %v18605_v37 = vpack.c.bf16 %v2405_v39, %v2404_v8  ;;  %v16295_v50 = vpop.f32.mrf.mxu0 }
 0x22f   : > { %vm2114_vm5 = vcmp.gt.f32.partialorder %v1772_v44, 0.0  ;;  %v2260_v35 = vmul.f32 0.01, %v1772_v44 }
 0x230   : > { %v1774_v0 = vpop.f32.mrf.mxu0  ;;  %v3043_v62 = vshll.u32 %v18605_v37, 16  ;;  %v3047_v8 = vshrl.u32 %v18605_v37, 16 }
 0x231   : > { %v2406_v19 = vsel %vm2114_vm5, %v1772_v44, %v2260_v35  ;;  %v1775_v43 = vadd.f32 %v18304_v49, %v1774_v0  ;;  %v18620_v49 = vld [vmem:[%s23707_s29] ss:$0 sm:$0xff] }
 0x232   : > { %v18611_v34 = vpack.c.bf16 %v2406_v19, %v2406_v19  ;;  %v16296_v59 = vpop.f32.mrf.mxu0  ;;  %v3045_v1 = vrot.slane %v3043_v62, 1  ;;  %v16842_v62 = vld [vmem:[%s17809_s4 + $0x220] sm:$0xff]  }
 0x233   : > { %v2261_v50 = vmul.f32 0.01, %v1775_v43  ;;  %vm2115_vm6 = vcmp.gt.f32.partialorder %v1775_v43, 0.0 }
 0x234   : > { %v1779_v58 = vpop.f32.mrf.mxu0  ;;  %16394 = vmatmul.mubr.msk.bf16.gmra.mxu0 %vm1168_vm3, %v16841_v53  ;;  %v3046_v57 = vsel %vm2874_vm14, %v3041_v15, %v3045_v1  ;;  %v3051_v39 = vshll.u32 %v18611_v34, 16  ;;  %v3049_v35 = vor.u32 %v3047_v8, %v3045_v1  ;;  %v3237_v1 = vrot.slane %v18336_v5, 1  ;;  %v3176_v8 = vpop.permute.xlu1 %3175 }
 0x235   : > { %v1780_v44 = vadd.f32 %v18620_v49, %v1779_v58  ;;  %3187 = vrot.lane.b32.xlu1 %v3046_v57, %s17679_s30  ;;  %16397 = vmatprep.mubr.msk.bf16.mxu0 %vm17677_vm2, %v23727_v7  ;;  %v2407_v59 = vsel %vm2115_vm6, %v1775_v43, %v2261_v50  ;;  %v3238_v57 = vrot.slane %v18357_v12, 1 }
 0x236   : > { %v16299_v60 = vpop.f32.mrf.mxu0  ;;  %v3053_v0 = vrot.slane %v3051_v39, 1  ;;  %v2510_v52 = vpack.c.bf16 %v2407_v59, %v2406_v19 }
 0x237   : > { %v2262_v15 = vmul.f32 0.01, %v1780_v44  ;;  %vm2116_vm7 = vcmp.gt.f32.partialorder %v1780_v44, 0.0 }
 0x238   : > { %v1782_v53 = vpop.f32.mrf.mxu0  ;;  %v3054_v9 = vsel %vm2874_vm14, %v3049_v35, %v3053_v0 }
 0x239   : > { %v1783_v24 = vadd.f32 %v18620_v49, %v1782_v53  ;;  %3189 = vrot.lane.b32.xlu1 %v3054_v9, %s17679_s30  ;;  %v2408_v43 = vsel %vm2116_vm7, %v1780_v44, %v2262_v15  ;;  %v18637_v9 = vsel %vm3211_vm15, %v3237_v1, %v3238_v57 }
 0x23a   : > { %v16300_v58 = vpop.f32.mrf.mxu0  ;;  %23742 = vst [vmem:[#allocation36_spill] sm:$0xff] %v18637_v9 }
 0x23b   : > { %vm2117_vm8 = vcmp.gt.f32.partialorder %v1783_v24, 0.0  ;;  %v2263_v31 = vmul.f32 0.01, %v1783_v24 }
 0x23c   : > { %v1787_v60 = vpop.f32.mrf.mxu0  ;;  %16398 = vmatmul.mubr.msk.bf16.gmra.mxu0 %vm1168_vm3, %v16842_v62  ;;  %v2772_v62 = vunpack.c.h.b16 %v2510_v52 }
 0x23d   : > { %v2409_v39 = vsel %vm2117_vm8, %v1783_v24, %v2263_v31  ;;  %v1788_v50 = vadd.f32 %v18620_v49, %v1787_v60  ;;  %16401 = vmatprep.mubr.msk.bf16.mxu0 %vm17677_vm2, %v23727_v7  ;;  %v18643_v31 = vsel %vm3818_vm11, %v18336_v5, %v3176_v8  ;;  %v16843_v24 = vld [vmem:[%s17809_s4 + $0x228] sm:$0xff]   ;;  %v3240_v60 = vrot.slane %v18363_v29, 1  ;;  %v3178_v8 = vpop.permute.xlu1 %3177 }
 0x23e   : > { %v2511_v35 = vpack.c.bf16 %v2409_v39, %v2408_v43  ;;  %v3331_v0 = vpop.permute.xlu0 %3330  ;;  %v16303_v53 = vpop.f32.mrf.mxu0  ;;  %23743 = vst [vmem:[#allocation37_spill] sm:$0xff] %v18643_v31 }
 0x23f   : > { %v3945_v19 = vsel %vm3818_vm11, %v18637_v9, %v3331_v0  ;;  %v2264_v44 = vmul.f32 0.01, %v1788_v50  ;;  %vm2118_vm9 = vcmp.gt.f32.partialorder %v1788_v50, 0.0 }
 0x240   : > { %v2773_v59 = vunpack.c.l.b16 %v2511_v35  ;;  %v1790_v58 = vpop.f32.mrf.mxu0  ;;  %4525 = vmatprep.mubr.bf16.mxu1 %v3945_v19 }
 0x241   : > { %v1791_v15 = vadd.f32 %v18620_v49, %v1790_v58  ;;  %4526 = vmatmul.mubr.bf16.gmra.mxu1 %v18643_v31  ;;  %v2410_v0 = vsel %vm2118_vm9, %v1788_v50, %v2264_v44  ;;  %v18657_v58 = vsel %vm3211_vm15, %v3238_v57, %v3240_v60  ;;  %v2774_v50 = vunpack.c.h.b16 %v2511_v35 }
 0x242   : > { %v16304_v1 = vpop.f32.mrf.mxu0  ;;  %v3298_v43 = vpack.c.b16 %v2773_v59, %v2772_v62  ;;  %23745 = vst [vmem:[#allocation39_spill] sm:$0xff] %v18657_v58 }
 0x243   : > { %vm2119_vm10 = vcmp.gt.f32.partialorder %v1791_v15, 0.0  ;;  %v2265_v52 = vmul.f32 0.01, %v1791_v15 }
 0x244   : > { %16402 = vmatmul.mubr.msk.bf16.gmra.mxu0 %vm1168_vm3, %v16843_v24  ;;  %v18650_v39 = vpop.f32.mrf.mxu1  ;;  %3342 = vrot.lane.b32.xlu0 %v3298_v43, %s17679_s30  ;;  %v1795_v5 = vpop.f32.mrf.mxu0 }
 0x245   : > { %23744 = vst [vmem:[#allocation38_spill] sm:$0xff] %v18650_v39  ;;  %v2411_v53 = vsel %vm2119_vm10, %v1791_v15, %v2265_v52  ;;  %v1796_v19 = vadd.f32 %v18620_v49, %v1795_v5  ;;  %16405 = vmatprep.mubr.msk.bf16.mxu0 %vm17677_vm2, %v23727_v7  ;;  %v3543_v39 = vshll.u32 %v3298_v43, 16  ;;  %v18665_v52 = vsel %vm3818_vm11, %v18357_v12, %v3178_v8  ;;  %v16844_v5 = vld [vmem:[%s17809_s4 + $0x230] sm:$0xff]  }
 0x246   : > { %v2512_v29 = vpack.c.bf16 %v2411_v53, %v2410_v0  ;;  %v4457_v62 = vpop.f32.mrf.mxu1  ;;  %v3333_v59 = vpop.permute.xlu0 %3332  ;;  %v15707_v24 = vpack.c.bf16 %v2411_v53, %v2411_v53  ;;  %23747 = vst [vmem:[#allocation41_spill] sm:$0xff] %v18665_v52 }
 0x247   : > { %v16307_v1 = vpop.f32.mrf.mxu0  ;;  %v3949_v9 = vsel %vm3818_vm11, %v18657_v58, %v3333_v59  ;;  %v2266_v0 = vmul.f32 0.01, %v1796_v19  ;;  %vm2120_vm12 = vcmp.gt.f32.partialorder %v1796_v19, 0.0 }
 0x248   : > { %v2775_v44 = vunpack.c.l.b16 %v2512_v29  ;;  %v18661_v15 = vpop.f32.mrf.mxu1  ;;  %4533 = vmatprep.mubr.bf16.mxu1 %v3949_v9  ;;  %v3703_v35 = vrot.slane %v15707_v24, 1  ;;  %v3700_v29 = vrot.slane %v3298_v43, 1  ;;  %v3545_v1 = vrot.slane %v3543_v39, 1 }
 0x249   : > { %23746 = vst [vmem:[#allocation40_spill] sm:$0xff] %v18661_v15  ;;  %v1798_v62 = vpop.f32.mrf.mxu0  ;;  %4534 = vmatmul.mubr.bf16.gmra.mxu1 %v18665_v52  ;;  %v3556_v58 = vshll.u32 %v15707_v24, 16  ;;  %v2412_v15 = vsel %vm2120_vm12, %v1796_v19, %v2266_v0  ;;  %v16845_v19 = vld [vmem:[%s17809_s4 + $0x238] sm:$0xff]  }
 0x24a   : > { %v1799_v57 = vadd.f32 %v18620_v49, %v1798_v62  ;;  %v4460_v60 = vpop.f32.mrf.mxu1  ;;  %v3299_v53 = vpack.c.b16 %v2775_v44, %v2774_v50  ;;  %v3541_v50 = vshrl.u32 %v3298_v43, 16 }
 0x24b   : > { %v16308_v59 = vpop.f32.mrf.mxu0  ;;  %v3558_v27 = vrot.slane %v3556_v58, 1 }
 0x24c   : > { %vm2121_vm13 = vcmp.gt.f32.partialorder %v1799_v57, 0.0  ;;  %v2267_v9 = vmul.f32 0.01, %v1799_v57  ;;  %3344 = vrot.lane.b32.xlu0 %v3299_v53, %s17679_s30  ;;  %16406 = vmatmul.mubr.msk.bf16.gmra.mxu0 %vm1168_vm3, %v16844_v5  ;;  %v3701_v12 = vrot.slane %v3299_v53, 1  ;;  %v3548_v8 = vshll.u32 %v3299_v53, 16 }
 0x24d   : > { %v1803_v52 = vpop.f32.mrf.mxu0  ;;  %16409 = vmatprep.mubr.msk.bf16.mxu0 %vm17677_vm2, %v23727_v7  ;;  %v3552_v24 = vshrl.u32 %v3299_v53, 16  ;;  %v3546_v0 = vor.u32 %v3545_v1, %v3541_v50 }
 0x24e   : > { %v2413_v44 = vsel %vm2121_vm13, %v1799_v57, %v2267_v9  ;;  %v1804_v62 = vadd.f32 %v18620_v49, %v1803_v52  ;;  %v18676_v39 = vsel %vm3211_vm15, %v3701_v12, %v3703_v35  ;;  %v18679_v60 = vsel %vm3211_vm15, %v3700_v29, %v3701_v12 }
 0x24f   : > { %v18681_v5 = vpack.c.bf16 %v2413_v44, %v2412_v15  ;;  %v16311_v59 = vpop.f32.mrf.mxu0  ;;  %v3550_v31 = vrot.slane %v3548_v8, 1 }
 0x250   : > { %v2268_v43 = vmul.f32 0.01, %v1804_v62  ;;  %vm2122_vm1 = vcmp.gt.f32.partialorder %v1804_v62, 0.0 }
 0x251   : > { %v1806_v36 = vpop.f32.mrf.mxu0  ;;  %v3554_v56 = vor.u32 %v3552_v24, %v3550_v31  ;;  %v18686_v52 = vsel %vm2874_vm14, %v3546_v0, %v3550_v31  ;;  %v3058_v15 = vshll.u32 %v18681_v5, 16  ;;  %v3056_v44 = vshrl.u32 %v18681_v5, 16 }
 0x252   : > { %v1807_v57 = vadd.f32 %v18620_v49, %v1806_v36  ;;  %23748 = vst [vmem:[#allocation42_spill] sm:$0xff] %v18686_v52  ;;  %v2414_v36 = vsel %vm2122_vm1, %v1804_v62, %v2268_v43 }
 0x253   : > { %v16312_v35 = vpop.f32.mrf.mxu0  ;;  %v18690_v29 = vsel %vm2874_vm14, %v3554_v56, %v3558_v27  ;;  %v3060_v8 = vrot.slane %v3058_v15, 1  ;;  %v16846_v27 = vld [vmem:[%s17809_s4 + $0x240] sm:$0xff]  }
 0x254   : > { %23749 = vst [vmem:[#allocation43_spill] sm:$0xff] %v18690_v29  ;;  %vm2123_vm4 = vcmp.gt.f32.partialorder %v1807_v57, 0.0  ;;  %v2269_v53 = vmul.f32 0.01, %v1807_v57  ;;  %16410 = vmatmul.mubr.msk.bf16.gmra.mxu0 %vm1168_vm3, %v16845_v19 }
 0x255   : > { %v1811_v1 = vpop.f32.mrf.mxu0  ;;  %16413 = vmatprep.mubr.msk.bf16.mxu0 %vm17677_vm2, %v23727_v7  ;;  %v3061_v43 = vor.u32 %v3060_v8, %v3056_v44 }
 0x256   : > { %v2415_v58 = vsel %vm2123_vm4, %v1807_v57, %v2269_v53  ;;  %v1812_v31 = vadd.f32 %v18620_v49, %v1811_v1 }
 0x257   : > { %v18696_v9 = vpack.c.bf16 %v2415_v58, %v2414_v36  ;;  %v16315_v12 = vpop.f32.mrf.mxu0 }
 0x258   : > { %vm2124_vm5 = vcmp.gt.f32.partialorder %v1812_v31, 0.0  ;;  %v2270_v50 = vmul.f32 0.01, %v1812_v31 }
 0x259   : > { %v1814_v56 = vpop.f32.mrf.mxu0  ;;  %v3063_v59 = vshll.u32 %v18696_v9, 16  ;;  %v3067_v53 = vshrl.u32 %v18696_v9, 16 }
 0x25a   : > { %v2416_v24 = vsel %vm2124_vm5, %v1812_v31, %v2270_v50  ;;  %v1815_v19 = vadd.f32 %v18620_v49, %v1814_v56 }
 0x25b   : > { %v18702_v0 = vpack.c.bf16 %v2416_v24, %v2416_v24  ;;  %v16316_v62 = vpop.f32.mrf.mxu0  ;;  %v3065_v57 = vrot.slane %v3063_v59, 1 }
 0x25c   : > { %16414 = vmatmul.mubr.msk.bf16.gmra.mxu0 %vm1168_vm3, %v16846_v27  ;;  %v2271_v36 = vmul.f32 0.01, %v1815_v19  ;;  %vm2125_vm6 = vcmp.gt.f32.partialorder %v1815_v19, 0.0  ;;  %v3243_v62 = vrot.slane %v18439_v6, 1 }
 0x25d   : > { %v1819_v35 = vpop.f32.mrf.mxu0  ;;  %v3066_v15 = vsel %vm2874_vm14, %v3061_v43, %v3065_v57  ;;  %v3071_v1 = vshll.u32 %v18702_v0, 16  ;;  %16417 = vmatprep.mubr.msk.bf16.mxu0 %vm17677_vm2, %v23727_v7  ;;  %v3069_v12 = vor.u32 %v3067_v53, %v3065_v57  ;;  %v3242_v57 = vrot.slane %v18418_v4, 1  ;;  %v3180_v53 = vpop.permute.xlu1 %3179 }
 0x25e   : > { %v1820_v58 = vadd.f32 %v18620_v49, %v1819_v35  ;;  %3191 = vrot.lane.b32.xlu1 %v3066_v15, %s17679_s30  ;;  %v2417_v56 = vsel %vm2125_vm6, %v1815_v19, %v2271_v36 }
 0x25f   : > { %v16319_v31 = vpop.f32.mrf.mxu0  ;;  %v3073_v8 = vrot.slane %v3071_v1, 1  ;;  %v2515_v1 = vpack.c.bf16 %v2417_v56, %v2416_v24  ;;  %v18729_v24 = vsel %vm3818_vm11, %v18418_v4, %v3180_v53 }
 0x260   : > { %v2272_v44 = vmul.f32 0.01, %v1820_v58  ;;  %vm2126_vm7 = vcmp.gt.f32.partialorder %v1820_v58, 0.0  ;;  %23753 = vst [vmem:[#allocation47_spill] sm:$0xff] %v18729_v24 }
 0x261   : > { %v1822_v50 = vpop.f32.mrf.mxu0  ;;  %v3074_v27 = vsel %vm2874_vm14, %v3069_v12, %v3073_v8  ;;  %v3182_v4 = vpop.permute.xlu1 %3181 }
 0x262   : > { %v1823_v59 = vadd.f32 %v18620_v49, %v1822_v50  ;;  %3193 = vrot.lane.b32.xlu1 %v3074_v27, %s17679_s30  ;;  %v2418_v12 = vsel %vm2126_vm7, %v1820_v58, %v2272_v44  ;;  %v18721_v27 = vsel %vm3211_vm15, %v3242_v57, %v3243_v62  ;;  %v2782_v58 = vunpack.c.h.b16 %v2515_v1 }
 0x263   : > { %v16320_v43 = vpop.f32.mrf.mxu0  ;;  %23751 = vst [vmem:[#allocation45_spill] sm:$0xff] %v18721_v27 }
 0x264   : > { %vm2127_vm8 = vcmp.gt.f32.partialorder %v1823_v59, 0.0  ;;  %v2273_v35 = vmul.f32 0.01, %v1823_v59  ;;  %v18716_v15 = vpop.f32.mrf.mxu1 }
 0x265   : > { %23750 = vst [vmem:[#allocation44_spill] sm:$0xff] %v18716_v15  ;;  %v1827_v31 = vpop.f32.mrf.mxu0 }
 0x266   : > { %v2419_v19 = vsel %vm2127_vm8, %v1823_v59, %v2273_v35  ;;  %v1828_v36 = vadd.f32 %v18620_v49, %v1827_v31  ;;  %v4465_v8 = vpop.f32.mrf.mxu1  ;;  %v3335_v50 = vpop.permute.xlu0 %3334  ;;  %v3245_v59 = vrot.slane %v18445_v3, 1 }
 0x267   : > { %v2516_v52 = vpack.c.bf16 %v2419_v19, %v2418_v12  ;;  %v16323_v43 = vpop.f32.mrf.mxu0  ;;  %v3953_v61 = vsel %vm3818_vm11, %v18721_v27, %v3335_v50 }
 0x268   : > { %v18725_v15 = vpop.f32.mrf.mxu1  ;;  %4541 = vmatprep.mubr.bf16.mxu1 %v3953_v61  ;;  %v2274_v35 = vmul.f32 0.01, %v1828_v36  ;;  %vm2128_vm9 = vcmp.gt.f32.partialorder %v1828_v36, 0.0 }
 0x269   : > { %23752 = vst [vmem:[#allocation46_spill] sm:$0xff] %v18725_v15  ;;  %v2783_v56 = vunpack.c.l.b16 %v2516_v52  ;;  %v1830_v44 = vpop.f32.mrf.mxu0  ;;  %4542 = vmatmul.mubr.bf16.gmra.mxu1 %v18729_v24 }
 0x26a   : > { %v1831_v57 = vadd.f32 %v18620_v49, %v1830_v44  ;;  %v4468_v31 = vpop.f32.mrf.mxu1  ;;  %v2420_v1 = vsel %vm2128_vm9, %v1828_v36, %v2274_v35  ;;  %v18739_v44 = vsel %vm3211_vm15, %v3243_v62, %v3245_v59  ;;  %v2784_v35 = vunpack.c.h.b16 %v2516_v52 }
 0x26b   : > { %v16324_v12 = vpop.f32.mrf.mxu0  ;;  %v3300_v19 = vpack.c.b16 %v2783_v56, %v2782_v58  ;;  %23755 = vst [vmem:[#allocation49_spill] sm:$0xff] %v18739_v44 }
 0x26c   : > { %vm2129_vm10 = vcmp.gt.f32.partialorder %v1831_v57, 0.0  ;;  %v2275_v61 = vmul.f32 0.01, %v1831_v57  ;;  %v18734_v8 = vpop.f32.mrf.mxu1 }
 0x26d   : > { %23754 = vst [vmem:[#allocation48_spill] sm:$0xff] %v18734_v8  ;;  %3346 = vrot.lane.b32.xlu0 %v3300_v19, %s17679_s30  ;;  %v1835_v53 = vpop.f32.mrf.mxu0  ;;  %v18747_v8 = vsel %vm3818_vm11, %v18439_v6, %v3182_v4  ;;  %v3563_v36 = vshll.u32 %v3300_v19, 16 }
 0x26e   : > { %v2421_v50 = vsel %vm2129_vm10, %v1831_v57, %v2275_v61  ;;  %v1836_v43 = vadd.f32 %v18620_v49, %v1835_v53  ;;  %v4473_v3 = vpop.f32.mrf.mxu1  ;;  %v3337_v27 = vpop.permute.xlu0 %3336  ;;  %23757 = vst [vmem:[#allocation51_spill] sm:$0xff] %v18747_v8 }
 0x26f   : > { %v2517_v31 = vpack.c.bf16 %v2421_v50, %v2420_v1  ;;  %v16327_v12 = vpop.f32.mrf.mxu0  ;;  %v3957_v58 = vsel %vm3818_vm11, %v18739_v44, %v3337_v27  ;;  %v15708_v61 = vpack.c.bf16 %v2421_v50, %v2421_v50  ;;  %v3561_v44 = vshrl.u32 %v3300_v19, 16 }
 0x270   : > { %v18743_v56 = vpop.f32.mrf.mxu1  ;;  %4549 = vmatprep.mubr.bf16.mxu1 %v3957_v58  ;;  %v2276_v62 = vmul.f32 0.01, %v1836_v43  ;;  %vm2130_vm12 = vcmp.gt.f32.partialorder %v1836_v43, 0.0  ;;  %v3705_v12 = vrot.slane %v3300_v19, 1  ;;  %v3565_v6 = vrot.slane %v3563_v36, 1 }
 0x271   : > { %23756 = vst [vmem:[#allocation50_spill] sm:$0xff] %v18743_v56  ;;  %v2785_v57 = vunpack.c.l.b16 %v2517_v31  ;;  %v1838_v53 = vpop.f32.mrf.mxu0  ;;  %4550 = vmatmul.mubr.bf16.gmra.mxu1 %v18747_v8  ;;  %v3576_v4 = vshll.u32 %v15708_v61, 16  ;;  %v3708_v31 = vrot.slane %v15708_v61, 1 }
 0x272   : > { %v1839_v59 = vadd.f32 %v18620_v49, %v1838_v53  ;;  %v4476_v1 = vpop.f32.mrf.mxu1  ;;  %v2422_v15 = vsel %vm2130_vm12, %v1836_v43, %v2276_v62 }
 0x273   : > { %v16328_v27 = vpop.f32.mrf.mxu0  ;;  %v3301_v3 = vpack.c.b16 %v2785_v57, %v2784_v35  ;;  %v3578_v61 = vrot.slane %v3576_v4, 1 }
 0x274   : > { %vm2131_vm13 = vcmp.gt.f32.partialorder %v1839_v59, 0.0  ;;  %v2277_v58 = vmul.f32 0.01, %v1839_v59  ;;  %v3566_v27 = vor.u32 %v3565_v6, %v3561_v44 }
 0x275   : > { %3348 = vrot.lane.b32.xlu0 %v3301_v3, %s17679_s30  ;;  %v1843_v52 = vpop.f32.mrf.mxu0  ;;  %v3706_v50 = vrot.slane %v3301_v3, 1  ;;  %v3568_v56 = vshll.u32 %v3301_v3, 16  ;;  %v3572_v1 = vshrl.u32 %v3301_v3, 16 }
 0x276   : > { %v2423_v8 = vsel %vm2131_vm13, %v1839_v59, %v2277_v58  ;;  %v1844_v53 = vadd.f32 %v18620_v49, %v1843_v52 }
 0x277   : > { %v18753_v24 = vpack.c.bf16 %v2423_v8, %v2422_v15  ;;  %v16331_v35 = vpop.f32.mrf.mxu0  ;;  %v18756_v57 = vsel %vm3211_vm15, %v3706_v50, %v3708_v31  ;;  %v18759_v19 = vsel %vm3211_vm15, %v3705_v12, %v3706_v50  ;;  %v3570_v36 = vrot.slane %v3568_v56, 1 }
 0x278   : > { %v2278_v11 = vmul.f32 0.01, %v1844_v53  ;;  %vm2132_vm1 = vcmp.gt.f32.partialorder %v1844_v53, 0.0 }
 0x279   : > { %v1846_v29 = vpop.f32.mrf.mxu0  ;;  %v3574_v21 = vor.u32 %v3572_v1, %v3570_v36  ;;  %v18763_v62 = vsel %vm2874_vm14, %v3566_v27, %v3570_v36  ;;  %v3078_v8 = vshll.u32 %v18753_v24, 16  ;;  %v3076_v31 = vshrl.u32 %v18753_v24, 16 }
 0x27a   : > { %v1847_v43 = vadd.f32 %v18620_v49, %v1846_v29  ;;  %23758 = vst [vmem:[#allocation52_spill] sm:$0xff] %v18763_v62  ;;  %v2424_v44 = vsel %vm2132_vm1, %v1844_v53, %v2278_v11 }
 0x27b   : > { %v16332_v15 = vpop.f32.mrf.mxu0  ;;  %v18767_v59 = vsel %vm2874_vm14, %v3574_v21, %v3578_v61  ;;  %v3080_v4 = vrot.slane %v3078_v8, 1 }
 0x27c   : > { %23759 = vst [vmem:[#allocation53_spill] sm:$0xff] %v18767_v59  ;;  %vm2133_vm4 = vcmp.gt.f32.partialorder %v1847_v43, 0.0  ;;  %v2279_v3 = vmul.f32 0.01, %v1847_v43 }
 0x27d   : > { %v1851_v56 = vpop.f32.mrf.mxu0  ;;  %v3081_v53 = vor.u32 %v3080_v4, %v3076_v31 }
 0x27e   : > { %v2425_v12 = vsel %vm2133_vm4, %v1847_v43, %v2279_v3  ;;  %v1852_v58 = vadd.f32 %v18620_v49, %v1851_v56 }
 0x27f   : > { %v18770_v6 = vpack.c.bf16 %v2425_v12, %v2424_v44  ;;  %v16335_v29 = vpop.f32.mrf.mxu0 }
 0x280   : > { %vm2134_vm5 = vcmp.gt.f32.partialorder %v1852_v58, 0.0  ;;  %v2280_v52 = vmul.f32 0.01, %v1852_v58 }
 0x281   : > { %v1854_v50 = vpop.f32.mrf.mxu0  ;;  %v3083_v1 = vshll.u32 %v18770_v6, 16  ;;  %v3087_v15 = vshrl.u32 %v18770_v6, 16 }
 0x282   : > { %v2426_v21 = vsel %vm2134_vm5, %v1852_v58, %v2280_v52  ;;  %v1855_v35 = vadd.f32 %v18620_v49, %v1854_v50 }
 0x283   : > { %v18775_v36 = vpack.c.bf16 %v2426_v21, %v2426_v21  ;;  %v16336_v11 = vpop.f32.mrf.mxu0  ;;  %v3085_v27 = vrot.slane %v3083_v1, 1 }
 0x284   : > { %v2281_v3 = vmul.f32 0.01, %v1855_v35  ;;  %vm2135_vm6 = vcmp.gt.f32.partialorder %v1855_v35, 0.0  ;;  %v3248_v11 = vrot.slane %v18522_v45, 1 }
 0x285   : > { %v1859_v61 = vpop.f32.mrf.mxu0  ;;  %v3086_v43 = vsel %vm2874_vm14, %v3081_v53, %v3085_v27  ;;  %v3091_v8 = vshll.u32 %v18775_v36, 16  ;;  %v3089_v12 = vor.u32 %v3087_v15, %v3085_v27  ;;  %v3247_v15 = vrot.slane %v18501_v47, 1 }
 0x286   : > { %v1860_v56 = vadd.f32 %v18620_v49, %v1859_v61  ;;  %3195 = vrot.lane.b32.xlu1 %v3086_v43, %s17679_s30  ;;  %v2427_v50 = vsel %vm2135_vm6, %v1855_v35, %v2281_v3  ;;  %v3184_v43 = vpop.permute.xlu1 %3183 }
 0x287   : > { %v16339_v44 = vpop.f32.mrf.mxu0  ;;  %v3093_v58 = vrot.slane %v3091_v8, 1  ;;  %v2520_v8 = vpack.c.bf16 %v2427_v50, %v2426_v21  ;;  %v18799_v21 = vsel %vm3818_vm11, %v18501_v47, %v3184_v43 }
 0x288   : > { %v2282_v31 = vmul.f32 0.01, %v1860_v56  ;;  %vm2136_vm7 = vcmp.gt.f32.partialorder %v1860_v56, 0.0  ;;  %23763 = vst [vmem:[#allocation57_spill] sm:$0xff] %v18799_v21 }
 0x289   : > { %v1862_v29 = vpop.f32.mrf.mxu0  ;;  %v18782_v52 = vpop.f32.mrf.mxu1  ;;  %v3094_v4 = vsel %vm2874_vm14, %v3089_v12, %v3093_v58  ;;  %v2792_v50 = vunpack.c.h.b16 %v2520_v8 }
 0x28a   : > { %23760 = vst [vmem:[#allocation54_spill] sm:$0xff] %v18782_v52  ;;  %v1863_v1 = vadd.f32 %v18620_v49, %v1862_v29  ;;  %3197 = vrot.lane.b32.xlu1 %v3094_v4, %s17679_s30  ;;  %v2428_v35 = vsel %vm2136_vm7, %v1860_v56, %v2282_v31  ;;  %v18793_v29 = vsel %vm3211_vm15, %v3247_v15, %v3248_v11 }
 0x28b   : > { %v16340_v53 = vpop.f32.mrf.mxu0  ;;  %v4481_v61 = vpop.f32.mrf.mxu1  ;;  %23762 = vst [vmem:[#allocation56_spill] sm:$0xff] %v18793_v29 }
 0x28c   : > { %vm2137_vm8 = vcmp.gt.f32.partialorder %v1863_v1, 0.0  ;;  %v2283_v27 = vmul.f32 0.01, %v1863_v1 }
 0x28d   : > { %v1867_v44 = vpop.f32.mrf.mxu0  ;;  %v18789_v52 = vpop.f32.mrf.mxu1 }
 0x28e   : > { %23761 = vst [vmem:[#allocation55_spill] sm:$0xff] %v18789_v52  ;;  %v2429_v3 = vsel %vm2137_vm8, %v1863_v1, %v2283_v27  ;;  %v1868_v12 = vadd.f32 %v18620_v49, %v1867_v44  ;;  %v3339_v58 = vpop.permute.xlu0 %3338  ;;  %v3250_v27 = vrot.slane %v18528_v26, 1 }
 0x28f   : > { %v2521_v4 = vpack.c.bf16 %v2429_v3, %v2428_v35  ;;  %v16343_v53 = vpop.f32.mrf.mxu0  ;;  %v4484_v61 = vpop.f32.mrf.mxu1  ;;  %v3961_v62 = vsel %vm3818_vm11, %v18793_v29, %v3339_v58 }
 0x290   : > { %4557 = vmatprep.mubr.bf16.mxu1 %v3961_v62  ;;  %v2284_v15 = vmul.f32 0.01, %v1868_v12  ;;  %vm2138_vm9 = vcmp.gt.f32.partialorder %v1868_v12, 0.0  ;;  %v3186_v58 = vpop.permute.xlu1 %3185 }
 0x291   : > { %v2793_v56 = vunpack.c.l.b16 %v2521_v4  ;;  %v1870_v31 = vpop.f32.mrf.mxu0  ;;  %v18801_v1 = vpop.f32.mrf.mxu1  ;;  %4558 = vmatmul.mubr.bf16.gmra.mxu1 %v18799_v21 }
 0x292   : > { %23764 = vst [vmem:[#allocation58_spill] sm:$0xff] %v18801_v1  ;;  %v1871_v44 = vadd.f32 %v18620_v49, %v1870_v31  ;;  %v2430_v53 = vsel %vm2138_vm9, %v1868_v12, %v2284_v15  ;;  %v18811_v1 = vsel %vm3211_vm15, %v3248_v11, %v3250_v27  ;;  %v18820_v12 = vsel %vm3818_vm11, %v18522_v45, %v3186_v58 }
 0x293   : > { %v16344_v35 = vpop.f32.mrf.mxu0  ;;  %v4489_v3 = vpop.f32.mrf.mxu1  ;;  %v3302_v62 = vpack.c.b16 %v2793_v56, %v2792_v50  ;;  %23766 = vst [vmem:[#allocation60_spill] sm:$0xff] %v18811_v1  ;;  %v16847_v50 = vld [vmem:[%s23706_s0 + $0xb8] sm:$0xff]   ;;  %23767 = vst [vmem:[#allocation61_spill] sm:$0xff] %v18820_v12 }
 0x294   : > { %vm2139_vm10 = vcmp.gt.f32.partialorder %v1871_v44, 0.0  ;;  %v2285_v47 = vmul.f32 0.01, %v1871_v44  ;;  %4671 = vmatpush1.bf16.msra.mxu1 %v16847_v50 }
 0x295   : > { %3350 = vrot.lane.b32.xlu0 %v3302_v62, %s17679_s30  ;;  %v1875_v43 = vpop.f32.mrf.mxu0  ;;  %v18807_v8 = vpop.f32.mrf.mxu1  ;;  %v3583_v15 = vshll.u32 %v3302_v62, 16  ;;  %v3581_v58 = vshrl.u32 %v3302_v62, 16 }
 0x296   : > { %23765 = vst [vmem:[#allocation59_spill] sm:$0xff] %v18807_v8  ;;  %v2431_v61 = vsel %vm2139_vm10, %v1871_v44, %v2285_v47  ;;  %v1876_v29 = vadd.f32 %v18620_v49, %v1875_v43  ;;  %v3341_v26 = vpop.permute.xlu0 %3340  ;;  %v2794_v44 = vunpack.c.h.b16 %v2521_v4  ;;  %v23768_v43 = vmov 0  }
 0x297   : > { %v2522_v56 = vpack.c.bf16 %v2431_v61, %v2430_v53  ;;  %v16347_v31 = vpop.f32.mrf.mxu0  ;;  %v4492_v35 = vpop.f32.mrf.mxu1  ;;  %v3965_v3 = vsel %vm3818_vm11, %v18811_v1, %v3341_v26  ;;  %v15709_v27 = vpack.c.bf16 %v2431_v61, %v2431_v61  ;;  %4672 = vmatprep.subr.bf16.mxu1 %v23768_v43  ;;  %v3585_v50 = vrot.slane %v3583_v15, 1 }
 0x298   : > { %4565 = vmatprep.mubr.bf16.mxu1 %v3965_v3  ;;  %v2286_v53 = vmul.f32 0.01, %v1876_v29  ;;  %vm2140_vm12 = vcmp.gt.f32.partialorder %v1876_v29, 0.0  ;;  %v3710_v3 = vrot.slane %v3302_v62, 1 }
 0x299   : > { %v2795_v11 = vunpack.c.l.b16 %v2522_v56  ;;  %v1878_v47 = vpop.f32.mrf.mxu0  ;;  %4566 = vmatmul.mubr.bf16.gmra.mxu1 %v18820_v12  ;;  %v3596_v1 = vshll.u32 %v15709_v27, 16  ;;  %v3713_v56 = vrot.slane %v15709_v27, 1 }
 0x29a   : > { %v1879_v31 = vadd.f32 %v18620_v49, %v1878_v47  ;;  %v2432_v52 = vsel %vm2140_vm12, %v1876_v29, %v2286_v53 }
 0x29b   : > { %v16348_v26 = vpop.f32.mrf.mxu0  ;;  %v3303_v35 = vpack.c.b16 %v2795_v11, %v2794_v44  ;;  %v3598_v27 = vrot.slane %v3596_v1, 1 }
 0x29c   : > { %vm2141_vm13 = vcmp.gt.f32.partialorder %v1879_v31, 0.0  ;;  %v2287_v45 = vmul.f32 0.01, %v1879_v31  ;;  %v3586_v26 = vor.u32 %v3585_v50, %v3581_v58 }
 0x29d   : > { %3352 = vrot.lane.b32.xlu0 %v3303_v35, %s17679_s30  ;;  %v1883_v4 = vpop.f32.mrf.mxu0  ;;  %v3711_v61 = vrot.slane %v3303_v35, 1  ;;  %v3588_v8 = vshll.u32 %v3303_v35, 16  ;;  %v3592_v47 = vshrl.u32 %v3303_v35, 16 }
 0x29e   : > { %v2433_v12 = vsel %vm2141_vm13, %v1879_v31, %v2287_v45  ;;  %v1884_v21 = vadd.f32 %v18620_v49, %v1883_v4 }
 0x29f   : > { %v18827_v59 = vpack.c.bf16 %v2433_v12, %v2432_v52  ;;  %v16351_v44 = vpop.f32.mrf.mxu0  ;;  %v18830_v11 = vsel %vm3211_vm15, %v3711_v61, %v3713_v56  ;;  %v18833_v62 = vsel %vm3211_vm15, %v3710_v3, %v3711_v61  ;;  %v3590_v15 = vrot.slane %v3588_v8, 1  ;;  %v16848_v8 = vld [vmem:[%s23706_s0 + $0xb0] sm:$0xff]  }
 0x2a0   : > { %v2288_v14 = vmul.f32 0.01, %v1884_v21  ;;  %vm2142_vm1 = vcmp.gt.f32.partialorder %v1884_v21, 0.0  ;;  %4673 = vmatpush1.bf16.msra.mxu1 %v16848_v8 }
 0x2a1   : > { %v1886_v16 = vpop.f32.mrf.mxu0  ;;  %v3594_v42 = vor.u32 %v3592_v47, %v3590_v15  ;;  %v18837_v53 = vsel %vm2874_vm14, %v3586_v26, %v3590_v15  ;;  %v3098_v12 = vshll.u32 %v18827_v59, 16  ;;  %4674 = vmatprep.subr.bf16.mxu1 %v23768_v43  ;;  %v3096_v56 = vshrl.u32 %v18827_v59, 16 }
 0x2a2   : > { %v1887_v29 = vadd.f32 %v18620_v49, %v1886_v16  ;;  %23769 = vst [vmem:[#allocation62_spill] sm:$0xff] %v18837_v53  ;;  %v2434_v3 = vsel %vm2142_vm1, %v1884_v21, %v2288_v14 }
 0x2a3   : > { %v16352_v52 = vpop.f32.mrf.mxu0  ;;  %v18841_v31 = vsel %vm2874_vm14, %v3594_v42, %v3598_v27  ;;  %v3100_v4 = vrot.slane %v3098_v12, 1 }
 0x2a4   : > { %23770 = vst [vmem:[#allocation63_spill] sm:$0xff] %v18841_v31  ;;  %vm2143_vm4 = vcmp.gt.f32.partialorder %v1887_v29, 0.0  ;;  %v2289_v35 = vmul.f32 0.01, %v1887_v29 }
 0x2a5   : > { %v1891_v1 = vpop.f32.mrf.mxu0  ;;  %v3101_v26 = vor.u32 %v3100_v4, %v3096_v56 }
 0x2a6   : > { %v2435_v45 = vsel %vm2143_vm4, %v1887_v29, %v2289_v35  ;;  %v1892_v16 = vadd.f32 %v18620_v49, %v1891_v1 }
 0x2a7   : > { %v18847_v58 = vpack.c.bf16 %v2435_v45, %v2434_v3  ;;  %v16355_v50 = vpop.f32.mrf.mxu0 }
 0x2a8   : > { %vm2144_vm5 = vcmp.gt.f32.partialorder %v1892_v16, 0.0  ;;  %v2290_v42 = vmul.f32 0.01, %v1892_v16 }
 0x2a9   : > { %v1894_v61 = vpop.f32.mrf.mxu0  ;;  %v3103_v47 = vshll.u32 %v18847_v58, 16  ;;  %v3107_v12 = vshrl.u32 %v18847_v58, 16 }
 0x2aa   : > { %v2436_v44 = vsel %vm2144_vm5, %v1892_v16, %v2290_v42  ;;  %v1895_v14 = vadd.f32 %v18620_v49, %v1894_v61 }
 0x2ab   : > { %v18853_v21 = vpack.c.bf16 %v2436_v44, %v2436_v44  ;;  %v16356_v15 = vpop.f32.mrf.mxu0  ;;  %v3105_v27 = vrot.slane %v3103_v47, 1 }
 0x2ac   : > { %v2291_v8 = vmul.f32 0.01, %v1895_v14  ;;  %vm2145_vm6 = vcmp.gt.f32.partialorder %v1895_v14, 0.0  ;;  %v3253_v15 = vrot.slane %v18605_v37, 1 }
 0x2ad   : > { %v1899_v29 = vpop.f32.mrf.mxu0  ;;  %v3106_v52 = vsel %vm2874_vm14, %v3101_v26, %v3105_v27  ;;  %v3111_v35 = vshll.u32 %v18853_v21, 16  ;;  %v3109_v45 = vor.u32 %v3107_v12, %v3105_v27  ;;  %v16849_v26 = vld [vmem:[%s23706_s0 + $0xa8] sm:$0xff]  }
 0x2ae   : > { %v1900_v1 = vadd.f32 %v18620_v49, %v1899_v29  ;;  %3199 = vrot.lane.b32.xlu1 %v3106_v52, %s17679_s30  ;;  %v2437_v61 = vsel %vm2145_vm6, %v1895_v14, %v2291_v8  ;;  %v3188_v52 = vpop.permute.xlu1 %3187  ;;  %4675 = vmatpush1.bf16.msra.mxu1 %v16849_v26 }
 0x2af   : > { %v16359_v3 = vpop.f32.mrf.mxu0  ;;  %v3113_v16 = vrot.slane %v3111_v35, 1  ;;  %v3252_v35 = vrot.slane %v18584_v40, 1  ;;  %v2525_v14 = vpack.c.bf16 %v2437_v61, %v2436_v44  ;;  %4676 = vmatprep.subr.bf16.mxu1 %v23768_v43  ;;  %v18881_v44 = vsel %vm3818_vm11, %v18584_v40, %v3188_v52 }
 0x2b0   : > { %v2292_v56 = vmul.f32 0.01, %v1900_v1  ;;  %vm2146_vm7 = vcmp.gt.f32.partialorder %v1900_v1, 0.0  ;;  %23774 = vst [vmem:[#allocation67_spill] sm:$0xff] %v18881_v44 }
 0x2b1   : > { %v1902_v50 = vpop.f32.mrf.mxu0  ;;  %v18860_v42 = vpop.f32.mrf.mxu1  ;;  %v3114_v4 = vsel %vm2874_vm14, %v3109_v45, %v3113_v16  ;;  %v2802_v61 = vunpack.c.h.b16 %v2525_v14 }
 0x2b2   : > { %23771 = vst [vmem:[#allocation64_spill] sm:$0xff] %v18860_v42  ;;  %v1903_v47 = vadd.f32 %v18620_v49, %v1902_v50  ;;  %3201 = vrot.lane.b32.xlu1 %v3114_v4, %s17679_s30  ;;  %v2438_v45 = vsel %vm2146_vm7, %v1900_v1, %v2292_v56  ;;  %v3190_v40 = vpop.permute.xlu1 %3189 }
 0x2b3   : > { %v16360_v27 = vpop.f32.mrf.mxu0  ;;  %v4497_v29 = vpop.f32.mrf.mxu1 }
 0x2b4   : > { %vm2147_vm8 = vcmp.gt.f32.partialorder %v1903_v47, 0.0  ;;  %v2293_v12 = vmul.f32 0.01, %v1903_v47  ;;  %v18875_v27 = vsel %vm3211_vm15, %v3252_v35, %v3253_v15 }
 0x2b5   : > { %v1907_v8 = vpop.f32.mrf.mxu0  ;;  %v18870_v3 = vpop.f32.mrf.mxu1  ;;  %23773 = vst [vmem:[#allocation66_spill] sm:$0xff] %v18875_v27 }
 0x2b6   : > { %23772 = vst [vmem:[#allocation65_spill] sm:$0xff] %v18870_v3  ;;  %v2439_v16 = vsel %vm2147_vm8, %v1903_v47, %v2293_v12  ;;  %v1908_v50 = vadd.f32 %v18620_v49, %v1907_v8  ;;  %v3343_v4 = vpop.permute.xlu0 %3342  ;;  %v3255_v47 = vrot.slane %v18611_v34, 1 }
 0x2b7   : > { %v2526_v29 = vpack.c.bf16 %v2439_v16, %v2438_v45  ;;  %v16363_v42 = vpop.f32.mrf.mxu0  ;;  %v4500_v53 = vpop.f32.mrf.mxu1  ;;  %v3969_v26 = vsel %vm3818_vm11, %v18875_v27, %v3343_v4 }
 0x2b8   : > { %4573 = vmatprep.mubr.bf16.mxu1 %v3969_v26  ;;  %v2294_v12 = vmul.f32 0.01, %v1908_v50  ;;  %vm2148_vm9 = vcmp.gt.f32.partialorder %v1908_v50, 0.0 }
 0x2b9   : > { %v2803_v1 = vunpack.c.l.b16 %v2526_v29  ;;  %v1910_v56 = vpop.f32.mrf.mxu0  ;;  %4574 = vmatmul.mubr.bf16.gmra.mxu1 %v18881_v44 }
 0x2ba   : > { %v1911_v35 = vadd.f32 %v18620_v49, %v1910_v56  ;;  %v18886_v42 = vpop.f32.mrf.mxu1  ;;  %v2440_v14 = vsel %vm2148_vm9, %v1908_v50, %v2294_v12  ;;  %v18893_v56 = vsel %vm3211_vm15, %v3253_v15, %v3255_v47  ;;  %v18902_v50 = vsel %vm3818_vm11, %v18605_v37, %v3190_v40 }
 0x2bb   : > { %23775 = vst [vmem:[#allocation68_spill] sm:$0xff] %v18886_v42  ;;  %v16364_v53 = vpop.f32.mrf.mxu0  ;;  %v3304_v8 = vpack.c.b16 %v2803_v1, %v2802_v61  ;;  %23777 = vst [vmem:[#allocation70_spill] sm:$0xff] %v18893_v56  ;;  %v16850_v61 = vld [vmem:[%s23706_s0 + $0xa0] sm:$0xff]  }
 0x2bc   : > { %vm2149_vm10 = vcmp.gt.f32.partialorder %v1911_v35, 0.0  ;;  %v2295_v45 = vmul.f32 0.01, %v1911_v35  ;;  %v4505_v16 = vpop.f32.mrf.mxu1  ;;  %23778 = vst [vmem:[#allocation71_spill] sm:$0xff] %v18902_v50  ;;  %4677 = vmatpush1.bf16.msra.mxu1 %v16850_v61 }
 0x2bd   : > { %3354 = vrot.lane.b32.xlu0 %v3304_v8, %s17679_s30  ;;  %v1915_v52 = vpop.f32.mrf.mxu0  ;;  %v3603_v12 = vshll.u32 %v3304_v8, 16  ;;  %4678 = vmatprep.subr.bf16.mxu1 %v23768_v43  ;;  %v3601_v40 = vshrl.u32 %v3304_v8, 16 }
 0x2be   : > { %v2441_v4 = vsel %vm2149_vm10, %v1911_v35, %v2295_v45  ;;  %v1916_v26 = vadd.f32 %v18620_v49, %v1915_v52  ;;  %v18890_v34 = vpop.f32.mrf.mxu1  ;;  %v3345_v27 = vpop.permute.xlu0 %3344  ;;  %v2804_v35 = vunpack.c.h.b16 %v2526_v29 }
 0x2bf   : > { %23776 = vst [vmem:[#allocation69_spill] sm:$0xff] %v18890_v34  ;;  %v2527_v1 = vpack.c.bf16 %v2441_v4, %v2440_v14  ;;  %v16367_v53 = vpop.f32.mrf.mxu0  ;;  %v3973_v16 = vsel %vm3818_vm11, %v18893_v56, %v3345_v27  ;;  %v15710_v47 = vpack.c.bf16 %v2441_v4, %v2441_v4  ;;  %v3605_v61 = vrot.slane %v3603_v12, 1 }
 0x2c0   : > { %v4508_v42 = vpop.f32.mrf.mxu1  ;;  %4581 = vmatprep.mubr.bf16.mxu1 %v3973_v16  ;;  %v2296_v52 = vmul.f32 0.01, %v1916_v26  ;;  %vm2150_vm12 = vcmp.gt.f32.partialorder %v1916_v26, 0.0  ;;  %v3715_v53 = vrot.slane %v3304_v8, 1 }
 0x2c1   : > { %v2805_v15 = vunpack.c.l.b16 %v2527_v1  ;;  %v1918_v45 = vpop.f32.mrf.mxu0  ;;  %4582 = vmatmul.mubr.bf16.gmra.mxu1 %v18902_v50  ;;  %v3616_v16 = vshll.u32 %v15710_v47, 16  ;;  %v3718_v1 = vrot.slane %v15710_v47, 1 }
 0x2c2   : > { %v1919_v14 = vadd.f32 %v18620_v49, %v1918_v45  ;;  %v2442_v34 = vsel %vm2150_vm12, %v1916_v26, %v2296_v52 }
 0x2c3   : > { %v16368_v27 = vpop.f32.mrf.mxu0  ;;  %v3305_v42 = vpack.c.b16 %v2805_v15, %v2804_v35  ;;  %v3618_v47 = vrot.slane %v3616_v16, 1 }
 0x2c4   : > { %vm2151_vm13 = vcmp.gt.f32.partialorder %v1919_v14, 0.0  ;;  %v2297_v37 = vmul.f32 0.01, %v1919_v14  ;;  %v3606_v27 = vor.u32 %v3605_v61, %v3601_v40 }
 0x2c5   : > { %3356 = vrot.lane.b32.xlu0 %v3305_v42, %s17679_s30  ;;  %v1923_v29 = vpop.f32.mrf.mxu0  ;;  %v3716_v4 = vrot.slane %v3305_v42, 1  ;;  %v3608_v56 = vshll.u32 %v3305_v42, 16  ;;  %v3612_v45 = vshrl.u32 %v3305_v42, 16  ;;  %v16851_v42 = vld [vmem:[%s23706_s0 + $0x98] sm:$0xff]  }
 0x2c6   : > { %v2443_v3 = vsel %vm2151_vm13, %v1919_v14, %v2297_v37  ;;  %v1924_v50 = vadd.f32 %v18620_v49, %v1923_v29  ;;  %v18920_v49 = vld [vmem:[%s23707_s29] ss:$0 sm:$0xff]  ;;  %4679 = vmatpush1.bf16.msra.mxu1 %v16851_v42 }
 0x2c7   : > { %v18909_v44 = vpack.c.bf16 %v2443_v3, %v2442_v34  ;;  %v16371_v35 = vpop.f32.mrf.mxu0  ;;  %v18912_v15 = vsel %vm3211_vm15, %v3716_v4, %v3718_v1  ;;  %v18915_v8 = vsel %vm3211_vm15, %v3715_v53, %v3716_v4  ;;  %v3610_v12 = vrot.slane %v3608_v56, 1  ;;  %4680 = vmatprep.subr.bf16.mxu1 %v23768_v43 }
 0x2c8   : > { %v2298_v54 = vmul.f32 0.01, %v1924_v50  ;;  %vm2152_vm1 = vcmp.gt.f32.partialorder %v1924_v50, 0.0 }
 0x2c9   : > { %v1926_v31 = vpop.f32.mrf.mxu0  ;;  %v3614_v28 = vor.u32 %v3612_v45, %v3610_v12  ;;  %v18924_v26 = vsel %vm2874_vm14, %v3606_v27, %v3610_v12  ;;  %v3118_v52 = vshll.u32 %v18909_v44, 16  ;;  %v3116_v1 = vshrl.u32 %v18909_v44, 16 }
 0x2ca   : > { %v1927_v3 = vadd.f32 %v18920_v49, %v1926_v31  ;;  %23779 = vst [vmem:[#allocation72_spill] sm:$0xff] %v18924_v26  ;;  %v2444_v37 = vsel %vm2152_vm1, %v1924_v50, %v2298_v54 }
 0x2cb   : > { %v16372_v34 = vpop.f32.mrf.mxu0  ;;  %v18928_v56 = vsel %vm2874_vm14, %v3614_v28, %v3618_v47  ;;  %v3120_v29 = vrot.slane %v3118_v52, 1 }
 0x2cc   : > { %23780 = vst [vmem:[#allocation73_spill] sm:$0xff] %v18928_v56  ;;  %vm2153_vm4 = vcmp.gt.f32.partialorder %v1927_v3, 0.0  ;;  %v2299_v14 = vmul.f32 0.01, %v1927_v3 }
 0x2cd   : > { %v1931_v53 = vpop.f32.mrf.mxu0  ;;  %v3121_v27 = vor.u32 %v3120_v29, %v3116_v1 }
 0x2ce   : > { %v2445_v40 = vsel %vm2153_vm4, %v1927_v3, %v2299_v14  ;;  %v1932_v31 = vadd.f32 %v18920_v49, %v1931_v53 }
 0x2cf   : > { %v18934_v61 = vpack.c.bf16 %v2445_v40, %v2444_v37  ;;  %v16375_v16 = vpop.f32.mrf.mxu0 }
 0x2d0   : > { %vm2154_vm5 = vcmp.gt.f32.partialorder %v1932_v31, 0.0  ;;  %v2300_v28 = vmul.f32 0.01, %v1932_v31 }
 0x2d1   : > { %v1934_v4 = vpop.f32.mrf.mxu0  ;;  %v3123_v45 = vshll.u32 %v18934_v61, 16  ;;  %v3127_v52 = vshrl.u32 %v18934_v61, 16 }
 0x2d2   : > { %v2446_v35 = vsel %vm2154_vm5, %v1932_v31, %v2300_v28  ;;  %v1935_v54 = vadd.f32 %v18920_v49, %v1934_v4 }
 0x2d3   : > { %v18940_v50 = vpack.c.bf16 %v2446_v35, %v2446_v35  ;;  %v16376_v12 = vpop.f32.mrf.mxu0  ;;  %v3125_v47 = vrot.slane %v3123_v45, 1 }
 0x2d4   : > { %v2301_v42 = vmul.f32 0.01, %v1935_v54  ;;  %vm2155_vm6 = vcmp.gt.f32.partialorder %v1935_v54, 0.0  ;;  %v16852_v12 = vld [vmem:[%s23706_s0 + $0x90] sm:$0xff]  }
 0x2d5   : > { %v1939_v3 = vpop.f32.mrf.mxu0  ;;  %v3126_v34 = vsel %vm2874_vm14, %v3121_v27, %v3125_v47  ;;  %v3131_v14 = vshll.u32 %v18940_v50, 16  ;;  %v3129_v40 = vor.u32 %v3127_v52, %v3125_v47  ;;  %v3258_v47 = vrot.slane %v18696_v9, 1  ;;  %4681 = vmatpush1.bf16.msra.mxu1 %v16852_v12 }
 0x2d6   : > { %v1940_v53 = vadd.f32 %v18920_v49, %v1939_v3  ;;  %3203 = vrot.lane.b32.xlu1 %v3126_v34, %s17679_s30  ;;  %v2447_v28 = vsel %vm2155_vm6, %v1935_v54, %v2301_v42  ;;  %4682 = vmatprep.subr.bf16.mxu1 %v23768_v43  ;;  %v3192_v42 = vpop.permute.xlu1 %3191 }
 0x2d7   : > { %v16379_v37 = vpop.f32.mrf.mxu0  ;;  %v3133_v31 = vrot.slane %v3131_v14, 1  ;;  %v2530_v54 = vpack.c.bf16 %v2447_v28, %v2446_v35  ;;  %v3257_v14 = vrot.slane %v18681_v5, 1 }
 0x2d8   : > { %v2302_v4 = vmul.f32 0.01, %v1940_v53  ;;  %vm2156_vm7 = vcmp.gt.f32.partialorder %v1940_v53, 0.0 }
 0x2d9   : > { %v1942_v16 = vpop.f32.mrf.mxu0  ;;  %v3134_v29 = vsel %vm2874_vm14, %v3129_v40, %v3133_v31  ;;  %v18962_v26 = vsel %vm3211_vm15, %v3257_v14, %v3258_v47  ;;  %v2812_v28 = vunpack.c.h.b16 %v2530_v54  ;;  %v3260_v54 = vrot.slane %v18702_v0, 1 }
 0x2da   : > { %v1943_v1 = vadd.f32 %v18920_v49, %v1942_v16  ;;  %v18949_v45 = vpop.f32.mrf.mxu1  ;;  %3205 = vrot.lane.b32.xlu1 %v3134_v29, %s17679_s30  ;;  %v2448_v37 = vsel %vm2156_vm7, %v1940_v53, %v2302_v4  ;;  %23783 = vst [vmem:[#allocation76_spill] sm:$0xff] %v18962_v26  ;;  %v18968_v53 = vsel %vm3818_vm11, %v18681_v5, %v3192_v42 }
 0x2db   : > { %23781 = vst [vmem:[#allocation74_spill] sm:$0xff] %v18949_v45  ;;  %v16380_v27 = vpop.f32.mrf.mxu0  ;;  %23784 = vst [vmem:[#allocation77_spill] sm:$0xff] %v18968_v53 }
 0x2dc   : > { %vm2157_vm8 = vcmp.gt.f32.partialorder %v1943_v1, 0.0  ;;  %v2303_v3 = vmul.f32 0.01, %v1943_v1  ;;  %v4513_v34 = vpop.f32.mrf.mxu1 }
 0x2dd   : > { %v1947_v52 = vpop.f32.mrf.mxu0 }
 0x2de   : > { %v2449_v40 = vsel %vm2157_vm8, %v1943_v1, %v2303_v3  ;;  %v1948_v31 = vadd.f32 %v18920_v49, %v1947_v52  ;;  %v18959_v16 = vpop.f32.mrf.mxu1 }
 0x2df   : > { %23782 = vst [vmem:[#allocation75_spill] sm:$0xff] %v18959_v16  ;;  %v2531_v29 = vpack.c.bf16 %v2449_v40, %v2448_v37  ;;  %v3347_v27 = vpop.permute.xlu0 %3346  ;;  %v16383_v45 = vpop.f32.mrf.mxu0 }
 0x2e0   : > { %v4516_v12 = vpop.f32.mrf.mxu1  ;;  %v3977_v35 = vsel %vm3818_vm11, %v18962_v26, %v3347_v27  ;;  %v2304_v4 = vmul.f32 0.01, %v1948_v31  ;;  %v16853_v45 = vld [vmem:[%s23706_s0 + $0x88] sm:$0xff]   ;;  %vm2158_vm9 = vcmp.gt.f32.partialorder %v1948_v31, 0.0  ;;  %v3194_v40 = vpop.permute.xlu1 %3193 }
 0x2e1   : > { %v2813_v34 = vunpack.c.l.b16 %v2531_v29  ;;  %v1950_v56 = vpop.f32.mrf.mxu0  ;;  %4589 = vmatprep.mubr.bf16.mxu1 %v3977_v35  ;;  %4683 = vmatpush1.bf16.msra.mxu1 %v16853_v45  ;;  %v18987_v45 = vsel %vm3211_vm15, %v3258_v47, %v3260_v54  ;;  %v2814_v16 = vunpack.c.h.b16 %v2531_v29 }
 0x2e2   : > { %v1951_v1 = vadd.f32 %v18920_v49, %v1950_v56  ;;  %v18971_v3 = vpop.f32.mrf.mxu1  ;;  %4590 = vmatmul.mubr.bf16.gmra.mxu1 %v18968_v53  ;;  %v16854_v56 = vld [vmem:[%s23706_s0 + $0x80] sm:$0xff]   ;;  %4684 = vmatprep.subr.bf16.mxu1 %v23768_v43  ;;  %v2450_v27 = vsel %vm2158_vm9, %v1948_v31, %v2304_v4  ;;  %23787 = vst [vmem:[#allocation80_spill] sm:$0xff] %v18987_v45 }
 0x2e3   : > { %23785 = vst [vmem:[#allocation78_spill] sm:$0xff] %v18971_v3  ;;  %v16384_v52 = vpop.f32.mrf.mxu0  ;;  %v3306_v14 = vpack.c.b16 %v2813_v34, %v2812_v28 }
 0x2e4   : > { %vm2159_vm10 = vcmp.gt.f32.partialorder %v1951_v1, 0.0  ;;  %v2305_v37 = vmul.f32 0.01, %v1951_v1  ;;  %v4521_v5 = vpop.f32.mrf.mxu1 }
 0x2e5   : > { %3358 = vrot.lane.b32.xlu0 %v3306_v14, %s17679_s30  ;;  %v1955_v42 = vpop.f32.mrf.mxu0  ;;  %4685 = vmatpush1.bf16.msra.mxu1 %v16854_v56  ;;  %v3623_v3 = vshll.u32 %v3306_v14, 16 }
 0x2e6   : > { %v2451_v12 = vsel %vm2159_vm10, %v1951_v1, %v2305_v37  ;;  %v1956_v0 = vadd.f32 %v18920_v49, %v1955_v42  ;;  %v18984_v35 = vpop.f32.mrf.mxu1  ;;  %v18993_v1 = vsel %vm3818_vm11, %v18696_v9, %v3194_v40  ;;  %4686 = vmatprep.subr.bf16.mxu1 %v23768_v43  ;;  %v3720_v42 = vrot.slane %v3306_v14, 1 }
 0x2e7   : > { %23786 = vst [vmem:[#allocation79_spill] sm:$0xff] %v18984_v35  ;;  %v2532_v28 = vpack.c.bf16 %v2451_v12, %v2450_v27  ;;  %v3349_v34 = vpop.permute.xlu0 %3348  ;;  %v16387_v52 = vpop.f32.mrf.mxu0  ;;  %v15711_v31 = vpack.c.bf16 %v2451_v12, %v2451_v12  ;;  %23788 = vst [vmem:[#allocation81_spill] sm:$0xff] %v18993_v1  ;;  %v3621_v27 = vshrl.u32 %v3306_v14, 16  ;;  %v3625_v12 = vrot.slane %v3623_v3, 1 }
 0x2e8   : > { %v4524_v5 = vpop.f32.mrf.mxu1  ;;  %v3981_v26 = vsel %vm3818_vm11, %v18987_v45, %v3349_v34  ;;  %v2306_v37 = vmul.f32 0.01, %v1956_v0  ;;  %vm2160_vm12 = vcmp.gt.f32.partialorder %v1956_v0, 0.0 }
 0x2e9   : > { %v2815_v53 = vunpack.c.l.b16 %v2532_v28  ;;  %v1958_v4 = vpop.f32.mrf.mxu0  ;;  %4597 = vmatprep.mubr.bf16.mxu1 %v3981_v26  ;;  %v3636_v26 = vshll.u32 %v15711_v31, 16  ;;  %v3723_v28 = vrot.slane %v15711_v31, 1  ;;  %v16855_v31 = vld [vmem:[%s23706_s0 + $0xf8] sm:$0xff]  }
 0x2ea   : > { %v1959_v47 = vadd.f32 %v18920_v49, %v1958_v4  ;;  %4598 = vmatmul.mubr.bf16.gmra.mxu1 %v18993_v1  ;;  %v2452_v52 = vsel %vm2160_vm12, %v1956_v0, %v2306_v37 }
 0x2eb   : > { %v16388_v54 = vpop.f32.mrf.mxu0  ;;  %v3307_v56 = vpack.c.b16 %v2815_v53, %v2814_v16  ;;  %4687 = vmatpush2.bf16.msra.mxu1 %v16855_v31 }
 0x2ec   : > { %vm2161_vm13 = vcmp.gt.f32.partialorder %v1959_v47, 0.0  ;;  %v2307_v29 = vmul.f32 0.01, %v1959_v47  ;;  %v3626_v54 = vor.u32 %v3625_v12, %v3621_v27  ;;  %4688 = vmatprep.subr.bf16.mxu1 %v23768_v43 }
 0x2ed   : > { %3360 = vrot.lane.b32.xlu0 %v3307_v56, %s17679_s30  ;;  %v1963_v9 = vpop.f32.mrf.mxu0  ;;  %v3721_v40 = vrot.slane %v3307_v56, 1  ;;  %v3628_v34 = vshll.u32 %v3307_v56, 16  ;;  %v3632_v45 = vshrl.u32 %v3307_v56, 16 }
 0x2ee   : > { %v2453_v5 = vsel %vm2161_vm13, %v1959_v47, %v2307_v29  ;;  %v1964_v4 = vadd.f32 %v18920_v49, %v1963_v9  ;;  %v3638_v47 = vrot.slane %v3636_v26, 1 }
 0x2ef   : > { %v19000_v35 = vpack.c.bf16 %v2453_v5, %v2452_v52  ;;  %v16391_v16 = vpop.f32.mrf.mxu0  ;;  %v19003_v53 = vsel %vm3211_vm15, %v3721_v40, %v3723_v28  ;;  %v19006_v3 = vsel %vm3211_vm15, %v3720_v42, %v3721_v40  ;;  %v3630_v14 = vrot.slane %v3628_v34, 1 }
 0x2f0   : > { %v2308_v29 = vmul.f32 0.01, %v1964_v4  ;;  %vm2162_vm1 = vcmp.gt.f32.partialorder %v1964_v4, 0.0 }
 0x2f1   : > { %v1966_v0 = vpop.f32.mrf.mxu0  ;;  %v3634_v37 = vor.u32 %v3632_v45, %v3630_v14  ;;  %v19013_v9 = vsel %vm2874_vm14, %v3626_v54, %v3630_v14  ;;  %v3138_v42 = vshll.u32 %v19000_v35, 16  ;;  %v16856_v45 = vld [vmem:[%s23706_s0 + $0xf0] sm:$0xff]  }
 0x2f2   : > { %v1967_v56 = vadd.f32 %v18920_v49, %v1966_v0  ;;  %v2454_v26 = vsel %vm2162_vm1, %v1964_v4, %v2308_v29  ;;  %4689 = vmatpush2.bf16.msra.mxu1 %v16856_v45  ;;  %v3136_v0 = vshrl.u32 %v19000_v35, 16  ;;  %v16857_v29 = vld [vmem:[%s23706_s0 + $0xe8] sm:$0xff]  }
 0x2f3   : > { %v16392_v28 = vpop.f32.mrf.mxu0  ;;  %v19018_v40 = vsel %vm2874_vm14, %v3634_v37, %v3638_v47  ;;  %v3140_v14 = vrot.slane %v3138_v42, 1  ;;  %4690 = vmatprep.subr.bf16.mxu1 %v23768_v43 }
 0x2f4   : > { %vm2163_vm4 = vcmp.gt.f32.partialorder %v1967_v56, 0.0  ;;  %v2309_v27 = vmul.f32 0.01, %v1967_v56 }
 0x2f5   : > { %v1971_v12 = vpop.f32.mrf.mxu0  ;;  %v3141_v42 = vor.u32 %v3140_v14, %v3136_v0  ;;  %v16858_v14 = vld [vmem:[%s23706_s0 + $0xe0] sm:$0xff]  }
 0x2f6   : > { %v2455_v34 = vsel %vm2163_vm4, %v1967_v56, %v2309_v27  ;;  %v1972_v52 = vadd.f32 %v18920_v49, %v1971_v12  ;;  %4691 = vmatpush2.bf16.msra.mxu1 %v16857_v29 }
 0x2f7   : > { %v19024_v5 = vpack.c.bf16 %v2455_v34, %v2454_v26  ;;  %v16395_v16 = vpop.f32.mrf.mxu0  ;;  %4692 = vmatprep.subr.bf16.mxu1 %v23768_v43 }
 0x2f8   : > { %vm2164_vm5 = vcmp.gt.f32.partialorder %v1972_v52, 0.0  ;;  %v2310_v31 = vmul.f32 0.01, %v1972_v52 }
 0x2f9   : > { %v1974_v54 = vpop.f32.mrf.mxu0  ;;  %v3143_v37 = vshll.u32 %v19024_v5, 16  ;;  %v3147_v26 = vshrl.u32 %v19024_v5, 16 }
 0x2fa   : > { %v2456_v47 = vsel %vm2164_vm5, %v1972_v52, %v2310_v31  ;;  %v1975_v4 = vadd.f32 %v18920_v49, %v1974_v54  ;;  %4693 = vmatpush2.bf16.msra.mxu1 %v16858_v14 }
 0x2fb   : > { %v19033_v56 = vpack.c.bf16 %v2456_v47, %v2456_v47  ;;  %v16396_v28 = vpop.f32.mrf.mxu0  ;;  %v3145_v27 = vrot.slane %v3143_v37, 1  ;;  %4694 = vmatprep.subr.bf16.mxu1 %v23768_v43 }
 0x2fc   : > { %v2311_v52 = vmul.f32 0.01, %v1975_v4  ;;  %vm2165_vm6 = vcmp.gt.f32.partialorder %v1975_v4, 0.0 }
 0x2fd   : > { %v1979_v45 = vpop.f32.mrf.mxu0  ;;  %v3146_v12 = vsel %vm2874_vm14, %v3141_v42, %v3145_v27  ;;  %v3151_v34 = vshll.u32 %v19033_v56, 16  ;;  %v3149_v54 = vor.u32 %v3147_v26, %v3145_v27 }
 0x2fe   : > { %v1980_v16 = vadd.f32 %v18920_v49, %v1979_v45  ;;  %3207 = vrot.lane.b32.xlu1 %v3146_v12, %s17679_s30  ;;  %v2457_v42 = vsel %vm2165_vm6, %v1975_v4, %v2311_v52  ;;  %v3262_v52 = vrot.slane %v18753_v24, 1 }
 0x2ff   : > { %v16399_v31 = vpop.f32.mrf.mxu0  ;;  %v3153_v0 = vrot.slane %v3151_v34, 1  ;;  %v3263_v34 = vrot.slane %v18770_v6, 1 }
 0x300   : > { %v2312_v45 = vmul.f32 0.01, %v1980_v16  ;;  %v16859_v31 = vld [vmem:[%s23706_s0 + $0xd8] sm:$0xff]   ;;  %vm2166_vm7 = vcmp.gt.f32.partialorder %v1980_v16, 0.0 }
 0x301   : > { %v1982_v37 = vpop.f32.mrf.mxu0  ;;  %v19044_v29 = vpop.f32.mrf.mxu1  ;;  %v3154_v28 = vsel %vm2874_vm14, %v3149_v54, %v3153_v0  ;;  %4695 = vmatpush2.bf16.msra.mxu1 %v16859_v31  ;;  %v2535_v54 = vpack.c.bf16 %v2457_v42, %v2456_v47  ;;  %v16860_v31 = vld [vmem:[%s23706_s0 + $0xd0] sm:$0xff]  }
 0x302   : > { %23789 = vst [vmem:[#allocation82_spill] sm:$0xff] %v19044_v29  ;;  %v1983_v12 = vadd.f32 %v18920_v49, %v1982_v37  ;;  %3209 = vrot.lane.b32.xlu1 %v3154_v28, %s17679_s30  ;;  %4696 = vmatprep.subr.bf16.mxu1 %v23768_v43  ;;  %v3196_v37 = vpop.permute.xlu1 %3195  ;;  %v2458_v28 = vsel %vm2166_vm7, %v1980_v16, %v2312_v45 }
 0x303   : > { %v16400_v27 = vpop.f32.mrf.mxu0  ;;  %v4529_v26 = vpop.f32.mrf.mxu1  ;;  %v2822_v45 = vunpack.c.h.b16 %v2535_v54  ;;  %v16861_v54 = vld [vmem:[%s23706_s0 + $0xc8] sm:$0xff]  }
 0x304   : > { %vm2167_vm8 = vcmp.gt.f32.partialorder %v1983_v12, 0.0  ;;  %v2313_v14 = vmul.f32 0.01, %v1983_v12  ;;  %v19065_v26 = vsel %vm3211_vm15, %v3262_v52, %v3263_v34 }
 0x305   : > { %v1987_v0 = vpop.f32.mrf.mxu0  ;;  %v19054_v4 = vpop.f32.mrf.mxu1  ;;  %23791 = vst [vmem:[#allocation84_spill] sm:$0xff] %v19065_v26  ;;  %4697 = vmatpush2.bf16.msra.mxu1 %v16860_v31 }
 0x306   : > { %23790 = vst [vmem:[#allocation83_spill] sm:$0xff] %v19054_v4  ;;  %v2459_v29 = vsel %vm2167_vm8, %v1983_v12, %v2313_v14  ;;  %v1988_v1 = vadd.f32 %v18920_v49, %v1987_v0  ;;  %3732 = vrot.lane.b32.xlu1 %v18055_v13, %s17679_s30  ;;  %v19071_v13 = vsel %vm3818_vm11, %v18753_v24, %v3196_v37 }
 0x307   : > { %v2536_v47 = vpack.c.bf16 %v2459_v29, %v2458_v28  ;;  %v3351_v42 = vpop.permute.xlu0 %3350  ;;  %v16403_v27 = vpop.f32.mrf.mxu0  ;;  %4698 = vmatprep.subr.bf16.mxu1 %v23768_v43 }
 0x308   : > { %v4532_v4 = vpop.f32.mrf.mxu1  ;;  %v3985_v16 = vsel %vm3818_vm11, %v19065_v26, %v3351_v42  ;;  %v2314_v29 = vmul.f32 0.01, %v1988_v1  ;;  %vm2168_vm9 = vcmp.gt.f32.partialorder %v1988_v1, 0.0 }
 0x309   : > { %v2823_v12 = vunpack.c.l.b16 %v2536_v47  ;;  %v1990_v14 = vpop.f32.mrf.mxu0  ;;  %4605 = vmatprep.mubr.bf16.mxu1 %v3985_v16  ;;  %v3265_v4 = vrot.slane %v18775_v36, 1  ;;  %4699 = vmatpush2.bf16.msra.mxu1 %v16861_v54  ;;  %v3198_v36 = vpop.permute.xlu1 %3197 }
 0x30a   : > { %v1991_v0 = vadd.f32 %v18920_v49, %v1990_v14  ;;  %v19075_v52 = vpop.f32.mrf.mxu1  ;;  %4606 = vmatmul.mubr.bf16.gmra.mxu1 %v19071_v13  ;;  %3736 = vrot.lane.b32.xlu1 %v18125_v17, %s17679_s30  ;;  %v16862_v17 = vld [vmem:[%s23706_s0 + $0xc0] sm:$0xff]   ;;  %v2460_v27 = vsel %vm2168_vm9, %v1988_v1, %v2314_v29  ;;  %v2824_v1 = vunpack.c.h.b16 %v2536_v47 }
 0x30b   : > { %v16404_v24 = vpop.f32.mrf.mxu0  ;;  %v19084_v37 = vpack.c.b16 %v2823_v12, %v2822_v45  ;;  %4700 = vmatprep.subr.bf16.mxu1 %v23768_v43  ;;  %v19099_v54 = vsel %vm3211_vm15, %v3263_v34, %v3265_v4 }
 0x30c   : > { %vm2169_vm10 = vcmp.gt.f32.partialorder %v1991_v0, 0.0  ;;  %v2315_v28 = vmul.f32 0.01, %v1991_v0  ;;  %v4537_v31 = vpop.f32.mrf.mxu1 }
 0x30d   : > { %3362 = vrot.lane.b32.xlu0 %v19084_v37, %s17679_s30  ;;  %v19088_v42 = vpop.f32.mrf.mxu0  ;;  %v3643_v31 = vshll.u32 %v19084_v37, 16  ;;  %4701 = vmatpush2.bf16.msra.mxu1 %v16862_v17  ;;  %v3641_v17 = vshrl.u32 %v19084_v37, 16 }
 0x30e   : > { %v2461_v16 = vsel %vm2169_vm10, %v1991_v0, %v2315_v28  ;;  %v19094_v45 = vpop.f32.mrf.mxu1  ;;  %3740 = vrot.lane.b32.xlu1 %v18184_v32, %s17679_s30  ;;  %v19108_v32 = vsel %vm3818_vm11, %v18770_v6, %v3198_v36  ;;  %v3660_v36 = vrot.slane %v18027_v46, 1 }
 0x30f   : > { %v2537_v12 = vpack.c.bf16 %v2461_v16, %v2460_v27  ;;  %v3353_v14 = vpop.permute.xlu0 %3352  ;;  %v16407_v24 = vpop.f32.mrf.mxu0  ;;  %v19104_v0 = vpack.c.bf16 %v2461_v16, %v2461_v16  ;;  %v3645_v4 = vrot.slane %v3643_v31, 1 }
 0x310   : > { %v4540_v43 = vpop.f32.mrf.mxu1  ;;  %v3989_v26 = vsel %vm3818_vm11, %v19099_v54, %v3353_v14  ;;  %v23792_v14 = vrot.slane %v18040_v2, 1 }
 0x311   : > { %v2825_v29 = vunpack.c.l.b16 %v2537_v12  ;;  %4613 = vmatprep.mubr.bf16.mxu1 %v3989_v26  ;;  %v1998_v28 = vpop.f32.mrf.mxu0  ;;  %v3656_v47 = vshll.u32 %v19104_v0, 16  ;;  %v3646_v27 = vor.u32 %v3645_v4, %v3641_v17 }
 0x312   : > { %4614 = vmatmul.mubr.bf16.gmra.mxu1 %v19108_v32  ;;  %3744 = vrot.lane.b32.xlu1 %v18251_v23, %s17679_s30  ;;  %v3662_v24 = vsel %vm3211_vm15, %v3660_v36, %v23792_v14 }
 0x313   : > { %v19113_v43 = vpack.c.b16 %v2825_v29, %v2824_v1  ;;  %v16408_v34 = vpop.f32.mrf.mxu0  ;;  %v3658_v29 = vrot.slane %v3656_v47, 1 }
 0x315   : > { %3364 = vrot.lane.b32.xlu0 %v19113_v43, %s17679_s30  ;;  %v2003_v26 = vpop.f32.mrf.mxu0  ;;  %v3648_v6 = vshll.u32 %v19113_v43, 16  ;;  %v3652_v12 = vshrl.u32 %v19113_v43, 16 }
 0x316   : > { %3748 = vrot.lane.b32.xlu1 %v18339_v22, %s17679_s30  ;;  %v2004_v14 = vadd.f32 %v18920_v49, %v2003_v26  ;;  %v3725_v26 = vrot.slane %v19084_v37, 1 }
 0x317   : > { %v16411_v23 = vpop.f32.mrf.mxu0  ;;  %v3650_v16 = vrot.slane %v3648_v6, 1 }
 0x318   : > { %v1999_v23 = vadd.f32 %v18920_v49, %v1998_v28  ;;  %vm2172_vm1 = vcmp.gt.f32.partialorder %v2004_v14, 0.0 }
 0x319   : > { %3730 = vrot.lane.b32.xlu0 %v3662_v24, %s17679_s30  ;;  %v2006_v31 = vpop.f32.mrf.mxu0  ;;  %v19129_v1 = vsel %vm2874_vm14, %v3646_v27, %v3650_v16  ;;  %v3654_v34 = vor.u32 %v3652_v12, %v3650_v16 }
 0x31a   : > { %3752 = vrot.lane.b32.xlu1 %v18421_v20, %s17679_s30  ;;  %v2317_v12 = vmul.f32 0.01, %v1999_v23  ;;  %vm2171_vm13 = vcmp.gt.f32.partialorder %v1999_v23, 0.0 }
 0x31b   : > { %v16412_v22 = vpop.f32.mrf.mxu0  ;;  %v19134_v4 = vsel %vm2874_vm14, %v3654_v34, %v3658_v29 }
 0x31c   : > { %v2463_v22 = vsel %vm2171_vm13, %v1999_v23, %v2317_v12 }
 0x31d   : > { %3734 = vrot.lane.b32.xlu0 %v18128_v18, %s17679_s30  ;;  %v2011_v2 = vpop.f32.mrf.mxu0 }
 0x31e   : > { %3756 = vrot.lane.b32.xlu1 %v18504_v51, %s17679_s30  ;;  %v3268_v51 = vrot.slane %v18847_v58, 1 }
 0x31f   : > { %v16415_v17 = vpop.f32.mrf.mxu0 }
 0x320   : > { %v3200_v6 = vpop.permute.xlu1 %3199  ;;  %v2318_v17 = vmul.f32 0.01, %v2004_v14 }
 0x321   : > { %3738 = vrot.lane.b32.xlu0 %v18187_v33, %s17679_s30  ;;  %v2014_v47 = vpop.f32.mrf.mxu0 }
 0x322   : > { %3760 = vrot.lane.b32.xlu1 %v18587_v41, %s17679_s30 }
 0x323   : > { %v16416_v20 = vpop.f32.mrf.mxu0 }
 0x324   : > { %v3202_v24 = vpop.permute.xlu1 %3201 }
 0x325   : > { %3742 = vrot.lane.b32.xlu0 %v18254_v25, %s17679_s30  ;;  %v3267_v25 = vrot.slane %v18827_v59, 1  ;;  %v19204_v37 = vsel %vm3818_vm11, %v18847_v58, %v3202_v24  ;;  %v2876_v58 = vshrl.u32 %v17967_v55, 16 }
 0x326   : > { %3764 = vrot.lane.b32.xlu1 %v18676_v39, %s17679_s30 }
 0x329   : > { %3746 = vrot.lane.b32.xlu0 %v18342_v48, %s17679_s30  ;;  %v19150_v18 = vpop.f32.mrf.mxu1  ;;  %v1996_v48 = vadd.f32 %v18920_v49, %v19088_v42  ;;  %v3270_v42 = vrot.slane %v18853_v21, 1  ;;  %v3726_v21 = vrot.slane %v19113_v43, 1  ;;  %v2012_v43 = vadd.f32 %v18920_v49, %v2011_v2 }
 0x32a   : > { %3768 = vrot.lane.b32.xlu1 %v18756_v57, %s17679_s30  ;;  %v19165_v57 = vsel %vm3211_vm15, %v3267_v25, %v3268_v51  ;;  %v2464_v2 = vsel %vm2172_vm1, %v2004_v14, %v2318_v17  ;;  %v3728_v25 = vrot.slane %v19104_v0, 1 }
 0x32b   : > { %v4545_v33 = vpop.f32.mrf.mxu1  ;;  %v2316_v28 = vmul.f32 0.01, %v1996_v48  ;;  %vm2170_vm12 = vcmp.gt.f32.partialorder %v1996_v48, 0.0  ;;  %vm2174_vm5 = vcmp.gt.f32.partialorder %v2012_v43, 0.0 }
 0x32c   : > { %v3727_v33 = vsel %vm3211_vm15, %v3725_v26, %v3726_v21 }
 0x32d   : > { %3750 = vrot.lane.b32.xlu0 %v18424_v10, %s17679_s30  ;;  %v19157_v41 = vpop.f32.mrf.mxu1  ;;  %v2462_v29 = vsel %vm2170_vm12, %v1996_v48, %v2316_v28  ;;  %v2320_v48 = vmul.f32 0.01, %v2012_v43 }
 0x32e   : > { %3772 = vrot.lane.b32.xlu1 %v18830_v11, %s17679_s30  ;;  %v19176_v11 = vsel %vm3818_vm11, %v18827_v59, %v3200_v6 }
 0x32f   : > { %v3355_v39 = vpop.permute.xlu0 %3354  ;;  %v4548_v36 = vpop.f32.mrf.mxu1  ;;  %v2466_v23 = vsel %vm2174_vm5, %v2012_v43, %v2320_v48 }
 0x330   : > { %v3993_v10 = vsel %vm3818_vm11, %v19165_v57, %v3355_v39 }
 0x331   : > { %4621 = vmatprep.mubr.bf16.mxu1 %v3993_v10  ;;  %3754 = vrot.lane.b32.xlu0 %v18507_v30, %s17679_s30  ;;  %v19172_v27 = vpop.f32.mrf.mxu1  ;;  %v2007_v30 = vadd.f32 %v18920_v49, %v2006_v31  ;;  %v2878_v31 = vshll.u32 %v17967_v55, 16  ;;  %v16864_v10 = vld [vmem:[%s17809_s4 + $0x250] sm:$0xff]  }
 0x332   : > { %4622 = vmatmul.mubr.bf16.gmra.mxu1 %v19176_v11  ;;  %3776 = vrot.lane.b32.xlu1 %v18912_v15, %s17679_s30  ;;  %v19192_v15 = vsel %vm3211_vm15, %v3268_v51, %v3270_v42  ;;  %v19207_v51 = vpack.c.bf16 %v2463_v22, %v2462_v29 }
 0x333   : > { %v4553_v16 = vpop.f32.mrf.mxu1  ;;  %v2319_v47 = vmul.f32 0.01, %v2007_v30  ;;  %vm2173_vm4 = vcmp.gt.f32.partialorder %v2007_v30, 0.0  ;;  %v2880_v49 = vrot.slane %v2878_v31, 1 }
 0x334   : > { %v3792_v0 = vshll.u32 %v19207_v51, 16  ;;  %v3790_v28 = vshrl.u32 %v19207_v51, 16 }
 0x335   : > { %3758 = vrot.lane.b32.xlu0 %v18590_v38, %s17679_s30  ;;  %v19186_v59 = vpop.f32.mrf.mxu1  ;;  %v2465_v6 = vsel %vm2173_vm4, %v2007_v30, %v2319_v47  ;;  %v2881_v36 = vor.u32 %v2880_v49, %v2876_v58  ;;  %v3275_v49 = vrot.slane %v18940_v50, 1  ;;  %v16865_v50 = vld [vmem:[%s23706_s0 + $0x118] sm:$0xff]  }
 0x336   : > { %3780 = vrot.lane.b32.xlu1 %v19003_v53, %s17679_s30  ;;  %v16863_v53 = vld [vmem:[%s17809_s4 + $0x248] sm:$0xff]   ;;  %v19220_v39 = vpack.c.bf16 %v2465_v6, %v2464_v2  ;;  %v3794_v16 = vrot.slane %v3792_v0, 1  ;;  %16425 = vmatprep.subr.bf16.mxu1 %v16865_v50 }
 0x337   : > { %v3357_v34 = vpop.permute.xlu0 %3356  ;;  %v4556_v38 = vpop.f32.mrf.mxu1  ;;  %16418 = vmatmul.mubr.msk.bf16.gmra.mxu0 %vm1168_vm3, %v16863_v53  ;;  %v2886_v42 = vsel %vm2874_vm14, %v2881_v36, %v18038_v63 }
 0x338   : > { %v3997_v20 = vsel %vm3818_vm11, %v19192_v15, %v3357_v34  ;;  %16421 = vmatprep.mubr.msk.bf16.mxu0 %vm17677_vm2, %v23727_v7  ;;  %v3797_v12 = vshll.u32 %v19220_v39, 16  ;;  %v3795_v14 = vor.u32 %v3794_v16, %v3790_v28  ;;  %v3273_v34 = vrot.slane %v18934_v61, 1  ;;  %v23813_v7 = vld [vmem:[#allocation73_spill] sm:$0xff] }
 0x339   : > { %4629 = vmatprep.mubr.bf16.mxu1 %v3997_v20  ;;  %3762 = vrot.lane.b32.xlu0 %v18679_v60, %s17679_s30  ;;  %v3729_v60 = vsel %vm3211_vm15, %v3726_v21, %v3728_v25  ;;  %v3278_v16 = vrot.slane %v19024_v5, 1 }
 0x33a   : > { %4630 = vmatmul.mubr.bf16.gmra.mxu1 %v19204_v37  ;;  %3782 = vrot.lane.b32.xlu1 %v3727_v33, %s17679_s30  ;;  %v3799_v30 = vrot.slane %v3797_v12, 1  ;;  %v19268_v58 = vsel %vm3211_vm15, %v3273_v34, %v3275_v49 }
 0x33c   : > { %v3800_v21 = vsel %vm2874_vm14, %v3795_v14, %v3799_v30 }
 0x33d   : > { %3766 = vrot.lane.b32.xlu0 %v18759_v19, %s17679_s30  ;;  %v19229_v19 = vpack.c.bf16 %v2466_v23, %v2466_v23 }
 0x33e   : > { %3784 = vrot.lane.b32.xlu1 %v3729_v60, %s17679_s30 }
 0x33f   : > { %23793 = vst [vmem:[#allocation85_spill] sm:$0xff] %v19229_v19  ;;  %16422 = vmatmul.mubr.msk.bf16.gmra.mxu0 %vm1168_vm3, %v16864_v10  ;;  %v3805_v63 = vshll.u32 %v19229_v19, 16  ;;  %vm5446_vm3 = vcmask 261120  }
 0x341   : > { %3770 = vrot.lane.b32.xlu0 %v18833_v62, %s17679_s30  ;;  %v3801_v62 = vshrl.u32 %v19220_v39, 16  ;;  %v3807_v29 = vrot.slane %v3805_v63, 1 }
 0x342   : > { %3155 = vrot.lane.b32.xlu1 %v2886_v42, %s17679_s30 }
 0x343   : > { %v3803_v24 = vor.u32 %v3801_v62, %v3799_v30 }
 0x345   : > { %3774 = vrot.lane.b32.xlu0 %v18915_v8, %s17679_s30  ;;  %v3808_v26 = vsel %vm2874_vm14, %v3803_v24, %v3807_v29 }
 0x348   : > { %v3204_v38 = vpop.permute.xlu1 %3203 }
 0x349   : > { %3778 = vrot.lane.b32.xlu0 %v19006_v3, %s17679_s30  ;;  %v3272_v3 = vrot.slane %v18909_v44, 1  ;;  %v19261_v33 = vsel %vm3818_vm11, %v18909_v44, %v3204_v38 }
 0x34b   : > { %v19253_v43 = vsel %vm3211_vm15, %v3272_v3, %v3273_v34 }
 0x34c   : > { %v3206_v6 = vpop.permute.xlu1 %3205 }
 0x34d   : > { %3809 = vrot.lane.b32.xlu0 %v3800_v21, %s17679_s30  ;;  %v19274_v44 = vsel %vm3818_vm11, %v18934_v61, %v3206_v6  ;;  %v3277_v61 = vrot.slane %v19000_v35, 1 }
 0x34f   : > { %v19289_v63 = vsel %vm3211_vm15, %v3277_v61, %v3278_v16 }
 0x351   : > { %3811 = vrot.lane.b32.xlu0 %v3808_v26, %s17679_s30  ;;  %v19244_v8 = vpop.f32.mrf.mxu1 }
 0x353   : > { %v4561_v31 = vpop.f32.mrf.mxu1 }
 0x354   : > { %v3280_v31 = vrot.slane %v19033_v56, 1 }
 0x355   : > { %3310 = vrot.lane.b32.xlu0 %v18027_v46, %s17679_s30  ;;  %v19249_v22 = vpop.f32.mrf.mxu1 }
 0x356   : > { %v19309_v49 = vsel %vm3211_vm15, %v3278_v16, %v3280_v31  ;;  %v23801_v31 = vld [vmem:[#allocation29_spill] sm:$0xff] }
 0x357   : > { %v3359_v17 = vpop.permute.xlu0 %3358  ;;  %v4564_v47 = vpop.f32.mrf.mxu1  ;;  %23797 = vst [vmem:[#allocation89_spill] sm:$0xff] %v19309_v49 }
 0x358   : > { %v4001_v20 = vsel %vm3818_vm11, %v19253_v43, %v3359_v17  ;;  %v3383_v17 = vshll.u32 %v18027_v46, 16 }
 0x359   : > { %4637 = vmatprep.mubr.bf16.mxu1 %v4001_v20  ;;  %v19257_v53 = vpop.f32.mrf.mxu1 }
 0x35a   : > { %4638 = vmatmul.mubr.bf16.gmra.mxu1 %v19261_v33  ;;  %v3385_v6 = vrot.slane %v3383_v17, 1  ;;  %v23802_v17 = vld [vmem:[#allocation15_spill] sm:$0xff] }
 0x35b   : > { %v4569_v2 = vpop.f32.mrf.mxu1 }
 0x35d   : > { %v19265_v25 = vpop.f32.mrf.mxu1 }
 0x35f   : > { %v3361_v48 = vpop.permute.xlu0 %3360  ;;  %v4572_v60 = vpop.f32.mrf.mxu1 }
 0x360   : > { %v4005_v0 = vsel %vm3818_vm11, %v19268_v58, %v3361_v48  ;;  %v23798_v48 = vld [vmem:[#allocation13_spill] sm:$0xff] }
 0x361   : > { %4645 = vmatprep.mubr.bf16.mxu1 %v4005_v0  ;;  %v3381_v0 = vshrl.u32 %v18027_v46, 16 }
 0x362   : > { %4646 = vmatmul.mubr.bf16.gmra.mxu1 %v19274_v44 }
 0x363   : > { %v3386_v61 = vor.u32 %v3385_v6, %v3381_v0  ;;  %v23804_v0 = vld [vmem:[#allocation5_spill] sm:$0xff] }
 0x370   : > { %v3208_v36 = vpop.permute.xlu1 %3207 }
 0x371   : > { %v19299_v26 = vsel %vm3818_vm11, %v19000_v35, %v3208_v36 }
 0x374   : > { %v3210_v23 = vpop.permute.xlu1 %3209 }
 0x375   : > { %v19317_v56 = vsel %vm3818_vm11, %v19024_v5, %v3210_v23 }
 0x378   : > { %v3733_v10 = vpop.permute.xlu1 %3732 }
 0x379   : > { %v19280_v42 = vpop.f32.mrf.mxu1 }
 0x37b   : > { %v4577_v28 = vpop.f32.mrf.mxu1 }
 0x37c   : > { %v19283_v12 = vpop.permute.xlu1 %3736  ;;  %v23799_v28 = vld [vmem:[#allocation23_spill] sm:$0xff] }
 0x37d   : > { %v19285_v14 = vpop.f32.mrf.mxu1 }
 0x37e   : > { %23794 = vst [vmem:[#allocation86_spill] sm:$0xff] %v19285_v14 }
 0x37f   : > { %v3363_v30 = vpop.permute.xlu0 %3362  ;;  %v4580_v62 = vpop.f32.mrf.mxu1 }
 0x380   : > { %v19291_v21 = vpop.permute.xlu1 %3740  ;;  %v4009_v24 = vsel %vm3818_vm11, %v19289_v63, %v3363_v30  ;;  %v23800_v62 = vld [vmem:[#allocation4_spill] sm:$0xff] }
 0x381   : > { %4653 = vmatprep.mubr.bf16.mxu1 %v4009_v24  ;;  %v19295_v29 = vpop.f32.mrf.mxu1  ;;  %v3391_v24 = vsel %vm2874_vm14, %v3386_v61, %v23800_v62  ;;  %v23806_v61 = vld [vmem:[#allocation19_spill] sm:$0xff] }
 0x382   : > { %23795 = vst [vmem:[#allocation87_spill] sm:$0xff] %v19295_v29  ;;  %4654 = vmatmul.mubr.bf16.gmra.mxu1 %v19299_v26 }
 0x383   : > { %v4585_v34 = vpop.f32.mrf.mxu1 }
 0x384   : > { %v19303_v3 = vpop.permute.xlu1 %3744 }
 0x385   : > { %v19305_v38 = vpop.f32.mrf.mxu1 }
 0x386   : > { %23796 = vst [vmem:[#allocation88_spill] sm:$0xff] %v19305_v38 }
 0x387   : > { %v3365_v47 = vpop.permute.xlu0 %3364  ;;  %v4588_v20 = vpop.f32.mrf.mxu1 }
 0x388   : > { %v19311_v2 = vpop.permute.xlu1 %3748  ;;  %v4013_v35 = vsel %vm3818_vm11, %v19309_v49, %v3365_v47  ;;  %v23803_v20 = vld [vmem:[#allocation35_spill] sm:$0xff] }
 0x389   : > { %4661 = vmatprep.mubr.bf16.mxu1 %v4013_v35 }
 0x38a   : > { %4662 = vmatmul.mubr.bf16.gmra.mxu1 %v19317_v56 }
 0x38b   : > { %4702 = vmatprep.mubr.bf16.mxu1 %v23798_v48  ;;  %v3731_v60 = vpop.permute.xlu0 %3730 }
 0x38c   : > { %v3753_v36 = vpop.permute.xlu1 %3752  ;;  %v4017_v23 = vsel %vm3818_vm11, %v3391_v24, %v3731_v60  ;;  %v23805_v60 = vld [vmem:[#allocation43_spill] sm:$0xff]  ;;  %v23807_v24 = vld [vmem:[#allocation53_spill] sm:$0xff] }
 0x38d   : > { %v19324_v16 = vsel %vm3818_vm11, %v23799_v28, %v3753_v36  ;;  %v4021_v36 = vsel %vm3818_vm11, %v23804_v0, %v3733_v10  ;;  %v23811_v0 = vld [vmem:[#allocation21_spill] sm:$0xff] }
 0x38f   : > { %v3735_v30 = vpop.permute.xlu0 %3734 }
 0x390   : > { %v3757_v5 = vpop.permute.xlu1 %3756 }
 0x391   : > { %v19331_v34 = vsel %vm3818_vm11, %v23801_v31, %v3757_v5 }
 0x392   : > { %4703 = vmatmul.mubr.bf16.vlgmr.msra.gmra.mxu1 %v4017_v23 }
 0x393   : > { %4710 = vmatprep.mubr.bf16.mxu1 %v23802_v17  ;;  %v3739_v46 = vpop.permute.xlu0 %3738  ;;  %16426 = vmatpush3.bf16.msra.mxu1 %v16865_v50  ;;  %v23808_v17 = vld [vmem:[#allocation6_spill] sm:$0xff] }
 0x394   : > { %v3761_v47 = vpop.permute.xlu1 %3760  ;;  %v4025_v10 = vsel %vm3818_vm11, %v23808_v17, %v3735_v30  ;;  %v16866_v17 = vld [vmem:[%s23706_s0 + $0x110] sm:$0xff]  }
 0x395   : > { %v19336_v35 = vsel %vm3818_vm11, %v23803_v20, %v3761_v47  ;;  %v23809_v47 = vld [vmem:[#allocation63_spill] sm:$0xff]  ;;  %16427 = vmatprep.subr.bf16.mxu1 %v16866_v17 }
 0x397   : > { %v3743_v6 = vpop.permute.xlu0 %3742  ;;  %16428 = vmatpush3.bf16.msra.mxu1 %v16866_v17  ;;  %v23822_v17 = vld [vmem:[#allocation8_spill] sm:$0xff] }
 0x398   : > { %v3765_v48 = vpop.permute.xlu1 %3764  ;;  %v4033_v14 = vsel %vm3818_vm11, %v23822_v17, %v3739_v46 }
 0x399   : > { %v19342_v28 = vsel %vm3818_vm11, %v23805_v60, %v3765_v48  ;;  %v23812_v60 = vld [vmem:[#allocation28_spill] sm:$0xff] }
 0x39a   : > { %4711 = vmatmul.mubr.bf16.gmra.mxu1 %v4021_v36 }
 0x39b   : > { %4718 = vmatprep.mubr.bf16.mxu1 %v23806_v61  ;;  %v19345_v62 = vpop.permute.xlu0 %3746 }
 0x39c   : > { %v3769_v50 = vpop.permute.xlu1 %3768 }
 0x39d   : > { %v19349_v5 = vsel %vm3818_vm11, %v23807_v24, %v3769_v50 }
 0x39f   : > { %v19351_v23 = vpop.permute.xlu0 %3750 }
 0x3a0   : > { %v3773_v31 = vpop.permute.xlu1 %3772 }
 0x3a1   : > { %v19357_v20 = vsel %vm3818_vm11, %v23809_v47, %v3773_v31 }
 0x3a2   : > { %v19359_v48 = vpop.f32.mrf.mxu1  ;;  %4719 = vmatmul.mubr.bf16.gmra.mxu1 %v4025_v10  ;;  %v23815_v10 = vld [vmem:[#allocation34_spill] sm:$0xff] }
 0x3a3   : > { %23810 = vst [vmem:[#allocation13_spill] sm:$0xff] %v19359_v48  ;;  %4726 = vmatprep.mubr.bf16.mxu1 %v23811_v0  ;;  %v3755_v36 = vpop.permute.xlu0 %3754 }
 0x3a4   : > { %v19364_v61 = vsel %vm3818_vm11, %v23812_v60, %v3755_v36  ;;  %v4593_v50 = vpop.f32.mrf.mxu1  ;;  %v3777_v24 = vpop.permute.xlu1 %3776  ;;  %v23816_v60 = vld [vmem:[#allocation7_spill] sm:$0xff] }
 0x3a5   : > { %v19368_v38 = vsel %vm3818_vm11, %v23813_v7, %v3777_v24  ;;  %v4029_v50 = vsel %vm3818_vm11, %v23816_v60, %v19283_v12  ;;  %v23821_v60 = vld [vmem:[#allocation52_spill] sm:$0xff] }
 0x3a6   : > { %v19370_v30 = vpop.f32.mrf.mxu1 }
 0x3a7   : > { %23814 = vst [vmem:[#allocation23_spill] sm:$0xff] %v19370_v30  ;;  %v3759_v31 = vpop.permute.xlu0 %3758  ;;  %v23818_v30 = vld [vmem:[#allocation25_spill] sm:$0xff] }
 0x3a8   : > { %v19377_v47 = vsel %vm3818_vm11, %v23815_v10, %v3759_v31  ;;  %v4596_v0 = vpop.f32.mrf.mxu1  ;;  %v3781_v36 = vpop.permute.xlu1 %3780  ;;  %v23819_v31 = vld [vmem:[#allocation42_spill] sm:$0xff] }
 0x3a9   : > { %v19384_v7 = vsel %vm3818_vm11, %v19018_v40, %v3781_v36 }
 0x3aa   : > { %v19386_v24 = vpop.f32.mrf.mxu1  ;;  %4727 = vmatmul.mubr.bf16.gmra.mxu1 %v4029_v50 }
 0x3ab   : > { %23817 = vst [vmem:[#allocation4_spill] sm:$0xff] %v19386_v24  ;;  %4734 = vmatprep.mubr.bf16.mxu1 %v23818_v30  ;;  %v3763_v48 = vpop.permute.xlu0 %3762 }
 0x3ac   : > { %v19391_v10 = vsel %vm3818_vm11, %v23819_v31, %v3763_v48  ;;  %v4601_v0 = vpop.f32.mrf.mxu1  ;;  %v3783_v29 = vpop.permute.xlu1 %3782  ;;  %v23823_v31 = vld [vmem:[#allocation27_spill] sm:$0xff] }
 0x3ad   : > { %v19395_v12 = vsel %vm3818_vm11, %v19129_v1, %v3783_v29  ;;  %v23824_v29 = vld [vmem:[#allocation62_spill] sm:$0xff] }
 0x3ae   : > { %v19397_v40 = vpop.f32.mrf.mxu1 }
 0x3af   : > { %23820 = vst [vmem:[#allocation29_spill] sm:$0xff] %v19397_v40  ;;  %v3767_v36 = vpop.permute.xlu0 %3766 }
 0x3b0   : > { %v19401_v50 = vsel %vm3818_vm11, %v23821_v60, %v3767_v36  ;;  %v4604_v30 = vpop.f32.mrf.mxu1  ;;  %v3785_v24 = vpop.permute.xlu1 %3784  ;;  %v23825_v36 = vld [vmem:[#allocation72_spill] sm:$0xff] }
 0x3b1   : > { %v19407_v48 = vsel %vm3818_vm11, %v19134_v4, %v3785_v24  ;;  %v23826_v30 = vld [vmem:[#allocation9_spill] sm:$0xff]  ;;  %v23827_v4 = vld [vmem:[#allocation31_spill] sm:$0xff] }
 0x3b2   : > { %4735 = vmatmul.mubr.bf16.gmra.mxu1 %v4033_v14  ;;  %v4037_v46 = vsel %vm3818_vm11, %v23826_v30, %v19291_v21  ;;  %v3212_v21 = vrot.slane %v17967_v55, 1 }
 0x3b3   : > { %4742 = vmatprep.mubr.bf16.mxu1 %v23823_v31  ;;  %v3771_v1 = vpop.permute.xlu0 %3770  ;;  %v23828_v31 = vld [vmem:[#allocation10_spill] sm:$0xff] }
 0x3b4   : > { %v19412_v0 = vsel %vm3818_vm11, %v23824_v29, %v3771_v1  ;;  %v4041_v1 = vsel %vm3818_vm11, %v23828_v31, %v3743_v6 }
 0x3b7   : > { %v3775_v40 = vpop.permute.xlu0 %3774 }
 0x3b8   : > { %v19416_v60 = vsel %vm3818_vm11, %v23825_v36, %v3775_v40  ;;  %v23829_v40 = vld [vmem:[#allocation33_spill] sm:$0xff]  ;;  %v3156_v36 = vpop.permute.xlu1 %3155 }
 0x3b9   : > { %v3820_v6 = vsel %vm3818_vm11, %v17967_v55, %v3156_v36 }
 0x3ba   : > { %4743 = vmatmul.mubr.bf16.gmra.mxu1 %v4037_v46  ;;  %v23830_v46 = vld [vmem:[#allocation3_spill] sm:$0xff] }
 0x3bb   : > { %4750 = vmatprep.mubr.bf16.mxu1 %v23827_v4  ;;  %v3779_v14 = vpop.permute.xlu0 %3778  ;;  %v23831_v4 = vrot.slane %v23830_v46, 1 }
 0x3bc   : > { %v19424_v24 = vsel %vm3818_vm11, %v19013_v9, %v3779_v14  ;;  %v23832_v14 = vld [vmem:[#allocation11_spill] sm:$0xff] }
 0x3bd   : > { %v3214_v19 = vsel %vm3211_vm15, %v3212_v21, %v23831_v4  ;;  %v4045_v49 = vsel %vm3818_vm11, %v23832_v14, %v19303_v3  ;;  %v23835_v3 = vld [vmem:[#allocation41_spill] sm:$0xff] }
 0x3bf   : > { %v19426_v17 = vpop.permute.xlu0 %3809 }
 0x3c2   : > { %4751 = vmatmul.mubr.bf16.gmra.mxu1 %v4041_v1  ;;  %v23833_v1 = vld [vmem:[#allocation37_spill] sm:$0xff] }
 0x3c3   : > { %4758 = vmatprep.mubr.bf16.mxu1 %v23829_v40  ;;  %v19431_v29 = vpop.permute.xlu0 %3811 }
 0x3c7   : > { %v3311_v30 = vpop.permute.xlu0 %3310 }
 0x3c8   : > { %v3905_v9 = vsel %vm3818_vm11, %v3214_v19, %v3311_v30  ;;  %v23834_v19 = vld [vmem:[#allocation16_spill] sm:$0xff] }
 0x3c9   : > { %4445 = vmatprep.mubr.bf16.mxu0 %v3905_v9  ;;  %v4049_v30 = vsel %vm3818_vm11, %v23834_v19, %v19345_v62  ;;  %v16867_v62 = vld [vmem:[%s23706_s0 + $0x108] sm:$0xff]   ;;  %v23840_v19 = vld [vmem:[#allocation57_spill] sm:$0xff] }
 0x3ca   : > { %4446 = vmatmul.mubr.bf16.vlgmr.msra.gmra.mxu0 %v3820_v6  ;;  %v19443_v31 = vpop.f32.mrf.mxu1  ;;  %4759 = vmatmul.mubr.bf16.gmra.mxu1 %v4045_v49  ;;  %v23836_v49 = vld [vmem:[#allocation17_spill] sm:$0xff]  ;;  %v23837_v6 = vld [vmem:[#allocation47_spill] sm:$0xff] }
 0x3cb   : > { %4766 = vmatprep.mubr.bf16.mxu1 %v23833_v1  ;;  %v4053_v14 = vsel %vm3818_vm11, %v23836_v49, %v19311_v2  ;;  %v23838_v1 = vld [vmem:[#allocation22_spill] sm:$0xff]  ;;  %16429 = vmatprep.subr.bf16.mxu1 %v16867_v62 }
 0x3cc   : > { %v4609_v40 = vpop.f32.mrf.mxu1  ;;  %16430 = vmatpush3.bf16.msra.mxu1 %v16867_v62  ;;  %v16868_v2 = vld [vmem:[%s23706_s0 + $0x100] sm:$0xff]  }
 0x3cd   : > { %v4057_v40 = vsel %vm3818_vm11, %v23838_v1, %v19351_v23  ;;  %16431 = vmatprep.subr.bf16.mxu1 %v16868_v2  ;;  %v23841_v23 = vld [vmem:[#allocation61_spill] sm:$0xff] }
 0x3ce   : > { %v19446_v46 = vpop.f32.mrf.mxu1 }
 0x3d0   : > { %v4612_v21 = vpop.f32.mrf.mxu1  ;;  %16432 = vmatpush3.bf16.msra.mxu1 %v16868_v2 }
 0x3d1   : > { %v23839_v21 = vld [vmem:[#allocation51_spill] sm:$0xff] }
 0x3d2   : > { %v19451_v4 = vpop.f32.mrf.mxu1  ;;  %4767 = vmatmul.mubr.bf16.gmra.mxu1 %v4049_v30 }
 0x3d3   : > { %4774 = vmatprep.mubr.bf16.mxu1 %v23835_v3 }
 0x3d4   : > { %v4617_v55 = vpop.f32.mrf.mxu1 }
 0x3d6   : > { %v19454_v36 = vpop.f32.mrf.mxu1 }
 0x3d8   : > { %v4620_v9 = vpop.f32.mrf.mxu1 }
 0x3da   : > { %4775 = vmatmul.mubr.bf16.gmra.mxu1 %v4053_v14 }
 0x3db   : > { %4782 = vmatprep.mubr.bf16.mxu1 %v23837_v6 }
 0x3e2   : > { %4783 = vmatmul.mubr.bf16.gmra.mxu1 %v4057_v40 }
 0x3e3   : > { %4790 = vmatprep.mubr.bf16.mxu1 %v23839_v21 }
 0x3ea   : > { %4791 = vmatmul.mubr.bf16.gmra.mxu1 %v19324_v16  ;;  %v23842_v16 = vld [vmem:[#allocation67_spill] sm:$0xff] }
 0x3eb   : > { %4798 = vmatprep.mubr.bf16.mxu1 %v23840_v19  ;;  %v23843_v19 = vld [vmem:[#allocation71_spill] sm:$0xff] }
 0x3f2   : > { %v19472_v30 = vpop.f32.mrf.mxu1  ;;  %4799 = vmatmul.mubr.bf16.gmra.mxu1 %v19364_v61 }
 0x3f3   : > { %4806 = vmatprep.mubr.bf16.mxu1 %v23841_v23 }
 0x3f4   : > { %v4625_v3 = vpop.f32.mrf.mxu1 }
 0x3f6   : > { %v19476_v55 = vpop.f32.mrf.mxu1 }
 0x3f7   : > { %v2019_v14 = vpop.f32.mrf.mxu0 }
 0x3f8   : > { %v4628_v9 = vpop.f32.mrf.mxu1 }
 0x3f9   : > { %v16419_v62 = vpop.f32.mrf.mxu0 }
 0x3fa   : > { %v19478_v49 = vpop.f32.mrf.mxu1  ;;  %4807 = vmatmul.mubr.bf16.gmra.mxu1 %v19331_v34  ;;  %v23844_v34 = vld [vmem:[#allocation77_spill] sm:$0xff] }
 0x3fb   : > { %4814 = vmatprep.mubr.bf16.mxu1 %v23842_v16  ;;  %v2021_v40 = vpop.f32.mrf.mxu0  ;;  %v23845_v16 = vld [vmem:[#allocation81_spill] sm:$0xff] }
 0x3fc   : > { %v4633_v6 = vpop.f32.mrf.mxu1 }
 0x3fd   : > { %v16420_v61 = vpop.f32.mrf.mxu0 }
 0x3fe   : > { %v19482_v1 = vpop.f32.mrf.mxu1 }
 0x3ff   : > { %v2025_v2 = vpop.f32.mrf.mxu0 }
 0x400   : > { %v4636_v21 = vpop.f32.mrf.mxu1 }
 0x401   : > { %v16423_v23 = vpop.f32.mrf.mxu0 }
 0x402   : > { %4815 = vmatmul.mubr.bf16.gmra.mxu1 %v19377_v47  ;;  %v23848_v23 = vld [vmem:[#allocation40_spill] sm:$0xff] }
 0x403   : > { %4822 = vmatprep.mubr.bf16.mxu1 %v23843_v19  ;;  %v2027_v3 = vpop.f32.mrf.mxu0 }
 0x405   : > { %v16424_v9 = vpop.f32.mrf.mxu0 }
 0x40a   : > { %4823 = vmatmul.mubr.bf16.gmra.mxu1 %v19336_v35 }
 0x40b   : > { %4830 = vmatprep.mubr.bf16.mxu1 %v23844_v34 }
 0x412   : > { %4831 = vmatmul.mubr.bf16.gmra.mxu1 %v19391_v10 }
 0x413   : > { %4838 = vmatprep.mubr.bf16.mxu1 %v23845_v16 }
 0x41a   : > { %v19490_v14 = vpop.f32.mrf.mxu1  ;;  %4839 = vmatmul.mubr.bf16.gmra.mxu1 %v19342_v28 }
 0x41b   : > { %4846 = vmatprep.mubr.bf16.mxu1 %v19071_v13 }
 0x41c   : > { %v4641_v47 = vpop.f32.mrf.mxu1 }
 0x41d   : > { %v23849_v47 = vld [vmem:[#allocation44_spill] sm:$0xff] }
 0x41e   : > { %v19494_v6 = vpop.f32.mrf.mxu1 }
 0x420   : > { %v4644_v62 = vpop.f32.mrf.mxu1 }
 0x422   : > { %v19496_v40 = vpop.f32.mrf.mxu1  ;;  %4847 = vmatmul.mubr.bf16.gmra.mxu1 %v19401_v50 }
 0x423   : > { %4854 = vmatprep.mubr.bf16.mxu1 %v19108_v32 }
 0x424   : > { %v4649_v35 = vpop.f32.mrf.mxu1 }
 0x426   : > { %v19500_v10 = vpop.f32.mrf.mxu1 }
 0x428   : > { %v4652_v21 = vpop.f32.mrf.mxu1 }
 0x42a   : > { %4855 = vmatmul.mubr.bf16.gmra.mxu1 %v19349_v5 }
 0x42b   : > { %4862 = vmatprep.mubr.bf16.mxu1 %v19176_v11 }
 0x432   : > { %4863 = vmatmul.mubr.bf16.gmra.mxu1 %v19412_v0  ;;  %v19527_v0 = vld [vmem:[%s23846_s28] ss:$0 sm:$0xff]  ;;  %s627_s28 = scalar_lea.vmem %s23621_s20, %s23969_s24 }
 0x433   : > { %4870 = vmatprep.mubr.bf16.mxu1 %v19204_v37  ;;  %v4459_v3 = vadd.f32 %v19527_v0, %v23848_v23  ;;  %v4464_v62 = vadd.f32 %v19527_v0, %v23849_v47 }
 0x43a   : > { %4871 = vmatmul.mubr.bf16.gmra.mxu1 %v19357_v20 }
 0x43b   : > { %4878 = vmatprep.mubr.bf16.mxu1 %v19261_v33 }
 0x442   : > { %v19508_v13 = vpop.f32.mrf.mxu1  ;;  %4879 = vmatmul.mubr.bf16.gmra.mxu1 %v19416_v60 }
 0x443   : > { %4886 = vmatprep.mubr.bf16.mxu1 %v19274_v44 }
 0x444   : > { %v4657_v32 = vpop.f32.mrf.mxu1 }
 0x445   : > { %v23850_v32 = vld [vmem:[#allocation46_spill] sm:$0xff] }
 0x446   : > { %v19512_v28 = vpop.f32.mrf.mxu1 }
 0x448   : > { %v4660_v5 = vpop.f32.mrf.mxu1 }
 0x449   : > { %v4467_v5 = vadd.f32 %v19527_v0, %v23850_v32  ;;  %v23857_v32 = vld [vmem:[#allocation55_spill] sm:$0xff] }
 0x44a   : > { %v19514_v50 = vpop.f32.mrf.mxu1  ;;  %4887 = vmatmul.mubr.bf16.gmra.mxu1 %v19368_v38 }
 0x44b   : > { %4894 = vmatprep.mubr.bf16.mxu1 %v19299_v26  ;;  %v23847_v26 = vld [vmem:[#allocation38_spill] sm:$0xff] }
 0x44c   : > { %v4665_v11 = vpop.f32.mrf.mxu1  ;;  %v4456_v61 = vadd.f32 %v19527_v0, %v23847_v26 }
 0x44e   : > { %v19518_v37 = vpop.f32.mrf.mxu1 }
 0x450   : > { %v4668_v33 = vpop.f32.mrf.mxu1 }
 0x452   : > { %v19520_v20 = vpop.f32.mrf.mxu1  ;;  %4895 = vmatmul.mubr.bf16.gmra.mxu1 %v19424_v24  ;;  %v4128_v24 = vsel %vm3818_vm11, %v19207_v51, %v19426_v17 }
 0x453   : > { %4902 = vmatprep.mubr.bf16.mxu1 %v19317_v56 }
 0x454   : > { %v4706_v44 = vpop.f32.mrf.mxu1 }
 0x456   : > { %v19529_v60 = vpop.f32.mrf.mxu1 }
 0x458   : > { %v4709_v38 = vpop.f32.mrf.mxu1 }
 0x459   : > { %v23851_v38 = vld [vmem:[#allocation48_spill] sm:$0xff] }
 0x45a   : > { %v4712_v19 = vpop.f32.mrf.mxu1  ;;  %4903 = vmatmul.mubr.bf16.gmra.mxu1 %v19384_v7  ;;  %v4131_v7 = vsel %vm3818_vm11, %v19220_v39, %v19431_v29  ;;  %v4472_v26 = vadd.f32 %v19527_v0, %v23851_v38  ;;  %v23852_v29 = vld [vmem:[#allocation12_spill] sm:$0xff] }
 0x45b   : > { %v19537_v56 = vadd.f32 %v4712_v19, %v4456_v61  ;;  %4910 = vmatprep.mubr.bf16.mxu1 %v4128_v24  ;;  %v23853_v24 = vld [vmem:[#allocation50_spill] sm:$0xff] }
 0x45c   : > { %v4714_v2 = vpop.f32.mrf.mxu1 }
 0x45d   : > { %v4475_v2 = vadd.f32 %v19527_v0, %v23853_v24 }
 0x45e   : > { %v4715_v9 = vpop.f32.mrf.mxu1 }
 0x45f   : > { %v19541_v34 = vadd.f32 %v4715_v9, %v4459_v3 }
 0x460   : > { %v4717_v16 = vpop.f32.mrf.mxu1 }
 0x461   : > { %v23854_v16 = vld [vmem:[#allocation54_spill] sm:$0xff] }
 0x462   : > { %v4720_v35 = vpop.f32.mrf.mxu1  ;;  %4911 = vmatmul.mubr.bf16.gmra.mxu1 %v19395_v12  ;;  %v4480_v47 = vadd.f32 %v19527_v0, %v23854_v16 }
 0x463   : > { %v19549_v17 = vadd.f32 %v4720_v35, %v4464_v62  ;;  %4918 = vmatprep.mubr.bf16.mxu1 %v4131_v7  ;;  %v23855_v35 = vld [vmem:[#allocation14_spill] sm:$0xff] }
 0x464   : > { %v4722_v21 = vpop.f32.mrf.mxu1  ;;  %v23856_v7 = vld [vmem:[#allocation18_spill] sm:$0xff] }
 0x466   : > { %v4723_v11 = vpop.f32.mrf.mxu1 }
 0x467   : > { %v19553_v33 = vadd.f32 %v4723_v11, %v4467_v5  ;;  %v4483_v5 = vadd.f32 %v19527_v0, %v23857_v32 }
 0x468   : > { %v4725_v44 = vpop.f32.mrf.mxu1 }
 0x46a   : > { %v4728_v61 = vpop.f32.mrf.mxu1  ;;  %4919 = vmatmul.mubr.bf16.gmra.mxu1 %v19407_v48 }
 0x46b   : > { %v19558_v12 = vadd.f32 %v4728_v61, %v4472_v26  ;;  %16433 = vmatprep.mubr.msk.bf16.mxu1 %vm3818_vm11, %v23852_v29  ;;  %v23858_v26 = vld [vmem:[#allocation58_spill] sm:$0xff] }
 0x46c   : > { %v4730_v19 = vpop.f32.mrf.mxu1  ;;  %v4488_v61 = vadd.f32 %v19527_v0, %v23858_v26 }
 0x46d   : > { %v23859_v19 = vld [vmem:[#allocation20_spill] sm:$0xff] }
 0x46e   : > { %v4731_v23 = vpop.f32.mrf.mxu1 }
 0x46f   : > { %v19564_v3 = vadd.f32 %v4731_v23, %v4475_v2  ;;  %v23860_v2 = vld [vmem:[#allocation24_spill] sm:$0xff] }
 0x470   : > { %v4733_v9 = vpop.f32.mrf.mxu1 }
 0x471   : > { %v23861_v9 = vld [vmem:[#allocation59_spill] sm:$0xff] }
 0x472   : > { %v4736_v62 = vpop.f32.mrf.mxu1  ;;  %16434 = vmatmul.mubr.msk.bf16.vlgmr.msra.gmra.mxu1 %vm3818_vm11, %v23855_v35  ;;  %v4491_v16 = vadd.f32 %v19527_v0, %v23861_v9  ;;  %v23868_v9 = vld [vmem:[#allocation68_spill] sm:$0xff] }
 0x473   : > { %v19570_v48 = vadd.f32 %v4736_v62, %v4480_v47  ;;  %16437 = vmatprep.mubr.msk.bf16.mxu1 %vm3818_vm11, %v23856_v7  ;;  %v23862_v7 = vld [vmem:[#allocation64_spill] sm:$0xff] }
 0x474   : > { %v4738_v21 = vpop.f32.mrf.mxu1 }
 0x475   : > { %v4496_v21 = vadd.f32 %v19527_v0, %v23862_v7  ;;  %v23869_v7 = vld [vmem:[#allocation32_spill] sm:$0xff] }
 0x476   : > { %v4739_v11 = vpop.f32.mrf.mxu1 }
 0x477   : > { %v19576_v44 = vadd.f32 %v4739_v11, %v4483_v5  ;;  %v23863_v5 = vld [vmem:[#allocation26_spill] sm:$0xff] }
 0x478   : > { %v4741_v38 = vpop.f32.mrf.mxu1 }
 0x479   : > { %v23865_v38 = vld [vmem:[#allocation30_spill] sm:$0xff] }
 0x47a   : > { %v4744_v29 = vpop.f32.mrf.mxu1  ;;  %16438 = vmatmul.mubr.msk.bf16.gmra.mxu1 %vm3818_vm11, %v23859_v19 }
 0x47b   : > { %v19582_v24 = vadd.f32 %v4744_v29, %v4488_v61  ;;  %16441 = vmatprep.mubr.msk.bf16.mxu1 %vm3818_vm11, %v23860_v2  ;;  %v23866_v61 = vld [vmem:[#allocation65_spill] sm:$0xff] }
 0x47c   : > { %v4746_v23 = vpop.f32.mrf.mxu1  ;;  %v4499_v29 = vadd.f32 %v19527_v0, %v23866_v61  ;;  %v23871_v61 = vld [vmem:[#allocation69_spill] sm:$0xff] }
 0x47e   : > { %v4747_v47 = vpop.f32.mrf.mxu1 }
 0x47f   : > { %v19588_v62 = vadd.f32 %v4747_v47, %v4491_v16  ;;  %v4504_v16 = vadd.f32 %v19527_v0, %v23868_v9 }
 0x480   : > { %v4749_v35 = vpop.f32.mrf.mxu1 }
 0x482   : > { %v4752_v32 = vpop.f32.mrf.mxu1  ;;  %16442 = vmatmul.mubr.msk.bf16.gmra.mxu1 %vm3818_vm11, %v23863_v5  ;;  %v23870_v5 = vld [vmem:[#allocation36_spill] sm:$0xff] }
 0x483   : > { %v19594_v11 = vadd.f32 %v4752_v32, %v4496_v21  ;;  %16445 = vmatprep.mubr.msk.bf16.mxu1 %vm3818_vm11, %v23865_v38 }
 0x484   : > { %v4754_v26 = vpop.f32.mrf.mxu1 }
 0x485   : > { %23864 = vst [vmem:[#allocation15_spill] sm:$0xff] %v19594_v11 }
 0x486   : > { %v4755_v19 = vpop.f32.mrf.mxu1 }
 0x487   : > { %v19600_v2 = vadd.f32 %v4755_v19, %v4499_v29  ;;  %v4507_v29 = vadd.f32 %v19527_v0, %v23871_v61 }
 0x488   : > { %v4757_v23 = vpop.f32.mrf.mxu1 }
 0x489   : > { %23867 = vst [vmem:[#allocation35_spill] sm:$0xff] %v19600_v2 }
 0x48a   : > { %v4447_v47 = vpop.f32.mrf.mxu0  ;;  %v4760_v35 = vpop.f32.mrf.mxu1  ;;  %16446 = vmatmul.mubr.msk.bf16.gmra.mxu1 %vm3818_vm11, %v23869_v7 }
 0x48b   : > { %v4448_v21 = vadd.f32 %v19527_v0, %v4447_v47  ;;  %v19607_v32 = vadd.f32 %v4760_v35, %v4504_v16  ;;  %16449 = vmatprep.mubr.msk.bf16.mxu1 %vm3818_vm11, %v23870_v5  ;;  %v23873_v35 = vld [vmem:[#allocation74_spill] sm:$0xff] }
 0x48c   : > { %v4449_v38 = vpop.f32.mrf.mxu0  ;;  %v4762_v26 = vpop.f32.mrf.mxu1  ;;  %v4512_v11 = vadd.f32 %v19527_v0, %v23873_v35  ;;  %v23879_v35 = vld [vmem:[#allocation78_spill] sm:$0xff] }
 0x48d   : > { %v19614_v19 = vadd.f32 %v19520_v20, %v4448_v21  ;;  %v23874_v26 = vld [vmem:[#allocation39_spill] sm:$0xff]  ;;  %v23876_v21 = vld [vmem:[#allocation45_spill] sm:$0xff] }
 0x48e   : > { %v4450_v23 = vpop.f32.mrf.mxu0  ;;  %v4763_v9 = vpop.f32.mrf.mxu1 }
 0x48f   : > { %v4451_v2 = vadd.f32 %v19527_v0, %v4450_v23  ;;  %v19617_v7 = vadd.f32 %v4763_v9, %v4507_v29  ;;  %v23877_v29 = vld [vmem:[#allocation75_spill] sm:$0xff] }
 0x490   : > { %v4452_v47 = vpop.f32.mrf.mxu0  ;;  %v4765_v16 = vpop.f32.mrf.mxu1  ;;  %v4515_v23 = vadd.f32 %v19527_v0, %v23877_v29 }
 0x491   : > { %23872 = vst [vmem:[#allocation5_spill] sm:$0xff] %v19617_v7  ;;  %v19622_v5 = vadd.f32 %v19529_v60, %v4451_v2  ;;  %v4520_v60 = vadd.f32 %v19527_v0, %v23879_v35  ;;  %v23880_v7 = vld [vmem:[#allocation49_spill] sm:$0xff] }
 0x492   : > { %v4768_v38 = vpop.f32.mrf.mxu1  ;;  %16450 = vmatmul.mubr.msk.bf16.gmra.mxu1 %vm3818_vm11, %v23874_v26 }
 0x493   : > { %v19626_v20 = vadd.f32 %v4768_v38, %v4512_v11  ;;  %16453 = vmatprep.mubr.msk.bf16.mxu1 %vm3818_vm11, %v23876_v21  ;;  %v23881_v38 = vld [vmem:[#allocation56_spill] sm:$0xff]  ;;  %v23882_v21 = vld [vmem:[#allocation79_spill] sm:$0xff] }
 0x494   : > { %v4770_v61 = vpop.f32.mrf.mxu1 }
 0x495   : > { %23875 = vst [vmem:[#allocation43_spill] sm:$0xff] %v19626_v20  ;;  %v4523_v61 = vadd.f32 %v19527_v0, %v23882_v21  ;;  %v23885_v20 = vld [vmem:[#allocation60_spill] sm:$0xff] }
 0x496   : > { %v4771_v9 = vpop.f32.mrf.mxu1 }
 0x497   : > { %v19632_v47 = vadd.f32 %v4771_v9, %v4515_v23 }
 0x498   : > { %v4773_v16 = vpop.f32.mrf.mxu1 }
 0x499   : > { %23878 = vst [vmem:[#allocation19_spill] sm:$0xff] %v19632_v47  ;;  %v23884_v16 = vld [vmem:[#allocation82_spill] sm:$0xff] }
 0x49a   : > { %v4776_v2 = vpop.f32.mrf.mxu1  ;;  %16454 = vmatmul.mubr.msk.bf16.gmra.mxu1 %vm3818_vm11, %v23880_v7  ;;  %v4528_v35 = vadd.f32 %v19527_v0, %v23884_v16 }
 0x49b   : > { %v19638_v11 = vadd.f32 %v4776_v2, %v4520_v60  ;;  %16457 = vmatprep.mubr.msk.bf16.mxu1 %vm3818_vm11, %v23881_v38  ;;  %v23886_v60 = vld [vmem:[#allocation66_spill] sm:$0xff]  ;;  %v23887_v38 = vld [vmem:[#allocation83_spill] sm:$0xff] }
 0x49c   : > { %v4778_v26 = vpop.f32.mrf.mxu1 }
 0x49d   : > { %v4531_v26 = vadd.f32 %v19527_v0, %v23887_v38 }
 0x49e   : > { %v4779_v29 = vpop.f32.mrf.mxu1 }
 0x49f   : > { %v19644_v23 = vadd.f32 %v4779_v29, %v4523_v61 }
 0x4a0   : > { %v4781_v9 = vpop.f32.mrf.mxu1 }
 0x4a1   : > { %23883 = vst [vmem:[#allocation53_spill] sm:$0xff] %v19644_v23  ;;  %v4536_v9 = vadd.f32 %v19527_v0, %v19075_v52  ;;  %v23888_v23 = vld [vmem:[#allocation70_spill] sm:$0xff]  ;;  %v4544_v52 = vadd.f32 %v19527_v0, %v19150_v18  ;;  %v4552_v18 = vadd.f32 %v19527_v0, %v19172_v27  ;;  %v4560_v27 = vadd.f32 %v19527_v0, %v19244_v8 }
 0x4a2   : > { %v4784_v47 = vpop.f32.mrf.mxu1  ;;  %16458 = vmatmul.mubr.msk.bf16.gmra.mxu1 %vm3818_vm11, %v23885_v20 }
 0x4a3   : > { %v19650_v7 = vadd.f32 %v4784_v47, %v4528_v35  ;;  %16461 = vmatprep.mubr.msk.bf16.mxu1 %vm3818_vm11, %v23886_v60  ;;  %v23889_v47 = vld [vmem:[#allocation76_spill] sm:$0xff]  ;;  %v4539_v60 = vadd.f32 %v19527_v0, %v19094_v45  ;;  %v4547_v45 = vadd.f32 %v19527_v0, %v19157_v41  ;;  %v4555_v41 = vadd.f32 %v19527_v0, %v19186_v59  ;;  %v16869_v59 = vld [vmem:[%s23614_s13] sm:$0xff]  }
 0x4a4   : > { %v4786_v2 = vpop.f32.mrf.mxu1  ;;  %16493 = vmatprep.mubr.msk.bf16.mxu0 %vm5446_vm3, %v16869_v59 }
 0x4a6   : > { %v4787_v21 = vpop.f32.mrf.mxu1 }
 0x4a7   : > { %v19656_v61 = vadd.f32 %v4787_v21, %v4531_v26 }
 0x4a8   : > { %v4789_v29 = vpop.f32.mrf.mxu1 }
 0x4a9   : > { %v23890_v29 = vld [vmem:[#allocation80_spill] sm:$0xff] }
 0x4aa   : > { %v4792_v16 = vpop.f32.mrf.mxu1  ;;  %16462 = vmatmul.mubr.msk.bf16.gmra.mxu1 %vm3818_vm11, %v23888_v23 }
 0x4ab   : > { %v19662_v20 = vadd.f32 %v4792_v16, %v4536_v9  ;;  %16465 = vmatprep.mubr.msk.bf16.mxu1 %vm3818_vm11, %v23889_v47  ;;  %v23891_v9 = vld [vmem:[#allocation84_spill] sm:$0xff] }
 0x4ac   : > { %v4794_v35 = vpop.f32.mrf.mxu1 }
 0x4ae   : > { %v4795_v2 = vpop.f32.mrf.mxu1 }
 0x4af   : > { %v19668_v38 = vadd.f32 %v4795_v2, %v4539_v60 }
 0x4b0   : > { %v4797_v26 = vpop.f32.mrf.mxu1 }
 0x4b2   : > { %v4800_v21 = vpop.f32.mrf.mxu1  ;;  %16466 = vmatmul.mubr.msk.bf16.gmra.mxu1 %vm3818_vm11, %v23890_v29 }
 0x4b3   : > { %v19674_v23 = vadd.f32 %v4800_v21, %v4544_v52  ;;  %16469 = vmatprep.mubr.msk.bf16.mxu1 %vm3818_vm11, %v23891_v9 }
 0x4b4   : > { %v4802_v16 = vpop.f32.mrf.mxu1 }
 0x4b6   : > { %v4803_v47 = vpop.f32.mrf.mxu1 }
 0x4b7   : > { %v19680_v35 = vadd.f32 %v4803_v47, %v4547_v45  ;;  %v4563_v45 = vadd.f32 %v19527_v0, %v19249_v22 }
 0x4b8   : > { %v4805_v60 = vpop.f32.mrf.mxu1 }
 0x4b9   : > { %v4568_v60 = vadd.f32 %v19527_v0, %v19257_v53 }
 0x4ba   : > { %v4808_v2 = vpop.f32.mrf.mxu1  ;;  %16470 = vmatmul.mubr.msk.bf16.gmra.mxu1 %vm3818_vm11, %v19099_v54 }
 0x4bb   : > { %v19686_v26 = vadd.f32 %v4808_v2, %v4552_v18  ;;  %16473 = vmatprep.mubr.msk.bf16.mxu1 %vm3818_vm11, %v19165_v57  ;;  %v4571_v2 = vadd.f32 %v19527_v0, %v19265_v25 }
 0x4bc   : > { %v4810_v52 = vpop.f32.mrf.mxu1 }
 0x4be   : > { %v4811_v21 = vpop.f32.mrf.mxu1 }
 0x4bf   : > { %v19692_v29 = vadd.f32 %v4811_v21, %v4555_v41  ;;  %v3813_v41 = vrot.slane %v19207_v51, 1  ;;  %v3814_v21 = vrot.slane %v19220_v39, 1  ;;  %v23893_v51 = vld [vmem:[#allocation85_spill] sm:$0xff]  ;;  %v23894_v39 = vld [vmem:[#allocation86_spill] sm:$0xff] }
 0x4c0   : > { %v4813_v9 = vpop.f32.mrf.mxu1  ;;  %v3816_v59 = vrot.slane %v23893_v51, 1 }
 0x4c2   : > { %v4816_v16 = vpop.f32.mrf.mxu1  ;;  %16474 = vmatmul.mubr.msk.bf16.gmra.mxu1 %vm3818_vm11, %v19192_v15 }
 0x4c3   : > { %v19698_v54 = vadd.f32 %v4816_v16, %v4560_v27  ;;  %16477 = vmatprep.mubr.msk.bf16.mxu1 %vm3818_vm11, %v19253_v43  ;;  %v23892_v16 = vld [vmem:[#allocation89_spill] sm:$0xff] }
 0x4c4   : > { %v4818_v57 = vpop.f32.mrf.mxu1 }
 0x4c6   : > { %v4819_v47 = vpop.f32.mrf.mxu1 }
 0x4c7   : > { %v19708_v8 = vadd.f32 %v4819_v47, %v4563_v45  ;;  %v4579_v45 = vadd.f32 %v19527_v0, %v23894_v39 }
 0x4c8   : > { %v4821_v15 = vpop.f32.mrf.mxu1 }
 0x4ca   : > { %v4824_v18 = vpop.f32.mrf.mxu1  ;;  %16478 = vmatmul.mubr.msk.bf16.gmra.mxu1 %vm3818_vm11, %v19268_v58  ;;  %v4576_v58 = vadd.f32 %v19527_v0, %v19280_v42 }
 0x4cb   : > { %v19714_v43 = vadd.f32 %v4824_v18, %v4568_v60  ;;  %16481 = vmatprep.mubr.msk.bf16.mxu1 %vm3818_vm11, %v19289_v63  ;;  %v3815_v63 = vsel %vm3211_vm15, %v3813_v41, %v3814_v21  ;;  %v23895_v60 = vld [vmem:[#allocation87_spill] sm:$0xff] }
 0x4cc   : > { %v4826_v22 = vpop.f32.mrf.mxu1  ;;  %v4584_v18 = vadd.f32 %v19527_v0, %v23895_v60 }
 0x4cd   : > { %v3817_v22 = vsel %vm3211_vm15, %v3814_v21, %v3816_v59  ;;  %v23897_v21 = vld [vmem:[#allocation13_spill] sm:$0xff] }
 0x4ce   : > { %v4827_v52 = vpop.f32.mrf.mxu1  ;;  %v4592_v51 = vadd.f32 %v19527_v0, %v23897_v21 }
 0x4cf   : > { %v19722_v9 = vadd.f32 %v4827_v52, %v4571_v2 }
 0x4d0   : > { %v4829_v53 = vpop.f32.mrf.mxu1 }
 0x4d1   : > { %v16875_v53 = vld [vmem:[%s23614_s13 + $0x30] sm:$0xff]  }
 0x4d2   : > { %v4832_v27 = vpop.f32.mrf.mxu1  ;;  %16482 = vmatmul.mubr.msk.bf16.gmra.mxu1 %vm3818_vm11, %v23892_v16 }
 0x4d3   : > { %v19729_v57 = vadd.f32 %v4832_v27, %v4576_v58  ;;  %16485 = vmatprep.mubr.msk.bf16.mxu1 %vm3818_vm11, %v3815_v63  ;;  %v23896_v58 = vld [vmem:[#allocation88_spill] sm:$0xff] }
 0x4d4   : > { %v4834_v25 = vpop.f32.mrf.mxu1  ;;  %v4587_v27 = vadd.f32 %v19527_v0, %v23896_v58 }
 0x4d6   : > { %v4835_v47 = vpop.f32.mrf.mxu1 }
 0x4d7   : > { %v19735_v15 = vadd.f32 %v4835_v47, %v4579_v45  ;;  %v23898_v47 = vld [vmem:[#allocation23_spill] sm:$0xff] }
 0x4d8   : > { %v4837_v42 = vpop.f32.mrf.mxu1 }
 0x4d9   : > { %v4595_v42 = vadd.f32 %v19527_v0, %v23898_v47 }
 0x4da   : > { %v4840_v2 = vpop.f32.mrf.mxu1  ;;  %16486 = vmatmul.mubr.msk.bf16.gmra.mxu1 %vm3818_vm11, %v3817_v22 }
 0x4db   : > { %v19741_v52 = vadd.f32 %v4840_v2, %v4584_v18  ;;  %16517 = vmatprep.mubr.msk.bf16.mxu1 %vm5446_vm3, %v16875_v53  ;;  %v23899_v2 = vld [vmem:[#allocation4_spill] sm:$0xff] }
 0x4dc   : > { %v4842_v41 = vpop.f32.mrf.mxu1 }
 0x4dd   : > { %v4600_v41 = vadd.f32 %v19527_v0, %v23899_v2 }
 0x4de   : > { %v4843_v16 = vpop.f32.mrf.mxu1 }
 0x4df   : > { %v19749_v63 = vadd.f32 %v4843_v16, %v4587_v27  ;;  %v23900_v16 = vld [vmem:[#allocation29_spill] sm:$0xff] }
 0x4e0   : > { %v4845_v25 = vpop.f32.mrf.mxu1 }
 0x4e1   : > { %v4603_v25 = vadd.f32 %v19527_v0, %v23900_v16 }
 0x4e2   : > { %v4848_v59 = vpop.f32.mrf.mxu1 }
 0x4e3   : > { %v19753_v39 = vadd.f32 %v4848_v59, %v4592_v51 }
 0x4e4   : > { %v4850_v45 = vpop.f32.mrf.mxu1 }
 0x4e5   : > { %v4608_v45 = vadd.f32 %v19527_v0, %v19443_v31  ;;  %v4619_v31 = vadd.f32 %v19527_v0, %v19454_v36  ;;  %v4632_v36 = vadd.f32 %v19527_v0, %v19478_v49  ;;  %v4643_v49 = vadd.f32 %v19527_v0, %v19494_v6 }
 0x4e6   : > { %v4851_v60 = vpop.f32.mrf.mxu1  ;;  %v4656_v6 = vadd.f32 %v19527_v0, %v19508_v13  ;;  %v4667_v13 = vadd.f32 %v19527_v0, %v19518_v37 }
 0x4e7   : > { %v19757_v18 = vadd.f32 %v4851_v60, %v4595_v42 }
 0x4e8   : > { %v4853_v22 = vpop.f32.mrf.mxu1 }
 0x4e9   : > { %v4611_v22 = vadd.f32 %v19527_v0, %v19446_v46  ;;  %v4624_v46 = vadd.f32 %v19527_v0, %v19472_v30  ;;  %v4635_v30 = vadd.f32 %v19527_v0, %v19482_v1  ;;  %v4648_v1 = vadd.f32 %v19527_v0, %v19496_v40 }
 0x4ea   : > { %v4856_v53 = vpop.f32.mrf.mxu1  ;;  %v4659_v40 = vadd.f32 %v19527_v0, %v19512_v28 }
 0x4eb   : > { %v19761_v58 = vadd.f32 %v4856_v53, %v4600_v41 }
 0x4ec   : > { %v4858_v27 = vpop.f32.mrf.mxu1 }
 0x4ed   : > { %v4616_v27 = vadd.f32 %v19527_v0, %v19451_v4  ;;  %v4627_v4 = vadd.f32 %v19527_v0, %v19476_v55  ;;  %v4640_v55 = vadd.f32 %v19527_v0, %v19490_v14  ;;  %v4651_v14 = vadd.f32 %v19527_v0, %v19500_v10 }
 0x4ee   : > { %v4859_v21 = vpop.f32.mrf.mxu1  ;;  %v4664_v10 = vadd.f32 %v19527_v0, %v19514_v50 }
 0x4ef   : > { %v19765_v51 = vadd.f32 %v4859_v21, %v4603_v25 }
 0x4f0   : > { %v4861_v59 = vpop.f32.mrf.mxu1 }
 0x4f2   : > { %v4864_v47 = vpop.f32.mrf.mxu1 }
 0x4f3   : > { %v19769_v42 = vadd.f32 %v4864_v47, %v4608_v45 }
 0x4f4   : > { %v4866_v60 = vpop.f32.mrf.mxu1 }
 0x4f6   : > { %v4867_v2 = vpop.f32.mrf.mxu1 }
 0x4f7   : > { %v19773_v41 = vadd.f32 %v4867_v2, %v4611_v22 }
 0x4f8   : > { %v4869_v53 = vpop.f32.mrf.mxu1 }
 0x4fa   : > { %v4872_v16 = vpop.f32.mrf.mxu1 }
 0x4fb   : > { %v19777_v25 = vadd.f32 %v4872_v16, %v4616_v27 }
 0x4fc   : > { %v4874_v21 = vpop.f32.mrf.mxu1 }
 0x4fe   : > { %v4875_v59 = vpop.f32.mrf.mxu1 }
 0x4ff   : > { %v19781_v45 = vadd.f32 %v4875_v59, %v4619_v31 }
 0x500   : > { %v4877_v47 = vpop.f32.mrf.mxu1 }
 0x502   : > { %v4880_v60 = vpop.f32.mrf.mxu1 }
 0x503   : > { %v19785_v22 = vadd.f32 %v4880_v60, %v4624_v46 }
 0x504   : > { %v4882_v2 = vpop.f32.mrf.mxu1 }
 0x506   : > { %v4883_v53 = vpop.f32.mrf.mxu1 }
 0x507   : > { %v19789_v27 = vadd.f32 %v4883_v53, %v4627_v4 }
 0x508   : > { %v4885_v16 = vpop.f32.mrf.mxu1 }
 0x50a   : > { %v4888_v21 = vpop.f32.mrf.mxu1 }
 0x50b   : > { %v19793_v31 = vadd.f32 %v4888_v21, %v4632_v36 }
 0x50c   : > { %v4890_v59 = vpop.f32.mrf.mxu1 }
 0x50e   : > { %v4891_v47 = vpop.f32.mrf.mxu1 }
 0x50f   : > { %v19797_v46 = vadd.f32 %v4891_v47, %v4635_v30 }
 0x510   : > { %v4893_v60 = vpop.f32.mrf.mxu1 }
 0x512   : > { %v4896_v2 = vpop.f32.mrf.mxu1 }
 0x513   : > { %v19801_v4 = vadd.f32 %v4896_v2, %v4640_v55 }
 0x514   : > { %v4898_v53 = vpop.f32.mrf.mxu1 }
 0x516   : > { %v4899_v16 = vpop.f32.mrf.mxu1 }
 0x517   : > { %v19805_v36 = vadd.f32 %v4899_v16, %v4643_v49 }
 0x518   : > { %v4901_v21 = vpop.f32.mrf.mxu1 }
 0x51a   : > { %v4904_v59 = vpop.f32.mrf.mxu1 }
 0x51b   : > { %v19809_v30 = vadd.f32 %v4904_v59, %v4648_v1 }
 0x51c   : > { %v4906_v47 = vpop.f32.mrf.mxu1 }
 0x51e   : > { %v4907_v60 = vpop.f32.mrf.mxu1 }
 0x51f   : > { %v19813_v55 = vadd.f32 %v4907_v60, %v4651_v14 }
 0x520   : > { %v4909_v2 = vpop.f32.mrf.mxu1 }
 0x522   : > { %v4912_v53 = vpop.f32.mrf.mxu1 }
 0x523   : > { %v19817_v49 = vadd.f32 %v4912_v53, %v4656_v6 }
 0x524   : > { %v4914_v16 = vpop.f32.mrf.mxu1 }
 0x525   : > { %23901 = vst [vmem:[#allocation6_spill] sm:$0xff] %v19817_v49 }
 0x526   : > { %v4915_v21 = vpop.f32.mrf.mxu1 }
 0x527   : > { %v19821_v1 = vadd.f32 %v4915_v21, %v4659_v40 }
 0x528   : > { %v4917_v59 = vpop.f32.mrf.mxu1 }
 0x529   : > { %23902 = vst [vmem:[#allocation63_spill] sm:$0xff] %v19821_v1 }
 0x52a   : > { %v4920_v47 = vpop.f32.mrf.mxu1 }
 0x52b   : > { %v19825_v14 = vadd.f32 %v4920_v47, %v4664_v10 }
 0x52c   : > { %v4922_v60 = vpop.f32.mrf.mxu1 }
 0x52d   : > { %23903 = vst [vmem:[#allocation21_spill] sm:$0xff] %v19825_v14 }
 0x52e   : > { %v4923_v2 = vpop.f32.mrf.mxu1 }
 0x52f   : > { %v19829_v6 = vadd.f32 %v4923_v2, %v4667_v13 }
 0x530   : > { %v4925_v53 = vpop.f32.mrf.mxu1 }
 0x531   : > { %23904 = vst [vmem:[#allocation28_spill] sm:$0xff] %v19829_v6 }
 0x532   : > { %v16435_v16 = vpop.f32.mrf.mxu1 }
 0x533   : > { %v4970_v28 = vadd.f32 %v16435_v16, %v19537_v56 }
 0x534   : > { %v4961_v40 = vpop.f32.mrf.mxu1 }
 0x535   : > { %v4962_v21 = vadd.f32 %v4961_v40, %v19614_v19  ;;  %v5242_v59 = vmul.f32 0.01, %v4970_v28  ;;  %vm5186_vm6 = vcmp.gt.f32.partialorder %v4970_v28, 0.0 }
 0x536   : > { %v16436_v1 = vpop.f32.mrf.mxu1 }
 0x537   : > { %v4973_v50 = vadd.f32 %v16436_v1, %v19541_v34  ;;  %v5240_v47 = vmul.f32 0.01, %v4962_v21  ;;  %vm5184_vm8 = vcmp.gt.f32.partialorder %v4962_v21, 0.0  ;;  %v5298_v13 = vsel %vm5186_vm6, %v4970_v28, %v5242_v59 }
 0x538   : > { %v4964_v10 = vpop.f32.mrf.mxu1 }
 0x539   : > { %vm5187_vm7 = vcmp.gt.f32.partialorder %v4973_v50, 0.0  ;;  %v5243_v60 = vmul.f32 0.01, %v4973_v50  ;;  %v4965_v37 = vadd.f32 %v4964_v10, %v19622_v5  ;;  %v5296_v6 = vsel %vm5184_vm8, %v4962_v21, %v5240_v47 }
 0x53a   : > { %v16439_v0 = vpop.f32.mrf.mxu1 }
 0x53b   : > { %vm5185_vm9 = vcmp.gt.f32.partialorder %v4965_v37, 0.0  ;;  %v5241_v2 = vmul.f32 0.01, %v4965_v37  ;;  %v4986_v56 = vadd.f32 %v16439_v0, %v19558_v12  ;;  %v5299_v53 = vsel %vm5187_vm7, %v4973_v50, %v5243_v60 }
 0x53c   : > { %v4977_v19 = vpop.f32.mrf.mxu1  ;;  %v5353_v16 = vpack.c.bf16 %v5299_v53, %v5298_v13 }
 0x53d   : > { %v4978_v40 = vadd.f32 %v4977_v19, %v19549_v17  ;;  %v5297_v34 = vsel %vm5185_vm9, %v4965_v37, %v5241_v2  ;;  %v5246_v1 = vmul.f32 0.01, %v4986_v56  ;;  %vm5190_vm10 = vcmp.gt.f32.partialorder %v4986_v56, 0.0  ;;  %v16870_v17 = vld [vmem:[%s23614_s13 + $0x8] sm:$0xff]  }
 0x53e   : > { %v16440_v49 = vpop.f32.mrf.mxu1  ;;  %16489 = vmatprep.subr.bf16.mxu0 %v5353_v16  ;;  %v5352_v14 = vpack.c.bf16 %v5297_v34, %v5296_v6  ;;  %v16872_v34 = vld [vmem:[%s23614_s13 + $0x18] sm:$0xff]  }
 0x53f   : > { %v4989_v5 = vadd.f32 %v16440_v49, %v19564_v3  ;;  %16490 = vmatpush3.bf16.msra.mxu0 %v5353_v16  ;;  %v5244_v59 = vmul.f32 0.01, %v4978_v40  ;;  %vm5188_vm13 = vcmp.gt.f32.partialorder %v4978_v40, 0.0  ;;  %v5302_v21 = vsel %vm5190_vm10, %v4986_v56, %v5246_v1  ;;  %v16871_v49 = vld [vmem:[%s23614_s13 + $0x10] sm:$0xff]  }
 0x540   : > { %v4980_v28 = vpop.f32.mrf.mxu1  ;;  %16491 = vmatprep.subr.bf16.mxu0 %v5352_v14 }
 0x541   : > { %vm5191_vm12 = vcmp.gt.f32.partialorder %v4989_v5, 0.0  ;;  %v5247_v12 = vmul.f32 0.01, %v4989_v5  ;;  %v4981_v50 = vadd.f32 %v4980_v28, %v19553_v33  ;;  %v5300_v0 = vsel %vm5188_vm13, %v4978_v40, %v5244_v59  ;;  %v16873_v59 = vld [vmem:[%s23614_s13 + $0x20] sm:$0xff]  }
 0x542   : > { %v16443_v10 = vpop.f32.mrf.mxu1 }
 0x543   : > { %vm5189_vm1 = vcmp.gt.f32.partialorder %v4981_v50, 0.0  ;;  %v5245_v6 = vmul.f32 0.01, %v4981_v50  ;;  %v5002_v47 = vadd.f32 %v16443_v10, %v19582_v24  ;;  %16492 = vmatpush3.bf16.msra.mxu0 %v5352_v14  ;;  %v5303_v3 = vsel %vm5191_vm12, %v4989_v5, %v5247_v12 }
 0x544   : > { %v4993_v60 = vpop.f32.mrf.mxu1  ;;  %v5355_v37 = vpack.c.bf16 %v5303_v3, %v5302_v21 }
 0x545   : > { %v4994_v33 = vadd.f32 %v4993_v60, %v19570_v48  ;;  %v5301_v13 = vsel %vm5189_vm1, %v4981_v50, %v5245_v6  ;;  %v5250_v2 = vmul.f32 0.01, %v5002_v47  ;;  %vm5194_vm4 = vcmp.gt.f32.partialorder %v5002_v47, 0.0 }
 0x546   : > { %v16444_v53 = vpop.f32.mrf.mxu1  ;;  %16494 = vmatmul.mubr.msk.bf16.vlgmr.msra.gmra.mxu0 %vm5446_vm3, %v16870_v17  ;;  %16497 = vmatprep.subr.bf16.mxu0 %v5355_v37  ;;  %v5354_v56 = vpack.c.bf16 %v5301_v13, %v5300_v0  ;;  %v23907_v13 = vld [vmem:[#allocation35_spill] sm:$0xff] }
 0x547   : > { %v5005_v24 = vadd.f32 %v16444_v53, %v19588_v62  ;;  %16498 = vmatpush3.bf16.msra.mxu0 %v5355_v37  ;;  %16501 = vmatprep.mubr.msk.bf16.mxu0 %vm5446_vm3, %v16871_v49  ;;  %v5248_v19 = vmul.f32 0.01, %v4994_v33  ;;  %vm5192_vm6 = vcmp.gt.f32.partialorder %v4994_v33, 0.0  ;;  %v5306_v1 = vsel %vm5194_vm4, %v5002_v47, %v5250_v2  ;;  %v16874_v53 = vld [vmem:[%s23614_s13 + $0x28] sm:$0xff]  }
 0x548   : > { %v4996_v14 = vpop.f32.mrf.mxu1  ;;  %16499 = vmatprep.subr.bf16.mxu0 %v5354_v56 }
 0x549   : > { %vm5195_vm5 = vcmp.gt.f32.partialorder %v5005_v24, 0.0  ;;  %v5251_v16 = vmul.f32 0.01, %v5005_v24  ;;  %v4997_v48 = vadd.f32 %v4996_v14, %v19576_v44  ;;  %v23905_v44 = vld [vmem:[#allocation15_spill] sm:$0xff]  ;;  %v5304_v17 = vsel %vm5192_vm6, %v4994_v33, %v5248_v19 }
 0x54a   : > { %v16447_v40 = vpop.f32.mrf.mxu1 }
 0x54b   : > { %vm5193_vm7 = vcmp.gt.f32.partialorder %v4997_v48, 0.0  ;;  %v5249_v5 = vmul.f32 0.01, %v4997_v48  ;;  %v5018_v62 = vadd.f32 %v16447_v40, %v19607_v32  ;;  %16500 = vmatpush3.bf16.msra.mxu0 %v5354_v56  ;;  %v5307_v28 = vsel %vm5195_vm5, %v5005_v24, %v5251_v16  ;;  %v23906_v32 = vld [vmem:[#allocation5_spill] sm:$0xff]  ;;  %v16877_v16 = vld [vmem:[%s23614_s13 + $0x40] sm:$0xff]  }
 0x54c   : > { %v5009_v12 = vpop.f32.mrf.mxu1  ;;  %v5357_v50 = vpack.c.bf16 %v5307_v28, %v5306_v1 }
 0x54d   : > { %v5010_v10 = vadd.f32 %v5009_v12, %v23905_v44  ;;  %v5305_v21 = vsel %vm5193_vm7, %v4997_v48, %v5249_v5  ;;  %v5254_v6 = vmul.f32 0.01, %v5018_v62  ;;  %vm5198_vm8 = vcmp.gt.f32.partialorder %v5018_v62, 0.0 }
 0x54e   : > { %v16448_v3 = vpop.f32.mrf.mxu1  ;;  %16502 = vmatmul.mubr.msk.bf16.vlgmr.msra.gmra.mxu0 %vm5446_vm3, %v16872_v34  ;;  %16505 = vmatprep.subr.bf16.mxu0 %v5357_v50  ;;  %v5356_v47 = vpack.c.bf16 %v5305_v21, %v5304_v17  ;;  %v23908_v34 = vld [vmem:[#allocation43_spill] sm:$0xff] }
 0x54f   : > { %v5021_v49 = vadd.f32 %v16448_v3, %v23906_v32  ;;  %16506 = vmatpush3.bf16.msra.mxu0 %v5357_v50  ;;  %16509 = vmatprep.mubr.msk.bf16.mxu0 %vm5446_vm3, %v16873_v59  ;;  %v5252_v37 = vmul.f32 0.01, %v5010_v10  ;;  %vm5196_vm10 = vcmp.gt.f32.partialorder %v5010_v10, 0.0  ;;  %v5310_v56 = vsel %vm5198_vm8, %v5018_v62, %v5254_v6  ;;  %v23910_v6 = vld [vmem:[#allocation19_spill] sm:$0xff] }
 0x550   : > { %v5012_v60 = vpop.f32.mrf.mxu1  ;;  %16507 = vmatprep.subr.bf16.mxu0 %v5356_v47 }
 0x551   : > { %vm5199_vm9 = vcmp.gt.f32.partialorder %v5021_v49, 0.0  ;;  %v5255_v0 = vmul.f32 0.01, %v5021_v49  ;;  %v5013_v33 = vadd.f32 %v5012_v60, %v23907_v13  ;;  %v5308_v5 = vsel %vm5196_vm10, %v5010_v10, %v5252_v37 }
 0x552   : > { %v16451_v2 = vpop.f32.mrf.mxu1 }
 0x553   : > { %vm5197_vm12 = vcmp.gt.f32.partialorder %v5013_v33, 0.0  ;;  %v5253_v24 = vmul.f32 0.01, %v5013_v33  ;;  %v5034_v14 = vadd.f32 %v16451_v2, %v19638_v11  ;;  %16508 = vmatpush3.bf16.msra.mxu0 %v5356_v47  ;;  %v5311_v19 = vsel %vm5199_vm9, %v5021_v49, %v5255_v0  ;;  %v23909_v11 = vld [vmem:[#allocation53_spill] sm:$0xff] }
 0x554   : > { %v5025_v48 = vpop.f32.mrf.mxu1  ;;  %v5359_v40 = vpack.c.bf16 %v5311_v19, %v5310_v56  ;;  %v16876_v47 = vld [vmem:[%s23614_s13 + $0x38] sm:$0xff]   ;;  %v16879_v0 = vld [vmem:[%s23614_s13 + $0x50] sm:$0xff]  }
 0x555   : > { %v5026_v1 = vadd.f32 %v5025_v48, %v23908_v34  ;;  %v5309_v28 = vsel %vm5197_vm12, %v5013_v33, %v5253_v24  ;;  %v5258_v59 = vmul.f32 0.01, %v5034_v14  ;;  %vm5202_vm13 = vcmp.gt.f32.partialorder %v5034_v14, 0.0 }
 0x556   : > { %v16452_v12 = vpop.f32.mrf.mxu1  ;;  %16510 = vmatmul.mubr.msk.bf16.vlgmr.msra.gmra.mxu0 %vm5446_vm3, %v16874_v53  ;;  %16513 = vmatprep.subr.bf16.mxu1 %v5359_v40  ;;  %v5358_v62 = vpack.c.bf16 %v5309_v28, %v5308_v5 }
 0x557   : > { %v5037_v50 = vadd.f32 %v16452_v12, %v23909_v11  ;;  %16514 = vmatpush3.bf16.msra.mxu1 %v5359_v40  ;;  %16525 = vmatprep.mubr.msk.bf16.mxu0 %vm5446_vm3, %v16877_v16  ;;  %v5256_v17 = vmul.f32 0.01, %v5026_v1  ;;  %vm5200_vm4 = vcmp.gt.f32.partialorder %v5026_v1, 0.0  ;;  %v5314_v32 = vsel %vm5202_vm13, %v5034_v14, %v5258_v59  ;;  %v16881_v12 = vld [vmem:[%s23614_s13 + $0x60] sm:$0xff]  }
 0x558   : > { %v5028_v44 = vpop.f32.mrf.mxu1  ;;  %16515 = vmatprep.subr.bf16.mxu1 %v5358_v62 }
 0x559   : > { %vm5203_vm1 = vcmp.gt.f32.partialorder %v5037_v50, 0.0  ;;  %v5259_v21 = vmul.f32 0.01, %v5037_v50  ;;  %v5029_v10 = vadd.f32 %v5028_v44, %v23910_v6  ;;  %v5312_v53 = vsel %vm5200_vm4, %v5026_v1, %v5256_v17  ;;  %v16878_v1 = vld [vmem:[%s23614_s13 + $0x48] sm:$0xff]  }
 0x55a   : > { %v16455_v3 = vpop.f32.mrf.mxu1 }
 0x55b   : > { %vm5201_vm5 = vcmp.gt.f32.partialorder %v5029_v10, 0.0  ;;  %v5257_v49 = vmul.f32 0.01, %v5029_v10  ;;  %v5050_v60 = vadd.f32 %v16455_v3, %v19662_v20  ;;  %16516 = vmatpush3.bf16.msra.mxu1 %v5358_v62  ;;  %v5315_v37 = vsel %vm5203_vm1, %v5037_v50, %v5259_v21 }
 0x55c   : > { %v5041_v13 = vpop.f32.mrf.mxu1  ;;  %v5361_v33 = vpack.c.bf16 %v5315_v37, %v5314_v32 }
 0x55d   : > { %v5042_v2 = vadd.f32 %v5041_v13, %v19650_v7  ;;  %v5313_v56 = vsel %vm5201_vm5, %v5029_v10, %v5257_v49  ;;  %v5262_v24 = vmul.f32 0.01, %v5050_v60  ;;  %vm5206_vm6 = vcmp.gt.f32.partialorder %v5050_v60, 0.0  ;;  %v16880_v49 = vld [vmem:[%s23614_s13 + $0x58] sm:$0xff]   ;;  %v16883_v13 = vld [vmem:[%s23614_s13 + $0x70] sm:$0xff]  }
 0x55e   : > { %v16456_v19 = vpop.f32.mrf.mxu1  ;;  %16518 = vmatmul.mubr.msk.bf16.vlgmr.msra.gmra.mxu1 %vm5446_vm3, %v16876_v47  ;;  %16521 = vmatprep.subr.bf16.mxu0 %v5361_v33  ;;  %v5360_v14 = vpack.c.bf16 %v5313_v56, %v5312_v53 }
 0x55f   : > { %v5053_v20 = vadd.f32 %v16456_v19, %v19668_v38  ;;  %16522 = vmatpush3.bf16.msra.mxu0 %v5361_v33  ;;  %16533 = vmatprep.mubr.msk.bf16.mxu1 %vm5446_vm3, %v16879_v0  ;;  %v5260_v48 = vmul.f32 0.01, %v5042_v2  ;;  %vm5204_vm8 = vcmp.gt.f32.partialorder %v5042_v2, 0.0  ;;  %v5318_v5 = vsel %vm5206_vm6, %v5050_v60, %v5262_v24 }
 0x560   : > { %v5044_v16 = vpop.f32.mrf.mxu1  ;;  %16523 = vmatprep.subr.bf16.mxu0 %v5360_v14 }
 0x561   : > { %vm5207_vm7 = vcmp.gt.f32.partialorder %v5053_v20, 0.0  ;;  %v5263_v40 = vmul.f32 0.01, %v5053_v20  ;;  %v5045_v7 = vadd.f32 %v5044_v16, %v19656_v61  ;;  %v5316_v50 = vsel %vm5204_vm8, %v5042_v2, %v5260_v48 }
 0x562   : > { %v16459_v34 = vpop.f32.mrf.mxu1 }
 0x563   : > { %vm5205_vm9 = vcmp.gt.f32.partialorder %v5045_v7, 0.0  ;;  %v5261_v28 = vmul.f32 0.01, %v5045_v7  ;;  %v5066_v38 = vadd.f32 %v16459_v34, %v19686_v26  ;;  %16524 = vmatpush3.bf16.msra.mxu0 %v5360_v14  ;;  %v5319_v59 = vsel %vm5207_vm7, %v5053_v20, %v5263_v40 }
 0x564   : > { %v5057_v62 = vpop.f32.mrf.mxu1  ;;  %v5363_v11 = vpack.c.bf16 %v5319_v59, %v5318_v5 }
 0x565   : > { %v5058_v61 = vadd.f32 %v5057_v62, %v19674_v23  ;;  %v5317_v44 = vsel %vm5205_vm9, %v5045_v7, %v5261_v28  ;;  %v5266_v17 = vmul.f32 0.01, %v5066_v38  ;;  %vm5210_vm10 = vcmp.gt.f32.partialorder %v5066_v38, 0.0  ;;  %v16882_v7 = vld [vmem:[%s23614_s13 + $0x68] sm:$0xff]   ;;  %v16885_v28 = vld [vmem:[%s23614_s13 + $0x80] sm:$0xff]  }
 0x566   : > { %v16460_v21 = vpop.f32.mrf.mxu1  ;;  %16526 = vmatmul.mubr.msk.bf16.vlgmr.msra.gmra.mxu0 %vm5446_vm3, %v16878_v1  ;;  %16529 = vmatprep.subr.bf16.mxu1 %v5363_v11  ;;  %v5362_v6 = vpack.c.bf16 %v5317_v44, %v5316_v50 }
 0x567   : > { %v5069_v26 = vadd.f32 %v16460_v21, %v19692_v29  ;;  %16530 = vmatpush3.bf16.msra.mxu1 %v5363_v11  ;;  %16541 = vmatprep.mubr.msk.bf16.mxu0 %vm5446_vm3, %v16881_v12  ;;  %v5264_v3 = vmul.f32 0.01, %v5058_v61  ;;  %vm5208_vm13 = vcmp.gt.f32.partialorder %v5058_v61, 0.0  ;;  %v5322_v60 = vsel %vm5210_vm10, %v5066_v38, %v5266_v17 }
 0x568   : > { %v5060_v10 = vpop.f32.mrf.mxu1  ;;  %16531 = vmatprep.subr.bf16.mxu1 %v5362_v6 }
 0x569   : > { %vm5211_vm12 = vcmp.gt.f32.partialorder %v5069_v26, 0.0  ;;  %v5267_v47 = vmul.f32 0.01, %v5069_v26  ;;  %v5061_v23 = vadd.f32 %v5060_v10, %v19680_v35  ;;  %v5320_v53 = vsel %vm5208_vm13, %v5058_v61, %v5264_v3 }
 0x56a   : > { %v16463_v32 = vpop.f32.mrf.mxu1 }
 0x56b   : > { %vm5209_vm1 = vcmp.gt.f32.partialorder %v5061_v23, 0.0  ;;  %v5265_v37 = vmul.f32 0.01, %v5061_v23  ;;  %v5082_v29 = vadd.f32 %v16463_v32, %v19714_v43  ;;  %16532 = vmatpush3.bf16.msra.mxu1 %v5362_v6  ;;  %v5323_v0 = vsel %vm5211_vm12, %v5069_v26, %v5267_v47  ;;  %v16884_v26 = vld [vmem:[%s23614_s13 + $0x78] sm:$0xff]  }
 0x56c   : > { %v5073_v33 = vpop.f32.mrf.mxu1  ;;  %v5365_v2 = vpack.c.bf16 %v5323_v0, %v5322_v60 }
 0x56d   : > { %v5074_v35 = vadd.f32 %v5073_v33, %v19698_v54  ;;  %v5321_v56 = vsel %vm5209_vm1, %v5061_v23, %v5265_v37  ;;  %v5270_v24 = vmul.f32 0.01, %v5082_v29  ;;  %vm5214_vm4 = vcmp.gt.f32.partialorder %v5082_v29, 0.0  ;;  %v16887_v23 = vld [vmem:[%s23614_s13 + $0x90] sm:$0xff]  }
 0x56e   : > { %v16464_v19 = vpop.f32.mrf.mxu1  ;;  %16534 = vmatmul.mubr.msk.bf16.vlgmr.msra.gmra.mxu1 %vm5446_vm3, %v16880_v49  ;;  %16537 = vmatprep.subr.bf16.mxu0 %v5365_v2  ;;  %v5364_v14 = vpack.c.bf16 %v5321_v56, %v5320_v53  ;;  %v16886_v56 = vld [vmem:[%s23614_s13 + $0x88] sm:$0xff]  }
 0x56f   : > { %v5085_v43 = vadd.f32 %v16464_v19, %v19722_v9  ;;  %16538 = vmatpush3.bf16.msra.mxu0 %v5365_v2  ;;  %16549 = vmatprep.mubr.msk.bf16.mxu1 %vm5446_vm3, %v16883_v13  ;;  %v5268_v16 = vmul.f32 0.01, %v5074_v35  ;;  %vm5212_vm6 = vcmp.gt.f32.partialorder %v5074_v35, 0.0  ;;  %v5326_v34 = vsel %vm5214_vm4, %v5082_v29, %v5270_v24 }
 0x570   : > { %v5076_v20 = vpop.f32.mrf.mxu1  ;;  %16539 = vmatprep.subr.bf16.mxu0 %v5364_v14 }
 0x571   : > { %vm5215_vm5 = vcmp.gt.f32.partialorder %v5085_v43, 0.0  ;;  %v5271_v48 = vmul.f32 0.01, %v5085_v43  ;;  %v5077_v54 = vadd.f32 %v5076_v20, %v19708_v8  ;;  %v5324_v12 = vsel %vm5212_vm6, %v5074_v35, %v5268_v16 }
 0x572   : > { %v16467_v40 = vpop.f32.mrf.mxu1 }
 0x573   : > { %vm5213_vm7 = vcmp.gt.f32.partialorder %v5077_v54, 0.0  ;;  %v5269_v1 = vmul.f32 0.01, %v5077_v54  ;;  %v5098_v9 = vadd.f32 %v16467_v40, %v19741_v52  ;;  %16540 = vmatpush3.bf16.msra.mxu0 %v5364_v14  ;;  %v5327_v5 = vsel %vm5215_vm5, %v5085_v43, %v5271_v48  ;;  %v16889_v43 = vld [vmem:[%s23614_s13 + $0xa0] sm:$0xff]  }
 0x574   : > { %v5089_v38 = vpop.f32.mrf.mxu1  ;;  %v5367_v59 = vpack.c.bf16 %v5327_v5, %v5326_v34 }
 0x575   : > { %v5090_v8 = vadd.f32 %v5089_v38, %v19729_v57  ;;  %v5325_v62 = vsel %vm5213_vm7, %v5077_v54, %v5269_v1  ;;  %v5274_v11 = vmul.f32 0.01, %v5098_v9  ;;  %vm5218_vm8 = vcmp.gt.f32.partialorder %v5098_v9, 0.0 }
 0x576   : > { %v16468_v61 = vpop.f32.mrf.mxu1  ;;  %16542 = vmatmul.mubr.msk.bf16.vlgmr.msra.gmra.mxu0 %vm5446_vm3, %v16882_v7  ;;  %16545 = vmatprep.subr.bf16.mxu1 %v5367_v59  ;;  %v5366_v50 = vpack.c.bf16 %v5325_v62, %v5324_v12  ;;  %v16891_v62 = vld [vmem:[%s23614_s13 + $0xb0] sm:$0xff]  }
 0x577   : > { %v5101_v52 = vadd.f32 %v16468_v61, %v19749_v63  ;;  %16546 = vmatpush3.bf16.msra.mxu1 %v5367_v59  ;;  %16557 = vmatprep.mubr.msk.bf16.mxu0 %vm5446_vm3, %v16885_v28  ;;  %v5272_v17 = vmul.f32 0.01, %v5090_v8  ;;  %vm5216_vm10 = vcmp.gt.f32.partialorder %v5090_v8, 0.0  ;;  %v5330_v10 = vsel %vm5218_vm8, %v5098_v9, %v5274_v11  ;;  %v16888_v59 = vld [vmem:[%s23614_s13 + $0x98] sm:$0xff]  }
 0x578   : > { %v5092_v44 = vpop.f32.mrf.mxu1  ;;  %16547 = vmatprep.subr.bf16.mxu1 %v5366_v50 }
 0x579   : > { %vm5219_vm9 = vcmp.gt.f32.partialorder %v5101_v52, 0.0  ;;  %v5275_v21 = vmul.f32 0.01, %v5101_v52  ;;  %v5093_v57 = vadd.f32 %v5092_v44, %v19735_v15  ;;  %v5328_v60 = vsel %vm5216_vm10, %v5090_v8, %v5272_v17 }
 0x57a   : > { %v16471_v6 = vpop.f32.mrf.mxu1 }
 0x57b   : > { %vm5217_vm12 = vcmp.gt.f32.partialorder %v5093_v57, 0.0  ;;  %v5273_v3 = vmul.f32 0.01, %v5093_v57  ;;  %v5114_v63 = vadd.f32 %v16471_v6, %v19761_v58  ;;  %16548 = vmatpush3.bf16.msra.mxu1 %v5366_v50  ;;  %v5331_v47 = vsel %vm5219_vm9, %v5101_v52, %v5275_v21 }
 0x57c   : > { %v5105_v32 = vpop.f32.mrf.mxu1  ;;  %v5369_v49 = vpack.c.bf16 %v5331_v47, %v5330_v10 }
 0x57d   : > { %v5106_v15 = vadd.f32 %v5105_v32, %v19753_v39  ;;  %v5329_v37 = vsel %vm5217_vm12, %v5093_v57, %v5273_v3  ;;  %v5278_v29 = vmul.f32 0.01, %v5114_v63  ;;  %vm5222_vm13 = vcmp.gt.f32.partialorder %v5114_v63, 0.0  ;;  %v16893_v32 = vld [vmem:[%s23614_s13 + $0xc0] sm:$0xff]  }
 0x57e   : > { %v16472_v0 = vpop.f32.mrf.mxu1  ;;  %16550 = vmatmul.mubr.msk.bf16.vlgmr.msra.gmra.mxu1 %vm5446_vm3, %v16884_v26  ;;  %16553 = vmatprep.subr.bf16.mxu0 %v5369_v49  ;;  %v5368_v13 = vpack.c.bf16 %v5329_v37, %v5328_v60 }
 0x57f   : > { %v5117_v58 = vadd.f32 %v16472_v0, %v19765_v51  ;;  %16554 = vmatpush3.bf16.msra.mxu0 %v5369_v49  ;;  %16565 = vmatprep.mubr.msk.bf16.mxu1 %vm5446_vm3, %v16887_v23  ;;  %v5276_v2 = vmul.f32 0.01, %v5106_v15  ;;  %vm5220_vm4 = vcmp.gt.f32.partialorder %v5106_v15, 0.0  ;;  %v5334_v24 = vsel %vm5222_vm13, %v5114_v63, %v5278_v29  ;;  %v16890_v63 = vld [vmem:[%s23614_s13 + $0xa8] sm:$0xff]  }
 0x580   : > { %v5108_v33 = vpop.f32.mrf.mxu1  ;;  %16555 = vmatprep.subr.bf16.mxu0 %v5368_v13 }
 0x581   : > { %vm5223_vm1 = vcmp.gt.f32.partialorder %v5117_v58, 0.0  ;;  %v5279_v35 = vmul.f32 0.01, %v5117_v58  ;;  %v5109_v39 = vadd.f32 %v5108_v33, %v19757_v18  ;;  %v5332_v48 = vsel %vm5220_vm4, %v5106_v15, %v5276_v2 }
 0x582   : > { %v16475_v53 = vpop.f32.mrf.mxu1 }
 0x583   : > { %vm5221_vm5 = vcmp.gt.f32.partialorder %v5109_v39, 0.0  ;;  %v5277_v19 = vmul.f32 0.01, %v5109_v39  ;;  %v5130_v51 = vadd.f32 %v16475_v53, %v19777_v25  ;;  %16556 = vmatpush3.bf16.msra.mxu0 %v5368_v13  ;;  %v5335_v14 = vsel %vm5223_vm1, %v5117_v58, %v5279_v35  ;;  %v16892_v53 = vld [vmem:[%s23614_s13 + $0xb8] sm:$0xff]  }
 0x584   : > { %v5121_v20 = vpop.f32.mrf.mxu1  ;;  %v5371_v16 = vpack.c.bf16 %v5335_v14, %v5334_v24 }
 0x585   : > { %v5122_v18 = vadd.f32 %v5121_v20, %v19769_v42  ;;  %v5333_v54 = vsel %vm5221_vm5, %v5109_v39, %v5277_v19  ;;  %v5282_v40 = vmul.f32 0.01, %v5130_v51  ;;  %vm5226_vm6 = vcmp.gt.f32.partialorder %v5130_v51, 0.0 }
 0x586   : > { %v16476_v7 = vpop.f32.mrf.mxu1  ;;  %16558 = vmatmul.mubr.msk.bf16.vlgmr.msra.gmra.mxu0 %vm5446_vm3, %v16886_v56  ;;  %16561 = vmatprep.subr.bf16.mxu1 %v5371_v16  ;;  %v5370_v34 = vpack.c.bf16 %v5333_v54, %v5332_v48 }
 0x587   : > { %v5133_v25 = vadd.f32 %v16476_v7, %v19781_v45  ;;  %16562 = vmatpush3.bf16.msra.mxu1 %v5371_v16  ;;  %16573 = vmatprep.mubr.msk.bf16.mxu0 %vm5446_vm3, %v16889_v43  ;;  %v5280_v9 = vmul.f32 0.01, %v5122_v18  ;;  %vm5224_vm8 = vcmp.gt.f32.partialorder %v5122_v18, 0.0  ;;  %v5338_v38 = vsel %vm5226_vm6, %v5130_v51, %v5282_v40  ;;  %v16895_v51 = vld [vmem:[%s23614_s13 + $0xd0] sm:$0xff]  }
 0x588   : > { %v5124_v1 = vpop.f32.mrf.mxu1  ;;  %16563 = vmatprep.subr.bf16.mxu1 %v5370_v34  ;;  %v23913_v7 = vld [vmem:[#allocation28_spill] sm:$0xff] }
 0x589   : > { %vm5227_vm7 = vcmp.gt.f32.partialorder %v5133_v25, 0.0  ;;  %v5283_v5 = vmul.f32 0.01, %v5133_v25  ;;  %v5125_v42 = vadd.f32 %v5124_v1, %v19773_v41  ;;  %v5336_v50 = vsel %vm5224_vm8, %v5122_v18, %v5280_v9 }
 0x58a   : > { %v16479_v28 = vpop.f32.mrf.mxu1 }
 0x58b   : > { %vm5225_vm9 = vcmp.gt.f32.partialorder %v5125_v42, 0.0  ;;  %v5281_v8 = vmul.f32 0.01, %v5125_v42  ;;  %v5146_v45 = vadd.f32 %v16479_v28, %v19793_v31  ;;  %16564 = vmatpush3.bf16.msra.mxu1 %v5370_v34  ;;  %v5339_v12 = vsel %vm5227_vm7, %v5133_v25, %v5283_v5  ;;  %v23914_v5 = vld [vmem:[#allocation63_spill] sm:$0xff] }
 0x58c   : > { %v5137_v11 = vpop.f32.mrf.mxu1  ;;  %v5373_v61 = vpack.c.bf16 %v5339_v12, %v5338_v38  ;;  %v16894_v28 = vld [vmem:[%s23614_s13 + $0xc8] sm:$0xff]   ;;  %v23915_v12 = vmov 0  }
 0x58d   : > { %v5138_v41 = vadd.f32 %v5137_v11, %v19785_v22  ;;  %v5337_v52 = vsel %vm5225_vm9, %v5125_v42, %v5281_v8  ;;  %v5286_v44 = vmul.f32 0.01, %v5146_v45  ;;  %vm5230_vm10 = vcmp.gt.f32.partialorder %v5146_v45, 0.0 }
 0x58e   : > { %v16480_v17 = vpop.f32.mrf.mxu1  ;;  %16569 = vmatprep.subr.bf16.mxu0 %v5373_v61  ;;  %v5372_v21 = vpack.c.bf16 %v5337_v52, %v5336_v50  ;;  %16566 = vmatmul.mubr.msk.bf16.vlgmr.msra.gmra.mxu1 %vm5446_vm3, %v16888_v59  ;;  %v16897_v50 = vld [vmem:[%s23606_s5 + $0x38] sm:$0xff]   ;;  %v16898_v52 = vld [vmem:[%s23606_s5 + $0x30] sm:$0xff]  }
 0x58f   : > { %v5149_v31 = vadd.f32 %v16480_v17, %v19797_v46  ;;  %16570 = vmatpush3.bf16.msra.mxu0 %v5373_v61  ;;  %16581 = vmatprep.mubr.msk.bf16.mxu1 %vm5446_vm3, %v16891_v62  ;;  %v5284_v6 = vmul.f32 0.01, %v5138_v41  ;;  %vm5228_vm13 = vcmp.gt.f32.partialorder %v5138_v41, 0.0  ;;  %v5342_v3 = vsel %vm5230_vm10, %v5146_v45, %v5286_v44  ;;  %v16899_v44 = vld [vmem:[%s23606_s5 + $0x28] sm:$0xff]   ;;  %v16900_v17 = vld [vmem:[%s23606_s5 + $0x20] sm:$0xff]  }
 0x590   : > { %v5140_v57 = vpop.f32.mrf.mxu1  ;;  %16571 = vmatprep.subr.bf16.mxu0 %v5372_v21 }
 0x591   : > { %vm5231_vm12 = vcmp.gt.f32.partialorder %v5149_v31, 0.0  ;;  %v5287_v26 = vmul.f32 0.01, %v5149_v31  ;;  %v5141_v22 = vadd.f32 %v5140_v57, %v19789_v27  ;;  %v5340_v60 = vsel %vm5228_vm13, %v5138_v41, %v5284_v6  ;;  %v16896_v41 = vld [vmem:[%s23614_s13 + $0xd8] sm:$0xff]   ;;  %v16903_v57 = vld [vmem:[%s23606_s5 + $0x8] sm:$0xff]   ;;  %v16904_v6 = vld [vmem:[%s23606_s5] sm:$0xff]  }
 0x592   : > { %v16483_v10 = vpop.f32.mrf.mxu1 }
 0x593   : > { %vm5229_vm1 = vcmp.gt.f32.partialorder %v5141_v22, 0.0  ;;  %v5285_v47 = vmul.f32 0.01, %v5141_v22  ;;  %v5162_v46 = vadd.f32 %v16483_v10, %v19809_v30  ;;  %16572 = vmatpush3.bf16.msra.mxu0 %v5372_v21  ;;  %v5343_v23 = vsel %vm5231_vm12, %v5149_v31, %v5287_v26  ;;  %v16901_v21 = vld [vmem:[%s23606_s5 + $0x18] sm:$0xff]   ;;  %v16902_v31 = vld [vmem:[%s23606_s5 + $0x10] sm:$0xff]   ;;  %v16907_v10 = vld [vmem:[%s23606_s5 + $0x68] sm:$0xff]  }
 0x594   : > { %v5153_v49 = vpop.f32.mrf.mxu1  ;;  %v5375_v15 = vpack.c.bf16 %v5343_v23, %v5342_v3  ;;  %v16905_v26 = vld [vmem:[%s23606_s5 + $0x78] sm:$0xff]   ;;  %v16908_v3 = vld [vmem:[%s23606_s5 + $0x60] sm:$0xff]  }
 0x595   : > { %v5154_v27 = vadd.f32 %v5153_v49, %v19801_v4  ;;  %v5341_v37 = vsel %vm5229_vm1, %v5141_v22, %v5285_v47  ;;  %v5290_v29 = vmul.f32 0.01, %v5162_v46  ;;  %vm5234_vm4 = vcmp.gt.f32.partialorder %v5162_v46, 0.0  ;;  %v16906_v22 = vld [vmem:[%s23606_s5 + $0x70] sm:$0xff]   ;;  %v16912_v49 = vld [vmem:[%s23606_s5 + $0x40] sm:$0xff]  }
 0x596   : > { %v16484_v0 = vpop.f32.mrf.mxu1  ;;  %16577 = vmatprep.subr.bf16.mxu1 %v5375_v15  ;;  %v5374_v13 = vpack.c.bf16 %v5341_v37, %v5340_v60  ;;  %16574 = vmatmul.mubr.msk.bf16.vlgmr.msra.gmra.mxu0 %vm5446_vm3, %v16890_v63  ;;  %v16909_v63 = vld [vmem:[%s23606_s5 + $0x58] sm:$0xff]   ;;  %v16910_v47 = vld [vmem:[%s23606_s5 + $0x50] sm:$0xff]  }
 0x597   : > { %v5165_v30 = vadd.f32 %v16484_v0, %v19813_v55  ;;  %16578 = vmatpush3.bf16.msra.mxu1 %v5375_v15  ;;  %16589 = vmatprep.mubr.msk.bf16.mxu0 %vm5446_vm3, %v16893_v32  ;;  %v5288_v33 = vmul.f32 0.01, %v5154_v27  ;;  %vm5232_vm6 = vcmp.gt.f32.partialorder %v5154_v27, 0.0  ;;  %v5346_v39 = vsel %vm5234_vm4, %v5162_v46, %v5290_v29  ;;  %v23911_v55 = vld [vmem:[#allocation21_spill] sm:$0xff]  ;;  %v16911_v46 = vld [vmem:[%s23606_s5 + $0x48] sm:$0xff]  }
 0x598   : > { %v5156_v58 = vpop.f32.mrf.mxu1  ;;  %16579 = vmatprep.subr.bf16.mxu1 %v5374_v13  ;;  %v16913_v60 = vld [vmem:[%s23606_s5 + $0xb8] sm:$0xff]  }
 0x599   : > { %vm5235_vm5 = vcmp.gt.f32.partialorder %v5165_v30, 0.0  ;;  %v5291_v2 = vmul.f32 0.01, %v5165_v30  ;;  %v5157_v4 = vadd.f32 %v5156_v58, %v19805_v36  ;;  %v23912_v36 = vld [vmem:[#allocation6_spill] sm:$0xff]  ;;  %v5344_v16 = vsel %vm5232_vm6, %v5154_v27, %v5288_v33  ;;  %v16914_v58 = vld [vmem:[%s23606_s5 + $0xb0] sm:$0xff]  }
 0x59a   : > { %v16487_v35 = vpop.f32.mrf.mxu1 }
 0x59b   : > { %vm5233_vm7 = vcmp.gt.f32.partialorder %v5157_v4, 0.0  ;;  %v5289_v56 = vmul.f32 0.01, %v5157_v4  ;;  %v5178_v24 = vadd.f32 %v16487_v35, %v23911_v55  ;;  %16580 = vmatpush3.bf16.msra.mxu1 %v5374_v13  ;;  %v5347_v19 = vsel %vm5235_vm5, %v5165_v30, %v5291_v2 }
 0x59c   : > { %v5169_v14 = vpop.f32.mrf.mxu1  ;;  %v5377_v43 = vpack.c.bf16 %v5347_v19, %v5346_v39 }
 0x59d   : > { %v5170_v20 = vadd.f32 %v5169_v14, %v23912_v36  ;;  %v5345_v18 = vsel %vm5233_vm7, %v5157_v4, %v5289_v56  ;;  %v5294_v40 = vmul.f32 0.01, %v5178_v24  ;;  %vm5238_vm8 = vcmp.gt.f32.partialorder %v5178_v24, 0.0  ;;  %v16915_v56 = vld [vmem:[%s23606_s5 + $0xa8] sm:$0xff]  }
 0x59e   : > { %v16488_v48 = vpop.f32.mrf.mxu1  ;;  %16585 = vmatprep.subr.bf16.mxu0 %v5377_v43  ;;  %v5376_v54 = vpack.c.bf16 %v5345_v18, %v5344_v16  ;;  %16582 = vmatmul.mubr.msk.bf16.vlgmr.msra.gmra.mxu1 %vm5446_vm3, %v16892_v53 }
 0x59f   : > { %v5181_v34 = vadd.f32 %v16488_v48, %v23913_v7  ;;  %16586 = vmatpush3.bf16.msra.mxu0 %v5377_v43  ;;  %16597 = vmatprep.mubr.msk.bf16.mxu1 %vm5446_vm3, %v16895_v51  ;;  %v5292_v1 = vmul.f32 0.01, %v5170_v20  ;;  %vm5236_vm10 = vcmp.gt.f32.partialorder %v5170_v20, 0.0  ;;  %v5350_v59 = vsel %vm5238_vm8, %v5178_v24, %v5294_v40  ;;  %v16916_v43 = vld [vmem:[%s23606_s5 + $0xa0] sm:$0xff]  }
 0x5a0   : > { %v5172_v25 = vpop.f32.mrf.mxu1  ;;  %16587 = vmatprep.subr.bf16.mxu0 %v5376_v54 }
 0x5a1   : > { %vm5239_vm9 = vcmp.gt.f32.partialorder %v5181_v34, 0.0  ;;  %v5295_v9 = vmul.f32 0.01, %v5181_v34  ;;  %v5173_v42 = vadd.f32 %v5172_v25, %v23914_v5  ;;  %v5348_v62 = vsel %vm5236_vm10, %v5170_v20, %v5292_v1 }
 0x5a3   : > { %vm5237_vm12 = vcmp.gt.f32.partialorder %v5173_v42, 0.0  ;;  %v5293_v38 = vmul.f32 0.01, %v5173_v42  ;;  %16588 = vmatpush3.bf16.msra.mxu0 %v5376_v54  ;;  %v5351_v8 = vsel %vm5239_vm9, %v5181_v34, %v5295_v9  ;;  %v16917_v54 = vld [vmem:[%s23606_s5 + $0x98] sm:$0xff]  }
 0x5a4   : > { %v5379_v45 = vpack.c.bf16 %v5351_v8, %v5350_v59  ;;  %7714 = vmatprep.subr.bf16.mxu0 %v23915_v12 }
 0x5a5   : > { %v5349_v11 = vsel %vm5237_vm12, %v5173_v42, %v5293_v38 }
 0x5a6   : > { %16593 = vmatprep.subr.bf16.mxu1 %v5379_v45  ;;  %v5378_v61 = vpack.c.bf16 %v5349_v11, %v5348_v62  ;;  %16590 = vmatmul.mubr.msk.bf16.vlgmr.msra.gmra.mxu0 %vm5446_vm3, %v16894_v28  ;;  %v16918_v28 = vld [vmem:[%s23606_s5 + $0x90] sm:$0xff]  }
 0x5a7   : > { %16594 = vmatpush3.bf16.msra.mxu1 %v5379_v45  ;;  %7715 = vmatpush1.bf16.msra.mxu0 %v16897_v50 }
 0x5a8   : > { %16595 = vmatprep.subr.bf16.mxu1 %v5378_v61  ;;  %7716 = vmatprep.subr.bf16.mxu0 %v23915_v12 }
 0x5ab   : > { %16596 = vmatpush3.bf16.msra.mxu1 %v5378_v61  ;;  %7717 = vmatpush1.bf16.msra.mxu0 %v16898_v52 }
 0x5ac   : > { %7889 = vmatprep.subr.bf16.mxu1 %v23915_v12  ;;  %7718 = vmatprep.subr.bf16.mxu0 %v23915_v12 }
 0x5ae   : > { %16598 = vmatmul.mubr.msk.bf16.vlgmr.msra.gmra.mxu1 %vm5446_vm3, %v16896_v41  ;;  %v16919_v41 = vld [vmem:[%s23606_s5 + $0x88] sm:$0xff]  }
 0x5af   : > { %7719 = vmatpush1.bf16.msra.mxu0 %v16899_v44  ;;  %7890 = vmatpush1.bf16.msra.mxu1 %v16913_v60 }
 0x5b0   : > { %7720 = vmatprep.subr.bf16.mxu0 %v23915_v12  ;;  %7891 = vmatprep.subr.bf16.mxu1 %v23915_v12 }
 0x5b3   : > { %7721 = vmatpush1.bf16.msra.mxu0 %v16900_v17  ;;  %7892 = vmatpush1.bf16.msra.mxu1 %v16914_v58 }
 0x5b4   : > { %7722 = vmatprep.subr.bf16.mxu0 %v23915_v12  ;;  %7893 = vmatprep.subr.bf16.mxu1 %v23915_v12 }
 0x5b7   : > { %7723 = vmatpush1.bf16.msra.mxu0 %v16901_v21  ;;  %7894 = vmatpush1.bf16.msra.mxu1 %v16915_v56 }
 0x5b8   : > { %7724 = vmatprep.subr.bf16.mxu0 %v23915_v12  ;;  %7895 = vmatprep.subr.bf16.mxu1 %v23915_v12 }
 0x5bb   : > { %7725 = vmatpush1.bf16.msra.mxu0 %v16902_v31  ;;  %7896 = vmatpush1.bf16.msra.mxu1 %v16916_v43 }
 0x5bc   : > { %7726 = vmatprep.subr.bf16.mxu0 %v23915_v12  ;;  %7897 = vmatprep.subr.bf16.mxu1 %v23915_v12 }
 0x5bf   : > { %7727 = vmatpush1.bf16.msra.mxu0 %v16903_v57  ;;  %7898 = vmatpush1.bf16.msra.mxu1 %v16917_v54 }
 0x5c0   : > { %7728 = vmatprep.subr.bf16.mxu0 %v23915_v12  ;;  %7899 = vmatprep.subr.bf16.mxu1 %v23915_v12 }
 0x5c3   : > { %7729 = vmatpush1.bf16.msra.mxu0 %v16904_v6  ;;  %7900 = vmatpush1.bf16.msra.mxu1 %v16918_v28 }
 0x5c4   : > { %7730 = vmatprep.subr.bf16.mxu0 %v23915_v12  ;;  %7901 = vmatprep.subr.bf16.mxu1 %v23915_v12 }
 0x5c7   : > { %7731 = vmatpush2.bf16.msra.mxu0 %v16905_v26  ;;  %7902 = vmatpush1.bf16.msra.mxu1 %v16919_v41  ;;  %v16920_v26 = vld [vmem:[%s23606_s5 + $0x80] sm:$0xff]  }
 0x5c8   : > { %7732 = vmatprep.subr.bf16.mxu0 %v23915_v12  ;;  %7903 = vmatprep.subr.bf16.mxu1 %v23915_v12 }
 0x5cb   : > { %7733 = vmatpush2.bf16.msra.mxu0 %v16906_v22  ;;  %7904 = vmatpush1.bf16.msra.mxu1 %v16920_v26 }
 0x5cc   : > { %7734 = vmatprep.subr.bf16.mxu0 %v23915_v12  ;;  %7905 = vmatprep.subr.bf16.mxu1 %v23915_v12 }
 0x5cf   : > { %7735 = vmatpush2.bf16.msra.mxu0 %v16907_v10 }
 0x5d0   : > { %7736 = vmatprep.subr.bf16.mxu0 %v23915_v12 }
 0x5d3   : > { %7737 = vmatpush2.bf16.msra.mxu0 %v16908_v3 }
 0x5d4   : > { %7738 = vmatprep.subr.bf16.mxu0 %v23915_v12 }
 0x5d7   : > { %7739 = vmatpush2.bf16.msra.mxu0 %v16909_v63 }
 0x5d8   : > { %7740 = vmatprep.subr.bf16.mxu0 %v23915_v12 }
 0x5db   : > { %7741 = vmatpush2.bf16.msra.mxu0 %v16910_v47 }
 0x5dc   : > { %7742 = vmatprep.subr.bf16.mxu0 %v23915_v12 }
 0x5df   : > { %7743 = vmatpush2.bf16.msra.mxu0 %v16911_v46 }
 0x5e0   : > { %7744 = vmatprep.subr.bf16.mxu0 %v23915_v12 }
 0x5e3   : > { %7745 = vmatpush2.bf16.msra.mxu0 %v16912_v49 }
 0x606   : > { %v16495_v23 = vpop.f32.mrf.mxu0 }
 0x608   : > { %v5487_v32 = vpop.f32.mrf.mxu0 }
 0x60a   : > { %v16496_v15 = vpop.f32.mrf.mxu0 }
 0x60b   : > { %v20056_v27 = vpack.c.bf16 %v16496_v15, %v16495_v23  ;;  %v16921_v15 = vld [vmem:[%s23606_s5 + $0xf8] sm:$0xff]  }
 0x60c   : > { %v5490_v37 = vpop.f32.mrf.mxu0  ;;  %7906 = vmatpush2.bf16.msra.mxu1 %v16921_v15  ;;  %v16927_v15 = vld [vmem:[%s23606_s5 + $0xc8] sm:$0xff]  }
 0x60d   : > { %v20061_v29 = vpack.c.bf16 %v5490_v37, %v5487_v32  ;;  %v6456_v30 = vshll.u32 %v20056_v27, 16  ;;  %v6460_v48 = vshrl.u32 %v20056_v27, 16  ;;  %7907 = vmatprep.subr.bf16.mxu1 %v23915_v12 }
 0x60e   : > { %v16503_v0 = vpop.f32.mrf.mxu0 }
 0x60f   : > { %v6451_v13 = vshll.u32 %v20061_v29, 16  ;;  %v6449_v2 = vshrl.u32 %v20061_v29, 16  ;;  %v6458_v53 = vrot.slane %v6456_v30, 1 }
 0x610   : > { %v5552_v33 = vpop.f32.mrf.mxu0 }
 0x611   : > { %v6453_v4 = vrot.slane %v6451_v13, 1  ;;  %v6462_v1 = vor.u32 %v6460_v48, %v6458_v53 }
 0x612   : > { %v16504_v35 = vpop.f32.mrf.mxu0 }
 0x613   : > { %v6454_v39 = vor.u32 %v6453_v4, %v6449_v2  ;;  %v20085_v36 = vpack.c.bf16 %v16504_v35, %v16503_v0  ;;  %v16922_v2 = vld [vmem:[%s23606_s5 + $0xf0] sm:$0xff]  }
 0x614   : > { %v5555_v55 = vpop.f32.mrf.mxu0  ;;  %7908 = vmatpush2.bf16.msra.mxu1 %v16922_v2 }
 0x615   : > { %v20074_v24 = vpack.c.bf16 %v5555_v55, %v5552_v33  ;;  %v6459_v19 = vsel %vm2874_vm14, %v6454_v39, %v6458_v53  ;;  %v6471_v34 = vshll.u32 %v20085_v36, 16  ;;  %v6475_v61 = vshrl.u32 %v20085_v36, 16  ;;  %7909 = vmatprep.subr.bf16.mxu1 %v23915_v12 }
 0x616   : > { %6628 = vrot.lane.b32.xlu1 %v6459_v19, %s17679_s30  ;;  %v16511_v51 = vpop.f32.mrf.mxu0 }
 0x617   : > { %6738 = vrot.lane.b32.xlu0 %v20074_v24, %s17679_s30  ;;  %v6466_v14 = vshll.u32 %v20074_v24, 16  ;;  %v6464_v7 = vshrl.u32 %v20074_v24, 16  ;;  %v6473_v8 = vrot.slane %v6471_v34, 1 }
 0x618   : > { %v5617_v20 = vpop.f32.mrf.mxu0 }
 0x619   : > { %v6468_v18 = vrot.slane %v6466_v14, 1  ;;  %v20124_v21 = vor.u32 %v6475_v61, %v6473_v8 }
 0x61a   : > { %v16512_v16 = vpop.f32.mrf.mxu0 }
 0x61b   : > { %6740 = vrot.lane.b32.xlu0 %v20085_v36, %s17679_s30  ;;  %v6469_v5 = vor.u32 %v6468_v18, %v6464_v7  ;;  %v20106_v38 = vpack.c.bf16 %v16512_v16, %v16511_v51  ;;  %v16923_v51 = vld [vmem:[%s23606_s5 + $0xe8] sm:$0xff]   ;;  %v16924_v7 = vld [vmem:[%s23606_s5 + $0xe0] sm:$0xff]  }
 0x61c   : > { %v5620_v40 = vpop.f32.mrf.mxu0  ;;  %7910 = vmatpush2.bf16.msra.mxu1 %v16923_v51 }
 0x61d   : > { %v20096_v25 = vpack.c.bf16 %v5620_v40, %v5617_v20  ;;  %v20109_v62 = vsel %vm2874_vm14, %v6469_v5, %v6473_v8  ;;  %v6486_v44 = vshll.u32 %v20106_v38, 16  ;;  %v6490_v49 = vshrl.u32 %v20106_v38, 16  ;;  %7911 = vmatprep.subr.bf16.mxu1 %v23915_v12 }
 0x61e   : > { %v16519_v9 = vpop.f32.mrf.mxu1 }
 0x61f   : > { %6630 = vrot.lane.b32.xlu0 %v6462_v1, %s17679_s30  ;;  %6742 = vrot.lane.b32.xlu1 %v20096_v25, %s17679_s30  ;;  %v6481_v42 = vshll.u32 %v20096_v25, 16  ;;  %v6479_v52 = vshrl.u32 %v20096_v25, 16  ;;  %v6488_v3 = vrot.slane %v6486_v44, 1 }
 0x620   : > { %v5682_v59 = vpop.f32.mrf.mxu1  ;;  %7912 = vmatpush2.bf16.msra.mxu1 %v16924_v7 }
 0x621   : > { %v6483_v11 = vrot.slane %v6481_v42, 1  ;;  %v20153_v13 = vor.u32 %v6490_v49, %v6488_v3  ;;  %7913 = vmatprep.subr.bf16.mxu1 %v23915_v12 }
 0x622   : > { %v16520_v45 = vpop.f32.mrf.mxu1 }
 0x623   : > { %6744 = vrot.lane.b32.xlu0 %v20106_v38, %s17679_s30  ;;  %6632 = vrot.lane.b32.xlu1 %v20109_v62, %s17679_s30  ;;  %v6484_v57 = vor.u32 %v6483_v11, %v6479_v52  ;;  %v20135_v22 = vpack.c.bf16 %v16520_v45, %v16519_v9  ;;  %v16925_v45 = vld [vmem:[%s23606_s5 + $0xd8] sm:$0xff]  }
 0x624   : > { %v5685_v50 = vpop.f32.mrf.mxu1  ;;  %7914 = vmatpush2.bf16.msra.mxu1 %v16925_v45 }
 0x625   : > { %v20122_v17 = vpack.c.bf16 %v5685_v50, %v5682_v59  ;;  %v20139_v23 = vsel %vm2874_vm14, %v6484_v57, %v6488_v3  ;;  %v6501_v32 = vshll.u32 %v20135_v22, 16  ;;  %v6505_v53 = vshrl.u32 %v20135_v22, 16  ;;  %7915 = vmatprep.subr.bf16.mxu1 %v23915_v12  ;;  %v16926_v57 = vld [vmem:[%s23606_s5 + $0xd0] sm:$0xff]  }
 0x626   : > { %v16527_v31 = vpop.f32.mrf.mxu0 }
 0x627   : > { %6746 = vrot.lane.b32.xlu0 %v20122_v17, %s17679_s30  ;;  %6634 = vrot.lane.b32.xlu1 %v20124_v21, %s17679_s30  ;;  %v6496_v6 = vshll.u32 %v20122_v17, 16  ;;  %v6494_v63 = vshrl.u32 %v20122_v17, 16  ;;  %v6503_v58 = vrot.slane %v6501_v32, 1 }
 0x628   : > { %v5747_v10 = vpop.f32.mrf.mxu0  ;;  %7916 = vmatpush2.bf16.msra.mxu1 %v16926_v57 }
 0x629   : > { %v6498_v47 = vrot.slane %v6496_v6, 1  ;;  %v20182_v16 = vor.u32 %v6505_v53, %v6503_v58  ;;  %7917 = vmatprep.subr.bf16.mxu1 %v23915_v12  ;;  %v16928_v53 = vld [vmem:[%s23606_s5 + $0xc0] sm:$0xff]  }
 0x62a   : > { %v16528_v46 = vpop.f32.mrf.mxu0 }
 0x62b   : > { %6748 = vrot.lane.b32.xlu0 %v20135_v22, %s17679_s30  ;;  %6636 = vrot.lane.b32.xlu1 %v20139_v23, %s17679_s30  ;;  %v6499_v37 = vor.u32 %v6498_v47, %v6494_v63  ;;  %v20164_v4 = vpack.c.bf16 %v16528_v46, %v16527_v31 }
 0x62c   : > { %v5750_v60 = vpop.f32.mrf.mxu0  ;;  %7918 = vmatpush2.bf16.msra.mxu1 %v16927_v15  ;;  %v20302_v15 = vrot.slane %v20106_v38, 1 }
 0x62d   : > { %v20151_v0 = vpack.c.bf16 %v5750_v60, %v5747_v10  ;;  %v20167_v39 = vsel %vm2874_vm14, %v6499_v37, %v6503_v58  ;;  %v6516_v43 = vshll.u32 %v20164_v4, 16  ;;  %v6520_v42 = vshrl.u32 %v20164_v4, 16  ;;  %7919 = vmatprep.subr.bf16.mxu1 %v23915_v12 }
 0x62e   : > { %v16535_v30 = vpop.f32.mrf.mxu1 }
 0x62f   : > { %6638 = vrot.lane.b32.xlu0 %v20153_v13, %s17679_s30  ;;  %6750 = vrot.lane.b32.xlu1 %v20151_v0, %s17679_s30  ;;  %v6511_v33 = vshll.u32 %v20151_v0, 16  ;;  %v6509_v55 = vshrl.u32 %v20151_v0, 16  ;;  %v6518_v1 = vrot.slane %v6516_v43, 1 }
 0x630   : > { %v5812_v35 = vpop.f32.mrf.mxu1  ;;  %7920 = vmatpush2.bf16.msra.mxu1 %v16928_v53 }
 0x631   : > { %v6513_v19 = vrot.slane %v6511_v33, 1  ;;  %v20211_v52 = vor.u32 %v6520_v42, %v6518_v1 }
 0x632   : > { %v16536_v56 = vpop.f32.mrf.mxu1 }
 0x633   : > { %6752 = vrot.lane.b32.xlu0 %v20164_v4, %s17679_s30  ;;  %6640 = vrot.lane.b32.xlu1 %v20167_v39, %s17679_s30  ;;  %v20184_v18 = vpack.c.bf16 %v16536_v56, %v16535_v30  ;;  %v6514_v54 = vor.u32 %v6513_v19, %v6509_v55  ;;  %23916 = vst [vmem:[#allocation73_spill] sm:$0xff] %v20211_v52 }
 0x634   : > { %v5815_v14 = vpop.f32.mrf.mxu1 }
 0x635   : > { %v20180_v20 = vpack.c.bf16 %v5815_v14, %v5812_v35  ;;  %v6531_v5 = vshll.u32 %v20184_v18, 16  ;;  %v20199_v8 = vsel %vm2874_vm14, %v6514_v54, %v6518_v1  ;;  %v6535_v6 = vshrl.u32 %v20184_v18, 16 }
 0x636   : > { %v16543_v48 = vpop.f32.mrf.mxu0 }
 0x637   : > { %6754 = vrot.lane.b32.xlu0 %v20180_v20, %s17679_s30  ;;  %6642 = vrot.lane.b32.xlu1 %v20182_v16, %s17679_s30  ;;  %v6526_v40 = vshll.u32 %v20180_v20, 16  ;;  %v6524_v9 = vshrl.u32 %v20180_v20, 16  ;;  %v6533_v41 = vrot.slane %v6531_v5, 1 }
 0x638   : > { %v5877_v34 = vpop.f32.mrf.mxu0 }
 0x639   : > { %v6528_v28 = vrot.slane %v6526_v40, 1  ;;  %v20235_v49 = vor.u32 %v6535_v6, %v6533_v41 }
 0x63a   : > { %v16544_v59 = vpop.f32.mrf.mxu0 }
 0x63b   : > { %6756 = vrot.lane.b32.xlu0 %v20184_v18, %s17679_s30  ;;  %6644 = vrot.lane.b32.xlu1 %v20199_v8, %s17679_s30  ;;  %v6529_v61 = vor.u32 %v6528_v28, %v6524_v9  ;;  %v20213_v44 = vpack.c.bf16 %v16544_v59, %v16543_v48  ;;  %23918 = vst [vmem:[#allocation7_spill] sm:$0xff] %v20235_v49 }
 0x63c   : > { %v5880_v11 = vpop.f32.mrf.mxu0 }
 0x63d   : > { %v20209_v50 = vpack.c.bf16 %v5880_v11, %v5877_v34  ;;  %v20226_v3 = vsel %vm2874_vm14, %v6529_v61, %v6533_v41  ;;  %v6546_v47 = vshll.u32 %v20213_v44, 16  ;;  %v6550_v14 = vshrl.u32 %v20213_v44, 16 }
 0x63e   : > { %v16551_v31 = vpop.f32.mrf.mxu1  ;;  %23917 = vst [vmem:[#allocation34_spill] sm:$0xff] %v20226_v3  ;;  %v6703_v11 = vrot.slane %v20074_v24, 1 }
 0x63f   : > { %6646 = vrot.lane.b32.xlu0 %v20211_v52, %s17679_s30  ;;  %6758 = vrot.lane.b32.xlu1 %v20209_v50, %s17679_s30  ;;  %v6541_v26 = vshll.u32 %v20209_v50, 16  ;;  %v6539_v63 = vshrl.u32 %v20209_v50, 16  ;;  %v6548_v30 = vrot.slane %v6546_v47, 1 }
 0x640   : > { %v5942_v10 = vpop.f32.mrf.mxu1 }
 0x641   : > { %v6543_v46 = vrot.slane %v6541_v26, 1  ;;  %v20265_v1 = vor.u32 %v6550_v14, %v6548_v30 }
 0x642   : > { %v16552_v32 = vpop.f32.mrf.mxu1 }
 0x643   : > { %6760 = vrot.lane.b32.xlu0 %v20213_v44, %s17679_s30  ;;  %6648 = vrot.lane.b32.xlu1 %v20226_v3, %s17679_s30  ;;  %v6544_v37 = vor.u32 %v6543_v46, %v6539_v63  ;;  %v20242_v33 = vpack.c.bf16 %v16552_v32, %v16551_v31  ;;  %23921 = vst [vmem:[#allocation52_spill] sm:$0xff] %v20265_v1  ;;  %v20286_v31 = vrot.slane %v20085_v36, 1  ;;  %v6706_v32 = vrot.slane %v20096_v25, 1 }
 0x644   : > { %v5945_v60 = vpop.f32.mrf.mxu1 }
 0x645   : > { %v20240_v58 = vpack.c.bf16 %v5945_v60, %v5942_v10  ;;  %v20254_v55 = vsel %vm2874_vm14, %v6544_v37, %v6548_v30  ;;  %v6561_v51 = vshll.u32 %v20242_v33, 16  ;;  %v6565_v42 = vshrl.u32 %v20242_v33, 16 }
 0x646   : > { %v16559_v2 = vpop.f32.mrf.mxu0  ;;  %23919 = vst [vmem:[#allocation25_spill] sm:$0xff] %v20254_v55  ;;  %v20294_v47 = vsel %vm3211_vm15, %v6703_v11, %v20286_v31  ;;  %v20309_v53 = vsel %vm3211_vm15, %v6706_v32, %v20302_v15 }
 0x647   : > { %6762 = vrot.lane.b32.xlu0 %v20240_v58, %s17679_s30  ;;  %6650 = vrot.lane.b32.xlu1 %v20235_v49, %s17679_s30  ;;  %v6556_v35 = vshll.u32 %v20240_v58, 16  ;;  %v6554_v19 = vshrl.u32 %v20240_v58, 16  ;;  %v6563_v7 = vrot.slane %v6561_v51, 1 }
 0x648   : > { %v6007_v56 = vpop.f32.mrf.mxu0 }
 0x649   : > { %v6558_v43 = vrot.slane %v6556_v35, 1  ;;  %v20283_v41 = vor.u32 %v6565_v42, %v6563_v7 }
 0x64a   : > { %v16560_v48 = vpop.f32.mrf.mxu0 }
 0x64b   : > { %6764 = vrot.lane.b32.xlu0 %v20242_v33, %s17679_s30  ;;  %6652 = vrot.lane.b32.xlu1 %v20254_v55, %s17679_s30  ;;  %v6559_v40 = vor.u32 %v6558_v43, %v6554_v19  ;;  %v20267_v5 = vpack.c.bf16 %v16560_v48, %v16559_v2  ;;  %23924 = vst [vmem:[#allocation62_spill] sm:$0xff] %v20283_v41 }
 0x64c   : > { %v6010_v54 = vpop.f32.mrf.mxu0 }
 0x64d   : > { %v20263_v34 = vpack.c.bf16 %v6010_v54, %v6007_v56  ;;  %23922 = vst [vmem:[#allocation8_spill] sm:$0xff] %v20267_v5  ;;  %v20275_v28 = vsel %vm2874_vm14, %v6559_v40, %v6563_v7  ;;  %v6576_v10 = vshll.u32 %v20267_v5, 16  ;;  %v6580_v42 = vshrl.u32 %v20267_v5, 16 }
 0x64e   : > { %v16567_v9 = vpop.f32.mrf.mxu1  ;;  %23923 = vst [vmem:[#allocation27_spill] sm:$0xff] %v20275_v28 }
 0x64f   : > { %23920 = vst [vmem:[#allocation42_spill] sm:$0xff] %v20263_v34  ;;  %6654 = vrot.lane.b32.xlu0 %v20265_v1, %s17679_s30  ;;  %6766 = vrot.lane.b32.xlu1 %v20263_v34, %s17679_s30  ;;  %v6571_v45 = vshll.u32 %v20263_v34, 16  ;;  %v6569_v6 = vshrl.u32 %v20263_v34, 16  ;;  %v6578_v30 = vrot.slane %v6576_v10, 1 }
 0x650   : > { %v6072_v59 = vpop.f32.mrf.mxu1 }
 0x651   : > { %v6573_v26 = vrot.slane %v6571_v45, 1  ;;  %v20334_v11 = vor.u32 %v6580_v42, %v6578_v30 }
 0x652   : > { %v16568_v61 = vpop.f32.mrf.mxu1 }
 0x653   : > { %6768 = vrot.lane.b32.xlu0 %v20267_v5, %s17679_s30  ;;  %6656 = vrot.lane.b32.xlu1 %v20275_v28, %s17679_s30  ;;  %v6574_v37 = vor.u32 %v6573_v26, %v6569_v6  ;;  %v20305_v35 = vpack.c.bf16 %v16568_v61, %v16567_v9  ;;  %23930 = vst [vmem:[#allocation3_spill] sm:$0xff] %v20334_v11 }
 0x654   : > { %v6075_v57 = vpop.f32.mrf.mxu1 }
 0x655   : > { %v20290_v63 = vpack.c.bf16 %v6075_v57, %v6072_v59  ;;  %23926 = vst [vmem:[#allocation9_spill] sm:$0xff] %v20305_v35  ;;  %v20316_v19 = vsel %vm2874_vm14, %v6574_v37, %v6578_v30  ;;  %v6591_v48 = vshll.u32 %v20305_v35, 16  ;;  %v6595_v6 = vshrl.u32 %v20305_v35, 16 }
 0x656   : > { %v16575_v46 = vpop.f32.mrf.mxu0  ;;  %23927 = vst [vmem:[#allocation31_spill] sm:$0xff] %v20316_v19  ;;  %v20346_v37 = vrot.slane %v20135_v22, 1 }
 0x657   : > { %23925 = vst [vmem:[#allocation72_spill] sm:$0xff] %v20290_v63  ;;  %6804 = vrot.lane.b32.xlu0 %v20294_v47, %s17679_s30  ;;  %6658 = vrot.lane.b32.xlu1 %v20283_v41, %s17679_s30  ;;  %v6586_v2 = vshll.u32 %v20290_v63, 16  ;;  %v6584_v14 = vshrl.u32 %v20290_v63, 16  ;;  %v6593_v9 = vrot.slane %v6591_v48, 1 }
 0x658   : > { %v6137_v60 = vpop.f32.mrf.mxu0 }
 0x659   : > { %v6588_v43 = vrot.slane %v6586_v2, 1 }
 0x65a   : > { %v16576_v56 = vpop.f32.mrf.mxu0 }
 0x65b   : > { %6808 = vrot.lane.b32.xlu0 %v20309_v53, %s17679_s30  ;;  %6806 = vrot.lane.b32.xlu1 %v20286_v31, %s17679_s30  ;;  %v6589_v7 = vor.u32 %v6588_v43, %v6584_v14  ;;  %v20336_v57 = vpack.c.bf16 %v16576_v56, %v16575_v46  ;;  %v20352_v46 = vor.u32 %v6595_v6, %v6593_v9  ;;  %v16929_v43 = vld [vmem:[%s23606_s5 + $0x118] sm:$0xff]  }
 0x65c   : > { %v6140_v51 = vpop.f32.mrf.mxu0  ;;  %16601 = vmatprep.subr.bf16.mxu0 %v16929_v43 }
 0x65d   : > { %v20324_v40 = vpack.c.bf16 %v6140_v51, %v6137_v60  ;;  %v20332_v45 = vsel %vm2874_vm14, %v6589_v7, %v6593_v9  ;;  %23931 = vst [vmem:[#allocation11_spill] sm:$0xff] %v20336_v57  ;;  %v6709_v60 = vrot.slane %v20122_v17, 1  ;;  %23932 = vst [vmem:[#allocation37_spill] sm:$0xff] %v20352_v46  ;;  %v6606_v14 = vshll.u32 %v20336_v57, 16 }
 0x65e   : > { %v16583_v54 = vpop.f32.mrf.mxu1  ;;  %23929 = vst [vmem:[#allocation33_spill] sm:$0xff] %v20332_v45  ;;  %v6712_v7 = vrot.slane %v20151_v0, 1  ;;  %v20367_v9 = vrot.slane %v20164_v4, 1 }
 0x65f   : > { %6770 = vrot.lane.b32.xlu1 %v20290_v63, %s17679_s30  ;;  %6660 = vrot.lane.b32.xlu0 %v20316_v19, %s17679_s30  ;;  %23928 = vst [vmem:[#allocation10_spill] sm:$0xff] %v20324_v40  ;;  %v6601_v10 = vshll.u32 %v20324_v40, 16  ;;  %v6599_v56 = vshrl.u32 %v20324_v40, 16  ;;  %v20363_v48 = vsel %vm3211_vm15, %v6709_v60, %v20346_v37  ;;  %v6608_v6 = vrot.slane %v6606_v14, 1 }
 0x660   : > { %v6202_v59 = vpop.f32.mrf.mxu1  ;;  %v20378_v60 = vsel %vm3211_vm15, %v6712_v7, %v20367_v9  ;;  %v20450_v19 = vrot.slane %v20242_v33, 1 }
 0x661   : > { %v6603_v51 = vrot.slane %v6601_v10, 1 }
 0x662   : > { %v16584_v61 = vpop.f32.mrf.mxu1 }
 0x663   : > { %6772 = vrot.lane.b32.xlu1 %v20305_v35, %s17679_s30  ;;  %6774 = vrot.lane.b32.xlu0 %v20324_v40, %s17679_s30 }
 0x664   : > { %v6205_v32 = vpop.f32.mrf.mxu1 }
 0x665   : > { %v20354_v30 = vpack.c.bf16 %v6205_v32, %v6202_v59  ;;  %v6604_v59 = vor.u32 %v6603_v51, %v6599_v56  ;;  %v20374_v32 = vpack.c.bf16 %v16584_v61, %v16583_v54 }
 0x666   : > { %v16591_v26 = vpop.f32.mrf.mxu0 }
 0x667   : > { %6662 = vrot.lane.b32.xlu1 %v20334_v11, %s17679_s30  ;;  %6664 = vrot.lane.b32.xlu0 %v20332_v45, %s17679_s30  ;;  %v6616_v10 = vshll.u32 %v20354_v30, 16  ;;  %v20385_v12 = vsel %vm2874_vm14, %v6604_v59, %v6608_v6  ;;  %v6614_v56 = vshrl.u32 %v20354_v30, 16  ;;  %v6621_v54 = vshll.u32 %v20374_v32, 16 }
 0x668   : > { %v6267_v2 = vpop.f32.mrf.mxu0  ;;  %23933 = vst [vmem:[#allocation16_spill] sm:$0xff] %v20385_v12  ;;  %v6610_v45 = vshrl.u32 %v20336_v57, 16 }
 0x669   : > { %v6618_v51 = vrot.slane %v6616_v10, 1  ;;  %v6623_v7 = vrot.slane %v6621_v54, 1  ;;  %v20434_v54 = vrot.slane %v20213_v44, 1 }
 0x66a   : > { %v16592_v42 = vpop.f32.mrf.mxu0  ;;  %v20403_v10 = vor.u32 %v6610_v45, %v6608_v6  ;;  %v6701_v6 = vrot.slane %v20056_v27, 1 }
 0x66b   : > { %6810 = vrot.lane.b32.xlu1 %v20302_v15, %s17679_s30  ;;  %6776 = vrot.lane.b32.xlu0 %v20336_v57, %s17679_s30  ;;  %v6619_v14 = vor.u32 %v6618_v51, %v6614_v56  ;;  %v20405_v11 = vpack.c.bf16 %v16592_v42, %v16591_v26  ;;  %v20414_v56 = vrot.slane %v20184_v18, 1  ;;  %v6700_v26 = vrot.slane %v20061_v29, 1 }
 0x66c   : > { %23935 = vst [vmem:[#allocation17_spill] sm:$0xff] %v20403_v10  ;;  %v6718_v51 = vrot.slane %v20209_v50, 1 }
 0x66d   : > { %v20401_v59 = vsel %vm2874_vm14, %v6619_v14, %v6623_v7 }
 0x66e   : > { %23934 = vst [vmem:[#allocation41_spill] sm:$0xff] %v20401_v59  ;;  %v20436_v14 = vpop.f32.mrf.mxu1 }
 0x66f   : > { %6666 = vrot.lane.b32.xlu1 %v20352_v46, %s17679_s30  ;;  %6812 = vrot.lane.b32.xlu0 %v20363_v48, %s17679_s30  ;;  %v6270_v46 = vpop.f32.mrf.mxu0 }
 0x670   : > { %v20393_v61 = vpack.c.bf16 %v6270_v46, %v6267_v2  ;;  %v6625_v46 = vshrl.u32 %v20374_v32, 16  ;;  %v6715_v2 = vrot.slane %v20180_v20, 1  ;;  %v6332_v41 = vpop.f32.mrf.mxu1 }
 0x672   : > { %v20420_v45 = vor.u32 %v6625_v46, %v6623_v7  ;;  %v20425_v42 = vsel %vm3211_vm15, %v6715_v2, %v20414_v56  ;;  %v6702_v2 = vsel %vm3211_vm15, %v6700_v26, %v6701_v6  ;;  %v6789_v52 = vshll.u32 %v20393_v61, 16 }
 0x673   : > { %6814 = vrot.lane.b32.xlu1 %v20346_v37, %s17679_s30  ;;  %6816 = vrot.lane.b32.xlu0 %v20378_v60, %s17679_s30 }
 0x674   : > { %23936 = vst [vmem:[#allocation47_spill] sm:$0xff] %v20420_v45 }
 0x677   : > { %6778 = vrot.lane.b32.xlu1 %v20354_v30, %s17679_s30  ;;  %6668 = vrot.lane.b32.xlu0 %v20385_v12, %s17679_s30  ;;  %v6721_v12 = vrot.slane %v20240_v58, 1 }
 0x67b   : > { %6780 = vrot.lane.b32.xlu1 %v20374_v32, %s17679_s30  ;;  %6782 = vrot.lane.b32.xlu0 %v20393_v61, %s17679_s30 }
 0x67f   : > { %6670 = vrot.lane.b32.xlu1 %v20403_v10, %s17679_s30  ;;  %6672 = vrot.lane.b32.xlu0 %v20401_v59, %s17679_s30  ;;  %v20446_v10 = vsel %vm3211_vm15, %v6718_v51, %v20434_v54  ;;  %v20462_v51 = vrot.slane %v20267_v5, 1 }
 0x683   : > { %6818 = vrot.lane.b32.xlu1 %v20367_v9, %s17679_s30  ;;  %6784 = vrot.lane.b32.xlu0 %v20405_v11, %s17679_s30 }
 0x687   : > { %6674 = vrot.lane.b32.xlu1 %v20420_v45, %s17679_s30  ;;  %6820 = vrot.lane.b32.xlu0 %v20425_v42, %s17679_s30 }
 0x688   : > { %v6629_v7 = vpop.permute.xlu1 %6628 }
 0x689   : > { %v6739_v46 = vpop.permute.xlu0 %6738  ;;  %v6881_v45 = vsel %vm3818_vm11, %v20061_v29, %v6629_v7  ;;  %v20458_v29 = vsel %vm3211_vm15, %v6721_v12, %v20450_v19  ;;  %v16600_v7 = vpop.f32.mrf.mxu1  ;;  %v20471_v12 = vrot.slane %v20305_v35, 1 }
 0x68a   : > { %v6930_v59 = vsel %vm3818_vm11, %v6702_v2, %v6739_v46  ;;  %v6727_v2 = vrot.slane %v20290_v63, 1 }
 0x68b   : > { %7746 = vmatprep.mubr.bf16.mxu0 %v6930_v59  ;;  %6822 = vrot.lane.b32.xlu1 %v20414_v56, %s17679_s30  ;;  %v6724_v59 = vrot.slane %v20263_v34, 1  ;;  %v6335_v3 = vpop.f32.mrf.mxu1 }
 0x68c   : > { %6824 = vrot.lane.b32.xlu0 %v20446_v10, %s17679_s30  ;;  %7747 = vmatmul.mubr.bf16.vlgmr.msra.gmra.mxu0 %v6881_v45  ;;  %v20500_v63 = vpack.c.bf16 %v6335_v3, %v6332_v41 }
 0x68d   : > { %v6741_v26 = vpop.permute.xlu0 %6740  ;;  %16602 = vmatpush3.bf16.msra.mxu0 %v16929_v43  ;;  %v16930_v43 = vld [vmem:[%s23606_s5 + $0x110] sm:$0xff]   ;;  %v20480_v49 = vsel %vm3211_vm15, %v6724_v59, %v20462_v51  ;;  %v6787_v59 = vshrl.u32 %v20393_v61, 16 }
 0x68e   : > { %v6933_v28 = vsel %vm3818_vm11, %v6701_v6, %v6741_v26  ;;  %16603 = vmatprep.subr.bf16.mxu0 %v16930_v43 }
 0x68f   : > { %6826 = vrot.lane.b32.xlu1 %v20434_v54, %s17679_s30 }
 0x690   : > { %6828 = vrot.lane.b32.xlu0 %v20458_v29, %s17679_s30 }
 0x691   : > { %v6631_v45 = vpop.permute.xlu0 %6630  ;;  %v6743_v46 = vpop.permute.xlu1 %6742  ;;  %16604 = vmatpush3.bf16.msra.mxu0 %v16930_v43 }
 0x692   : > { %v6936_v1 = vsel %vm3818_vm11, %v20294_v47, %v6743_v46  ;;  %v6730_v47 = vrot.slane %v20324_v40, 1  ;;  %v20491_v46 = vrot.slane %v20336_v57, 1  ;;  %v6883_v43 = vsel %vm3818_vm11, %v20056_v27, %v6631_v45  ;;  %v16931_v40 = vld [vmem:[%s23606_s5 + $0x108] sm:$0xff]  }
 0x693   : > { %v14939_v55 = vcombine.low %v6933_v28, %v6936_v1  ;;  %6830 = vrot.lane.b32.xlu1 %v20450_v19, %s17679_s30  ;;  %v20487_v28 = vsel %vm3211_vm15, %v6727_v2, %v20471_v12  ;;  %v7177_v2 = vunpack.c.h.b16 %v6936_v1  ;;  %v6791_v57 = vrot.slane %v6789_v52, 1  ;;  %16605 = vmatprep.subr.bf16.mxu0 %v16931_v40 }
 0x694   : > { %6832 = vrot.lane.b32.xlu0 %v20480_v49, %s17679_s30  ;;  %v6855_v27 = vshll.u32 %v20500_v63, 16  ;;  %v6794_v1 = vshll.u32 %v20405_v11, 16  ;;  %v20514_v52 = vpack.c.bf16 %v16600_v7, %v20436_v14  ;;  %v6853_v45 = vshrl.u32 %v20500_v63, 16 }
 0x695   : > { %v6745_v6 = vpop.permute.xlu0 %6744  ;;  %7754 = vmatprep.mubr.bf16.mxu0 %v14939_v55  ;;  %v6633_v26 = vpop.permute.xlu1 %6632  ;;  %16606 = vmatpush3.bf16.msra.mxu0 %v16931_v40  ;;  %v16932_v40 = vld [vmem:[%s23606_s5 + $0x100] sm:$0xff]  }
 0x696   : > { %v6939_v35 = vsel %vm3818_vm11, %v20286_v31, %v6745_v6  ;;  %v6885_v55 = vsel %vm3818_vm11, %v20074_v24, %v6633_v26  ;;  %v6860_v14 = vshll.u32 %v20514_v52, 16  ;;  %16607 = vmatprep.subr.bf16.mxu0 %v16932_v40 }
 0x697   : > { %v7182_v5 = vunpack.c.l.b16 %v6939_v35  ;;  %v14938_v34 = vcombine.low %v6883_v43, %v6885_v55  ;;  %6834 = vrot.lane.b32.xlu1 %v20462_v51, %s17679_s30  ;;  %v7176_v7 = vunpack.c.h.b16 %v6885_v55  ;;  %v6796_v43 = vrot.slane %v6794_v1, 1 }
 0x698   : > { %6836 = vrot.lane.b32.xlu0 %v20487_v28, %s17679_s30 }
 0x699   : > { %v6747_v31 = vpop.permute.xlu0 %6746  ;;  %7755 = vmatmul.mubr.bf16.gmra.mxu0 %v14938_v34  ;;  %v6635_v24 = vpop.permute.xlu1 %6634  ;;  %v7323_v3 = vpack.c.b16 %v7182_v5, %v7177_v2  ;;  %v20520_v34 = vsel %vm3211_vm15, %v6730_v47, %v20491_v46  ;;  %v6792_v5 = vor.u32 %v6791_v57, %v6787_v59  ;;  %v6733_v57 = vrot.slane %v20354_v30, 1 }
 0x69a   : > { %v6887_v41 = vsel %vm3818_vm11, %v20085_v36, %v6635_v24  ;;  %v6857_v36 = vrot.slane %v6855_v27, 1  ;;  %v20533_v59 = vrot.slane %v20374_v32, 1  ;;  %v6798_v2 = vshrl.u32 %v20405_v11, 16  ;;  %16608 = vmatpush3.bf16.msra.mxu0 %v16932_v40 }
 0x69b   : > { %v7181_v35 = vunpack.c.l.b16 %v6887_v41  ;;  %7762 = vmatprep.mubr.bf16.mxu0 %v7323_v3  ;;  %6838 = vrot.lane.b32.xlu1 %v20471_v12, %s17679_s30  ;;  %v20539_v55 = vsel %vm2874_vm14, %v6792_v5, %v6796_v43  ;;  %v6862_v24 = vrot.slane %v6860_v14, 1  ;;  %v6942_v41 = vsel %vm3818_vm11, %v20309_v53, %v6747_v31 }
 0x69c   : > { %6840 = vrot.lane.b32.xlu0 %v20520_v34, %s17679_s30  ;;  %23937 = vst [vmem:[#allocation22_spill] sm:$0xff] %v20539_v55  ;;  %v6864_v5 = vshrl.u32 %v20514_v52, 16  ;;  %v6801_v40 = vrot.slane %v20393_v61, 1 }
 0x69d   : > { %v6749_v6 = vpop.permute.xlu0 %6748  ;;  %v6637_v26 = vpop.permute.xlu1 %6636  ;;  %v7322_v27 = vpack.c.b16 %v7181_v35, %v7176_v7  ;;  %v20547_v35 = vsel %vm3211_vm15, %v6733_v57, %v20533_v59  ;;  %v20549_v7 = vor.u32 %v6798_v2, %v6796_v43 }
 0x69e   : > { %v6889_v47 = vsel %vm3818_vm11, %v20096_v25, %v6637_v26  ;;  %v6858_v25 = vor.u32 %v6857_v36, %v6853_v45  ;;  %v20561_v26 = vrot.slane %v20405_v11, 1  ;;  %v6945_v43 = vsel %vm3818_vm11, %v20302_v15, %v6749_v6 }
 0x69f   : > { %7921 = vmatprep.mubr.bf16.mxu1 %v6889_v47  ;;  %6842 = vrot.lane.b32.xlu1 %v20491_v46, %s17679_s30  ;;  %23938 = vst [vmem:[#allocation51_spill] sm:$0xff] %v20549_v7  ;;  %v6866_v2 = vor.u32 %v6864_v5, %v6862_v24 }
 0x6a0   : > { %6867 = vrot.lane.b32.xlu0 %v20539_v55, %s17679_s30  ;;  %v6863_v45 = vsel %vm2874_vm14, %v6858_v25, %v6862_v24  ;;  %23939 = vst [vmem:[#allocation57_spill] sm:$0xff] %v20561_v26 }
 0x6a1   : > { %v6639_v3 = vpop.permute.xlu0 %6638  ;;  %7763 = vmatmul.mubr.bf16.gmra.mxu0 %v7322_v27  ;;  %v6751_v1 = vpop.permute.xlu1 %6750 }
 0x6a2   : > { %7770 = vmatprep.mubr.bf16.mxu0 %v6942_v41  ;;  %v6948_v31 = vsel %vm3818_vm11, %v20363_v48, %v6751_v1  ;;  %v20572_v41 = vsel %vm3211_vm15, %v6801_v40, %v20561_v26 }
 0x6a3   : > { %6844 = vrot.lane.b32.xlu1 %v20547_v35, %s17679_s30  ;;  %v14943_v57 = vcombine.low %v6945_v43, %v6948_v31  ;;  %23940 = vst [vmem:[#allocation61_spill] sm:$0xff] %v20572_v41 }
 0x6a4   : > { %6869 = vrot.lane.b32.xlu0 %v20549_v7, %s17679_s30 }
 0x6a5   : > { %v6753_v36 = vpop.permute.xlu0 %6752  ;;  %v6641_v14 = vpop.permute.xlu1 %6640 }
 0x6a6   : > { %v6951_v27 = vsel %vm3818_vm11, %v20346_v37, %v6753_v36  ;;  %v7202_v36 = vunpack.c.h.b16 %v6948_v31 }
 0x6a7   : > { %6871 = vrot.lane.b32.xlu1 %v6863_v45, %s17679_s30  ;;  %v7206_v6 = vunpack.c.l.b16 %v6951_v27  ;;  %v6893_v45 = vsel %vm3818_vm11, %v20122_v17, %v6641_v14 }
 0x6a8   : > { %6846 = vrot.lane.b32.xlu0 %v20533_v59, %s17679_s30  ;;  %v7179_v14 = vunpack.c.h.b16 %v6893_v45 }
 0x6a9   : > { %7771 = vmatmul.mubr.bf16.gmra.mxu0 %v6889_v47  ;;  %v6755_v25 = vpop.permute.xlu0 %6754  ;;  %v6643_v1 = vpop.permute.xlu1 %6642  ;;  %v6891_v47 = vsel %vm3818_vm11, %v20106_v38, %v6639_v3 }
 0x6aa   : > { %7778 = vmatprep.mubr.bf16.mxu0 %v14943_v57  ;;  %v14941_v43 = vcombine.low %v6891_v47, %v6893_v45  ;;  %v6895_v40 = vsel %vm3818_vm11, %v20135_v22, %v6643_v1  ;;  %v7335_v57 = vpack.c.b16 %v7206_v6, %v7202_v36  ;;  %v6954_v31 = vsel %vm3818_vm11, %v20378_v60, %v6755_v25 }
 0x6ab   : > { %6848 = vrot.lane.b32.xlu1 %v20572_v41, %s17679_s30  ;;  %v7184_v17 = vunpack.c.l.b16 %v6895_v40 }
 0x6ac   : > { %6873 = vrot.lane.b32.xlu0 %v6866_v2, %s17679_s30 }
 0x6ad   : > { %v6757_v24 = vpop.permute.xlu0 %6756  ;;  %v6645_v5 = vpop.permute.xlu1 %6644  ;;  %v7325_v55 = vpack.c.b16 %v7184_v17, %v7179_v14 }
 0x6ae   : > { %v6957_v47 = vsel %vm3818_vm11, %v20367_v9, %v6757_v24  ;;  %v20593_v45 = vsel %vm3818_vm11, %v20151_v0, %v6645_v5 }
 0x6af   : > { %6850 = vrot.lane.b32.xlu1 %v20561_v26, %s17679_s30 }
 0x6b1   : > { %v6647_v27 = vpop.permute.xlu0 %6646  ;;  %7779 = vmatmul.mubr.bf16.gmra.mxu0 %v14941_v43  ;;  %v6759_v41 = vpop.permute.xlu1 %6758 }
 0x6b2   : > { %7786 = vmatprep.mubr.bf16.mxu0 %v7335_v57  ;;  %v6960_v22 = vsel %vm3818_vm11, %v20425_v42, %v6759_v41  ;;  %v6899_v24 = vsel %vm3818_vm11, %v20164_v4, %v6647_v27 }
 0x6b3   : > { %v14947_v36 = vcombine.low %v6957_v47, %v6960_v22  ;;  %v7226_v0 = vunpack.c.h.b16 %v6960_v22 }
 0x6b5   : > { %v6761_v2 = vpop.permute.xlu0 %6760  ;;  %v6649_v7 = vpop.permute.xlu1 %6648 }
 0x6b6   : > { %v6963_v40 = vsel %vm3818_vm11, %v20414_v56, %v6761_v2  ;;  %v6901_v41 = vsel %vm3818_vm11, %v20180_v20, %v6649_v7 }
 0x6b7   : > { %v7230_v17 = vunpack.c.l.b16 %v6963_v40  ;;  %v20602_v5 = vcombine.low %v6899_v24, %v6901_v41  ;;  %v7204_v7 = vunpack.c.h.b16 %v6901_v41 }
 0x6b9   : > { %7787 = vmatmul.mubr.bf16.gmra.mxu0 %v7325_v55  ;;  %v6763_v38 = vpop.permute.xlu0 %6762  ;;  %v6651_v3 = vpop.permute.xlu1 %6650  ;;  %v7347_v47 = vpack.c.b16 %v7230_v17, %v7226_v0 }
 0x6ba   : > { %7794 = vmatprep.mubr.bf16.mxu0 %v6954_v31  ;;  %v6903_v2 = vsel %vm3818_vm11, %v20184_v18, %v6651_v3 }
 0x6bb   : > { %v7208_v20 = vunpack.c.l.b16 %v6903_v2 }
 0x6bd   : > { %v6765_v1 = vpop.permute.xlu0 %6764  ;;  %v6653_v6 = vpop.permute.xlu1 %6652  ;;  %v20613_v3 = vpack.c.b16 %v7208_v20, %v7204_v7 }
 0x6be   : > { %v20624_v0 = vsel %vm3818_vm11, %v20209_v50, %v6653_v6 }
 0x6c1   : > { %7795 = vmatmul.mubr.bf16.gmra.mxu0 %v20593_v45  ;;  %v6655_v25 = vpop.permute.xlu0 %6654  ;;  %v6767_v57 = vpop.permute.xlu1 %6766 }
 0x6c2   : > { %7802 = vmatprep.mubr.bf16.mxu0 %v14947_v36 }
 0x6c5   : > { %v6769_v14 = vpop.permute.xlu0 %6768  ;;  %v6657_v31 = vpop.permute.xlu1 %6656 }
 0x6c9   : > { %7803 = vmatmul.mubr.bf16.gmra.mxu0 %v20602_v5  ;;  %v6805_v26 = vpop.permute.xlu0 %6804  ;;  %v6659_v36 = vpop.permute.xlu1 %6658 }
 0x6ca   : > { %v7002_v40 = vsel %vm3818_vm11, %v20109_v62, %v6805_v26  ;;  %7810 = vmatprep.mubr.bf16.mxu0 %v7347_v47  ;;  %v6966_v26 = vsel %vm3818_vm11, %v20446_v10, %v6763_v38  ;;  %v6975_v47 = vsel %vm3818_vm11, %v20450_v19, %v6769_v14 }
 0x6cb   : > { %7922 = vmatmul.mubr.bf16.vlgmr.msra.gmra.mxu1 %v7002_v40  ;;  %v7254_v40 = vunpack.c.l.b16 %v6975_v47 }
 0x6cc   : > { %7929 = vmatprep.mubr.bf16.mxu1 %v14941_v43  ;;  %v6972_v43 = vsel %vm3818_vm11, %v20458_v29, %v6767_v57  ;;  %v6909_v57 = vsel %vm3818_vm11, %v20240_v58, %v6657_v31 }
 0x6cd   : > { %v6809_v4 = vpop.permute.xlu0 %6808  ;;  %v6807_v27 = vpop.permute.xlu1 %6806  ;;  %v7250_v50 = vunpack.c.h.b16 %v6972_v43 }
 0x6ce   : > { %v7008_v22 = vsel %vm3818_vm11, %v20139_v23, %v6809_v4  ;;  %v7005_v18 = vsel %vm3818_vm11, %v20124_v21, %v6807_v27  ;;  %v6969_v21 = vsel %vm3818_vm11, %v20434_v54, %v6765_v1  ;;  %v6907_v1 = vsel %vm3818_vm11, %v20213_v44, %v6655_v25 }
 0x6cf   : > { %v14940_v17 = vcombine.low %v7005_v18, %v7008_v22  ;;  %v14951_v2 = vcombine.low %v6969_v21, %v6972_v43  ;;  %v20635_v4 = vcombine.low %v6907_v1, %v6909_v57  ;;  %v7178_v14 = vunpack.c.h.b16 %v7008_v22  ;;  %v23941_v1 = vld [vmem:[#allocation42_spill] sm:$0xff] }
 0x6d0   : > { %v6911_v18 = vsel %vm3818_vm11, %v20242_v33, %v6659_v36  ;;  %v7228_v44 = vunpack.c.h.b16 %v6909_v57 }
 0x6d1   : > { %7811 = vmatmul.mubr.bf16.gmra.mxu0 %v20613_v3  ;;  %v6771_v24 = vpop.permute.xlu1 %6770  ;;  %v6661_v62 = vpop.permute.xlu0 %6660  ;;  %v7232_v21 = vunpack.c.l.b16 %v6911_v18 }
 0x6d2   : > { %7818 = vmatprep.mubr.bf16.mxu0 %v6966_v26  ;;  %v6978_v36 = vsel %vm3818_vm11, %v20480_v49, %v6771_v24 }
 0x6d3   : > { %7930 = vmatmul.mubr.bf16.gmra.mxu1 %v14940_v17  ;;  %v7359_v17 = vpack.c.b16 %v7254_v40, %v7250_v50  ;;  %v20641_v43 = vpack.c.b16 %v7232_v21, %v7228_v44 }
 0x6d4   : > { %7937 = vmatprep.mubr.bf16.mxu1 %v7325_v55 }
 0x6d5   : > { %v6773_v23 = vpop.permute.xlu1 %6772  ;;  %v6775_v41 = vpop.permute.xlu0 %6774 }
 0x6d6   : > { %v6984_v47 = vsel %vm3818_vm11, %v20487_v28, %v6775_v41 }
 0x6d9   : > { %7819 = vmatmul.mubr.bf16.gmra.mxu0 %v20624_v0  ;;  %v6663_v38 = vpop.permute.xlu1 %6662  ;;  %v6665_v55 = vpop.permute.xlu0 %6664 }
 0x6da   : > { %7826 = vmatprep.mubr.bf16.mxu0 %v14951_v2 }
 0x6dd   : > { %v6811_v20 = vpop.permute.xlu1 %6810  ;;  %v6777_v7 = vpop.permute.xlu0 %6776 }
 0x6de   : > { %v7011_v6 = vsel %vm3818_vm11, %v20153_v13, %v6811_v20 }
 0x6df   : > { %v7183_v27 = vunpack.c.l.b16 %v7011_v6 }
 0x6e1   : > { %v7324_v26 = vpack.c.b16 %v7183_v27, %v7178_v14  ;;  %7827 = vmatmul.mubr.bf16.gmra.mxu0 %v20635_v4  ;;  %v6667_v58 = vpop.permute.xlu1 %6666  ;;  %v6813_v31 = vpop.permute.xlu0 %6812  ;;  %v23942_v14 = vld [vmem:[#allocation8_spill] sm:$0xff] }
 0x6e2   : > { %7834 = vmatprep.mubr.bf16.mxu0 %v7359_v17  ;;  %v7014_v2 = vsel %vm3818_vm11, %v20167_v39, %v6813_v31  ;;  %v20659_v39 = vsel %vm3818_vm11, %v23941_v1, %v6661_v62  ;;  %v23943_v27 = vld [vmem:[#allocation72_spill] sm:$0xff]  ;;  %v7274_v17 = vunpack.c.h.b16 %v6984_v47 }
 0x6e3   : > { %7938 = vmatmul.mubr.bf16.gmra.mxu1 %v7324_v26  ;;  %v23944_v26 = vld [vmem:[#allocation73_spill] sm:$0xff] }
 0x6e4   : > { %7945 = vmatprep.mubr.bf16.mxu1 %v20593_v45  ;;  %v6981_v45 = vsel %vm3818_vm11, %v20462_v51, %v6773_v23 }
 0x6e5   : > { %v6815_v13 = vpop.permute.xlu1 %6814  ;;  %v6817_v25 = vpop.permute.xlu0 %6816  ;;  %v14955_v50 = vcombine.low %v6981_v45, %v6984_v47 }
 0x6e6   : > { %v7017_v20 = vsel %vm3818_vm11, %v20182_v16, %v6815_v13  ;;  %v7020_v24 = vsel %vm3818_vm11, %v20199_v8, %v6817_v25  ;;  %v6915_v16 = vsel %vm3818_vm11, %v23942_v14, %v6663_v38  ;;  %v6917_v8 = vsel %vm3818_vm11, %v23943_v27, %v6665_v55  ;;  %v23945_v25 = vld [vmem:[#allocation9_spill] sm:$0xff]  ;;  %v23947_v14 = vld [vmem:[#allocation7_spill] sm:$0xff] }
 0x6e7   : > { %v14944_v23 = vcombine.low %v7017_v20, %v7020_v24  ;;  %v14953_v31 = vcombine.low %v6915_v16, %v6917_v8  ;;  %v7203_v21 = vunpack.c.h.b16 %v7020_v24  ;;  %v23948_v27 = vld [vmem:[#allocation25_spill] sm:$0xff] }
 0x6e9   : > { %7835 = vmatmul.mubr.bf16.gmra.mxu0 %v20641_v43  ;;  %v6779_v22 = vpop.permute.xlu1 %6778  ;;  %v6669_v33 = vpop.permute.xlu0 %6668 }
 0x6ea   : > { %7842 = vmatprep.mubr.bf16.mxu0 %v6978_v36  ;;  %v6919_v36 = vsel %vm3818_vm11, %v23945_v25, %v6667_v58  ;;  %v6990_v24 = vsel %vm3818_vm11, %v20520_v34, %v6779_v22 }
 0x6eb   : > { %7946 = vmatmul.mubr.bf16.gmra.mxu1 %v7014_v2  ;;  %v7256_v55 = vunpack.c.l.b16 %v6919_v36 }
 0x6ec   : > { %7953 = vmatprep.mubr.bf16.mxu1 %v20602_v5  ;;  %v6987_v5 = vsel %vm3818_vm11, %v20471_v12, %v6777_v7 }
 0x6ed   : > { %v6781_v40 = vpop.permute.xlu1 %6780  ;;  %v6783_v57 = vpop.permute.xlu0 %6782  ;;  %v7278_v18 = vunpack.c.l.b16 %v6987_v5 }
 0x6ef   : > { %v7371_v2 = vpack.c.b16 %v7278_v18, %v7274_v17  ;;  %v23949_v18 = vld [vmem:[#allocation10_spill] sm:$0xff] }
 0x6f1   : > { %7843 = vmatmul.mubr.bf16.gmra.mxu0 %v20659_v39  ;;  %v6671_v41 = vpop.permute.xlu1 %6670  ;;  %v6673_v6 = vpop.permute.xlu0 %6672 }
 0x6f2   : > { %7850 = vmatprep.mubr.bf16.mxu0 %v14955_v50  ;;  %v23946_v50 = vld [vmem:[#allocation34_spill] sm:$0xff] }
 0x6f3   : > { %7954 = vmatmul.mubr.bf16.gmra.mxu1 %v14944_v23  ;;  %v6993_v23 = vsel %vm3818_vm11, %v20491_v46, %v6781_v40  ;;  %v23950_v40 = vld [vmem:[#allocation52_spill] sm:$0xff] }
 0x6f4   : > { %7961 = vmatprep.mubr.bf16.mxu1 %v20613_v3  ;;  %v7252_v3 = vunpack.c.h.b16 %v6917_v8 }
 0x6f5   : > { %v6819_v62 = vpop.permute.xlu1 %6818  ;;  %v6785_v13 = vpop.permute.xlu0 %6784 }
 0x6f6   : > { %v7023_v7 = vsel %vm3818_vm11, %v23944_v26, %v6819_v62  ;;  %v7361_v20 = vpack.c.b16 %v7256_v55, %v7252_v3  ;;  %v6921_v62 = vsel %vm3818_vm11, %v23949_v18, %v6669_v33 }
 0x6f7   : > { %v7207_v44 = vunpack.c.l.b16 %v7023_v7 }
 0x6f9   : > { %v7336_v38 = vpack.c.b16 %v7207_v44, %v7203_v21  ;;  %7851 = vmatmul.mubr.bf16.gmra.mxu0 %v14953_v31  ;;  %v6675_v45 = vpop.permute.xlu1 %6674  ;;  %v6821_v47 = vpop.permute.xlu0 %6820  ;;  %v6925_v44 = vsel %vm3818_vm11, %v20354_v30, %v6673_v6 }
 0x6fa   : > { %7858 = vmatprep.mubr.bf16.mxu0 %v7371_v2  ;;  %v7026_v58 = vsel %vm3818_vm11, %v23946_v50, %v6821_v47  ;;  %v7185_v50 = vunpack.c.l.b16 %v20346_v37 }
 0x6fb   : > { %7962 = vmatmul.mubr.bf16.gmra.mxu1 %v7336_v38  ;;  %v6927_v38 = vsel %vm3818_vm11, %v20374_v32, %v6675_v45  ;;  %v7180_v45 = vunpack.c.h.b16 %v20363_v48 }
 0x6fc   : > { %7969 = vmatprep.mubr.bf16.mxu1 %v20624_v0  ;;  %v6996_v0 = vsel %vm3818_vm11, %v20547_v35, %v6783_v57  ;;  %v23951_v57 = vld [vmem:[#allocation11_spill] sm:$0xff]  ;;  %v7280_v47 = vunpack.c.l.b16 %v6927_v38 }
 0x6fd   : > { %v6823_v1 = vpop.permute.xlu1 %6822  ;;  %v14959_v17 = vcombine.low %v6993_v23, %v6996_v0  ;;  %v6923_v21 = vsel %vm3818_vm11, %v23951_v57, %v6671_v41  ;;  %v7298_v36 = vunpack.c.h.b16 %v6996_v0  ;;  %v7276_v41 = vunpack.c.h.b16 %v6925_v44 }
 0x6fe   : > { %v6825_v5 = vpop.permute.xlu0 %6824  ;;  %v7029_v16 = vsel %vm3818_vm11, %v23947_v14, %v6823_v1  ;;  %v14957_v2 = vcombine.low %v6923_v21, %v6925_v44  ;;  %v14942_v0 = vcombine.low %v20302_v15, %v20363_v48  ;;  %v7205_v48 = vunpack.c.h.b16 %v20425_v42 }
 0x6ff   : > { %v7032_v22 = vsel %vm3818_vm11, %v23948_v27, %v6825_v5  ;;  %v7373_v6 = vpack.c.b16 %v7280_v47, %v7276_v41  ;;  %v23954_v5 = vld [vmem:[#allocation31_spill] sm:$0xff]  ;;  %v14950_v44 = vcombine.low %v20434_v54, %v20458_v29  ;;  %v7253_v47 = vunpack.c.h.b16 %v20487_v28 }
 0x700   : > { %v14948_v26 = vcombine.low %v7029_v16, %v7032_v22  ;;  %v7326_v16 = vpack.c.b16 %v7185_v50, %v7180_v45  ;;  %v7257_v41 = vunpack.c.l.b16 %v20471_v12 }
 0x701   : > { %7859 = vmatmul.mubr.bf16.gmra.mxu0 %v7361_v20  ;;  %v6827_v8 = vpop.permute.xlu1 %6826 }
 0x702   : > { %7866 = vmatprep.mubr.bf16.mxu0 %v6990_v24  ;;  %v7035_v7 = vsel %vm3818_vm11, %v23950_v40, %v6827_v8  ;;  %v6829_v30 = vpop.permute.xlu0 %6828  ;;  %v14946_v8 = vcombine.low %v20367_v9, %v20425_v42  ;;  %v23956_v40 = vld [vmem:[#allocation33_spill] sm:$0xff]  ;;  %v7233_v42 = vunpack.c.l.b16 %v20450_v19 }
 0x703   : > { %7970 = vmatmul.mubr.bf16.gmra.mxu1 %v7026_v58  ;;  %v7231_v33 = vunpack.c.l.b16 %v7035_v7  ;;  %v23953_v58 = vld [vmem:[#allocation62_spill] sm:$0xff]  ;;  %v23958_v7 = vld [vmem:[#allocation16_spill] sm:$0xff] }
 0x704   : > { %7977 = vmatprep.mubr.bf16.mxu1 %v20635_v4  ;;  %v6999_v4 = vsel %vm3818_vm11, %v20533_v59, %v6785_v13  ;;  %v7227_v13 = vunpack.c.h.b16 %v7032_v22 }
 0x705   : > { %v7302_v25 = vunpack.c.l.b16 %v6999_v4  ;;  %v6831_v1 = vpop.permute.xlu1 %6830 }
 0x706   : > { %v7348_v3 = vpack.c.b16 %v7231_v33, %v7227_v13  ;;  %v6833_v32 = vpop.permute.xlu0 %6832 }
 0x707   : > { %v7383_v55 = vpack.c.b16 %v7302_v25, %v7298_v36  ;;  %v7044_v23 = vsel %vm3818_vm11, %v23954_v5, %v6833_v32  ;;  %v23961_v5 = vld [vmem:[#allocation22_spill] sm:$0xff] }
 0x709   : > { %7867 = vmatmul.mubr.bf16.gmra.mxu0 %v6921_v62  ;;  %v6835_v14 = vpop.permute.xlu1 %6834 }
 0x70a   : > { %7874 = vmatprep.mubr.bf16.mxu0 %v14959_v17  ;;  %v6837_v15 = vpop.permute.xlu0 %6836  ;;  %v7209_v17 = vunpack.c.l.b16 %v20414_v56  ;;  %v23957_v56 = vld [vmem:[#allocation37_spill] sm:$0xff] }
 0x70b   : > { %7978 = vmatmul.mubr.bf16.gmra.mxu1 %v14948_v26  ;;  %v7050_v9 = vsel %vm3818_vm11, %v23956_v40, %v6837_v15 }
 0x70c   : > { %7985 = vmatprep.mubr.bf16.mxu1 %v20641_v43  ;;  %v23952_v43 = vld [vmem:[#allocation27_spill] sm:$0xff]  ;;  %v7338_v4 = vpack.c.b16 %v7209_v17, %v7205_v48 }
 0x70d   : > { %v7038_v24 = vsel %vm3818_vm11, %v23952_v43, %v6829_v30  ;;  %v6839_v26 = vpop.permute.xlu1 %6838  ;;  %v7362_v43 = vpack.c.b16 %v7257_v41, %v7253_v47  ;;  %v16946_v41 = vld [vmem:[%s23608_s7 + $0x18] sm:$0xff]  }
 0x711   : > { %7875 = vmatmul.mubr.bf16.gmra.mxu0 %v14957_v2  ;;  %v6843_v25 = vpop.permute.xlu1 %6842 }
 0x712   : > { %7882 = vmatprep.mubr.bf16.mxu0 %v7383_v55 }
 0x713   : > { %7986 = vmatmul.mubr.bf16.gmra.mxu1 %v7348_v3  ;;  %v14954_v3 = vcombine.low %v20462_v51, %v20487_v28  ;;  %v23960_v28 = vld [vmem:[#allocation41_spill] sm:$0xff] }
 0x714   : > { %7993 = vmatprep.mubr.bf16.mxu1 %v20659_v39  ;;  %v7041_v39 = vsel %vm3818_vm11, %v23953_v58, %v6831_v1 }
 0x715   : > { %v14952_v27 = vcombine.low %v7041_v39, %v7044_v23  ;;  %v6845_v38 = vpop.permute.xlu1 %6844 }
 0x716   : > { %v7062_v32 = vsel %vm3818_vm11, %v23960_v28, %v6845_v38  ;;  %v16942_v38 = vld [vmem:[%s23608_s7 + $0x20] sm:$0xff]   ;;  %v16952_v28 = vld [vmem:[%s23608_s7 + $0x48] sm:$0xff]  }
 0x719   : > { %7883 = vmatmul.mubr.bf16.gmra.mxu0 %v7373_v6  ;;  %v6872_v30 = vpop.permute.xlu1 %6871 }
 0x71a   : > { %16609 = vmatprep.mubr.msk.bf16.mxu0 %vm3818_vm11, %v20309_v53  ;;  %v23955_v53 = vld [vmem:[#allocation3_spill] sm:$0xff]  ;;  %v7077_v51 = vsel %vm3818_vm11, %v20500_v63, %v6872_v30 }
 0x71b   : > { %7994 = vmatmul.mubr.bf16.gmra.mxu1 %v7038_v24  ;;  %v7047_v22 = vsel %vm3818_vm11, %v23955_v53, %v6835_v14  ;;  %v7300_v50 = vunpack.c.h.b16 %v7077_v51  ;;  %v14958_v14 = vcombine.low %v20491_v46, %v20547_v35  ;;  %v16933_v46 = vld [vmem:[%s23608_s7 + $0x78] sm:$0xff]  }
 0x71c   : > { %8001 = vmatprep.mubr.bf16.mxu1 %v14953_v31  ;;  %v7255_v37 = vunpack.c.l.b16 %v7047_v22  ;;  %v7251_v31 = vunpack.c.h.b16 %v7044_v23  ;;  %15911 = vmatprep.subr.bf16.mxu1 %v16933_v46 }
 0x71d   : > { %v6849_v24 = vpop.permute.xlu1 %6848 }
 0x71e   : > { %v7360_v18 = vpack.c.b16 %v7255_v37, %v7251_v31  ;;  %v7068_v23 = vsel %vm3818_vm11, %v23961_v5, %v6849_v24  ;;  %v6878_v31 = vrot.slane %v20514_v52, 1  ;;  %v16957_v5 = vld [vmem:[%s23608_s7 + $0x118] sm:$0xff]  }
 0x71f   : > { %v7299_v17 = vunpack.c.h.b16 %v7068_v23 }
 0x721   : > { %16610 = vmatmul.mubr.msk.bf16.vlgmr.msra.gmra.mxu0 %vm3818_vm11, %v14942_v0 }
 0x722   : > { %16613 = vmatprep.mubr.msk.bf16.mxu0 %vm3818_vm11, %v7326_v16  ;;  %v6851_v16 = vpop.permute.xlu1 %6850 }
 0x723   : > { %8002 = vmatmul.mubr.bf16.gmra.mxu1 %v14952_v27  ;;  %v23962_v27 = vld [vmem:[#allocation47_spill] sm:$0xff] }
 0x724   : > { %8009 = vmatprep.mubr.bf16.mxu1 %v7361_v20  ;;  %v6841_v20 = vpop.permute.xlu0 %6840 }
 0x725   : > { %v7056_v57 = vsel %vm3818_vm11, %v23958_v7, %v6841_v20  ;;  %v16936_v7 = vld [vmem:[%s23608_s7 + $0x30] sm:$0xff]  }
 0x726   : > { %v7275_v55 = vunpack.c.h.b16 %v7056_v57 }
 0x728   : > { %v6868_v21 = vpop.permute.xlu0 %6867 }
 0x729   : > { %16614 = vmatmul.mubr.msk.bf16.gmra.mxu0 %vm3818_vm11, %v20378_v60  ;;  %v7229_v60 = vunpack.c.h.b16 %v20458_v29 }
 0x72a   : > { %16617 = vmatprep.mubr.msk.bf16.mxu0 %vm3818_vm11, %v14946_v8 }
 0x72b   : > { %8010 = vmatmul.mubr.bf16.gmra.mxu1 %v7360_v18  ;;  %v7350_v33 = vpack.c.b16 %v7233_v42, %v7229_v60  ;;  %v23963_v18 = vld [vmem:[#allocation51_spill] sm:$0xff]  ;;  %v23965_v60 = vld [vmem:[#allocation61_spill] sm:$0xff] }
 0x72c   : > { %8017 = vmatprep.mubr.bf16.mxu1 %v6921_v62  ;;  %v7053_v62 = vsel %vm3818_vm11, %v23957_v56, %v6839_v26  ;;  %v6870_v19 = vpop.permute.xlu0 %6869  ;;  %v7071_v15 = vsel %vm3818_vm11, %v23963_v18, %v6851_v16  ;;  %v7305_v26 = vunpack.c.l.b16 %v6878_v31  ;;  %v16935_v56 = vld [vmem:[%s23608_s7 + $0x70] sm:$0xff]  }
 0x72d   : > { %v14956_v36 = vcombine.low %v7053_v62, %v7056_v57 }
 0x730   : > { %v6847_v29 = vpop.permute.xlu0 %6846 }
 0x731   : > { %16618 = vmatmul.mubr.msk.bf16.gmra.mxu0 %vm3818_vm11, %v7338_v4  ;;  %v23964_v4 = vld [vmem:[#allocation57_spill] sm:$0xff] }
 0x732   : > { %16621 = vmatprep.mubr.msk.bf16.mxu0 %vm3818_vm11, %v20446_v10  ;;  %v23959_v10 = vld [vmem:[#allocation17_spill] sm:$0xff] }
 0x733   : > { %8018 = vmatmul.mubr.bf16.gmra.mxu1 %v7050_v9 }
 0x734   : > { %8025 = vmatprep.mubr.bf16.mxu1 %v14957_v2  ;;  %v7059_v2 = vsel %vm3818_vm11, %v23959_v10, %v6843_v25  ;;  %v6874_v1 = vpop.permute.xlu0 %6873  ;;  %v16939_v10 = vld [vmem:[%s23608_s7 + $0x178] sm:$0xff]  }
 0x735   : > { %v7279_v13 = vunpack.c.l.b16 %v7059_v2  ;;  %v7079_v12 = vsel %vm3818_vm11, %v20514_v52, %v6874_v1  ;;  %v16934_v52 = vld [vmem:[%s23608_s7 + $0x38] sm:$0xff]   ;;  %v16940_v2 = vld [vmem:[%s23608_s7 + $0x60] sm:$0xff]   ;;  %16003 = vmatprep.subr.bf16.mxu0 %v16939_v10  ;;  %v16948_v1 = vld [vmem:[%s23608_s7 + $0x50] sm:$0xff]  }
 0x736   : > { %v7304_v39 = vunpack.c.l.b16 %v7079_v12  ;;  %15912 = vmatpush3.bf16.msra.mxu1 %v16934_v52  ;;  %v16951_v12 = vld [vmem:[%s23608_s7 + $0x160] sm:$0xff]  }
 0x737   : > { %v7372_v54 = vpack.c.b16 %v7279_v13, %v7275_v55  ;;  %15913 = vmatprep.subr.bf16.mxu1 %v16935_v56 }
 0x738   : > { %v7385_v37 = vpack.c.b16 %v7304_v39, %v7300_v50  ;;  %v16956_v39 = vld [vmem:[%s23608_s7 + $0x40] sm:$0xff]  }
 0x739   : > { %16622 = vmatmul.mubr.msk.bf16.gmra.mxu0 %vm3818_vm11, %v14950_v44  ;;  %v16937_v44 = vld [vmem:[%s23608_s7 + $0x68] sm:$0xff]  }
 0x73a   : > { %16625 = vmatprep.mubr.msk.bf16.mxu0 %vm3818_vm11, %v7350_v33  ;;  %15914 = vmatpush3.bf16.msra.mxu1 %v16936_v7  ;;  %v16938_v33 = vld [vmem:[%s23608_s7 + $0x28] sm:$0xff]  }
 0x73b   : > { %8026 = vmatmul.mubr.bf16.gmra.mxu1 %v14956_v36  ;;  %15915 = vmatprep.subr.bf16.mxu1 %v16937_v44 }
 0x73c   : > { %8033 = vmatprep.mubr.bf16.mxu1 %v7373_v6  ;;  %v7073_v6 = vsel %vm3818_vm11, %v20393_v61, %v6868_v21  ;;  %v7277_v61 = vunpack.c.h.b16 %v20547_v35 }
 0x73e   : > { %15916 = vmatpush3.bf16.msra.mxu1 %v16938_v33 }
 0x73f   : > { %15917 = vmatprep.subr.bf16.mxu1 %v16940_v2 }
 0x741   : > { %16626 = vmatmul.mubr.msk.bf16.gmra.mxu0 %vm3818_vm11, %v20480_v49  ;;  %v7075_v49 = vsel %vm3818_vm11, %v20405_v11, %v6870_v19  ;;  %v7281_v11 = vunpack.c.l.b16 %v20533_v59  ;;  %v6877_v59 = vrot.slane %v20500_v63, 1  ;;  %v7303_v63 = vunpack.c.l.b16 %v7071_v15  ;;  %v16941_v19 = vld [vmem:[%s23608_s7 + $0x138] sm:$0xff]   ;;  %v16963_v15 = vld [vmem:[%s23608_s7 + $0x140] sm:$0xff]  }
 0x742   : > { %16629 = vmatprep.mubr.msk.bf16.mxu0 %vm3818_vm11, %v14954_v3  ;;  %v14961_v45 = vcombine.low %v7075_v49, %v7077_v51  ;;  %16004 = vmatpush3.bf16.msra.mxu0 %v16941_v19  ;;  %v16943_v3 = vld [vmem:[%s23608_s7 + $0x170] sm:$0xff]  }
 0x743   : > { %8034 = vmatmul.mubr.bf16.gmra.mxu1 %v7372_v54  ;;  %v7374_v22 = vpack.c.b16 %v7281_v11, %v7277_v61  ;;  %v6879_v35 = vsel %vm3211_vm15, %v6877_v59, %v6878_v31  ;;  %v7384_v40 = vpack.c.b16 %v7303_v63, %v7299_v17  ;;  %v16944_v54 = vld [vmem:[%s23608_s7 + $0x58] sm:$0xff]   ;;  %16005 = vmatprep.subr.bf16.mxu0 %v16943_v3  ;;  %v16950_v49 = vld [vmem:[%s23608_s7 + $0x10] sm:$0xff]   ;;  %v16954_v61 = vld [vmem:[%s23608_s7 + $0x8] sm:$0xff]   ;;  %v23966_v63 = vmov 0.0  }
 0x744   : > { %8041 = vmatprep.mubr.bf16.mxu1 %v7073_v6  ;;  %v14962_v20 = vcombine.low %v23964_v4, %v6879_v35  ;;  %v7301_v42 = vunpack.c.h.b16 %v6879_v35  ;;  %15918 = vmatpush3.bf16.msra.mxu1 %v16942_v38  ;;  %v16947_v6 = vld [vmem:[%s23608_s7 + $0x168] sm:$0xff]   ;;  %v16955_v11 = vld [vmem:[%s23608_s7 + $0x158] sm:$0xff]   ;;  %v20909_v17 = vld [vmem:[%s23607_s6] ss:$0 sm:$0xff] }
 0x745   : > { %15919 = vmatprep.subr.bf16.mxu1 %v16944_v54  ;;  %v16961_v31 = vld [vmem:[%s23608_s7 + $0x148] sm:$0xff]  }
 0x746   : > { %v7386_v57 = vpack.c.b16 %v7305_v26, %v7301_v42  ;;  %v16962_v59 = vld [vmem:[%s23608_s7 + $0x108] sm:$0xff]  }
 0x748   : > { %15920 = vmatpush3.bf16.msra.mxu1 %v16946_v41 }
 0x749   : > { %16630 = vmatmul.mubr.msk.bf16.gmra.mxu0 %vm3818_vm11, %v7362_v43  ;;  %v16949_v43 = vld [vmem:[%s23608_s7 + $0x128] sm:$0xff]   ;;  %15921 = vmatprep.subr.bf16.mxu1 %v16948_v1 }
 0x74a   : > { %16633 = vmatprep.mubr.msk.bf16.mxu0 %vm3818_vm11, %v20520_v34  ;;  %v7065_v34 = vsel %vm3818_vm11, %v23962_v27, %v6847_v29  ;;  %v16945_v29 = vld [vmem:[%s23608_s7 + $0x130] sm:$0xff]  }
 0x74b   : > { %8042 = vmatmul.mubr.bf16.gmra.mxu1 %v7062_v32  ;;  %v14960_v8 = vcombine.low %v7065_v34, %v7068_v23  ;;  %16006 = vmatpush3.bf16.msra.mxu0 %v16945_v29  ;;  %v16953_v32 = vld [vmem:[%s23608_s7 + $0x120] sm:$0xff]   ;;  %v16959_v27 = vld [vmem:[%s23608_s7 + $0x150] sm:$0xff]  }
 0x74c   : > { %v20762_v58 = vpop.f32.mrf.mxu0  ;;  %8049 = vmatprep.mubr.bf16.mxu1 %v14961_v45  ;;  %16007 = vmatprep.subr.bf16.mxu0 %v16947_v6  ;;  %v16960_v34 = vld [vmem:[%s23608_s7 + $0x110] sm:$0xff]  }
 0x74d   : > { %15922 = vmatpush3.bf16.msra.mxu1 %v16950_v49  ;;  %v7749_v26 = vadd.f32 %v20909_v17, %v20762_v58 }
 0x74e   : > { %v7750_v0 = vpop.f32.mrf.mxu0  ;;  %15923 = vmatprep.subr.bf16.mxu1 %v16952_v28 }
 0x74f   : > { %16008 = vmatpush3.bf16.msra.mxu0 %v16949_v43  ;;  %v16958_v0 = vld [vmem:[%s23608_s7] sm:$0xff]  }
 0x750   : > { %v20771_v53 = vpop.f32.mrf.mxu0  ;;  %16009 = vmatprep.subr.bf16.mxu0 %v16951_v12 }
 0x751   : > { %16634 = vmatmul.mubr.msk.bf16.gmra.mxu0 %vm3818_vm11, %v14958_v14  ;;  %15924 = vmatpush3.bf16.msra.mxu1 %v16954_v61  ;;  %v7752_v7 = vadd.f32 %v20909_v17, %v20771_v53 }
 0x752   : > { %v7753_v48 = vpop.f32.mrf.mxu0  ;;  %16637 = vmatprep.mubr.msk.bf16.mxu0 %vm3818_vm11, %v7374_v22  ;;  %15925 = vmatprep.subr.bf16.mxu1 %v16956_v39 }
 0x753   : > { %8050 = vmatmul.mubr.bf16.gmra.mxu1 %v14960_v8  ;;  %16010 = vmatpush3.bf16.msra.mxu0 %v16953_v32  ;;  %v16964_v48 = vld [vmem:[%s23608_s7 + $0x100] sm:$0xff]  }
 0x754   : > { %8057 = vmatprep.mubr.bf16.mxu1 %v7385_v37  ;;  %16011 = vmatprep.subr.bf16.mxu0 %v16955_v11 }
 0x755   : > { %15926 = vmatpush3.bf16.msra.mxu1 %v16958_v0 }
 0x757   : > { %16012 = vmatpush3.bf16.msra.mxu0 %v16957_v5 }
 0x758   : > { %16013 = vmatprep.subr.bf16.mxu0 %v16959_v27 }
 0x759   : > { %v20787_v9 = vpop.f32.mrf.mxu0  ;;  %16638 = vmatmul.mubr.msk.bf16.gmra.mxu0 %vm3818_vm11, %v23965_v60 }
 0x75a   : > { %16641 = vmatprep.mubr.msk.bf16.mxu0 %vm3818_vm11, %v14962_v20  ;;  %v7757_v58 = vadd.f32 %v20909_v17, %v20787_v9  ;;  %v16965_v9 = vld [vmem:[%s23608_s7 + $0xf8] sm:$0xff]  }
 0x75b   : > { %v7758_v62 = vpop.f32.mrf.mxu0  ;;  %8058 = vmatmul.mubr.bf16.gmra.mxu1 %v7384_v40  ;;  %16014 = vmatpush3.bf16.msra.mxu0 %v16960_v34 }
 0x75c   : > { %16015 = vmatprep.subr.bf16.mxu0 %v16961_v31  ;;  %15957 = vmatprep.subr.bf16.mxu1 %v16965_v9 }
 0x75d   : > { %v20798_v21 = vpop.f32.mrf.mxu0 }
 0x75e   : > { %v7760_v53 = vadd.f32 %v20909_v17, %v20798_v21 }
 0x75f   : > { %v7761_v25 = vpop.f32.mrf.mxu0  ;;  %16016 = vmatpush3.bf16.msra.mxu0 %v16962_v59 }
 0x760   : > { %16017 = vmatprep.subr.bf16.mxu0 %v16963_v15 }
 0x761   : > { %v20806_v36 = vpop.f32.mrf.mxu0  ;;  %16642 = vmatmul.mubr.msk.bf16.gmra.mxu0 %vm3818_vm11, %v7386_v57 }
 0x762   : > { %v7765_v21 = vadd.f32 %v20909_v17, %v20806_v36 }
 0x763   : > { %v7766_v13 = vpop.f32.mrf.mxu0  ;;  %16018 = vmatpush3.bf16.msra.mxu0 %v16964_v48 }
 0x764   : > { %16645 = vmatprep.subr.bf16.mxu0 %v23966_v63 }
 0x765   : > { %v20821_v55 = vpop.f32.mrf.mxu0 }
 0x766   : > { %v7768_v11 = vadd.f32 %v20909_v17, %v20821_v55 }
 0x767   : > { %v7769_v47 = vpop.f32.mrf.mxu0 }
 0x769   : > { %v20835_v30 = vpop.f32.mrf.mxu0 }
 0x76a   : > { %v7773_v36 = vadd.f32 %v20909_v17, %v20835_v30 }
 0x76b   : > { %v7774_v51 = vpop.f32.mrf.mxu0 }
 0x76d   : > { %v20849_v24 = vpop.f32.mrf.mxu0 }
 0x76e   : > { %v7776_v55 = vadd.f32 %v20909_v17, %v20849_v24 }
 0x76f   : > { %v7777_v45 = vpop.f32.mrf.mxu0 }
 0x771   : > { %v20863_v50 = vpop.f32.mrf.mxu0 }
 0x772   : > { %v7781_v30 = vadd.f32 %v20909_v17, %v20863_v50 }
 0x773   : > { %v7782_v23 = vpop.f32.mrf.mxu0 }
 0x775   : > { %v20877_v14 = vpop.f32.mrf.mxu0 }
 0x776   : > { %v7784_v24 = vadd.f32 %v20909_v17, %v20877_v14 }
 0x777   : > { %v7785_v16 = vpop.f32.mrf.mxu0 }
 0x779   : > { %v20885_v22 = vpop.f32.mrf.mxu0 }
 0x77a   : > { %v7789_v50 = vadd.f32 %v20909_v17, %v20885_v22 }
 0x77b   : > { %v7790_v37 = vpop.f32.mrf.mxu0 }
 0x77d   : > { %v20893_v8 = vpop.f32.mrf.mxu0 }
 0x77f   : > { %v7793_v18 = vpop.f32.mrf.mxu0 }
 0x781   : > { %v20901_v46 = vpop.f32.mrf.mxu0 }
 0x783   : > { %v7798_v52 = vpop.f32.mrf.mxu0 }
 0x785   : > { %v20904_v35 = vpop.f32.mrf.mxu0 }
 0x787   : > { %v7801_v4 = vpop.f32.mrf.mxu0 }
 0x789   : > { %v20911_v20 = vpop.f32.mrf.mxu0 }
 0x78b   : > { %v7806_v40 = vpop.f32.mrf.mxu0  ;;  %v7923_v60 = vpop.f32.mrf.mxu1 }
 0x78c   : > { %v20915_v42 = vadd.f32 %v7923_v60, %v7749_v26 }
 0x78d   : > { %v20917_v56 = vpop.f32.mrf.mxu0  ;;  %v7925_v62 = vpop.f32.mrf.mxu1 }
 0x78f   : > { %v7809_v57 = vpop.f32.mrf.mxu0  ;;  %v7926_v44 = vpop.f32.mrf.mxu1 }
 0x790   : > { %v20921_v25 = vadd.f32 %v7926_v44, %v7752_v7 }
 0x791   : > { %v20923_v33 = vpop.f32.mrf.mxu0  ;;  %v7928_v10 = vpop.f32.mrf.mxu1 }
 0x793   : > { %v7814_v2 = vpop.f32.mrf.mxu0  ;;  %v7931_v19 = vpop.f32.mrf.mxu1 }
 0x794   : > { %v20927_v13 = vadd.f32 %v7931_v19, %v7757_v58 }
 0x795   : > { %v20929_v38 = vpop.f32.mrf.mxu0  ;;  %v7933_v3 = vpop.f32.mrf.mxu1 }
 0x797   : > { %v7817_v54 = vpop.f32.mrf.mxu0  ;;  %v7934_v29 = vpop.f32.mrf.mxu1 }
 0x798   : > { %v20933_v47 = vadd.f32 %v7934_v29, %v7760_v53 }
 0x799   : > { %v20935_v41 = vpop.f32.mrf.mxu0  ;;  %v7936_v6 = vpop.f32.mrf.mxu1 }
 0x79b   : > { %v7822_v1 = vpop.f32.mrf.mxu0 }
 0x79d   : > { %v20940_v43 = vpop.f32.mrf.mxu0 }
 0x79f   : > { %v7825_v51 = vpop.f32.mrf.mxu0 }
 0x7a0   : > { %v7797_v51 = vadd.f32 %v20909_v17, %v20901_v46 }
 0x7a1   : > { %v20942_v49 = vpop.f32.mrf.mxu0 }
 0x7a3   : > { %v7830_v12 = vpop.f32.mrf.mxu0  ;;  %v7939_v28 = vpop.f32.mrf.mxu1 }
 0x7a4   : > { %v20946_v32 = vadd.f32 %v7939_v28, %v7765_v21 }
 0x7a5   : > { %v20948_v45 = vpop.f32.mrf.mxu0  ;;  %v7941_v61 = vpop.f32.mrf.mxu1 }
 0x7a7   : > { %v7833_v39 = vpop.f32.mrf.mxu0  ;;  %v7942_v5 = vpop.f32.mrf.mxu1 }
 0x7a8   : > { %v20952_v23 = vadd.f32 %v7942_v5, %v7768_v11 }
 0x7a9   : > { %v20954_v0 = vpop.f32.mrf.mxu0  ;;  %v7944_v16 = vpop.f32.mrf.mxu1 }
 0x7ab   : > { %v7838_v27 = vpop.f32.mrf.mxu0  ;;  %v7947_v34 = vpop.f32.mrf.mxu1 }
 0x7ac   : > { %v20958_v37 = vadd.f32 %v7947_v34, %v7773_v36 }
 0x7ad   : > { %v20960_v31 = vpop.f32.mrf.mxu0  ;;  %v7949_v59 = vpop.f32.mrf.mxu1 }
 0x7af   : > { %v7841_v18 = vpop.f32.mrf.mxu0  ;;  %v7950_v15 = vpop.f32.mrf.mxu1 }
 0x7b0   : > { %v20964_v48 = vadd.f32 %v7950_v15, %v7776_v55 }
 0x7b1   : > { %v20966_v52 = vpop.f32.mrf.mxu0  ;;  %v7952_v4 = vpop.f32.mrf.mxu1 }
 0x7b3   : > { %v7846_v26 = vpop.f32.mrf.mxu0  ;;  %v7955_v40 = vpop.f32.mrf.mxu1 }
 0x7b4   : > { %v20970_v60 = vadd.f32 %v7955_v40, %v7781_v30 }
 0x7b5   : > { %v20972_v62 = vpop.f32.mrf.mxu0  ;;  %v7957_v7 = vpop.f32.mrf.mxu1 }
 0x7b7   : > { %v7849_v57 = vpop.f32.mrf.mxu0  ;;  %v7958_v44 = vpop.f32.mrf.mxu1 }
 0x7b8   : > { %v20976_v10 = vadd.f32 %v7958_v44, %v7784_v24 }
 0x7b9   : > { %v20978_v58 = vpop.f32.mrf.mxu0  ;;  %v7960_v2 = vpop.f32.mrf.mxu1 }
 0x7bb   : > { %v7854_v19 = vpop.f32.mrf.mxu0  ;;  %v7963_v3 = vpop.f32.mrf.mxu1 }
 0x7bc   : > { %v20982_v53 = vadd.f32 %v7963_v3, %v7789_v50 }
 0x7bd   : > { %v20984_v54 = vpop.f32.mrf.mxu0  ;;  %v7965_v29 = vpop.f32.mrf.mxu1 }
 0x7bf   : > { %v7857_v6 = vpop.f32.mrf.mxu0  ;;  %v20986_v1 = vpop.f32.mrf.mxu1 }
 0x7c1   : > { %v20988_v14 = vpop.f32.mrf.mxu0  ;;  %v7968_v9 = vpop.f32.mrf.mxu1 }
 0x7c2   : > { %v7792_v9 = vadd.f32 %v20909_v17, %v20893_v8  ;;  %v7821_v8 = vadd.f32 %v20909_v17, %v20935_v41  ;;  %v21039_v41 = vadd.f32 %v20909_v17, %v20966_v52  ;;  %v21055_v52 = vadd.f32 %v20909_v17, %v20984_v54 }
 0x7c3   : > { %v7862_v21 = vpop.f32.mrf.mxu0  ;;  %v7971_v12 = vpop.f32.mrf.mxu1 }
 0x7c4   : > { %v20992_v28 = vadd.f32 %v7971_v12, %v7797_v51  ;;  %v7800_v12 = vadd.f32 %v20909_v17, %v20904_v35  ;;  %v7824_v35 = vadd.f32 %v20909_v17, %v20940_v43 }
 0x7c5   : > { %v7863_v22 = vpop.f32.mrf.mxu0  ;;  %v7973_v61 = vpop.f32.mrf.mxu1 }
 0x7c6   : > { %v7805_v61 = vadd.f32 %v20909_v17, %v20911_v20  ;;  %v7829_v20 = vadd.f32 %v20909_v17, %v20942_v49 }
 0x7c7   : > { %v7865_v11 = vpop.f32.mrf.mxu0  ;;  %v7974_v39 = vpop.f32.mrf.mxu1 }
 0x7c8   : > { %v7808_v11 = vadd.f32 %v20909_v17, %v20917_v56  ;;  %v7832_v56 = vadd.f32 %v20909_v17, %v20948_v45  ;;  %v21044_v45 = vadd.f32 %v20909_v17, %v20972_v62 }
 0x7c9   : > { %v7868_v5 = vpop.f32.mrf.mxu0  ;;  %v7976_v16 = vpop.f32.mrf.mxu1 }
 0x7cb   : > { %v7870_v36 = vpop.f32.mrf.mxu0  ;;  %v7979_v27 = vpop.f32.mrf.mxu1 }
 0x7cc   : > { %v7813_v36 = vadd.f32 %v20909_v17, %v20923_v33  ;;  %v21031_v33 = vadd.f32 %v20909_v17, %v20954_v0  ;;  %v21048_v0 = vadd.f32 %v20909_v17, %v20978_v58 }
 0x7cd   : > { %v20994_v34 = vpop.f32.mrf.mxu0  ;;  %v7981_v59 = vpop.f32.mrf.mxu1 }
 0x7ce   : > { %v7816_v59 = vadd.f32 %v20909_v17, %v20929_v38  ;;  %v21035_v38 = vadd.f32 %v20909_v17, %v20960_v31 }
 0x7cf   : > { %v7873_v55 = vpop.f32.mrf.mxu0  ;;  %v20996_v18 = vpop.f32.mrf.mxu1 }
 0x7d1   : > { %v20998_v15 = vpop.f32.mrf.mxu0  ;;  %v7984_v46 = vpop.f32.mrf.mxu1 }
 0x7d3   : > { %v7878_v4 = vpop.f32.mrf.mxu0  ;;  %v21000_v30 = vpop.f32.mrf.mxu1 }
 0x7d5   : > { %v7879_v26 = vpop.f32.mrf.mxu0  ;;  %v7989_v40 = vpop.f32.mrf.mxu1 }
 0x7d6   : > { %v21062_v40 = vadd.f32 %v20909_v17, %v20988_v14 }
 0x7d7   : > { %v7881_v7 = vpop.f32.mrf.mxu0  ;;  %v21002_v24 = vpop.f32.mrf.mxu1 }
 0x7d9   : > { %v7884_v57 = vpop.f32.mrf.mxu0  ;;  %v7992_v44 = vpop.f32.mrf.mxu1 }
 0x7da   : > { %v21069_v57 = vadd.f32 %v20909_v17, %v7863_v22  ;;  %v21076_v44 = vadd.f32 %v7979_v27, %v7805_v61 }
 0x7db   : > { %v7885_v2 = vpop.f32.mrf.mxu0  ;;  %v21004_v50 = vpop.f32.mrf.mxu1 }
 0x7dd   : > { %v7886_v19 = vpop.f32.mrf.mxu0  ;;  %v7997_v3 = vpop.f32.mrf.mxu1 }
 0x7df   : > { %v7887_v29 = vpop.f32.mrf.mxu0  ;;  %v21006_v6 = vpop.f32.mrf.mxu1 }
 0x7e0   : > { %v21081_v29 = vadd.f32 %v20909_v17, %v20994_v34  ;;  %v21094_v34 = vadd.f32 %v21000_v30, %v7813_v36 }
 0x7e1   : > { %v8000_v51 = vpop.f32.mrf.mxu1  ;;  %v16611_v21 = vpop.f32.mrf.mxu0 }
 0x7e2   : > { %v8107_v16 = vadd.f32 %v16611_v21, %v20927_v13 }
 0x7e3   : > { %v8003_v55 = vpop.f32.mrf.mxu1  ;;  %v8098_v46 = vpop.f32.mrf.mxu0 }
 0x7e4   : > { %vm8241_vm11 = vcmp.gt.f32.partialorder %v8107_v16, 0.0  ;;  %v8275_v13 = vmul.f32 0.01, %v8107_v16  ;;  %v8099_v43 = vadd.f32 %v8098_v46, %v20915_v42  ;;  %v21058_v42 = vadd.f32 %v20986_v1, %v7792_v9 }
 0x7e5   : > { %v8005_v49 = vpop.f32.mrf.mxu1  ;;  %v16612_v4 = vpop.f32.mrf.mxu0  ;;  %v21074_v1 = vadd.f32 %v20909_v17, %v7868_v5  ;;  %v21101_v46 = vadd.f32 %v21004_v50, %v7821_v8 }
 0x7e6   : > { %v21050_v26 = vsel %vm8241_vm11, %v8107_v16, %v8275_v13  ;;  %v8110_v31 = vadd.f32 %v16612_v4, %v20933_v47  ;;  %v21071_v47 = vadd.f32 %v7974_v39, %v7800_v12  ;;  %v8273_v14 = vmul.f32 0.01, %v8099_v43 }
 0x7e7   : > { %v21066_v62 = vpack.c.bf16 %v21050_v26, %v21050_v26  ;;  %v8006_v58 = vpop.f32.mrf.mxu1  ;;  %v8101_v7 = vpop.f32.mrf.mxu0  ;;  %vm8239_vm13 = vcmp.gt.f32.partialorder %v8099_v43, 0.0  ;;  %v21091_v12 = vadd.f32 %v20909_v17, %v20998_v15  ;;  %v21098_v16 = vadd.f32 %v21002_v24, %v7816_v59 }
 0x7e8   : > { %vm8242_vm3 = vcmp.gt.f32.partialorder %v8110_v31, 0.0  ;;  %v8276_v54 = vmul.f32 0.01, %v8110_v31  ;;  %v8102_v2 = vadd.f32 %v8101_v7, %v20921_v25  ;;  %v21087_v25 = vadd.f32 %v20996_v18, %v7808_v11 }
 0x7e9   : > { %v8008_v19 = vpop.f32.mrf.mxu1  ;;  %v16615_v3 = vpop.f32.mrf.mxu0  ;;  %v8576_v39 = vshll.u32 %v21066_v62, 16  ;;  %v21104_v11 = vadd.f32 %v21006_v6, %v7824_v35  ;;  %v21106_v17 = vadd.f32 %v8003_v55, %v7829_v20  ;;  %v21108_v15 = vadd.f32 %v8006_v58, %v7832_v56 }
 0x7ea   : > { %v8310_v22 = vsel %vm8242_vm3, %v8110_v31, %v8276_v54  ;;  %vm8240_vm1 = vcmp.gt.f32.partialorder %v8102_v2, 0.0  ;;  %v8274_v5 = vmul.f32 0.01, %v8102_v2  ;;  %v8123_v27 = vadd.f32 %v16615_v3, %v20958_v37 }
 0x7eb   : > { %v8342_v9 = vpack.c.bf16 %v8310_v22, %v21050_v26  ;;  %v8011_v51 = vpop.f32.mrf.mxu1  ;;  %v8114_v21 = vpop.f32.mrf.mxu0  ;;  %v8307_v37 = vsel %vm8239_vm13, %v8099_v43, %v8273_v14  ;;  %v8578_v8 = vrot.slane %v8576_v39, 1 }
 0x7ec   : > { %v8115_v61 = vadd.f32 %v8114_v21, %v20946_v32  ;;  %v8308_v13 = vsel %vm8240_vm1, %v8102_v2, %v8274_v5  ;;  %v8634_v32 = vrot.slane %v21066_v62, 1  ;;  %v8279_v24 = vmul.f32 0.01, %v8123_v27 }
 0x7ed   : > { %v8013_v49 = vpop.f32.mrf.mxu1  ;;  %v16616_v18 = vpop.f32.mrf.mxu0  ;;  %v21110_v30 = vpack.c.bf16 %v8308_v13, %v8307_v37  ;;  %vm8245_vm4 = vcmp.gt.f32.partialorder %v8123_v27, 0.0  ;;  %v21118_v26 = vadd.f32 %v8011_v51, %v21031_v33  ;;  %v8523_v21 = vunpack.c.h.b16 %v8342_v9 }
 0x7ee   : > { %v8126_v36 = vadd.f32 %v16616_v18, %v20964_v48  ;;  %vm8243_vm5 = vcmp.gt.f32.partialorder %v8115_v61, 0.0  ;;  %v8277_v43 = vmul.f32 0.01, %v8115_v61  ;;  %v8313_v62 = vsel %vm8245_vm4, %v8123_v27, %v8279_v24 }
 0x7ef   : > { %v8014_v50 = vpop.f32.mrf.mxu1  ;;  %v8117_v59 = vpop.f32.mrf.mxu0  ;;  %v8571_v56 = vshll.u32 %v21110_v30, 16  ;;  %v8633_v4 = vrot.slane %v21110_v30, 1  ;;  %v8569_v33 = vshrl.u32 %v21110_v30, 16 }
 0x7f0   : > { %v8118_v6 = vadd.f32 %v8117_v59, %v20952_v23  ;;  %vm8246_vm6 = vcmp.gt.f32.partialorder %v8126_v36, 0.0  ;;  %v8280_v35 = vmul.f32 0.01, %v8126_v36  ;;  %v8311_v2 = vsel %vm8243_vm5, %v8115_v61, %v8277_v43 }
 0x7f1   : > { %v8016_v55 = vpop.f32.mrf.mxu1  ;;  %v16619_v20 = vpop.f32.mrf.mxu0  ;;  %v8573_v23 = vrot.slane %v8571_v56, 1  ;;  %v21122_v14 = vsel %vm3211_vm15, %v8633_v4, %v8634_v32  ;;  %v21131_v49 = vadd.f32 %v8014_v50, %v21035_v38 }
 0x7f2   : > { %vm8244_vm7 = vcmp.gt.f32.partialorder %v8118_v6, 0.0  ;;  %v8278_v48 = vmul.f32 0.01, %v8118_v6  ;;  %v8139_v31 = vadd.f32 %v16619_v20, %v20982_v53  ;;  %v8314_v58 = vsel %vm8246_vm6, %v8126_v36, %v8280_v35  ;;  %v16966_v36 = vld [vmem:[%s23608_s7 + $0xb8] sm:$0xff]  }
 0x7f3   : > { %v8019_v7 = vpop.f32.mrf.mxu1  ;;  %v8130_v54 = vpop.f32.mrf.mxu0  ;;  %v21125_v19 = vpack.c.bf16 %v8314_v58, %v8313_v62  ;;  %v8574_v13 = vor.u32 %v8573_v23, %v8569_v33 }
 0x7f4   : > { %v8312_v3 = vsel %vm8244_vm7, %v8118_v6, %v8278_v48  ;;  %v8283_v5 = vmul.f32 0.01, %v8139_v31  ;;  %v8131_v53 = vadd.f32 %v8130_v54, %v20970_v60  ;;  %vm8249_vm8 = vcmp.gt.f32.partialorder %v8139_v31, 0.0 }
 0x7f5   : > { %v8343_v22 = vpack.c.bf16 %v8312_v3, %v8311_v2  ;;  %v15719_v39 = vpack.c.bf16 %v8312_v3, %v8312_v3  ;;  %v8021_v27 = vpop.f32.mrf.mxu1  ;;  %v16620_v51 = vpop.f32.mrf.mxu0  ;;  %v8579_v9 = vsel %vm2874_vm14, %v8574_v13, %v8578_v8  ;;  %v21144_v43 = vadd.f32 %v8019_v7, %v21039_v41 }
 0x7f6   : > { %v8142_v37 = vadd.f32 %v16620_v51, %v21058_v42  ;;  %vm8247_vm9 = vcmp.gt.f32.partialorder %v8131_v53, 0.0  ;;  %v8281_v18 = vmul.f32 0.01, %v8131_v53  ;;  %v16967_v42 = vld [vmem:[%s23608_s7 + $0xf0] sm:$0xff]   ;;  %v8317_v50 = vsel %vm8249_vm8, %v8139_v31, %v8283_v5  ;;  %9243 = vmatprep.mubr.bf16.mxu1 %v8579_v9 }
 0x7f7   : > { %v8524_v61 = vunpack.c.l.b16 %v8343_v22  ;;  %v8022_v32 = vpop.f32.mrf.mxu1  ;;  %v8133_v24 = vpop.f32.mrf.mxu0  ;;  %v8676_v60 = vshll.u32 %v15719_v39, 16  ;;  %9244 = vmatmul.mubr.bf16.vlgmr.msra.gmra.mxu1 %v21110_v30  ;;  %v8581_v4 = vshrl.u32 %v21125_v19, 16  ;;  %v8734_v22 = vrot.slane %v15719_v39, 1  ;;  %v16970_v39 = vld [vmem:[%s23608_s7 + $0xa8] sm:$0xff]  }
 0x7f8   : > { %vm8250_vm10 = vcmp.gt.f32.partialorder %v8142_v37, 0.0  ;;  %v8284_v59 = vmul.f32 0.01, %v8142_v37  ;;  %v8134_v6 = vadd.f32 %v8133_v24, %v20976_v10  ;;  %v8315_v20 = vsel %vm8247_vm9, %v8131_v53, %v8281_v18  ;;  %15958 = vmatpush3.bf16.msra.mxu1 %v16966_v36  ;;  %v16968_v10 = vld [vmem:[%s23608_s7 + $0xb0] sm:$0xff]  }
 0x7f9   : > { %v21140_v38 = vpack.c.b16 %v8524_v61, %v8523_v21  ;;  %v8024_v35 = vpop.f32.mrf.mxu1  ;;  %v16623_v55 = vpop.f32.mrf.mxu0  ;;  %v21152_v31 = vadd.f32 %v8022_v32, %v21044_v45  ;;  %v21157_v7 = vrot.slane %v8676_v60, 1  ;;  %15959 = vmatprep.subr.bf16.mxu1 %v16967_v42  ;;  %v16969_v45 = vld [vmem:[%s23608_s7 + $0xe8] sm:$0xff]   ;;  %v21163_v54 = vpack.c.bf16 %v8315_v20, %v8315_v20 }
 0x7fa   : > { %v8318_v56 = vsel %vm8250_vm10, %v8142_v37, %v8284_v59  ;;  %v8155_v8 = vadd.f32 %v16623_v55, %v21076_v44  ;;  %vm8248_vm12 = vcmp.gt.f32.partialorder %v8134_v6, 0.0  ;;  %v8282_v41 = vmul.f32 0.01, %v8134_v6 }
 0x7fb   : > { %v8346_v48 = vpack.c.bf16 %v8318_v56, %v8317_v50  ;;  %v8027_v62 = vpop.f32.mrf.mxu1  ;;  %v8146_v58 = vpop.f32.mrf.mxu0  ;;  %v8733_v33 = vrot.slane %v21140_v38, 1  ;;  %v21166_v53 = vpack.c.bf16 %v8318_v56, %v8318_v56  ;;  %v8583_v18 = vshll.u32 %v21125_v19, 16 }
 0x7fc   : > { %vm8253_vm11 = vcmp.gt.f32.partialorder %v8155_v8, 0.0  ;;  %v8287_v30 = vmul.f32 0.01, %v8155_v8  ;;  %v8147_v44 = vadd.f32 %v8146_v58, %v20992_v28  ;;  %v8316_v23 = vsel %vm8248_vm12, %v8134_v6, %v8282_v41  ;;  %15960 = vmatpush3.bf16.msra.mxu1 %v16968_v10 }
 0x7fd   : > { %v8029_v2 = vpop.f32.mrf.mxu1  ;;  %v16624_v3 = vpop.f32.mrf.mxu0  ;;  %v8530_v5 = vunpack.c.l.b16 %v8346_v48  ;;  %v8345_v27 = vpack.c.bf16 %v8316_v23, %v8315_v20  ;;  %v21169_v51 = vadd.f32 %v8027_v62, %v21048_v0  ;;  %v8735_v37 = vsel %vm3211_vm15, %v8733_v33, %v8734_v22  ;;  %15961 = vmatprep.subr.bf16.mxu1 %v16969_v45 }
 0x7fe   : > { %v8321_v28 = vsel %vm8253_vm11, %v8155_v8, %v8287_v30  ;;  %v8158_v21 = vadd.f32 %v16624_v3, %v21087_v25  ;;  %vm8251_vm3 = vcmp.gt.f32.partialorder %v8147_v44, 0.0  ;;  %v8285_v24 = vmul.f32 0.01, %v8147_v44  ;;  %9389 = vmatprep.mubr.bf16.mxu0 %v8735_v37  ;;  %v16971_v25 = vld [vmem:[%s23608_s7 + $0xe0] sm:$0xff]  }
 0x7ff   : > { %v8030_v13 = vpop.f32.mrf.mxu1  ;;  %v8149_v61 = vpop.f32.mrf.mxu0  ;;  %v8529_v32 = vunpack.c.h.b16 %v8345_v27  ;;  %v8585_v60 = vrot.slane %v8583_v18, 1  ;;  %v8588_v59 = vshll.u32 %v21163_v54, 16  ;;  %v21188_v41 = vpack.c.bf16 %v8321_v28, %v8321_v28 }
 0x800   : > { %v8150_v0 = vadd.f32 %v8149_v61, %v21071_v47  ;;  %vm8254_vm13 = vcmp.gt.f32.partialorder %v8158_v21, 0.0  ;;  %v8288_v36 = vmul.f32 0.01, %v8158_v21  ;;  %v8688_v47 = vshll.u32 %v21166_v53, 16  ;;  %15962 = vmatpush3.bf16.msra.mxu1 %v16970_v39 }
 0x801   : > { %v8032_v9 = vpop.f32.mrf.mxu1  ;;  %v16627_v42 = vpop.f32.mrf.mxu0  ;;  %v21182_v50 = vpack.c.b16 %v8530_v5, %v8529_v32  ;;  %v8586_v20 = vor.u32 %v8585_v60, %v8581_v4  ;;  %v8590_v56 = vrot.slane %v8588_v59, 1  ;;  %v8319_v62 = vsel %vm8251_vm3, %v8147_v44, %v8285_v24  ;;  %15963 = vmatprep.subr.bf16.mxu1 %v16971_v25  ;;  %v16974_v44 = vld [vmem:[%s23608_s7 + $0xd8] sm:$0xff]  }
 0x802   : > { %vm8252_vm1 = vcmp.gt.f32.partialorder %v8150_v0, 0.0  ;;  %v8286_v6 = vmul.f32 0.01, %v8150_v0  ;;  %v8171_v35 = vadd.f32 %v16627_v42, %v21101_v46  ;;  %v8322_v55 = vsel %vm8254_vm13, %v8158_v21, %v8288_v36  ;;  %v16973_v46 = vld [vmem:[%s23608_s7 + $0xa0] sm:$0xff]   ;;  %v16972_v36 = vld [vmem:[%s23608_s7 + $0x238] sm:$0xff]  }
 0x803   : > { %v21186_v8 = vpop.f32.mrf.mxu1  ;;  %v8162_v48 = vpop.f32.mrf.mxu0  ;;  %v8348_v58 = vpack.c.bf16 %v8322_v55, %v8321_v28  ;;  %v21195_v30 = vadd.f32 %v8030_v13, %v21055_v52  ;;  %v21200_v45 = vsel %vm2874_vm14, %v8586_v20, %v8590_v56  ;;  %v8671_v23 = vshll.u32 %v21140_v38, 16 }
 0x804   : > { %v8320_v10 = vsel %vm8252_vm1, %v8150_v0, %v8286_v6  ;;  %9251 = vmatprep.mubr.bf16.mxu1 %v21200_v45  ;;  %v8291_v33 = vmul.f32 0.01, %v8171_v35  ;;  %v8669_v22 = vshrl.u32 %v21140_v38, 16  ;;  %v8163_v52 = vadd.f32 %v8162_v48, %v21094_v34  ;;  %15964 = vmatpush3.bf16.msra.mxu1 %v16973_v46  ;;  %v16976_v34 = vld [vmem:[%s23608_s7 + $0x98] sm:$0xff]   ;;  %v16977_v48 = vld [vmem:[%s23608_s7 + $0xd0] sm:$0xff]  }
 0x805   : > { %v21197_v4 = vpack.c.bf16 %v8320_v10, %v8319_v62  ;;  %v8037_v2 = vpop.f32.mrf.mxu1  ;;  %v16628_v3 = vpop.f32.mrf.mxu0  ;;  %vm8257_vm4 = vcmp.gt.f32.partialorder %v8171_v35, 0.0  ;;  %9252 = vmatmul.mubr.bf16.gmra.mxu1 %v21125_v19  ;;  %v8673_v27 = vrot.slane %v8671_v23, 1  ;;  %v8736_v28 = vrot.slane %v21182_v50, 1  ;;  %15965 = vmatprep.subr.bf16.mxu1 %v16974_v44  ;;  %v16975_v44 = vld [vmem:[%s23608_s7 + $0x230] sm:$0xff]  }
 0x806   : > { %v8174_v5 = vadd.f32 %v16628_v3, %v21104_v11  ;;  %v8737_v21 = vrot.slane %v21166_v53, 1  ;;  %v21215_v61 = vunpack.c.h.b16 %v8348_v58  ;;  %v8289_v18 = vmul.f32 0.01, %v8163_v52 }
 0x807   : > { %v21213_v37 = vpop.f32.mrf.mxu1  ;;  %v8165_v13 = vpop.f32.mrf.mxu0  ;;  %v8674_v11 = vor.u32 %v8673_v27, %v8669_v22  ;;  %vm8255_vm6 = vcmp.gt.f32.partialorder %v8163_v52, 0.0  ;;  %v8325_v60 = vsel %vm8257_vm4, %v8171_v35, %v8291_v33  ;;  %v8683_v42 = vshll.u32 %v21182_v50, 16  ;;  %v16980_v33 = vld [vmem:[%s23608_s7 + $0xc8] sm:$0xff]  }
 0x808   : > { %vm8258_vm5 = vcmp.gt.f32.partialorder %v8174_v5, 0.0  ;;  %v8292_v39 = vmul.f32 0.01, %v8174_v5  ;;  %v8738_v32 = vsel %vm3211_vm15, %v8736_v28, %v8737_v21  ;;  %v8166_v24 = vadd.f32 %v8165_v13, %v21098_v16  ;;  %15966 = vmatpush3.bf16.msra.mxu1 %v16976_v34 }
 0x809   : > { %v8040_v0 = vpop.f32.mrf.mxu1  ;;  %v16631_v25 = vpop.f32.mrf.mxu0  ;;  %v8679_v6 = vsel %vm2874_vm14, %v8674_v11, %v21157_v7  ;;  %v8323_v35 = vsel %vm8255_vm6, %v8163_v52, %v8289_v18  ;;  %v8685_v62 = vrot.slane %v8683_v42, 1  ;;  %v16979_v7 = vld [vmem:[%s23608_s7 + $0x90] sm:$0xff]   ;;  %v8595_v28 = vshll.u32 %v21197_v4, 16  ;;  %15967 = vmatprep.subr.bf16.mxu1 %v16977_v48 }
 0x80a   : > { %v8326_v59 = vsel %vm8258_vm5, %v8174_v5, %v8292_v39  ;;  %v8187_v9 = vadd.f32 %v16631_v25, %v21118_v26  ;;  %vm8256_vm7 = vcmp.gt.f32.partialorder %v8166_v24, 0.0  ;;  %v8290_v16 = vmul.f32 0.01, %v8166_v24  ;;  %9390 = vmatmul.mubr.bf16.vlgmr.msra.gmra.mxu0 %v8679_v6  ;;  %v16978_v0 = vld [vmem:[%s23608_s7 + $0x228] sm:$0xff]  }
 0x80b   : > { %v21230_v55 = vpack.c.bf16 %v8326_v59, %v8325_v60  ;;  %v8043_v20 = vpop.f32.mrf.mxu1  ;;  %v8178_v56 = vpop.f32.mrf.mxu0  ;;  %v8681_v26 = vshrl.u32 %v21182_v50, 16  ;;  %9397 = vmatprep.mubr.bf16.mxu0 %v8738_v32  ;;  %16646 = vmatpush3.bf16.msra.mxu0 %v16972_v36  ;;  %v8690_v5 = vrot.slane %v8688_v47, 1  ;;  %v8600_v53 = vshll.u32 %v21188_v41, 16  ;;  %v16982_v25 = vld [vmem:[%s23608_s7 + $0x88] sm:$0xff]  }
 0x80c   : > { %vm8261_vm8 = vcmp.gt.f32.partialorder %v8187_v9, 0.0  ;;  %v8324_v58 = vsel %vm8256_vm7, %v8166_v24, %v8290_v16  ;;  %v8295_v10 = vmul.f32 0.01, %v8187_v9  ;;  %v21241_v46 = vadd.f32 %v8043_v20, %v21074_v1  ;;  %16647 = vmatprep.subr.bf16.mxu0 %v23966_v63  ;;  %15968 = vmatpush3.bf16.msra.mxu1 %v16979_v7 }
 0x80d   : > { %v8179_v23 = vadd.f32 %v8178_v56, %v21106_v17  ;;  %v8045_v2 = vpop.f32.mrf.mxu1  ;;  %v16632_v3 = vpop.f32.mrf.mxu0  ;;  %v8349_v22 = vpack.c.bf16 %v8324_v58, %v8323_v35  ;;  %v8686_v52 = vor.u32 %v8685_v62, %v8681_v26  ;;  %v8593_v1 = vshrl.u32 %v21197_v4, 16  ;;  %15969 = vmatprep.subr.bf16.mxu1 %v16980_v33 }
 0x80e   : > { %v8190_v27 = vadd.f32 %v16632_v3, %v21131_v49  ;;  %v21256_v39 = vpack.c.bf16 %v8324_v58, %v8324_v58  ;;  %v8329_v47 = vsel %vm8261_vm8, %v8187_v9, %v8295_v10  ;;  %v8597_v32 = vrot.slane %v8595_v28, 1 }
 0x80f   : > { %vm8259_vm9 = vcmp.gt.f32.partialorder %v8179_v23, 0.0  ;;  %v8293_v17 = vmul.f32 0.01, %v8179_v23  ;;  %v8046_v21 = vpop.f32.mrf.mxu1  ;;  %v8181_v13 = vpop.f32.mrf.mxu0  ;;  %v8536_v18 = vunpack.c.l.b16 %v8349_v22  ;;  %v8691_v34 = vsel %vm2874_vm14, %v8686_v52, %v8690_v5  ;;  %16648 = vmatpush3.bf16.msra.mxu0 %v16975_v44 }
 0x810   : > { %vm8262_vm10 = vcmp.gt.f32.partialorder %v8190_v27, 0.0  ;;  %v8296_v11 = vmul.f32 0.01, %v8190_v27  ;;  %v8602_v59 = vrot.slane %v8600_v53, 1  ;;  %v21272_v9 = vadd.f32 %v8046_v21, %v21081_v29  ;;  %16649 = vmatprep.subr.bf16.mxu0 %v23966_v63  ;;  %15970 = vmatpush3.bf16.msra.mxu1 %v16982_v25 }
 0x811   : > { %v8048_v24 = vpop.f32.mrf.mxu1  ;;  %v16635_v49 = vpop.f32.mrf.mxu0  ;;  %v21268_v36 = vpack.c.b16 %v8536_v18, %v21215_v61  ;;  %v8327_v60 = vsel %vm8259_vm9, %v8179_v23, %v8293_v17  ;;  %v8598_v6 = vor.u32 %v8597_v32, %v8593_v1  ;;  %v8182_v16 = vadd.f32 %v8181_v13, %v21108_v15  ;;  %v16983_v61 = vld [vmem:[%s23608_s7 + $0xc0] sm:$0xff]   ;;  %v16988_v23 = vld [vmem:[%s23608_s7 + $0x1f8] sm:$0xff]  }
 0x812   : > { %v8330_v42 = vsel %vm8262_vm10, %v8190_v27, %v8296_v11  ;;  %v8203_v20 = vadd.f32 %v16635_v49, %v21169_v51  ;;  %v21284_v35 = vadd.f32 %v21186_v8, %v21062_v40  ;;  %v21288_v29 = vadd.f32 %v21213_v37, %v21069_v57  ;;  %9398 = vmatmul.mubr.bf16.gmra.mxu0 %v8691_v34  ;;  %v16981_v40 = vld [vmem:[%s23608_s7 + $0x220] sm:$0xff]  }
 0x813   : > { %v21277_v56 = vpop.f32.mrf.mxu1  ;;  %v8194_v48 = vpop.f32.mrf.mxu0  ;;  %v8352_v26 = vpack.c.bf16 %v8330_v42, %v8329_v47  ;;  %v8700_v51 = vshll.u32 %v21256_v39, 16  ;;  %v21293_v62 = vsel %vm2874_vm14, %v8598_v6, %v8602_v59  ;;  %vm8260_vm12 = vcmp.gt.f32.partialorder %v8182_v16, 0.0  ;;  %16650 = vmatpush3.bf16.msra.mxu0 %v16978_v0  ;;  %v16985_v57 = vld [vmem:[%s23608_s7 + $0x80] sm:$0xff]   ;;  %15971 = vmatprep.subr.bf16.mxu1 %v16983_v61 }
 0x814   : > { %v8195_v15 = vadd.f32 %v8194_v48, %v21144_v43  ;;  %v8294_v7 = vmul.f32 0.01, %v8182_v16  ;;  %v21301_v43 = vpack.c.bf16 %v8327_v60, %v8327_v60  ;;  %v21303_v8 = vpack.c.bf16 %v8330_v42, %v8330_v42  ;;  %9259 = vmatprep.mubr.bf16.mxu1 %v21293_v62  ;;  %16651 = vmatprep.subr.bf16.mxu0 %v23966_v63 }
 0x815   : > { %v8053_v58 = vpop.f32.mrf.mxu1  ;;  %v16636_v10 = vpop.f32.mrf.mxu0  ;;  %vm8265_vm11 = vcmp.gt.f32.partialorder %v8203_v20, 0.0  ;;  %v8299_v37 = vmul.f32 0.01, %v8203_v20  ;;  %9260 = vmatmul.mubr.bf16.gmra.mxu1 %v21197_v4  ;;  %v8739_v33 = vrot.slane %v21268_v36, 1  ;;  %v8740_v1 = vrot.slane %v21256_v39, 1  ;;  %v16987_v39 = vld [vmem:[%s23608_s7 + $0x208] sm:$0xff]  }
 0x816   : > { %v8328_v2 = vsel %vm8260_vm12, %v8182_v16, %v8294_v7  ;;  %v8297_v3 = vmul.f32 0.01, %v8195_v15  ;;  %v8206_v44 = vadd.f32 %v16636_v10, %v21195_v30  ;;  %vm8263_vm3 = vcmp.gt.f32.partialorder %v8195_v15, 0.0  ;;  %v16984_v30 = vld [vmem:[%s23608_s7 + $0x218] sm:$0xff]   ;;  %15972 = vmatpush3.bf16.msra.mxu1 %v16985_v57 }
 0x817   : > { %v8054_v22 = vpop.f32.mrf.mxu1  ;;  %v8197_v52 = vpop.f32.mrf.mxu0  ;;  %v8351_v5 = vpack.c.bf16 %v8328_v2, %v8327_v60  ;;  %v8542_v27 = vunpack.c.l.b16 %v8352_v26  ;;  %v21316_v28 = vsel %vm8265_vm11, %v8203_v20, %v8299_v37  ;;  %16652 = vmatpush3.bf16.msra.mxu0 %v16981_v40  ;;  %v8741_v53 = vsel %vm3211_vm15, %v8739_v33, %v8740_v1  ;;  %16049 = vmatprep.subr.bf16.mxu1 %v16988_v23 }
 0x818   : > { %v8198_v17 = vadd.f32 %v8197_v52, %v21152_v31  ;;  %vm8266_vm13 = vcmp.gt.f32.partialorder %v8206_v44, 0.0  ;;  %v8300_v21 = vmul.f32 0.01, %v8206_v44  ;;  %16653 = vmatprep.subr.bf16.mxu0 %v23966_v63  ;;  %v8331_v31 = vsel %vm8263_vm3, %v8195_v15, %v8297_v3  ;;  %9405 = vmatprep.mubr.bf16.mxu0 %v8741_v53  ;;  %v16986_v15 = vld [vmem:[%s23608_s7 + $0x210] sm:$0xff]  }
 0x819   : > { %v8056_v13 = vpop.f32.mrf.mxu1  ;;  %v16639_v18 = vpop.f32.mrf.mxu0  ;;  %v8541_v34 = vunpack.c.h.b16 %v8351_v5  ;;  %v8607_v32 = vshll.u32 %v21230_v55, 16  ;;  %v8612_v24 = vshll.u32 %v21301_v43, 16  ;;  %v8605_v16 = vshrl.u32 %v21230_v55, 16 }
 0x81a   : > { %vm8264_vm1 = vcmp.gt.f32.partialorder %v8198_v17, 0.0  ;;  %v8298_v47 = vmul.f32 0.01, %v8198_v17  ;;  %v21324_v11 = vsel %vm8266_vm13, %v8206_v44, %v8300_v21  ;;  %v8219_v42 = vadd.f32 %v16639_v18, %v21241_v46 }
 0x81b   : > { %v8059_v49 = vpop.f32.mrf.mxu1  ;;  %v8210_v0 = vpop.f32.mrf.mxu0  ;;  %v21328_v25 = vpack.c.b16 %v8542_v27, %v8541_v34  ;;  %v8354_v60 = vpack.c.bf16 %v21324_v11, %v21316_v28  ;;  %v8609_v20 = vrot.slane %v8607_v32, 1  ;;  %v8614_v48 = vrot.slane %v8612_v24, 1  ;;  %16654 = vmatpush3.bf16.msra.mxu0 %v16984_v30 }
 0x81c   : > { %v8332_v59 = vsel %vm8264_vm1, %v8198_v17, %v8298_v47  ;;  %v21341_v7 = vpack.c.bf16 %v21316_v28, %v21316_v28  ;;  %v8052_v46 = vadd.f32 %v21277_v56, %v21091_v12  ;;  %v8693_v58 = vshrl.u32 %v21268_v36, 16  ;;  %16655 = vmatprep.subr.bf16.mxu0 %v23966_v63 }
 0x81d   : > { %v21333_v6 = vpack.c.bf16 %v8332_v59, %v8331_v31  ;;  %v8060_v61 = vpop.f32.mrf.mxu1  ;;  %v16640_v26 = vpop.f32.mrf.mxu0  ;;  %v8695_v10 = vshll.u32 %v21268_v36, 16  ;;  %v8610_v40 = vor.u32 %v8609_v20, %v8605_v16  ;;  %v8303_v57 = vmul.f32 0.01, %v8219_v42 }
 0x81e   : > { %v8211_v37 = vadd.f32 %v8210_v0, %v21284_v35  ;;  %v8222_v23 = vadd.f32 %v16640_v26, %v21272_v9  ;;  %vm8269_vm4 = vcmp.gt.f32.partialorder %v8219_v42, 0.0  ;;  %v8742_v33 = vrot.slane %v21328_v25, 1 }
 0x81f   : > { %v8061_v2 = vpop.f32.mrf.mxu1  ;;  %v8213_v3 = vpop.f32.mrf.mxu0  ;;  %v8697_v44 = vrot.slane %v8695_v10, 1  ;;  %v8743_v12 = vrot.slane %v21303_v8, 1  ;;  %v21353_v56 = vsel %vm2874_vm14, %v8610_v40, %v8614_v48  ;;  %v8702_v22 = vrot.slane %v8700_v51, 1  ;;  %16656 = vmatpush3.bf16.msra.mxu0 %v16986_v15 }
 0x820   : > { %v8301_v52 = vmul.f32 0.01, %v8211_v37  ;;  %vm8270_vm5 = vcmp.gt.f32.partialorder %v8222_v23, 0.0  ;;  %9267 = vmatprep.mubr.bf16.mxu1 %v21353_v56  ;;  %v8304_v1 = vmul.f32 0.01, %v8222_v23  ;;  %v8214_v27 = vadd.f32 %v8213_v3, %v21288_v29  ;;  %16657 = vmatprep.subr.bf16.mxu0 %v23966_v63 }
 0x821   : > { %v8062_v5 = vpop.f32.mrf.mxu1  ;;  %v16643_v35 = vpop.f32.mrf.mxu0  ;;  %v8698_v9 = vor.u32 %v8697_v44, %v8693_v58  ;;  %v8744_v17 = vsel %vm3211_vm15, %v8742_v33, %v8743_v12  ;;  %v8712_v51 = vshll.u32 %v21303_v8, 16  ;;  %v8337_v21 = vsel %vm8269_vm4, %v8219_v42, %v8303_v57  ;;  %9268 = vmatmul.mubr.bf16.gmra.mxu1 %v21230_v55  ;;  %v16989_v42 = vld [vmem:[%s23608_s7 + $0x200] sm:$0xff]  }
 0x822   : > { %vm8267_vm6 = vcmp.gt.f32.partialorder %v8211_v37, 0.0  ;;  %v8707_v13 = vshll.u32 %v21328_v25, 16  ;;  %v8338_v29 = vsel %vm8270_vm5, %v8222_v23, %v8304_v1  ;;  %vm8268_vm7 = vcmp.gt.f32.partialorder %v8214_v27, 0.0 }
 0x823   : > { %v8226_v18 = vpop.f32.mrf.mxu0  ;;  %v8703_v30 = vsel %vm2874_vm14, %v8698_v9, %v8702_v22  ;;  %v8302_v34 = vmul.f32 0.01, %v8214_v27  ;;  %v21370_v53 = vpack.c.bf16 %v8338_v29, %v8337_v21  ;;  %v8705_v47 = vshrl.u32 %v21328_v25, 16  ;;  %16658 = vmatpush3.bf16.msra.mxu0 %v16987_v39 }
 0x824   : > { %9406 = vmatmul.mubr.bf16.gmra.mxu0 %v8703_v30  ;;  %v8709_v8 = vrot.slane %v8707_v13, 1  ;;  %v8227_v31 = vadd.f32 %v8226_v18, %v8052_v46  ;;  %v8335_v24 = vsel %vm8267_vm6, %v8211_v37, %v8301_v52  ;;  %v8619_v0 = vshll.u32 %v21333_v6, 16  ;;  %16659 = vmatprep.subr.bf16.mxu0 %v23966_v63  ;;  %v16990_v30 = vld [vmem:[%s23608_s7 + $0x1b8] sm:$0xff]  }
 0x825   : > { %v16644_v32 = vpop.f32.mrf.mxu0  ;;  %9413 = vmatprep.mubr.bf16.mxu0 %v8744_v17  ;;  %v8336_v49 = vsel %vm8268_vm7, %v8214_v27, %v8302_v34  ;;  %v8624_v59 = vshll.u32 %v21341_v7, 16  ;;  %v8714_v48 = vrot.slane %v8712_v51, 1  ;;  %v8617_v46 = vshrl.u32 %v21333_v6, 16  ;;  %v16991_v34 = vld [vmem:[%s23608_s7 + $0x1f0] sm:$0xff]  }
 0x826   : > { %v8355_v16 = vpack.c.bf16 %v8336_v49, %v8335_v24  ;;  %v8710_v20 = vor.u32 %v8709_v8, %v8705_v47  ;;  %vm8271_vm8 = vcmp.gt.f32.partialorder %v8227_v31, 0.0  ;;  %v15723_v26 = vpack.c.bf16 %v8336_v49, %v8336_v49  ;;  %v16992_v8 = vld [vmem:[%s23608_s7 + $0x1b0] sm:$0xff]   ;;  %v16993_v32 = vld [vmem:[%s23608_s7 + $0x1e8] sm:$0xff]   ;;  %v16995_v49 = vld [vmem:[%s23608_s7 + $0x1e0] sm:$0xff]  }
 0x827   : > { %v8229_v61 = vpop.f32.mrf.mxu0  ;;  %v8305_v15 = vmul.f32 0.01, %v8227_v31  ;;  %v8621_v58 = vrot.slane %v8619_v0, 1  ;;  %v8547_v10 = vunpack.c.h.b16 %v8354_v60  ;;  %v8626_v2 = vrot.slane %v8624_v59, 1  ;;  %16660 = vmatpush3.bf16.msra.mxu0 %v16989_v42  ;;  %v16997_v59 = vld [vmem:[%s23608_s7 + $0x1d8] sm:$0xff]  }
 0x828   : > { %v8548_v40 = vunpack.c.l.b16 %v8355_v16  ;;  %v8715_v57 = vsel %vm2874_vm14, %v8710_v20, %v8714_v48  ;;  %v8724_v33 = vshll.u32 %v15723_v26, 16  ;;  %v8746_v11 = vrot.slane %v15723_v26, 1  ;;  %v16998_v16 = vld [vmem:[%s23608_s7 + $0x198] sm:$0xff]   ;;  %v16999_v20 = vld [vmem:[%s23608_s7 + $0x1d0] sm:$0xff]   ;;  %v17001_v61 = vld [vmem:[%s23608_s7 + $0x1c8] sm:$0xff]  }
 0x829   : > { %v8339_v37 = vsel %vm8271_vm8, %v8227_v31, %v8305_v15  ;;  %v8622_v23 = vor.u32 %v8621_v58, %v8617_v46  ;;  %v8769_v52 = vrot.slane %v21370_v53, 1  ;;  %v8759_v1 = vshll.u32 %v21370_v53, 16  ;;  %v17002_v15 = vld [vmem:[%s23608_s7 + $0x188] sm:$0xff]   ;;  %v17003_v46 = vld [vmem:[%s23608_s7 + $0x1c0] sm:$0xff]  }
 0x82a   : > { %v21384_v3 = vpack.c.b16 %v8548_v40, %v8547_v10  ;;  %v15724_v44 = vpack.c.bf16 %v8339_v37, %v8339_v37  ;;  %v8726_v51 = vrot.slane %v8724_v33, 1  ;;  %v8757_v21 = vshrl.u32 %v21370_v53, 16 }
 0x82b   : > { %v21387_v12 = vsel %vm2874_vm14, %v8622_v23, %v8626_v2  ;;  %v8761_v13 = vrot.slane %v8759_v1, 1  ;;  %v8637_v31 = vrot.slane %v21163_v54, 1  ;;  %v8636_v24 = vrot.slane %v21125_v19, 1  ;;  %v16996_v54 = vld [vmem:[%s23608_s7 + $0x1a0] sm:$0xff]  }
 0x82c   : > { %9414 = vmatmul.mubr.bf16.gmra.mxu0 %v8715_v57  ;;  %v8770_v22 = vrot.slane %v15724_v44, 1  ;;  %9275 = vmatprep.mubr.bf16.mxu1 %v21387_v12  ;;  %v8745_v28 = vrot.slane %v21384_v3, 1  ;;  %v8719_v60 = vshll.u32 %v21384_v3, 16  ;;  %v8717_v35 = vshrl.u32 %v21384_v3, 16 }
 0x82d   : > { %9276 = vmatmul.mubr.bf16.gmra.mxu1 %v21333_v6  ;;  %v8764_v27 = vshll.u32 %v15724_v44, 16  ;;  %v8762_v29 = vor.u32 %v8761_v13, %v8757_v21  ;;  %v8639_v0 = vrot.slane %v21197_v4, 1  ;;  %v8640_v42 = vrot.slane %v21188_v41, 1  ;;  %v17000_v41 = vld [vmem:[%s23608_s7 + $0x190] sm:$0xff]   ;;  %v17032_v21 = vld [vmem:[%s23610_s9 + $0x164] ss:$8 sps:$4 sm:$0xff]  }
 0x82e   : > { %9316 = vmatprep.mubr.bf16.mxu1 %v21140_v38  ;;  %v8747_v5 = vsel %vm3211_vm15, %v8745_v28, %v8746_v11  ;;  %v8721_v9 = vrot.slane %v8719_v60, 1  ;;  %v21399_v17 = vsel %vm3211_vm15, %v8769_v52, %v8770_v22  ;;  %v8643_v48 = vrot.slane %v21301_v43, 1  ;;  %v17004_v43 = vld [vmem:[%s23608_s7 + $0x180] sm:$0xff]  }
 0x82f   : > { %9421 = vmatprep.mubr.bf16.mxu0 %v8747_v5  ;;  %v8766_v18 = vrot.slane %v8764_v27, 1  ;;  %v8642_v26 = vrot.slane %v21230_v55, 1  ;;  %v8645_v58 = vrot.slane %v21333_v6, 1  ;;  %v8646_v10 = vrot.slane %v21341_v7, 1  ;;  %v17026_v27 = vld [vmem:[%s23610_s9 + $0x174] ss:$8 sps:$4 sm:$0xff]  }
 0x830   : > { %v8722_v39 = vor.u32 %v8721_v9, %v8717_v35  ;;  %10981 = vmatprep.subr.bf16.mxu0 %v17026_v27 }
 0x831   : > { %v21410_v47 = vsel %vm2874_vm14, %v8762_v29, %v8766_v18  ;;  %v8647_v40 = vsel %vm3211_vm15, %v8645_v58, %v8646_v10  ;;  %v17038_v29 = vld [vmem:[%s23610_s9 + $0x154] ss:$8 sps:$4 sm:$0xff]  }
 0x832   : > { %v8727_v38 = vsel %vm2874_vm14, %v8722_v39, %v8726_v51  ;;  %v17030_v51 = vld [vmem:[%s23610_s9 + $0x160] ss:$8 sps:$4 sm:$0xff]  }
 0x834   : > { %9422 = vmatmul.mubr.bf16.gmra.mxu0 %v8727_v38 }
 0x835   : > { %9317 = vmatmul.mubr.bf16.vlgmr.msra.gmra.mxu1 %v21122_v14  ;;  %16661 = vmatprep.mubr.msk.bf16.mxu0 %vm17677_vm2, %v23966_v63  ;;  %v16994_v14 = vld [vmem:[%s23608_s7 + $0x1a8] sm:$0xff]  }
 0x836   : > { %9324 = vmatprep.mubr.bf16.mxu1 %v21182_v50  ;;  %16050 = vmatpush3.bf16.msra.mxu1 %v16990_v30  ;;  %v8638_v50 = vsel %vm3211_vm15, %v8636_v24, %v8637_v31  ;;  %v17036_v30 = vld [vmem:[%s23610_s9 + $0x150] ss:$8 sps:$4 sm:$0xff]   ;;  %v17042_v24 = vld [vmem:[%s23610_s9 + $0x140] ss:$8 sps:$4 sm:$0xff]  }
 0x837   : > { %16051 = vmatprep.subr.bf16.mxu1 %v16991_v34 }
 0x83a   : > { %16052 = vmatpush3.bf16.msra.mxu1 %v16992_v8 }
 0x83b   : > { %16053 = vmatprep.subr.bf16.mxu1 %v16993_v32 }
 0x83c   : > { %16662 = vmatmul.mubr.bf16.vlgmr.msra.gmra.mxu0 %v8638_v50 }
 0x83d   : > { %9325 = vmatmul.mubr.bf16.gmra.mxu1 %v8638_v50  ;;  %16665 = vmatprep.mubr.msk.bf16.mxu0 %vm17677_vm2, %v23966_v63 }
 0x83e   : > { %9332 = vmatprep.mubr.bf16.mxu1 %v21268_v36  ;;  %16054 = vmatpush3.bf16.msra.mxu1 %v16994_v14  ;;  %v8641_v36 = vsel %vm3211_vm15, %v8639_v0, %v8640_v42  ;;  %v17044_v14 = vld [vmem:[%s23610_s9 + $0x144] ss:$8 sps:$4 sm:$0xff]   ;;  %v17050_v42 = vld [vmem:[%s23610_s9 + $0x134] ss:$8 sps:$4 sm:$0xff]  }
 0x83f   : > { %16055 = vmatprep.subr.bf16.mxu1 %v16995_v49 }
 0x842   : > { %16056 = vmatpush3.bf16.msra.mxu1 %v16996_v54 }
 0x843   : > { %16057 = vmatprep.subr.bf16.mxu1 %v16997_v59  ;;  %v17048_v59 = vld [vmem:[%s23610_s9 + $0x130] ss:$8 sps:$4 sm:$0xff]  }
 0x844   : > { %16666 = vmatmul.mubr.bf16.gmra.mxu0 %v8641_v36 }
 0x845   : > { %9333 = vmatmul.mubr.bf16.gmra.mxu1 %v8641_v36  ;;  %16669 = vmatprep.mubr.msk.bf16.mxu0 %vm17677_vm2, %v23966_v63 }
 0x846   : > { %9340 = vmatprep.mubr.bf16.mxu1 %v21328_v25  ;;  %16058 = vmatpush3.bf16.msra.mxu1 %v16998_v16  ;;  %v8644_v25 = vsel %vm3211_vm15, %v8642_v26, %v8643_v48  ;;  %v17054_v26 = vld [vmem:[%s23610_s9 + $0x120] ss:$8 sps:$4 sm:$0xff]  }
 0x847   : > { %16059 = vmatprep.subr.bf16.mxu1 %v16999_v20 }
 0x84a   : > { %16060 = vmatpush3.bf16.msra.mxu1 %v17000_v41 }
 0x84b   : > { %16061 = vmatprep.subr.bf16.mxu1 %v17001_v61 }
 0x84c   : > { %16670 = vmatmul.mubr.bf16.gmra.mxu0 %v8644_v25 }
 0x84d   : > { %9341 = vmatmul.mubr.bf16.gmra.mxu1 %v8644_v25  ;;  %16673 = vmatprep.mubr.msk.bf16.mxu0 %vm17677_vm2, %v23966_v63 }
 0x84e   : > { %9348 = vmatprep.mubr.bf16.mxu1 %v21384_v3  ;;  %16062 = vmatpush3.bf16.msra.mxu1 %v17002_v15  ;;  %v17056_v15 = vld [vmem:[%s23610_s9 + $0x124] ss:$8 sps:$4 sm:$0xff]  }
 0x84f   : > { %16063 = vmatprep.subr.bf16.mxu1 %v17003_v46 }
 0x852   : > { %16064 = vmatpush3.bf16.msra.mxu1 %v17004_v43 }
 0x854   : > { %16674 = vmatmul.mubr.bf16.gmra.mxu0 %v8647_v40 }
 0x855   : > { %9349 = vmatmul.mubr.bf16.gmra.mxu1 %v8647_v40  ;;  %16677 = vmatprep.mubr.msk.bf16.mxu0 %vm17677_vm2, %v23966_v63  ;;  %v17005_v63 = vld [vmem:[%s23615_s14] sm:$0xff]   ;;  %vm9634_vm2 = vcmask 130048   ;;  %v17060_v40 = vld [vmem:[%s23610_s9 + $0x110] ss:$8 sps:$4 sm:$0xff]  }
 0x856   : > { %9462 = vmatprep.mubr.bf16.mxu1 %v21200_v45 }
 0x85c   : > { %16678 = vmatmul.mubr.bf16.gmra.mxu0 %v21399_v17  ;;  %v17024_v17 = vld [vmem:[%s23610_s9 + $0x170] ss:$8 sps:$4 sm:$0xff]  }
 0x85d   : > { %9463 = vmatmul.mubr.bf16.vlgmr.msra.gmra.mxu1 %v21125_v19  ;;  %10982 = vmatpush1.bf16.msra.mxu0 %v17024_v17 }
 0x85e   : > { %9470 = vmatprep.mubr.bf16.mxu1 %v21293_v62  ;;  %10983 = vmatprep.subr.bf16.mxu0 %v17032_v21  ;;  %v17072_v21 = vld [vmem:[%s23610_s9 + $0x1f0] ss:$8 sps:$4 sm:$0xff]  }
 0x861   : > { %10984 = vmatpush1.bf16.msra.mxu0 %v17030_v51 }
 0x862   : > { %10985 = vmatprep.subr.bf16.mxu0 %v17038_v29 }
 0x865   : > { %9471 = vmatmul.mubr.bf16.gmra.mxu1 %v21197_v4  ;;  %10986 = vmatpush1.bf16.msra.mxu0 %v17036_v30 }
 0x866   : > { %9478 = vmatprep.mubr.bf16.mxu1 %v21353_v56  ;;  %10987 = vmatprep.subr.bf16.mxu0 %v17044_v14 }
 0x869   : > { %10988 = vmatpush1.bf16.msra.mxu0 %v17042_v24 }
 0x86a   : > { %10989 = vmatprep.subr.bf16.mxu0 %v17050_v42 }
 0x86d   : > { %9479 = vmatmul.mubr.bf16.gmra.mxu1 %v21230_v55  ;;  %10990 = vmatpush1.bf16.msra.mxu0 %v17048_v59 }
 0x86e   : > { %9486 = vmatprep.mubr.bf16.mxu1 %v21387_v12  ;;  %10991 = vmatprep.subr.bf16.mxu0 %v17056_v15 }
 0x871   : > { %10992 = vmatpush1.bf16.msra.mxu0 %v17054_v26 }
 0x875   : > { %9487 = vmatmul.mubr.bf16.gmra.mxu1 %v21333_v6 }
 0x876   : > { %9494 = vmatprep.mubr.bf16.mxu1 %v21410_v47 }
 0x87d   : > { %9495 = vmatmul.mubr.bf16.gmra.mxu1 %v21370_v53 }
 0x87e   : > { %16683 = vmatprep.mubr.msk.bf16.mxu1 %vm9634_vm2, %v17005_v63  ;;  %v17062_v63 = vld [vmem:[%s23610_s9 + $0x114] ss:$8 sps:$4 sm:$0xff]  }
 0x87f   : > { %10993 = vmatprep.subr.bf16.mxu0 %v17062_v63 }
 0x880   : > { %10994 = vmatpush1.bf16.msra.mxu0 %v17060_v40 }
 0x8b7   : > { %v15927_v19 = vpop.f32.mrf.mxu1 }
 0x8b9   : > { %v15928_v4 = vpop.f32.mrf.mxu1 }
 0x8ba   : > { %v21493_v45 = vadd.f32 %v15928_v4, %v15927_v19  ;;  %v21584_v19 = vld [vmem:[%s23609_s8] ss:$0 sm:$0xff] }
 0x8bb   : > { %v21495_v55 = vpop.f32.mrf.mxu1 }
 0x8bd   : > { %v21497_v62 = vpop.f32.mrf.mxu1 }
 0x8c5   : > { %v15933_v6 = vpop.f32.mrf.mxu1 }
 0x8c7   : > { %v15934_v7 = vpop.f32.mrf.mxu1 }
 0x8c8   : > { %v21499_v56 = vadd.f32 %v15934_v7, %v15933_v6 }
 0x8c9   : > { %v21503_v2 = vpop.f32.mrf.mxu1 }
 0x8ca   : > { %v16019_v53 = vpop.f32.mrf.mxu0 }
 0x8cb   : > { %v21507_v12 = vpop.f32.mrf.mxu1 }
 0x8cc   : > { %v16020_v57 = vpop.f32.mrf.mxu0 }
 0x8cd   : > { %v21501_v37 = vadd.f32 %v16020_v57, %v16019_v53  ;;  %v9246_v57 = vadd.f32 %v21493_v45, %v21584_v19 }
 0x8ce   : > { %v16022_v23 = vpop.f32.mrf.mxu0 }
 0x8d0   : > { %v16023_v3 = vpop.f32.mrf.mxu0 }
 0x8d1   : > { %v21505_v44 = vadd.f32 %v16023_v3, %v16022_v23  ;;  %v15932_v23 = vadd.f32 %v21497_v62, %v21495_v55 }
 0x8d2   : > { %v16025_v33 = vpop.f32.mrf.mxu0 }
 0x8d3   : > { %v9249_v45 = vadd.f32 %v15932_v23, %v21584_v19 }
 0x8d4   : > { %v16026_v22 = vpop.f32.mrf.mxu0 }
 0x8d5   : > { %v21509_v28 = vadd.f32 %v16026_v22, %v16025_v33  ;;  %v15939_v11 = vpop.f32.mrf.mxu1  ;;  %v17066_v22 = vld [vmem:[%s23610_s9 + $0x100] ss:$8 sps:$4 sm:$0xff]  }
 0x8d6   : > { %v16028_v60 = vpop.f32.mrf.mxu0 }
 0x8d7   : > { %v15940_v52 = vpop.f32.mrf.mxu1 }
 0x8d8   : > { %v16029_v5 = vpop.f32.mrf.mxu0  ;;  %v21511_v35 = vadd.f32 %v15940_v52, %v15939_v11  ;;  %v17068_v11 = vld [vmem:[%s23610_s9 + $0x104] ss:$8 sps:$4 sm:$0xff]  }
 0x8d9   : > { %v21513_v9 = vadd.f32 %v16029_v5, %v16028_v60  ;;  %v21515_v1 = vpop.f32.mrf.mxu1  ;;  %10995 = vmatprep.subr.bf16.mxu0 %v17068_v11 }
 0x8da   : > { %10996 = vmatpush1.bf16.msra.mxu0 %v17066_v22 }
 0x8db   : > { %v21523_v39 = vpop.f32.mrf.mxu1 }
 0x8e1   : > { %v15945_v13 = vpop.f32.mrf.mxu1 }
 0x8e3   : > { %v15946_v38 = vpop.f32.mrf.mxu1 }
 0x8e4   : > { %v16031_v18 = vpop.f32.mrf.mxu0  ;;  %v21537_v34 = vadd.f32 %v15946_v38, %v15945_v13  ;;  %v17074_v13 = vld [vmem:[%s23610_s9 + $0x1f4] ss:$8 sps:$4 sm:$0xff]  }
 0x8e5   : > { %v21541_v31 = vpop.f32.mrf.mxu1  ;;  %10997 = vmatprep.subr.bf16.mxu0 %v17074_v13 }
 0x8e6   : > { %v16032_v47 = vpop.f32.mrf.mxu0  ;;  %10998 = vmatpush2.bf16.msra.mxu0 %v17072_v21 }
 0x8e7   : > { %v21539_v8 = vadd.f32 %v16032_v47, %v16031_v18  ;;  %v21549_v49 = vpop.f32.mrf.mxu1  ;;  %v9254_v47 = vadd.f32 %v21499_v56, %v21584_v19 }
 0x8e8   : > { %v16034_v32 = vpop.f32.mrf.mxu0 }
 0x8ea   : > { %v16035_v50 = vpop.f32.mrf.mxu0 }
 0x8eb   : > { %v21551_v54 = vadd.f32 %v16035_v50, %v16034_v32  ;;  %v17078_v50 = vld [vmem:[%s23610_s9 + $0x1e0] ss:$8 sps:$4 sm:$0xff]  }
 0x8ec   : > { %v16037_v0 = vpop.f32.mrf.mxu0 }
 0x8ed   : > { %v15951_v16 = vpop.f32.mrf.mxu1 }
 0x8ee   : > { %v16038_v36 = vpop.f32.mrf.mxu0 }
 0x8ef   : > { %v21559_v20 = vadd.f32 %v16038_v36, %v16037_v0  ;;  %v15952_v41 = vpop.f32.mrf.mxu1  ;;  %v17080_v0 = vld [vmem:[%s23610_s9 + $0x1e4] ss:$8 sps:$4 sm:$0xff]  }
 0x8f0   : > { %v16040_v48 = vpop.f32.mrf.mxu0  ;;  %v21561_v61 = vadd.f32 %v15952_v41, %v15951_v16  ;;  %10999 = vmatprep.subr.bf16.mxu0 %v17080_v0 }
 0x8f1   : > { %v21569_v25 = vpop.f32.mrf.mxu1  ;;  %11000 = vmatpush2.bf16.msra.mxu0 %v17078_v50 }
 0x8f2   : > { %v16041_v46 = vpop.f32.mrf.mxu0 }
 0x8f3   : > { %v21571_v43 = vadd.f32 %v16041_v46, %v16040_v48  ;;  %v21573_v58 = vpop.f32.mrf.mxu1  ;;  %v9262_v46 = vadd.f32 %v21511_v35, %v21584_v19 }
 0x8f4   : > { %v16043_v10 = vpop.f32.mrf.mxu0 }
 0x8f5   : > { %v15973_v4 = vpop.f32.mrf.mxu1 }
 0x8f6   : > { %v16044_v6 = vpop.f32.mrf.mxu0 }
 0x8f7   : > { %v15974_v7 = vpop.f32.mrf.mxu1  ;;  %v21586_v53 = vadd.f32 %v16044_v6, %v16043_v10  ;;  %v15944_v10 = vadd.f32 %v21523_v39, %v21515_v1 }
 0x8f8   : > { %v15975_v3 = vadd.f32 %v15974_v7, %v15973_v4  ;;  %v16046_v33 = vpop.f32.mrf.mxu0 }
 0x8f9   : > { %v15976_v60 = vpop.f32.mrf.mxu1  ;;  %v9265_v23 = vadd.f32 %v15944_v10, %v21584_v19 }
 0x8fa   : > { %v9319_v52 = vadd.f32 %v15975_v3, %v9246_v57  ;;  %v16047_v5 = vpop.f32.mrf.mxu0 }
 0x8fb   : > { %v15977_v17 = vpop.f32.mrf.mxu1  ;;  %v21598_v27 = vadd.f32 %v16047_v5, %v16046_v33 }
 0x8fc   : > { %v15978_v55 = vadd.f32 %v15977_v17, %v15976_v60  ;;  %v21601_v62 = vpop.f32.mrf.mxu0  ;;  %v21604_v51 = vadd.f32 %v21501_v37, %v9319_v52  ;;  %v15938_v37 = vadd.f32 %v21507_v12, %v21503_v2  ;;  %v15950_v60 = vadd.f32 %v21549_v49, %v21541_v31 }
 0x8fd   : > { %v15979_v18 = vpop.f32.mrf.mxu1 }
 0x8fe   : > { %v9322_v38 = vadd.f32 %v15978_v55, %v9249_v45  ;;  %v16663_v30 = vpop.f32.mrf.mxu0  ;;  %v9257_v2 = vadd.f32 %v15938_v37, %v21584_v19  ;;  %v9273_v13 = vadd.f32 %v15950_v60, %v21584_v19 }
 0x8ff   : > { %v15980_v29 = vpop.f32.mrf.mxu1 }
 0x900   : > { %v15981_v32 = vadd.f32 %v15980_v29, %v15979_v18  ;;  %v21616_v24 = vpop.f32.mrf.mxu0  ;;  %v21619_v14 = vadd.f32 %v21505_v44, %v9322_v38 }
 0x901   : > { %v15982_v59 = vpop.f32.mrf.mxu1 }
 0x902   : > { %v9327_v42 = vadd.f32 %v15981_v32, %v9254_v47  ;;  %v16664_v56 = vpop.f32.mrf.mxu0  ;;  %v15956_v47 = vadd.f32 %v21573_v58, %v21569_v25 }
 0x903   : > { %v15983_v16 = vpop.f32.mrf.mxu1 }
 0x904   : > { %v15984_v12 = vadd.f32 %v15983_v16, %v15982_v59  ;;  %v21628_v36 = vpop.f32.mrf.mxu0  ;;  %v21631_v44 = vadd.f32 %v21509_v28, %v9327_v42  ;;  %v9281_v56 = vadd.f32 %v15956_v47, %v21584_v19 }
 0x905   : > { %v15985_v41 = vpop.f32.mrf.mxu1 }
 0x906   : > { %v9330_v48 = vadd.f32 %v15984_v12, %v9257_v2  ;;  %v16667_v26 = vpop.f32.mrf.mxu0 }
 0x907   : > { %v15986_v15 = vpop.f32.mrf.mxu1 }
 0x908   : > { %v15987_v40 = vadd.f32 %v15986_v15, %v15985_v41  ;;  %v21637_v63 = vpop.f32.mrf.mxu0  ;;  %v21640_v4 = vadd.f32 %v21513_v9, %v9330_v48  ;;  %v9270_v9 = vadd.f32 %v21537_v34, %v21584_v19 }
 0x909   : > { %v15988_v6 = vpop.f32.mrf.mxu1 }
 0x90a   : > { %v9335_v7 = vadd.f32 %v15987_v40, %v9262_v46  ;;  %v16668_v28 = vpop.f32.mrf.mxu0 }
 0x90b   : > { %v15989_v57 = vpop.f32.mrf.mxu1 }
 0x90c   : > { %v15990_v3 = vadd.f32 %v15989_v57, %v15988_v6  ;;  %v21643_v33 = vpop.f32.mrf.mxu0  ;;  %v21646_v35 = vadd.f32 %v21539_v8, %v9335_v7 }
 0x90d   : > { %v15991_v22 = vpop.f32.mrf.mxu1 }
 0x90e   : > { %v9338_v1 = vadd.f32 %v15990_v3, %v9265_v23  ;;  %v16671_v39 = vpop.f32.mrf.mxu0 }
 0x90f   : > { %v15992_v11 = vpop.f32.mrf.mxu1 }
 0x910   : > { %v15993_v52 = vadd.f32 %v15992_v11, %v15991_v22  ;;  %v21652_v5 = vpop.f32.mrf.mxu0  ;;  %v21655_v17 = vadd.f32 %v21551_v54, %v9338_v1  ;;  %v9278_v54 = vadd.f32 %v21561_v61, %v21584_v19 }
 0x911   : > { %v15994_v45 = vpop.f32.mrf.mxu1 }
 0x912   : > { %v9343_v55 = vadd.f32 %v15993_v52, %v9270_v9  ;;  %v16672_v8 = vpop.f32.mrf.mxu0 }
 0x913   : > { %v15995_v21 = vpop.f32.mrf.mxu1 }
 0x914   : > { %v15996_v18 = vadd.f32 %v15995_v21, %v15994_v45  ;;  %v21658_v38 = vpop.f32.mrf.mxu0  ;;  %v21661_v34 = vadd.f32 %v21559_v20, %v9343_v55 }
 0x915   : > { %v15997_v30 = vpop.f32.mrf.mxu1 }
 0x916   : > { %v9346_v31 = vadd.f32 %v15996_v18, %v9273_v13  ;;  %v16675_v49 = vpop.f32.mrf.mxu0 }
 0x917   : > { %v15998_v29 = vpop.f32.mrf.mxu1 }
 0x918   : > { %v15999_v37 = vadd.f32 %v15998_v29, %v15997_v30  ;;  %v21667_v32 = vpop.f32.mrf.mxu0  ;;  %v21670_v50 = vadd.f32 %v21571_v43, %v9346_v31 }
 0x919   : > { %v16000_v0 = vpop.f32.mrf.mxu1 }
 0x91a   : > { %v9351_v59 = vadd.f32 %v15999_v37, %v9278_v54  ;;  %v16676_v20 = vpop.f32.mrf.mxu0 }
 0x91b   : > { %v16001_v42 = vpop.f32.mrf.mxu1 }
 0x91c   : > { %v16002_v16 = vadd.f32 %v16001_v42, %v16000_v0  ;;  %v21673_v2 = vpop.f32.mrf.mxu0  ;;  %v21676_v61 = vadd.f32 %v21586_v53, %v9351_v59 }
 0x91d   : > { %v16065_v12 = vpop.f32.mrf.mxu1 }
 0x91e   : > { %v9354_v25 = vadd.f32 %v16002_v16, %v9281_v56  ;;  %v16679_v58 = vpop.f32.mrf.mxu0 }
 0x91f   : > { %v16066_v41 = vpop.f32.mrf.mxu1 }
 0x920   : > { %v16067_v48 = vadd.f32 %v16066_v41, %v16065_v12  ;;  %v21678_v26 = vpop.f32.mrf.mxu0  ;;  %v21681_v43 = vadd.f32 %v21598_v27, %v9354_v25 }
 0x921   : > { %v16068_v15 = vpop.f32.mrf.mxu1 }
 0x922   : > { %v9465_v46 = vadd.f32 %v16067_v48, %v21604_v51  ;;  %v16680_v19 = vpop.f32.mrf.mxu0 }
 0x923   : > { %v16069_v10 = vpop.f32.mrf.mxu1 }
 0x924   : > { %v9538_v40 = vadd.f32 %v21601_v62, %v9465_v46  ;;  %v16070_v6 = vadd.f32 %v16069_v10, %v16068_v15 }
 0x925   : > { %v16071_v53 = vpop.f32.mrf.mxu1 }
 0x926   : > { %v9468_v7 = vadd.f32 %v16070_v6, %v21619_v14  ;;  %v9586_v57 = vmul.f32 0.01, %v9538_v40  ;;  %vm9576_vm9 = vcmp.gt.f32.partialorder %v9538_v40, 0.0 }
 0x927   : > { %v16072_v28 = vpop.f32.mrf.mxu1 }
 0x928   : > { %v9541_v23 = vadd.f32 %v21616_v24, %v9468_v7  ;;  %v16073_v3 = vadd.f32 %v16072_v28, %v16071_v53  ;;  %v9596_v62 = vsel %vm9576_vm9, %v9538_v40, %v9586_v57  ;;  %v17006_v24 = vld [vmem:[%s23615_s14 + $0x8] ss:$0 sps:$4 sm:$0xff]  }
 0x929   : > { %v16074_v22 = vpop.f32.mrf.mxu1 }
 0x92a   : > { %v9587_v27 = vmul.f32 0.01, %v9541_v23  ;;  %v9473_v1 = vadd.f32 %v16073_v3, %v21631_v44  ;;  %vm9577_vm10 = vcmp.gt.f32.partialorder %v9541_v23, 0.0 }
 0x92b   : > { %v16075_v51 = vpop.f32.mrf.mxu1 }
 0x92c   : > { %v9546_v39 = vadd.f32 %v21628_v36, %v9473_v1  ;;  %v16076_v11 = vadd.f32 %v16075_v51, %v16074_v22  ;;  %v9597_v9 = vsel %vm9577_vm10, %v9541_v23, %v9587_v27  ;;  %v17007_v36 = vld [vmem:[%s23615_s14 + $0xc] sm:$0xff]  }
 0x92d   : > { %v16077_v60 = vpop.f32.mrf.mxu1  ;;  %v9606_v52 = vpack.c.bf16 %v9597_v9, %v9596_v62  ;;  %v17012_v27 = vld [vmem:[%s23615_s14 + $0x2c] ss:$0 sps:$4 sm:$0xff]   ;;  %v17017_v62 = vld [vmem:[%s23610_s9 + $0x74] ss:$8 sps:$4 sm:$0xff]   ;;  %v17015_v9 = vld [vmem:[%s23610_s9 + $0x70] ss:$8 sps:$4 sm:$0xff]  }
 0x92e   : > { %v9476_v14 = vadd.f32 %v16076_v11, %v21640_v4  ;;  %v9588_v55 = vmul.f32 0.01, %v9546_v39  ;;  %vm9578_vm12 = vcmp.gt.f32.partialorder %v9546_v39, 0.0 }
 0x92f   : > { %v16078_v45 = vpop.f32.mrf.mxu1  ;;  %16681 = vmatprep.subr.bf16.mxu1 %v9606_v52 }
 0x930   : > { %v9549_v44 = vadd.f32 %v21637_v63, %v9476_v14  ;;  %v16079_v8 = vadd.f32 %v16078_v45, %v16077_v60  ;;  %16682 = vmatpush3.bf16.msra.mxu1 %v9606_v52  ;;  %v9598_v49 = vsel %vm9578_vm12, %v9546_v39, %v9588_v55  ;;  %v17020_v60 = vld [vmem:[%s23610_s9 + $0x64] ss:$8 sps:$4 sm:$0xff]   ;;  %v17018_v52 = vld [vmem:[%s23610_s9 + $0x60] ss:$8 sps:$4 sm:$0xff]   ;;  %v17023_v14 = vld [vmem:[%s23610_s9 + $0x54] ss:$8 sps:$4 sm:$0xff]  }
 0x931   : > { %v16080_v21 = vpop.f32.mrf.mxu1  ;;  %v17021_v45 = vld [vmem:[%s23610_s9 + $0x50] ss:$8 sps:$4 sm:$0xff]   ;;  %v17027_v55 = vld [vmem:[%s23610_s9 + $0x40] ss:$8 sps:$4 sm:$0xff]  }
 0x932   : > { %v9589_v13 = vmul.f32 0.01, %v9549_v44  ;;  %v9481_v4 = vadd.f32 %v16079_v8, %v21646_v35  ;;  %vm9579_vm11 = vcmp.gt.f32.partialorder %v9549_v44, 0.0  ;;  %v17008_v35 = vld [vmem:[%s23615_s14 + $0x14] ss:$0 sps:$4 sm:$0xff]  }
 0x933   : > { %v16081_v18 = vpop.f32.mrf.mxu1  ;;  %16684 = vmatmul.mubr.msk.bf16.vlgmr.msra.gmra.mxu1 %vm9634_vm2, %v17006_v24  ;;  %v17029_v24 = vld [vmem:[%s23610_s9 + $0x44] ss:$8 sps:$4 sm:$0xff]   ;;  %v17033_v8 = vld [vmem:[%s23610_s9 + $0x30] ss:$8 sps:$4 sm:$0xff]  }
 0x934   : > { %v9554_v30 = vadd.f32 %v21643_v33, %v9481_v4  ;;  %v16082_v31 = vadd.f32 %v16081_v18, %v16080_v21  ;;  %v9599_v63 = vsel %vm9579_vm11, %v9549_v44, %v9589_v13  ;;  %16689 = vmatprep.mubr.msk.bf16.mxu1 %vm9634_vm2, %v17007_v36  ;;  %v17009_v33 = vld [vmem:[%s23615_s14 + $0x18] sm:$0xff]   ;;  %v17041_v36 = vld [vmem:[%s23610_s9 + $0x24] ss:$8 sps:$4 sm:$0xff]   ;;  %v17039_v21 = vld [vmem:[%s23610_s9 + $0x20] ss:$8 sps:$4 sm:$0xff]  }
 0x935   : > { %v16083_v29 = vpop.f32.mrf.mxu1  ;;  %v9607_v54 = vpack.c.bf16 %v9599_v63, %v9598_v49  ;;  %v17035_v44 = vld [vmem:[%s23610_s9 + $0x34] ss:$8 sps:$4 sm:$0xff]   ;;  %v17045_v4 = vld [vmem:[%s23610_s9 + $0x10] ss:$8 sps:$4 sm:$0xff]   ;;  %v17053_v18 = vld [vmem:[%s23610_s9 + $0x4] ss:$8 sps:$4 sm:$0xff]  }
 0x936   : > { %v9484_v47 = vadd.f32 %v16082_v31, %v21655_v17  ;;  %v9590_v0 = vmul.f32 0.01, %v9554_v30  ;;  %vm9580_vm3 = vcmp.gt.f32.partialorder %v9554_v30, 0.0  ;;  %v17047_v13 = vld [vmem:[%s23610_s9 + $0x14] ss:$8 sps:$4 sm:$0xff]  }
 0x937   : > { %v16084_v37 = vpop.f32.mrf.mxu1  ;;  %16687 = vmatprep.subr.bf16.mxu1 %v9607_v54  ;;  %v17059_v31 = vld [vmem:[%s23610_s9 + $0xf4] ss:$8 sps:$4 sm:$0xff]   ;;  %v17057_v49 = vld [vmem:[%s23610_s9 + $0xf0] ss:$8 sps:$4 sm:$0xff]   ;;  %v17065_v63 = vld [vmem:[%s23610_s9 + $0xe4] ss:$8 sps:$4 sm:$0xff]  }
 0x938   : > { %v9557_v59 = vadd.f32 %v21652_v5, %v9484_v47  ;;  %v16085_v20 = vadd.f32 %v16084_v37, %v16083_v29  ;;  %16688 = vmatpush3.bf16.msra.mxu1 %v9607_v54  ;;  %v9600_v58 = vsel %vm9580_vm3, %v9554_v30, %v9590_v0  ;;  %v17051_v30 = vld [vmem:[%s23610_s9] ss:$8 sps:$4 sm:$0xff]   ;;  %v17071_v54 = vld [vmem:[%s23610_s9 + $0xd4] ss:$8 sps:$4 sm:$0xff]   ;;  %v17069_v47 = vld [vmem:[%s23610_s9 + $0xd0] ss:$8 sps:$4 sm:$0xff]  }
 0x939   : > { %v16086_v42 = vpop.f32.mrf.mxu1  ;;  %v17063_v29 = vld [vmem:[%s23610_s9 + $0xe0] ss:$8 sps:$4 sm:$0xff]   ;;  %v17084_v37 = vld [vmem:[%s23610_s9 + $0x1d0] ss:$8 sps:$4 sm:$0xff]   ;;  %v17086_v0 = vld [vmem:[%s23610_s9 + $0x1d4] ss:$8 sps:$4 sm:$0xff]  }
 0x93a   : > { %v9591_v56 = vmul.f32 0.01, %v9557_v59  ;;  %v9489_v17 = vadd.f32 %v16085_v20, %v21661_v34  ;;  %vm9581_vm13 = vcmp.gt.f32.partialorder %v9557_v59, 0.0  ;;  %v17010_v34 = vld [vmem:[%s23615_s14 + $0x20] ss:$0 sps:$4 sm:$0xff]   ;;  %11001 = vmatprep.subr.bf16.mxu0 %v17086_v0 }
 0x93b   : > { %v16087_v16 = vpop.f32.mrf.mxu1  ;;  %16690 = vmatmul.mubr.msk.bf16.vlgmr.msra.gmra.mxu1 %vm9634_vm2, %v17008_v35  ;;  %v17077_v35 = vld [vmem:[%s23610_s9 + $0xc4] ss:$8 sps:$4 sm:$0xff]   ;;  %11002 = vmatpush2.bf16.msra.mxu0 %v17084_v37  ;;  %v17090_v20 = vld [vmem:[%s23610_s9 + $0x1c0] ss:$8 sps:$4 sm:$0xff]   ;;  %v17117_v0 = vld [vmem:[%s23610_s9 + $0x250] ss:$8 sps:$4 sm:$0xff]  }
 0x93c   : > { %v9562_v12 = vadd.f32 %v21658_v38, %v9489_v17  ;;  %v16088_v25 = vadd.f32 %v16087_v16, %v16086_v42  ;;  %v9601_v5 = vsel %vm9581_vm13, %v9557_v59, %v9591_v56  ;;  %16695 = vmatprep.mubr.msk.bf16.mxu1 %vm9634_vm2, %v17009_v33  ;;  %v17011_v38 = vld [vmem:[%s23615_s14 + $0x24] sm:$0xff]   ;;  %v17083_v42 = vld [vmem:[%s23610_s9 + $0xb4] ss:$8 sps:$4 sm:$0xff]   ;;  %v17081_v17 = vld [vmem:[%s23610_s9 + $0xb0] ss:$8 sps:$4 sm:$0xff]  }
 0x93d   : > { %v16089_v41 = vpop.f32.mrf.mxu1  ;;  %v9608_v48 = vpack.c.bf16 %v9601_v5, %v9600_v58  ;;  %v17075_v59 = vld [vmem:[%s23610_s9 + $0xc0] ss:$8 sps:$4 sm:$0xff]   ;;  %v17092_v33 = vld [vmem:[%s23610_s9 + $0x1c4] ss:$8 sps:$4 sm:$0xff]   ;;  %v17098_v56 = vld [vmem:[%s23610_s9 + $0x1b4] ss:$8 sps:$4 sm:$0xff]  }
 0x93e   : > { %v9492_v15 = vadd.f32 %v16088_v25, %v21670_v50  ;;  %v9592_v19 = vmul.f32 0.01, %v9562_v12  ;;  %vm9582_vm1 = vcmp.gt.f32.partialorder %v9562_v12, 0.0  ;;  %11003 = vmatprep.subr.bf16.mxu0 %v17092_v33  ;;  %v17096_v16 = vld [vmem:[%s23610_s9 + $0x1b0] ss:$8 sps:$4 sm:$0xff]  }
 0x93f   : > { %v16090_v46 = vpop.f32.mrf.mxu1  ;;  %16693 = vmatprep.subr.bf16.mxu1 %v9608_v48  ;;  %11004 = vmatpush2.bf16.msra.mxu0 %v17090_v20  ;;  %v17104_v25 = vld [vmem:[%s23610_s9 + $0x1a4] ss:$8 sps:$4 sm:$0xff]   ;;  %v17087_v58 = vld [vmem:[%s23610_s9 + $0xa0] ss:$8 sps:$4 sm:$0xff]   ;;  %v17132_v33 = vld [vmem:[%s23610_s9 + $0x350] ss:$8 sps:$4 sm:$0xff]  }
 0x940   : > { %v9565_v10 = vadd.f32 %v21667_v32, %v9492_v15  ;;  %v16091_v40 = vadd.f32 %v16090_v46, %v16089_v41  ;;  %16694 = vmatpush3.bf16.msra.mxu1 %v9608_v48  ;;  %v9602_v23 = vsel %vm9582_vm1, %v9562_v12, %v9592_v19  ;;  %v17089_v12 = vld [vmem:[%s23610_s9 + $0xa4] ss:$8 sps:$4 sm:$0xff]   ;;  %11005 = vmatprep.subr.bf16.mxu0 %v17098_v56  ;;  %v17102_v5 = vld [vmem:[%s23610_s9 + $0x1a0] ss:$8 sps:$4 sm:$0xff]   ;;  %v17095_v41 = vld [vmem:[%s23610_s9 + $0x94] ss:$8 sps:$4 sm:$0xff]  }
 0x941   : > { %v16092_v6 = vpop.f32.mrf.mxu1  ;;  %v17110_v48 = vld [vmem:[%s23610_s9 + $0x194] ss:$8 sps:$4 sm:$0xff]   ;;  %v17093_v15 = vld [vmem:[%s23610_s9 + $0x90] ss:$8 sps:$4 sm:$0xff]   ;;  %v17116_v19 = vld [vmem:[%s23610_s9 + $0x184] ss:$8 sps:$4 sm:$0xff]  }
 0x942   : > { %v9593_v53 = vmul.f32 0.01, %v9565_v10  ;;  %v9497_v50 = vadd.f32 %v16091_v40, %v21676_v61  ;;  %vm9583_vm4 = vcmp.gt.f32.partialorder %v9565_v10, 0.0  ;;  %v17108_v46 = vld [vmem:[%s23610_s9 + $0x190] ss:$8 sps:$4 sm:$0xff]  }
 0x943   : > { %v16093_v7 = vpop.f32.mrf.mxu1  ;;  %16696 = vmatmul.mubr.msk.bf16.vlgmr.msra.gmra.mxu1 %vm9634_vm2, %v17010_v34  ;;  %11006 = vmatpush2.bf16.msra.mxu0 %v17096_v16  ;;  %v17101_v34 = vld [vmem:[%s23610_s9 + $0x84] ss:$8 sps:$4 sm:$0xff]   ;;  %v17114_v40 = vld [vmem:[%s23610_s9 + $0x180] ss:$8 sps:$4 sm:$0xff]  }
 0x944   : > { %v9570_v28 = vadd.f32 %v21673_v2, %v9497_v50  ;;  %v16094_v57 = vadd.f32 %v16093_v7, %v16092_v6  ;;  %v9603_v32 = vsel %vm9583_vm4, %v9565_v10, %v9593_v53  ;;  %16701 = vmatprep.mubr.msk.bf16.mxu1 %vm9634_vm2, %v17011_v38  ;;  %v17013_v2 = vld [vmem:[%s23615_s14 + $0x30] sm:$0xff]   ;;  %11007 = vmatprep.subr.bf16.mxu0 %v17104_v25  ;;  %v17099_v10 = vld [vmem:[%s23610_s9 + $0x80] ss:$8 sps:$4 sm:$0xff]   ;;  %v17125_v20 = vld [vmem:[%s23610_s9 + $0x244] ss:$8 sps:$4 sm:$0xff]  }
 0x945   : > { %v9609_v3 = vpack.c.bf16 %v9603_v32, %v9602_v23  ;;  %v17107_v38 = vld [vmem:[%s23610_s9 + $0x274] ss:$8 sps:$4 sm:$0xff]  }
 0x946   : > { %v9500_v22 = vadd.f32 %v16094_v57, %v21681_v43  ;;  %v9594_v61 = vmul.f32 0.01, %v9570_v28  ;;  %vm9584_vm5 = vcmp.gt.f32.partialorder %v9570_v28, 0.0  ;;  %v17122_v6 = vld [vmem:[%s23610_s9 + $0x374] ss:$8 sps:$4 sm:$0xff]  }
 0x947   : > { %16699 = vmatprep.subr.bf16.mxu1 %v9609_v3  ;;  %11008 = vmatpush2.bf16.msra.mxu0 %v17102_v5 }
 0x948   : > { %v9573_v1 = vadd.f32 %v21678_v26, %v9500_v22  ;;  %16700 = vmatpush3.bf16.msra.mxu1 %v9609_v3  ;;  %v9604_v39 = vsel %vm9584_vm5, %v9570_v28, %v9594_v61  ;;  %v17014_v26 = vld [vmem:[%s23615_s14 + $0x38] ss:$0 sps:$4 sm:$0xff]   ;;  %11009 = vmatprep.subr.bf16.mxu0 %v17110_v48 }
 0x94a   : > { %v9595_v51 = vmul.f32 0.01, %v9573_v1  ;;  %vm9585_vm6 = vcmp.gt.f32.partialorder %v9573_v1, 0.0 }
 0x94b   : > { %16702 = vmatmul.mubr.msk.bf16.vlgmr.msra.gmra.mxu1 %vm9634_vm2, %v17012_v27  ;;  %11010 = vmatpush2.bf16.msra.mxu0 %v17108_v46  ;;  %v17138_v46 = vld [vmem:[%s23610_s9 + $0x340] ss:$8 sps:$4 sm:$0xff]  }
 0x94c   : > { %v9605_v43 = vsel %vm9585_vm6, %v9573_v1, %v9595_v51  ;;  %16707 = vmatprep.mubr.msk.bf16.mxu1 %vm9634_vm2, %v17013_v2  ;;  %11011 = vmatprep.subr.bf16.mxu0 %v17116_v19  ;;  %vm13459_vm6 = vcmask 64512  }
 0x94d   : > { %v9610_v11 = vpack.c.bf16 %v9605_v43, %v9604_v39 }
 0x94f   : > { %16705 = vmatprep.subr.bf16.mxu1 %v9610_v11  ;;  %11012 = vmatpush2.bf16.msra.mxu0 %v17114_v40 }
 0x950   : > { %16706 = vmatpush3.bf16.msra.mxu1 %v9610_v11  ;;  %11107 = vmatprep.subr.bf16.mxu0 %v17122_v6 }
 0x951   : > { %10918 = vmatprep.subr.bf16.mxu1 %v17017_v62  ;;  %v17105_v62 = vld [vmem:[%s23610_s9 + $0x270] ss:$8 sps:$4 sm:$0xff]  }
 0x953   : > { %16708 = vmatmul.mubr.msk.bf16.vlgmr.msra.gmra.mxu1 %vm9634_vm2, %v17014_v26 }
 0x954   : > { %10919 = vmatpush1.bf16.msra.mxu1 %v17015_v9 }
 0x955   : > { %10920 = vmatprep.subr.bf16.mxu1 %v17020_v60 }
 0x958   : > { %10921 = vmatpush1.bf16.msra.mxu1 %v17018_v52 }
 0x959   : > { %10922 = vmatprep.subr.bf16.mxu1 %v17023_v14  ;;  %v17113_v14 = vld [vmem:[%s23610_s9 + $0x264] ss:$8 sps:$4 sm:$0xff]  }
 0x95c   : > { %10923 = vmatpush1.bf16.msra.mxu1 %v17021_v45 }
 0x95d   : > { %10924 = vmatprep.subr.bf16.mxu1 %v17029_v24  ;;  %v17120_v24 = vld [vmem:[%s23610_s9 + $0x370] ss:$8 sps:$4 sm:$0xff]  }
 0x960   : > { %10925 = vmatpush1.bf16.msra.mxu1 %v17027_v55  ;;  %v17128_v55 = vld [vmem:[%s23610_s9 + $0x364] ss:$8 sps:$4 sm:$0xff]  }
 0x961   : > { %10926 = vmatprep.subr.bf16.mxu1 %v17035_v44 }
 0x964   : > { %10927 = vmatpush1.bf16.msra.mxu1 %v17033_v8 }
 0x965   : > { %10928 = vmatprep.subr.bf16.mxu1 %v17041_v36 }
 0x968   : > { %10929 = vmatpush1.bf16.msra.mxu1 %v17039_v21 }
 0x969   : > { %10930 = vmatprep.subr.bf16.mxu1 %v17047_v13 }
 0x96c   : > { %10931 = vmatpush1.bf16.msra.mxu1 %v17045_v4  ;;  %v17111_v4 = vld [vmem:[%s23610_s9 + $0x260] ss:$8 sps:$4 sm:$0xff]  }
 0x96d   : > { %10932 = vmatprep.subr.bf16.mxu1 %v17053_v18  ;;  %v17119_v18 = vld [vmem:[%s23610_s9 + $0x254] ss:$8 sps:$4 sm:$0xff]  }
 0x970   : > { %10933 = vmatpush1.bf16.msra.mxu1 %v17051_v30 }
 0x971   : > { %10934 = vmatprep.subr.bf16.mxu1 %v17059_v31 }
 0x974   : > { %10935 = vmatpush2.bf16.msra.mxu1 %v17057_v49  ;;  %v17126_v49 = vld [vmem:[%s23610_s9 + $0x360] ss:$8 sps:$4 sm:$0xff]  }
 0x975   : > { %10936 = vmatprep.subr.bf16.mxu1 %v17065_v63 }
 0x978   : > { %10937 = vmatpush2.bf16.msra.mxu1 %v17063_v29 }
 0x979   : > { %10938 = vmatprep.subr.bf16.mxu1 %v17071_v54 }
 0x97c   : > { %10939 = vmatpush2.bf16.msra.mxu1 %v17069_v47  ;;  %v17134_v47 = vld [vmem:[%s23610_s9 + $0x354] ss:$8 sps:$4 sm:$0xff]  }
 0x97d   : > { %10940 = vmatprep.subr.bf16.mxu1 %v17077_v35 }
 0x980   : > { %10941 = vmatpush2.bf16.msra.mxu1 %v17075_v59 }
 0x981   : > { %10942 = vmatprep.subr.bf16.mxu1 %v17083_v42 }
 0x984   : > { %10943 = vmatpush2.bf16.msra.mxu1 %v17081_v17 }
 0x985   : > { %10944 = vmatprep.subr.bf16.mxu1 %v17089_v12  ;;  %v17140_v12 = vld [vmem:[%s23610_s9 + $0x344] ss:$8 sps:$4 sm:$0xff]  }
 0x988   : > { %10945 = vmatpush2.bf16.msra.mxu1 %v17087_v58 }
 0x989   : > { %10946 = vmatprep.subr.bf16.mxu1 %v17095_v41  ;;  %v17123_v41 = vld [vmem:[%s23610_s9 + $0x240] ss:$8 sps:$4 sm:$0xff]  }
 0x98c   : > { %10947 = vmatpush2.bf16.msra.mxu1 %v17093_v15  ;;  %v17131_v15 = vld [vmem:[%s23610_s9 + $0x234] ss:$8 sps:$4 sm:$0xff]  }
 0x98d   : > { %10948 = vmatprep.subr.bf16.mxu1 %v17101_v34 }
 0x990   : > { %10949 = vmatpush2.bf16.msra.mxu1 %v17099_v10  ;;  %v17146_v10 = vld [vmem:[%s23610_s9 + $0x334] ss:$8 sps:$4 sm:$0xff]  }
 0x991   : > { %11044 = vmatprep.subr.bf16.mxu1 %v17107_v38 }
 0x9f3   : > { %v16685_v53 = vpop.f32.mrf.mxu1 }
 0x9f4   : > { %v9938_v28 = vpack.c.bf16 %v16685_v53, %v16685_v53 }
 0x9f5   : > { %v9675_v50 = vpop.f32.mrf.mxu1 }
 0x9f6   : > { %v10100_v3 = vshll.u32 %v9938_v28, 16  ;;  %v10138_v9 = vrot.slane %v9938_v28, 1  ;;  %v17137_v28 = vld [vmem:[%s23610_s9 + $0x224] ss:$8 sps:$4 sm:$0xff]  }
 0x9f7   : > { %v16686_v7 = vpop.f32.mrf.mxu1 }
 0x9f8   : > { %v10102_v39 = vrot.slane %v10100_v3, 1  ;;  %v17152_v3 = vld [vmem:[%s23610_s9 + $0x324] ss:$8 sps:$4 sm:$0xff]  }
 0x9f9   : > { %v9678_v57 = vpop.f32.mrf.mxu1 }
 0x9fa   : > { %v9937_v23 = vpack.c.bf16 %v9678_v57, %v9675_v50  ;;  %v17129_v50 = vld [vmem:[%s23610_s9 + $0x230] ss:$8 sps:$4 sm:$0xff]  }
 0x9fb   : > { %v16691_v32 = vpop.f32.mrf.mxu1  ;;  %v17144_v57 = vld [vmem:[%s23610_s9 + $0x330] ss:$8 sps:$4 sm:$0xff]  }
 0x9fc   : > { %v10095_v22 = vshll.u32 %v9937_v23, 16  ;;  %v10093_v61 = vshrl.u32 %v9937_v23, 16  ;;  %v9940_v2 = vpack.c.bf16 %v16691_v32, %v16691_v32  ;;  %v10137_v43 = vrot.slane %v9937_v23, 1 }
 0x9fd   : > { %v9737_v27 = vpop.f32.mrf.mxu1 }
 0x9fe   : > { %v10097_v1 = vrot.slane %v10095_v22, 1  ;;  %v10112_v52 = vshll.u32 %v9940_v2, 16  ;;  %v10139_v8 = vsel %vm3211_vm15, %v10137_v43, %v10138_v9  ;;  %v10141_v13 = vrot.slane %v9940_v2, 1  ;;  %v17143_v2 = vld [vmem:[%s23610_s9 + $0x214] ss:$8 sps:$4 sm:$0xff]  }
 0x9ff   : > { %v16692_v51 = vpop.f32.mrf.mxu1  ;;  %v17164_v9 = vld [vmem:[%s23610_s9 + $0x304] ss:$8 sps:$4 sm:$0xff]  }
 0xa00   : > { %v10098_v11 = vor.u32 %v10097_v1, %v10093_v61  ;;  %v10114_v31 = vrot.slane %v10112_v52, 1  ;;  %v17135_v61 = vld [vmem:[%s23610_s9 + $0x220] ss:$8 sps:$4 sm:$0xff]   ;;  %v17155_v52 = vld [vmem:[%s23610_s9 + $0x2f4] ss:$8 sps:$4 sm:$0xff]  }
 0xa01   : > { %v9740_v26 = vpop.f32.mrf.mxu1  ;;  %v17150_v51 = vld [vmem:[%s23610_s9 + $0x320] ss:$8 sps:$4 sm:$0xff]  }
 0xa02   : > { %v10103_v60 = vsel %vm2874_vm14, %v10098_v11, %v10102_v39  ;;  %v9939_v45 = vpack.c.bf16 %v9740_v26, %v9737_v27  ;;  %v17158_v39 = vld [vmem:[%s23610_s9 + $0x314] ss:$8 sps:$4 sm:$0xff]   ;;  %v17141_v11 = vld [vmem:[%s23610_s9 + $0x210] ss:$8 sps:$4 sm:$0xff]  }
 0xa03   : > { %10950 = vmatprep.mubr.bf16.mxu1 %v10103_v60  ;;  %v16697_v44 = vpop.f32.mrf.mxu1  ;;  %v17156_v26 = vld [vmem:[%s23610_s9 + $0x310] ss:$8 sps:$4 sm:$0xff]   ;;  %v17147_v60 = vld [vmem:[%s23610_s9 + $0x200] ss:$8 sps:$4 sm:$0xff]  }
 0xa04   : > { %10951 = vmatmul.mubr.bf16.vlgmr.msra.gmra.mxu1 %v9937_v23  ;;  %11013 = vmatprep.mubr.bf16.mxu0 %v9939_v45  ;;  %v10105_v36 = vshrl.u32 %v9939_v45, 16  ;;  %v10107_v21 = vshll.u32 %v9939_v45, 16  ;;  %v9942_v63 = vpack.c.bf16 %v16697_v44, %v16697_v44  ;;  %v10140_v54 = vrot.slane %v9939_v45, 1  ;;  %v17168_v44 = vld [vmem:[%s23610_s9 + $0x3f0] ss:$8 sps:$4 sm:$0xff]  }
 0xa05   : > { %11045 = vmatpush1.bf16.msra.mxu1 %v17105_v62  ;;  %11014 = vmatmul.mubr.bf16.vlgmr.msra.gmra.mxu0 %v10139_v8  ;;  %v9799_v30 = vpop.f32.mrf.mxu1  ;;  %v17149_v62 = vld [vmem:[%s23610_s9 + $0x204] ss:$8 sps:$4 sm:$0xff]  }
 0xa06   : > { %11046 = vmatprep.subr.bf16.mxu1 %v17113_v14  ;;  %11108 = vmatpush1.bf16.msra.mxu0 %v17120_v24  ;;  %v10109_v29 = vrot.slane %v10107_v21, 1  ;;  %v10124_v42 = vshll.u32 %v9942_v63, 16  ;;  %v10142_v16 = vsel %vm3211_vm15, %v10140_v54, %v10141_v13  ;;  %v10144_v38 = vrot.slane %v9942_v63, 1  ;;  %v17162_v14 = vld [vmem:[%s23610_s9 + $0x300] ss:$8 sps:$4 sm:$0xff]  }
 0xa07   : > { %11109 = vmatprep.subr.bf16.mxu0 %v17128_v55  ;;  %v16698_v37 = vpop.f32.mrf.mxu1  ;;  %v17153_v24 = vld [vmem:[%s23610_s9 + $0x2f0] ss:$8 sps:$4 sm:$0xff]   ;;  %v17161_v55 = vld [vmem:[%s23610_s9 + $0x2e4] ss:$8 sps:$4 sm:$0xff]   ;;  %v17167_v21 = vld [vmem:[%s23610_s9 + $0x2d4] ss:$8 sps:$4 sm:$0xff]  }
 0xa08   : > { %v10110_v35 = vor.u32 %v10109_v29, %v10105_v36  ;;  %v10126_v34 = vrot.slane %v10124_v42, 1  ;;  %v17176_v8 = vld [vmem:[%s23610_s9 + $0x3e4] ss:$8 sps:$4 sm:$0xff]   ;;  %v17159_v36 = vld [vmem:[%s23610_s9 + $0x2e0] ss:$8 sps:$4 sm:$0xff]  }
 0xa09   : > { %11047 = vmatpush1.bf16.msra.mxu1 %v17111_v4  ;;  %v9802_v59 = vpop.f32.mrf.mxu1  ;;  %v17174_v13 = vld [vmem:[%s23610_s9 + $0x3e0] ss:$8 sps:$4 sm:$0xff]   ;;  %v17182_v4 = vld [vmem:[%s23610_s9 + $0x3d4] ss:$8 sps:$4 sm:$0xff]   ;;  %v17177_v37 = vld [vmem:[%s23610_s9 + $0x2b0] ss:$8 sps:$4 sm:$0xff]  }
 0xa0a   : > { %11048 = vmatprep.subr.bf16.mxu1 %v17119_v18  ;;  %11110 = vmatpush1.bf16.msra.mxu0 %v17126_v49  ;;  %v21912_v56 = vpack.c.bf16 %v9802_v59, %v9799_v30  ;;  %v21915_v17 = vsel %vm2874_vm14, %v10110_v35, %v10114_v31  ;;  %v17165_v18 = vld [vmem:[%s23610_s9 + $0x2d0] ss:$8 sps:$4 sm:$0xff]   ;;  %v17173_v30 = vld [vmem:[%s23610_s9 + $0x2c4] ss:$8 sps:$4 sm:$0xff]   ;;  %v17171_v63 = vld [vmem:[%s23610_s9 + $0x2c0] ss:$8 sps:$4 sm:$0xff]  }
 0xa0b   : > { %11111 = vmatprep.subr.bf16.mxu0 %v17134_v47  ;;  %10960 = vmatprep.mubr.bf16.mxu1 %v21915_v17  ;;  %v21922_v25 = vpop.f32.mrf.mxu1  ;;  %v17180_v31 = vld [vmem:[%s23610_s9 + $0x3d0] ss:$8 sps:$4 sm:$0xff]   ;;  %v17188_v49 = vld [vmem:[%s23610_s9 + $0x3c4] ss:$8 sps:$4 sm:$0xff]   ;;  %v17179_v29 = vld [vmem:[%s23610_s9 + $0x2b4] ss:$8 sps:$4 sm:$0xff]  }
 0xa0c   : > { %10961 = vmatmul.mubr.bf16.gmra.mxu1 %v9939_v45  ;;  %v10117_v58 = vshrl.u32 %v21912_v56, 16  ;;  %v10119_v5 = vshll.u32 %v21912_v56, 16  ;;  %11023 = vmatprep.mubr.bf16.mxu0 %v21912_v56  ;;  %v10143_v53 = vrot.slane %v21912_v56, 1  ;;  %v17170_v45 = vld [vmem:[%s23610_s9 + $0x3f4] ss:$8 sps:$4 sm:$0xff]  }
 0xa0d   : > { %11049 = vmatpush1.bf16.msra.mxu1 %v17117_v0  ;;  %v9861_v48 = vpop.f32.mrf.mxu1  ;;  %11024 = vmatmul.mubr.bf16.gmra.mxu0 %v10142_v16  ;;  %v17186_v54 = vld [vmem:[%s23610_s9 + $0x3c0] ss:$8 sps:$4 sm:$0xff]   ;;  %v17194_v47 = vld [vmem:[%s23610_s9 + $0x3b4] ss:$8 sps:$4 sm:$0xff]   ;;  %v17185_v35 = vld [vmem:[%s23610_s9 + $0x2a4] ss:$8 sps:$4 sm:$0xff]  }
 0xa0e   : > { %11050 = vmatprep.subr.bf16.mxu1 %v17125_v20  ;;  %11112 = vmatpush1.bf16.msra.mxu0 %v17132_v33  ;;  %v10121_v19 = vrot.slane %v10119_v5, 1  ;;  %v21963_v27 = vsel %vm3211_vm15, %v10143_v53, %v10144_v38  ;;  %v17192_v0 = vld [vmem:[%s23610_s9 + $0x3b0] ss:$8 sps:$4 sm:$0xff]   ;;  %v17200_v59 = vld [vmem:[%s23610_s9 + $0x3a4] ss:$8 sps:$4 sm:$0xff]  }
 0xa0f   : > { %11113 = vmatprep.subr.bf16.mxu0 %v17140_v12  ;;  %v16704_v40 = vpop.f32.mrf.mxu1  ;;  %v17183_v20 = vld [vmem:[%s23610_s9 + $0x2a0] ss:$8 sps:$4 sm:$0xff]   ;;  %v17191_v33 = vld [vmem:[%s23610_s9 + $0x294] ss:$8 sps:$4 sm:$0xff]   ;;  %v9944_v12 = vpack.c.bf16 %v21922_v25, %v21922_v25  ;;  %v17189_v5 = vld [vmem:[%s23610_s9 + $0x290] ss:$8 sps:$4 sm:$0xff]  }
 0xa10   : > { %v10122_v6 = vor.u32 %v10121_v19, %v10117_v58  ;;  %v17198_v42 = vld [vmem:[%s23610_s9 + $0x3a0] ss:$8 sps:$4 sm:$0xff]   ;;  %v17212_v25 = vld [vmem:[%s23610_s9 + $0x384] ss:$8 sps:$4 sm:$0xff]   ;;  %v17203_v38 = vld [vmem:[%s23610_s9 + $0x474] ss:$8 sps:$4 sm:$0xff]  }
 0xa11   : > { %11051 = vmatpush1.bf16.msra.mxu1 %v17123_v41  ;;  %v9864_v7 = vpop.f32.mrf.mxu1  ;;  %v17195_v40 = vld [vmem:[%s23610_s9 + $0x280] ss:$8 sps:$4 sm:$0xff]   ;;  %v17233_v53 = vld [vmem:[%s23612_s11 + $0x74] ss:$8 sps:$4 sm:$0xff]  }
 0xa12   : > { %11052 = vmatprep.subr.bf16.mxu1 %v17131_v15  ;;  %11114 = vmatpush1.bf16.msra.mxu0 %v17138_v46  ;;  %v21950_v23 = vsel %vm2874_vm14, %v10122_v6, %v10126_v34  ;;  %v21952_v32 = vpack.c.bf16 %v9864_v7, %v9861_v48  ;;  %v17197_v48 = vld [vmem:[%s23610_s9 + $0x284] ss:$8 sps:$4 sm:$0xff]   ;;  %v17204_v15 = vld [vmem:[%s23610_s9 + $0x390] ss:$8 sps:$4 sm:$0xff]   ;;  %v10157_v46 = vshll.u32 %v9944_v12, 16 }
 0xa13   : > { %11115 = vmatprep.subr.bf16.mxu0 %v17146_v10  ;;  %10970 = vmatprep.mubr.bf16.mxu1 %v21950_v23  ;;  %v21958_v22 = vpop.f32.mrf.mxu1  ;;  %v17210_v6 = vld [vmem:[%s23610_s9 + $0x380] ss:$8 sps:$4 sm:$0xff]  }
 0xa14   : > { %10971 = vmatmul.mubr.bf16.gmra.mxu1 %v21912_v56  ;;  %11033 = vmatprep.mubr.bf16.mxu0 %v21952_v32  ;;  %v10152_v58 = vshll.u32 %v21952_v32, 16  ;;  %v10150_v34 = vshrl.u32 %v21952_v32, 16 }
 0xa15   : > { %11053 = vmatpush1.bf16.msra.mxu1 %v17129_v50  ;;  %11076 = vmatprep.mubr.bf16.mxu1 %v10142_v16  ;;  %v21968_v1 = vpop.f32.mrf.mxu1  ;;  %v17206_v16 = vld [vmem:[%s23610_s9 + $0x394] ss:$8 sps:$4 sm:$0xff]   ;;  %v10159_v50 = vrot.slane %v10157_v46, 1  ;;  %v17267_v46 = vld [vmem:[%s23612_s11 + $0x120] ss:$8 sps:$4 sm:$0xff]  }
 0xa16   : > { %11054 = vmatprep.subr.bf16.mxu1 %v17137_v28  ;;  %11116 = vmatpush1.bf16.msra.mxu0 %v17144_v57  ;;  %v10154_v19 = vrot.slane %v10152_v58, 1  ;;  %v22110_v28 = vpack.c.bf16 %v21958_v22, %v21958_v22 }
 0xa17   : > { %11117 = vmatprep.subr.bf16.mxu0 %v17152_v3  ;;  %11034 = vmatmul.mubr.bf16.gmra.mxu0 %v21963_v27  ;;  %v16710_v43 = vpop.f32.mrf.mxu1  ;;  %v17201_v3 = vld [vmem:[%s23610_s9 + $0x470] ss:$8 sps:$4 sm:$0xff]  }
 0xa18   : > { %11139 = vmatprep.mubr.bf16.mxu0 %v21950_v23  ;;  %v10155_v7 = vor.u32 %v10154_v19, %v10150_v34  ;;  %v17207_v43 = vld [vmem:[%s23610_s9 + $0x460] ss:$8 sps:$4 sm:$0xff]   ;;  %v10184_v58 = vrot.slane %v22110_v28, 1  ;;  %v17269_v34 = vld [vmem:[%s23612_s11 + $0x124] ss:$8 sps:$4 sm:$0xff]  }
 0xa19   : > { %11055 = vmatpush1.bf16.msra.mxu1 %v17135_v61  ;;  %v9926_v41 = vpop.f32.mrf.mxu1  ;;  %v17209_v61 = vld [vmem:[%s23610_s9 + $0x464] ss:$8 sps:$4 sm:$0xff]   ;;  %v17270_v19 = vld [vmem:[%s23612_s11] ss:$8 sps:$4 sm:$0xff]  }
 0xa1a   : > { %11056 = vmatprep.subr.bf16.mxu1 %v17143_v2  ;;  %11118 = vmatpush1.bf16.msra.mxu0 %v17150_v51  ;;  %v22094_v10 = vpack.c.bf16 %v9926_v41, %v21968_v1  ;;  %v17231_v1 = vld [vmem:[%s23612_s11 + $0x70] ss:$8 sps:$4 sm:$0xff]   ;;  %v10160_v22 = vsel %vm2874_vm14, %v10155_v7, %v10159_v50  ;;  %v10176_v2 = vshll.u32 %v22110_v28, 16  ;;  %v17255_v41 = vld [vmem:[%s23612_s11 + $0x140] ss:$8 sps:$4 sm:$0xff]  }
 0xa1b   : > { %11119 = vmatprep.subr.bf16.mxu0 %v17158_v39  ;;  %v17279_v50 = vld [vmem:[%s23612_s11 + $0x100] ss:$8 sps:$4 sm:$0xff]   ;;  %v17281_v7 = vld [vmem:[%s23612_s11 + $0x104] ss:$8 sps:$4 sm:$0xff]  }
 0xa1c   : > { %v10171_v57 = vshll.u32 %v22094_v10, 16  ;;  %v10169_v51 = vshrl.u32 %v22094_v10, 16  ;;  %v17282_v28 = vld [vmem:[%s23612_s11 + $0xe0] ss:$8 sps:$4 sm:$0xff]  }
 0xa1d   : > { %11057 = vmatpush1.bf16.msra.mxu1 %v17141_v11  ;;  %v10165_v11 = vrot.slane %v9944_v12, 1  ;;  %v17249_v12 = vld [vmem:[%s23612_s11 + $0x150] ss:$8 sps:$4 sm:$0xff]  }
 0xa1e   : > { %11058 = vmatprep.subr.bf16.mxu1 %v17149_v62  ;;  %11120 = vmatpush1.bf16.msra.mxu0 %v17156_v26  ;;  %v10173_v39 = vrot.slane %v10171_v57, 1  ;;  %v10164_v62 = vrot.slane %v21952_v32, 1  ;;  %v17234_v26 = vld [vmem:[%s23612_s11 + $0x60] ss:$8 sps:$4 sm:$0xff]   ;;  %v17284_v57 = vld [vmem:[%s23612_s11 + $0xe4] ss:$8 sps:$4 sm:$0xff]  }
 0xa1f   : > { %11121 = vmatprep.subr.bf16.mxu0 %v17164_v9  ;;  %v10178_v9 = vrot.slane %v10176_v2, 1  ;;  %v17291_v2 = vld [vmem:[%s23612_s11 + $0x1e0] ss:$8 sps:$4 sm:$0xff]  }
 0xa21   : > { %11059 = vmatpush1.bf16.msra.mxu1 %v17147_v60  ;;  %v10174_v60 = vor.u32 %v10173_v39, %v10169_v51  ;;  %v17293_v51 = vld [vmem:[%s23612_s11 + $0x1e4] ss:$8 sps:$4 sm:$0xff]   ;;  %v17294_v39 = vld [vmem:[%s23612_s11 + $0xc0] ss:$8 sps:$4 sm:$0xff]  }
 0xa22   : > { %11060 = vmatprep.subr.bf16.mxu1 %v17155_v52  ;;  %11122 = vmatpush1.bf16.msra.mxu0 %v17162_v14  ;;  %v17213_v52 = vld [vmem:[%s23610_s9 + $0x450] ss:$8 sps:$4 sm:$0xff]   ;;  %v17218_v14 = vld [vmem:[%s23610_s9 + $0x444] ss:$8 sps:$4 sm:$0xff]  }
 0xa23   : > { %11123 = vmatprep.subr.bf16.mxu0 %v17170_v45  ;;  %v22148_v45 = vsel %vm3211_vm15, %v10164_v62, %v10165_v11  ;;  %v17297_v11 = vld [vmem:[%s23612_s11 + $0x1d0] ss:$8 sps:$4 sm:$0xff]  }
 0xa24   : > { %v17300_v62 = vld [vmem:[%s23612_s11 + $0xb0] ss:$8 sps:$4 sm:$0xff]  }
 0xa25   : > { %11061 = vmatpush2.bf16.msra.mxu1 %v17153_v24  ;;  %v17242_v24 = vld [vmem:[%s23612_s11 + $0x54] ss:$8 sps:$4 sm:$0xff]  }
 0xa26   : > { %11062 = vmatprep.subr.bf16.mxu1 %v17161_v55  ;;  %11124 = vmatpush2.bf16.msra.mxu0 %v17168_v44  ;;  %v10179_v55 = vsel %vm2874_vm14, %v10174_v60, %v10178_v9  ;;  %v17240_v44 = vld [vmem:[%s23612_s11 + $0x50] ss:$8 sps:$4 sm:$0xff]   ;;  %v17305_v9 = vld [vmem:[%s23612_s11 + $0x1c4] ss:$8 sps:$4 sm:$0xff]   ;;  %v17306_v60 = vld [vmem:[%s23612_s11 + $0xa0] ss:$8 sps:$4 sm:$0xff]  }
 0xa27   : > { %11125 = vmatprep.subr.bf16.mxu0 %v17176_v8  ;;  %v17216_v8 = vld [vmem:[%s23610_s9 + $0x440] ss:$8 sps:$4 sm:$0xff]  }
 0xa29   : > { %11063 = vmatpush2.bf16.msra.mxu1 %v17159_v36  ;;  %v17221_v36 = vld [vmem:[%s23610_s9 + $0x434] ss:$8 sps:$4 sm:$0xff]  }
 0xa2a   : > { %11064 = vmatprep.subr.bf16.mxu1 %v17167_v21  ;;  %11126 = vmatpush2.bf16.msra.mxu0 %v17174_v13  ;;  %v17246_v21 = vld [vmem:[%s23612_s11 + $0x40] ss:$8 sps:$4 sm:$0xff]   ;;  %v17219_v13 = vld [vmem:[%s23610_s9 + $0x430] ss:$8 sps:$4 sm:$0xff]  }
 0xa2b   : > { %11127 = vmatprep.subr.bf16.mxu0 %v17182_v4  ;;  %v17254_v4 = vld [vmem:[%s23612_s11 + $0x34] ss:$8 sps:$4 sm:$0xff]  }
 0xa2d   : > { %11065 = vmatpush2.bf16.msra.mxu1 %v17165_v18  ;;  %v17252_v18 = vld [vmem:[%s23612_s11 + $0x30] ss:$8 sps:$4 sm:$0xff]  }
 0xa2e   : > { %11066 = vmatprep.subr.bf16.mxu1 %v17173_v30  ;;  %11128 = vmatpush2.bf16.msra.mxu0 %v17180_v31  ;;  %v17222_v30 = vld [vmem:[%s23610_s9 + $0x420] ss:$8 sps:$4 sm:$0xff]   ;;  %v23967_v31 = vmov 0  }
 0xa2f   : > { %11129 = vmatprep.subr.bf16.mxu0 %v17188_v49  ;;  %v17227_v49 = vld [vmem:[%s23610_s9 + $0x414] ss:$8 sps:$4 sm:$0xff]  }
 0xa31   : > { %11067 = vmatpush2.bf16.msra.mxu1 %v17171_v63  ;;  %v17260_v63 = vld [vmem:[%s23612_s11 + $0x24] ss:$8 sps:$4 sm:$0xff]  }
 0xa32   : > { %11068 = vmatprep.subr.bf16.mxu1 %v17179_v29  ;;  %11130 = vmatpush2.bf16.msra.mxu0 %v17186_v54  ;;  %v17258_v29 = vld [vmem:[%s23612_s11 + $0x20] ss:$8 sps:$4 sm:$0xff]   ;;  %v17225_v54 = vld [vmem:[%s23610_s9 + $0x410] ss:$8 sps:$4 sm:$0xff]  }
 0xa33   : > { %11131 = vmatprep.subr.bf16.mxu0 %v17194_v47  ;;  %v17230_v47 = vld [vmem:[%s23610_s9 + $0x404] ss:$8 sps:$4 sm:$0xff]  }
 0xa35   : > { %11069 = vmatpush2.bf16.msra.mxu1 %v17177_v37  ;;  %v17266_v37 = vld [vmem:[%s23612_s11 + $0x14] ss:$8 sps:$4 sm:$0xff]  }
 0xa36   : > { %11070 = vmatprep.subr.bf16.mxu1 %v17185_v35  ;;  %11132 = vmatpush2.bf16.msra.mxu0 %v17192_v0  ;;  %v17264_v35 = vld [vmem:[%s23612_s11 + $0x10] ss:$8 sps:$4 sm:$0xff]   ;;  %v17228_v0 = vld [vmem:[%s23610_s9 + $0x400] ss:$8 sps:$4 sm:$0xff]  }
 0xa37   : > { %11133 = vmatprep.subr.bf16.mxu0 %v17200_v59  ;;  %v17239_v59 = vld [vmem:[%s23612_s11 + $0x174] ss:$8 sps:$4 sm:$0xff]  }
 0xa39   : > { %11071 = vmatpush2.bf16.msra.mxu1 %v17183_v20  ;;  %v17237_v20 = vld [vmem:[%s23612_s11 + $0x170] ss:$8 sps:$4 sm:$0xff]  }
 0xa3a   : > { %11072 = vmatprep.subr.bf16.mxu1 %v17191_v33  ;;  %11134 = vmatpush2.bf16.msra.mxu0 %v17198_v42  ;;  %v17245_v33 = vld [vmem:[%s23612_s11 + $0x164] ss:$8 sps:$4 sm:$0xff]   ;;  %v17243_v42 = vld [vmem:[%s23612_s11 + $0x160] ss:$8 sps:$4 sm:$0xff]  }
 0xa3b   : > { %11135 = vmatprep.subr.bf16.mxu0 %v17206_v16  ;;  %v17251_v16 = vld [vmem:[%s23612_s11 + $0x154] ss:$8 sps:$4 sm:$0xff]  }
 0xa3d   : > { %11073 = vmatpush2.bf16.msra.mxu1 %v17189_v5  ;;  %v10183_v5 = vrot.slane %v22094_v10, 1 }
 0xa3e   : > { %11074 = vmatprep.subr.bf16.mxu1 %v17197_v48  ;;  %11136 = vmatpush2.bf16.msra.mxu0 %v17204_v15  ;;  %v17263_v48 = vld [vmem:[%s23612_s11 + $0x134] ss:$8 sps:$4 sm:$0xff]  }
 0xa3f   : > { %11137 = vmatprep.subr.bf16.mxu0 %v17212_v25  ;;  %v10185_v15 = vsel %vm3211_vm15, %v10183_v5, %v10184_v58  ;;  %v17261_v25 = vld [vmem:[%s23612_s11 + $0x130] ss:$8 sps:$4 sm:$0xff]  }
 0xa41   : > { %11075 = vmatpush2.bf16.msra.mxu1 %v17195_v40  ;;  %v17273_v40 = vld [vmem:[%s23612_s11 + $0x110] ss:$8 sps:$4 sm:$0xff]  }
 0xa42   : > { %11170 = vmatprep.subr.bf16.mxu1 %v17203_v38  ;;  %11138 = vmatpush2.bf16.msra.mxu0 %v17210_v6  ;;  %v17275_v38 = vld [vmem:[%s23612_s11 + $0x114] ss:$8 sps:$4 sm:$0xff]   ;;  %v17276_v6 = vld [vmem:[%s23612_s11 + $0xf0] ss:$8 sps:$4 sm:$0xff]  }
 0xa43   : > { %13081 = vmatprep.subr.bf16.mxu0 %v17233_v53  ;;  %v17278_v53 = vld [vmem:[%s23612_s11 + $0xf4] ss:$8 sps:$4 sm:$0xff]  }
 0xa44   : > { %11077 = vmatmul.mubr.bf16.vlgmr.msra.gmra.mxu1 %v21915_v17  ;;  %v17215_v17 = vld [vmem:[%s23610_s9 + $0x454] ss:$8 sps:$4 sm:$0xff]  }
 0xa45   : > { %11171 = vmatpush1.bf16.msra.mxu1 %v17201_v3  ;;  %11140 = vmatmul.mubr.bf16.vlgmr.msra.gmra.mxu0 %v21912_v56  ;;  %v17236_v56 = vld [vmem:[%s23612_s11 + $0x64] ss:$8 sps:$4 sm:$0xff]   ;;  %v17285_v3 = vld [vmem:[%s23612_s11 + $0x1f0] ss:$8 sps:$4 sm:$0xff]  }
 0xa46   : > { %11172 = vmatprep.subr.bf16.mxu1 %v17209_v61  ;;  %11086 = vmatprep.mubr.bf16.mxu1 %v21963_v27  ;;  %v17287_v61 = vld [vmem:[%s23612_s11 + $0x1f4] ss:$8 sps:$4 sm:$0xff]  }
 0xa47   : > { %11149 = vmatprep.mubr.bf16.mxu0 %v10160_v22  ;;  %13082 = vmatpush1.bf16.msra.mxu0 %v17231_v1  ;;  %v17288_v1 = vld [vmem:[%s23612_s11 + $0xd0] ss:$8 sps:$4 sm:$0xff]  }
 0xa48   : > { %13083 = vmatprep.subr.bf16.mxu0 %v17236_v56  ;;  %v17303_v56 = vld [vmem:[%s23612_s11 + $0x1c0] ss:$8 sps:$4 sm:$0xff]  }
 0xa49   : > { %11173 = vmatpush1.bf16.msra.mxu1 %v17207_v43  ;;  %v17296_v43 = vld [vmem:[%s23612_s11 + $0xc4] ss:$8 sps:$4 sm:$0xff]  }
 0xa4a   : > { %11174 = vmatprep.subr.bf16.mxu1 %v17215_v17  ;;  %v17299_v17 = vld [vmem:[%s23612_s11 + $0x1d4] ss:$8 sps:$4 sm:$0xff]  }
 0xa4b   : > { %13084 = vmatpush1.bf16.msra.mxu0 %v17234_v26  ;;  %v17302_v26 = vld [vmem:[%s23612_s11 + $0xb4] ss:$8 sps:$4 sm:$0xff]  }
 0xa4c   : > { %11087 = vmatmul.mubr.bf16.gmra.mxu1 %v21950_v23  ;;  %13085 = vmatprep.subr.bf16.mxu0 %v17242_v24  ;;  %v17248_v23 = vld [vmem:[%s23612_s11 + $0x44] ss:$8 sps:$4 sm:$0xff]   ;;  %v17312_v24 = vld [vmem:[%s23612_s11 + $0x90] ss:$8 sps:$4 sm:$0xff]  }
 0xa4d   : > { %11175 = vmatpush1.bf16.msra.mxu1 %v17213_v52  ;;  %11096 = vmatprep.mubr.bf16.mxu1 %v22148_v45  ;;  %v17308_v52 = vld [vmem:[%s23612_s11 + $0xa4] ss:$8 sps:$4 sm:$0xff]  }
 0xa4e   : > { %11176 = vmatprep.subr.bf16.mxu1 %v17218_v14  ;;  %11150 = vmatmul.mubr.bf16.gmra.mxu0 %v21952_v32  ;;  %v17224_v32 = vld [vmem:[%s23610_s9 + $0x424] ss:$8 sps:$4 sm:$0xff]   ;;  %v17309_v14 = vld [vmem:[%s23612_s11 + $0x1b0] ss:$8 sps:$4 sm:$0xff]  }
 0xa4f   : > { %11159 = vmatprep.mubr.bf16.mxu0 %v10179_v55  ;;  %13086 = vmatpush1.bf16.msra.mxu0 %v17240_v44  ;;  %v17314_v55 = vld [vmem:[%s23612_s11 + $0x94] ss:$8 sps:$4 sm:$0xff]   ;;  %v17317_v44 = vld [vmem:[%s23612_s11 + $0x1a4] ss:$8 sps:$4 sm:$0xff]  }
 0xa50   : > { %13087 = vmatprep.subr.bf16.mxu0 %v17248_v23  ;;  %v17318_v23 = vld [vmem:[%s23612_s11 + $0x80] ss:$8 sps:$4 sm:$0xff]  }
 0xa51   : > { %11177 = vmatpush1.bf16.msra.mxu1 %v17216_v8  ;;  %v17320_v8 = vld [vmem:[%s23612_s11 + $0x84] ss:$8 sps:$4 sm:$0xff]  }
 0xa52   : > { %11178 = vmatprep.subr.bf16.mxu1 %v17221_v36  ;;  %v17315_v36 = vld [vmem:[%s23612_s11 + $0x1a0] ss:$8 sps:$4 sm:$0xff]  }
 0xa53   : > { %13088 = vmatpush1.bf16.msra.mxu0 %v17246_v21  ;;  %v17323_v21 = vld [vmem:[%s23612_s11 + $0x194] ss:$8 sps:$4 sm:$0xff]  }
 0xa54   : > { %11097 = vmatmul.mubr.bf16.gmra.mxu1 %v10160_v22  ;;  %13089 = vmatprep.subr.bf16.mxu0 %v17254_v4  ;;  %v17290_v22 = vld [vmem:[%s23612_s11 + $0xd4] ss:$8 sps:$4 sm:$0xff]   ;;  %v17329_v4 = vld [vmem:[%s23612_s11 + $0x184] ss:$8 sps:$4 sm:$0xff]  }
 0xa55   : > { %11179 = vmatpush1.bf16.msra.mxu1 %v17219_v13  ;;  %11202 = vmatprep.mubr.bf16.mxu1 %v23967_v31  ;;  %v17326_v13 = vld [vmem:[%s23612_s11 + $0x274] ss:$8 sps:$4 sm:$0xff]  }
 0xa56   : > { %11180 = vmatprep.subr.bf16.mxu1 %v17224_v32  ;;  %11160 = vmatmul.mubr.bf16.gmra.mxu0 %v22094_v10  ;;  %v17272_v10 = vld [vmem:[%s23612_s11 + $0x4] ss:$8 sps:$4 sm:$0xff]   ;;  %v17321_v32 = vld [vmem:[%s23612_s11 + $0x190] ss:$8 sps:$4 sm:$0xff]  }
 0xa57   : > { %13090 = vmatpush1.bf16.msra.mxu0 %v17252_v18  ;;  %v10188_v18 = vlaneseq }
 0xa58   : > { %13091 = vmatprep.subr.bf16.mxu0 %v17260_v63 }
 0xa59   : > { %11181 = vmatpush1.bf16.msra.mxu1 %v17222_v30  ;;  %v17327_v30 = vld [vmem:[%s23612_s11 + $0x180] ss:$8 sps:$4 sm:$0xff]   ;;  %v22376_v63 = vshrl.u32 %v10188_v18, 7 }
 0xa5a   : > { %11182 = vmatprep.subr.bf16.mxu1 %v17227_v49  ;;  %v17335_v49 = vld [vmem:[%s23612_s11 + $0x374] ss:$8 sps:$4 sm:$0xff]  }
 0xa5b   : > { %13092 = vmatpush1.bf16.msra.mxu0 %v17258_v29 }
 0xa5c   : > { %13093 = vmatprep.subr.bf16.mxu0 %v17266_v37  ;;  %v22385_v37 = vsub.s32 0, %v22376_v63 }
 0xa5d   : > { %11183 = vmatpush1.bf16.msra.mxu1 %v17225_v54 }
 0xa5e   : > { %11184 = vmatprep.subr.bf16.mxu1 %v17230_v47 }
 0xa5f   : > { %13094 = vmatpush1.bf16.msra.mxu0 %v17264_v35 }
 0xa60   : > { %13095 = vmatprep.subr.bf16.mxu0 %v17272_v10 }
 0xa61   : > { %11185 = vmatpush1.bf16.msra.mxu1 %v17228_v0  ;;  %v10091_v0 = vld [vmem:[%s23611_s10] sm:$0x3] }
 0xa62   : > { %13122 = vmatprep.subr.bf16.mxu1 %v17239_v59 }
 0xa63   : > { %13096 = vmatpush1.bf16.msra.mxu0 %v17270_v19 }
 0xa64   : > { %11203 = vmatmul.mubr.bf16.vlgmr.msra.gmra.mxu1 %v21963_v27  ;;  %v17257_v27 = vld [vmem:[%s23612_s11 + $0x144] ss:$8 sps:$4 sm:$0xff]   ;;  %13097 = vmatprep.subr.bf16.mxu0 %v17278_v53 }
 0xa65   : > { %11212 = vmatprep.mubr.bf16.mxu1 %v23967_v31  ;;  %13123 = vmatpush1.bf16.msra.mxu1 %v17237_v20 }
 0xa66   : > { %13124 = vmatprep.subr.bf16.mxu1 %v17245_v33 }
 0xa67   : > { %13098 = vmatpush2.bf16.msra.mxu0 %v17276_v6 }
 0xa68   : > { %13099 = vmatprep.subr.bf16.mxu0 %v17284_v57 }
 0xa69   : > { %13125 = vmatpush1.bf16.msra.mxu1 %v17243_v42  ;;  %v22399_v42 = vrot.slane %v10091_v0, %v22385_v37 }
 0xa6a   : > { %13126 = vmatprep.subr.bf16.mxu1 %v17251_v16 }
 0xa6b   : > { %13100 = vmatpush2.bf16.msra.mxu0 %v17282_v28 }
 0xa6c   : > { %11213 = vmatmul.mubr.bf16.gmra.mxu1 %v22148_v45  ;;  %13101 = vmatprep.subr.bf16.mxu0 %v17290_v22  ;;  %v17311_v45 = vld [vmem:[%s23612_s11 + $0x1b4] ss:$8 sps:$4 sm:$0xff]  }
 0xa6d   : > { %11222 = vmatprep.mubr.bf16.mxu1 %v23967_v31  ;;  %13127 = vmatpush1.bf16.msra.mxu1 %v17249_v12 }
 0xa6e   : > { %13128 = vmatprep.subr.bf16.mxu1 %v17257_v27 }
 0xa6f   : > { %13102 = vmatpush2.bf16.msra.mxu0 %v17288_v1 }
 0xa70   : > { %13103 = vmatprep.subr.bf16.mxu0 %v17296_v43 }
 0xa71   : > { %13129 = vmatpush1.bf16.msra.mxu1 %v17255_v41 }
 0xa72   : > { %13130 = vmatprep.subr.bf16.mxu1 %v17263_v48 }
 0xa73   : > { %13104 = vmatpush2.bf16.msra.mxu0 %v17294_v39 }
 0xa74   : > { %11223 = vmatmul.mubr.bf16.gmra.mxu1 %v10185_v15  ;;  %13105 = vmatprep.subr.bf16.mxu0 %v17302_v26 }
 0xa75   : > { %13131 = vmatpush1.bf16.msra.mxu1 %v17261_v25  ;;  %v22409_v25 = vsub.s32 1, %v22376_v63 }
 0xa76   : > { %13132 = vmatprep.subr.bf16.mxu1 %v17269_v34 }
 0xa77   : > { %13106 = vmatpush2.bf16.msra.mxu0 %v17300_v62 }
 0xa78   : > { %13107 = vmatprep.subr.bf16.mxu0 %v17308_v52 }
 0xa79   : > { %13133 = vmatpush1.bf16.msra.mxu1 %v17267_v46 }
 0xa7a   : > { %13134 = vmatprep.subr.bf16.mxu1 %v17275_v38  ;;  %v22415_v38 = vrot.slane %v10091_v0, %v22409_v25 }
 0xa7b   : > { %13108 = vmatpush2.bf16.msra.mxu0 %v17306_v60 }
 0xa7c   : > { %13109 = vmatprep.subr.bf16.mxu0 %v17314_v55 }
 0xa7d   : > { %13135 = vmatpush1.bf16.msra.mxu1 %v17273_v40 }
 0xa7e   : > { %13136 = vmatprep.subr.bf16.mxu1 %v17281_v7 }
 0xa7f   : > { %13110 = vmatpush2.bf16.msra.mxu0 %v17312_v24 }
 0xa80   : > { %13111 = vmatprep.subr.bf16.mxu0 %v17320_v8 }
 0xa81   : > { %13137 = vmatpush1.bf16.msra.mxu1 %v17279_v50 }
 0xa82   : > { %13138 = vmatprep.subr.bf16.mxu1 %v17287_v61 }
 0xa83   : > { %13112 = vmatpush2.bf16.msra.mxu0 %v17318_v23 }
 0xa84   : > { %13163 = vmatprep.subr.bf16.mxu0 %v17326_v13 }
 0xa85   : > { %13139 = vmatpush2.bf16.msra.mxu1 %v17285_v3 }
 0xa86   : > { %13140 = vmatprep.subr.bf16.mxu1 %v17293_v51 }
 0xa89   : > { %13141 = vmatpush2.bf16.msra.mxu1 %v17291_v2 }
 0xa8a   : > { %13142 = vmatprep.subr.bf16.mxu1 %v17299_v17 }
 0xa8d   : > { %13143 = vmatpush2.bf16.msra.mxu1 %v17297_v11 }
 0xa8e   : > { %13144 = vmatprep.subr.bf16.mxu1 %v17305_v9 }
 0xa91   : > { %13145 = vmatpush2.bf16.msra.mxu1 %v17303_v56 }
 0xa92   : > { %13146 = vmatprep.subr.bf16.mxu1 %v17311_v45 }
 0xa95   : > { %13147 = vmatpush2.bf16.msra.mxu1 %v17309_v14 }
 0xa96   : > { %13148 = vmatprep.subr.bf16.mxu1 %v17317_v44 }
 0xa99   : > { %13149 = vmatpush2.bf16.msra.mxu1 %v17315_v36 }
 0xa9a   : > { %13150 = vmatprep.subr.bf16.mxu1 %v17323_v21 }
 0xa9d   : > { %13151 = vmatpush2.bf16.msra.mxu1 %v17321_v32 }
 0xa9e   : > { %13152 = vmatprep.subr.bf16.mxu1 %v17329_v4 }
 0xaa1   : > { %13153 = vmatpush2.bf16.msra.mxu1 %v17327_v30 }
 0xaa2   : > { %13204 = vmatprep.subr.bf16.mxu1 %v17335_v49 }
 0xac4   : > { %v22378_v29 = vpop.f32.mrf.mxu1 }
 0xac5   : > { %v22380_v54 = vpop.f32.mrf.mxu0 }
 0xac6   : > { %v22382_v47 = vpop.f32.mrf.mxu1 }
 0xac7   : > { %v22387_v35 = vpop.f32.mrf.mxu0 }
 0xac8   : > { %v22392_v59 = vpop.f32.mrf.mxu1 }
 0xac9   : > { %v22394_v20 = vpop.f32.mrf.mxu0 }
 0xaca   : > { %v22396_v33 = vpop.f32.mrf.mxu1 }
 0xacb   : > { %v22401_v16 = vpop.f32.mrf.mxu0 }
 0xacc   : > { %v10962_v12 = vpop.f32.mrf.mxu1 }
 0xacd   : > { %v10963_v27 = vadd.f32 %v10962_v12, %v22399_v42  ;;  %v11025_v58 = vpop.f32.mrf.mxu0 }
 0xace   : > { %v22404_v5 = vpop.f32.mrf.mxu1 }
 0xacf   : > { %v11026_v41 = vadd.f32 %v11025_v58, %v10963_v27  ;;  %v22406_v48 = vpop.f32.mrf.mxu0 }
 0xad0   : > { %v10966_v15 = vpop.f32.mrf.mxu1 }
 0xad1   : > { %v10967_v46 = vadd.f32 %v10966_v15, %v22399_v42  ;;  %v11029_v34 = vpop.f32.mrf.mxu0 }
 0xad2   : > { %v22412_v19 = vpop.f32.mrf.mxu1 }
 0xad3   : > { %v11030_v10 = vadd.f32 %v11029_v34, %v10967_v46  ;;  %v22418_v53 = vpop.f32.mrf.mxu0  ;;  %v10953_v34 = vadd.f32 %v22378_v29, %v22399_v42  ;;  %v10959_v29 = vadd.f32 %v22396_v33, %v22415_v38  ;;  %v10969_v33 = vadd.f32 %v22412_v19, %v22415_v38 }
 0xad4   : > { %v10972_v40 = vpop.f32.mrf.mxu1 }
 0xad5   : > { %v10973_v6 = vadd.f32 %v10972_v40, %v22399_v42 }
 0xad6   : > { %v10974_v50 = vpop.f32.mrf.mxu1 }
 0xad7   : > { %v10975_v7 = vadd.f32 %v10974_v50, %v22415_v38  ;;  %v11035_v28 = vpop.f32.mrf.mxu0  ;;  %v10955_v50 = vadd.f32 %v22382_v47, %v22415_v38  ;;  %v10965_v47 = vadd.f32 %v22404_v5, %v22415_v38 }
 0xad8   : > { %v11036_v57 = vadd.f32 %v11035_v28, %v10973_v6  ;;  %v10976_v3 = vpop.f32.mrf.mxu1 }
 0xad9   : > { %v10977_v61 = vadd.f32 %v10976_v3, %v22399_v42  ;;  %v11037_v1 = vpop.f32.mrf.mxu0  ;;  %v10957_v3 = vadd.f32 %v22392_v59, %v22399_v42 }
 0xada   : > { %v11038_v22 = vadd.f32 %v11037_v1, %v10975_v7  ;;  %v10978_v2 = vpop.f32.mrf.mxu1 }
 0xadb   : > { %v10979_v51 = vadd.f32 %v10978_v2, %v22415_v38  ;;  %v11039_v39 = vpop.f32.mrf.mxu0 }
 0xadc   : > { %v11040_v43 = vadd.f32 %v11039_v39, %v10977_v61  ;;  %v11018_v61 = vadd.f32 %v22387_v35, %v10955_v50  ;;  %v11028_v35 = vadd.f32 %v22406_v48, %v10965_v47 }
 0xadd   : > { %v11041_v11 = vpop.f32.mrf.mxu0 }
 0xade   : > { %v11042_v17 = vadd.f32 %v11041_v11, %v10979_v51  ;;  %v11022_v51 = vadd.f32 %v22401_v16, %v10959_v29 }
 0xb04   : > { %v11078_v62 = vpop.f32.mrf.mxu1 }
 0xb05   : > { %v11141_v26 = vpop.f32.mrf.mxu0 }
 0xb06   : > { %v11080_v56 = vpop.f32.mrf.mxu1 }
 0xb07   : > { %v11143_v9 = vpop.f32.mrf.mxu0  ;;  %v11081_v2 = vadd.f32 %v11080_v56, %v11018_v61 }
 0xb08   : > { %v11082_v60 = vpop.f32.mrf.mxu1 }
 0xb09   : > { %v11145_v52 = vpop.f32.mrf.mxu0  ;;  %v11144_v11 = vadd.f32 %v11143_v9, %v11081_v2 }
 0xb0a   : > { %v11084_v14 = vpop.f32.mrf.mxu1 }
 0xb0b   : > { %v11147_v45 = vpop.f32.mrf.mxu0 }
 0xb0c   : > { %v11088_v24 = vpop.f32.mrf.mxu1 }
 0xb0d   : > { %v11089_v55 = vadd.f32 %v11088_v24, %v11026_v41 }
 0xb0e   : > { %v11090_v44 = vpop.f32.mrf.mxu1  ;;  %v11151_v8 = vpop.f32.mrf.mxu0 }
 0xb0f   : > { %v22423_v36 = vadd.f32 %v11151_v8, %v11089_v55  ;;  %v11091_v56 = vadd.f32 %v11090_v44, %v11028_v35 }
 0xb10   : > { %v11092_v23 = vpop.f32.mrf.mxu1  ;;  %v11153_v21 = vpop.f32.mrf.mxu0 }
 0xb11   : > { %v11093_v13 = vadd.f32 %v11092_v23, %v11030_v10  ;;  %v11154_v19 = vadd.f32 %v11153_v21, %v11091_v56  ;;  %v17324_v21 = vld [vmem:[%s23612_s11 + $0x270] ss:$8 sps:$4 sm:$0xff]  }
 0xb12   : > { %v11094_v32 = vpop.f32.mrf.mxu1  ;;  %v11155_v4 = vpop.f32.mrf.mxu0 }
 0xb13   : > { %v22425_v18 = vadd.f32 %v11155_v4, %v11093_v13 }
 0xb14   : > { %v11098_v30 = vpop.f32.mrf.mxu1  ;;  %v22427_v49 = vpop.f32.mrf.mxu0 }
 0xb15   : > { %v11099_v0 = vadd.f32 %v11098_v30, %v11036_v57  ;;  %v11016_v57 = vadd.f32 %v22380_v54, %v10953_v34 }
 0xb16   : > { %v11100_v12 = vpop.f32.mrf.mxu1  ;;  %v11161_v27 = vpop.f32.mrf.mxu0 }
 0xb17   : > { %v22429_v58 = vadd.f32 %v11100_v12, %v11038_v22  ;;  %v22431_v41 = vadd.f32 %v11161_v27, %v11099_v0  ;;  %v11079_v1 = vadd.f32 %v11078_v62, %v11016_v57  ;;  %v11020_v22 = vadd.f32 %v22394_v20, %v10957_v3 }
 0xb18   : > { %v11102_v15 = vpop.f32.mrf.mxu1  ;;  %v22433_v46 = vpop.f32.mrf.mxu0 }
 0xb19   : > { %v11103_v10 = vadd.f32 %v11102_v15, %v11040_v43  ;;  %v11142_v39 = vadd.f32 %v11141_v26, %v11079_v1  ;;  %v11083_v43 = vadd.f32 %v11082_v60, %v11020_v22  ;;  %v11032_v26 = vadd.f32 %v22418_v53, %v10969_v33 }
 0xb1a   : > { %v11104_v40 = vpop.f32.mrf.mxu1  ;;  %v11165_v6 = vpop.f32.mrf.mxu0 }
 0xb1b   : > { %v22439_v7 = vadd.f32 %v11104_v40, %v11042_v17  ;;  %v22441_v28 = vadd.f32 %v11165_v6, %v11103_v10  ;;  %v11085_v17 = vadd.f32 %v11084_v14, %v11022_v51  ;;  %v11146_v62 = vadd.f32 %v11145_v52, %v11083_v43  ;;  %v17332_v10 = vld [vmem:[%s23612_s11 + $0x264] ss:$8 sps:$4 sm:$0xff]  }
 0xb1c   : > { %v11095_v48 = vadd.f32 %v11094_v32, %v11032_v26  ;;  %v11164_v40 = vadd.f32 %v22433_v46, %v22429_v58  ;;  %v17330_v58 = vld [vmem:[%s23612_s11 + $0x260] ss:$8 sps:$4 sm:$0xff]   ;;  %v11167_v35 = vpop.f32.mrf.mxu0 }
 0xb1d   : > { %v11148_v5 = vadd.f32 %v11147_v45, %v11085_v17  ;;  %v17333_v17 = vld [vmem:[%s23612_s11 + $0x370] ss:$8 sps:$4 sm:$0xff]   ;;  %v11168_v26 = vadd.f32 %v11167_v35, %v22439_v7  ;;  %v17390_v35 = vld [vmem:[%s23612_s11 + $0x2c0] ss:$8 sps:$4 sm:$0xff]  }
 0xb1e   : > { %v11158_v34 = vadd.f32 %v22427_v49, %v11095_v48 }
 0xb24   : > { %v11204_v54 = vpop.f32.mrf.mxu1 }
 0xb25   : > { %v11205_v59 = vadd.f32 %v11204_v54, %v11142_v39  ;;  %v17338_v39 = vld [vmem:[%s23612_s11 + $0x254] ss:$8 sps:$4 sm:$0xff]  }
 0xb26   : > { %v11206_v42 = vpop.f32.mrf.mxu1 }
 0xb27   : > { %v11207_v20 = vadd.f32 %v11206_v42, %v11144_v11  ;;  %v11245_v24 = vmul.f32 0.01, %v11205_v59  ;;  %vm11233_vm14 = vcmp.gt.f32.partialorder %v11205_v59, 0.0 }
 0xb28   : > { %v11208_v55 = vpop.f32.mrf.mxu1 }
 0xb29   : > { %v11209_v16 = vadd.f32 %v11208_v55, %v11146_v62  ;;  %v11246_v9 = vmul.f32 0.01, %v11207_v20  ;;  %v11257_v23 = vsel %vm11233_vm14, %v11205_v59, %v11245_v24  ;;  %vm11234_vm7 = vcmp.gt.f32.partialorder %v11207_v20, 0.0  ;;  %v17336_v24 = vld [vmem:[%s23612_s11 + $0x250] ss:$8 sps:$4 sm:$0xff]  }
 0xb2a   : > { %v11210_v60 = vpop.f32.mrf.mxu1 }
 0xb2b   : > { %vm11235_vm15 = vcmp.gt.f32.partialorder %v11209_v16, 0.0  ;;  %v11247_v14 = vmul.f32 0.01, %v11209_v16  ;;  %v11211_v8 = vadd.f32 %v11210_v60, %v11148_v5  ;;  %v11258_v30 = vsel %vm11234_vm7, %v11207_v20, %v11246_v9  ;;  %v17341_v20 = vld [vmem:[%s23612_s11 + $0x364] ss:$8 sps:$4 sm:$0xff]  }
 0xb2c   : > { %v11214_v38 = vpop.f32.mrf.mxu1  ;;  %v17344_v5 = vld [vmem:[%s23612_s11 + $0x244] ss:$8 sps:$4 sm:$0xff]   ;;  %v17339_v9 = vld [vmem:[%s23612_s11 + $0x360] ss:$8 sps:$4 sm:$0xff]   ;;  %vm14560_vm7 = vcmask 1040384  }
 0xb2d   : > { %v11259_v52 = vsel %vm11235_vm15, %v11209_v16, %v11247_v14  ;;  %vm11236_vm8 = vcmp.gt.f32.partialorder %v11211_v8, 0.0  ;;  %v11248_v44 = vmul.f32 0.01, %v11211_v8  ;;  %v11215_v13 = vadd.f32 %v11214_v38, %v22423_v36  ;;  %v17347_v14 = vld [vmem:[%s23612_s11 + $0x354] ss:$8 sps:$4 sm:$0xff]  }
 0xb2e   : > { %v22458_v45 = vpack.c.bf16 %v11259_v52, %v11257_v23  ;;  %v11216_v4 = vpop.f32.mrf.mxu1 }
 0xb2f   : > { %v11260_v53 = vsel %vm11236_vm8, %v11211_v8, %v11248_v44  ;;  %v11217_v0 = vadd.f32 %v11216_v4, %v11154_v19  ;;  %v11249_v15 = vmul.f32 0.01, %v11215_v13  ;;  %vm11237_vm2 = vcmp.gt.f32.partialorder %v11215_v13, 0.0  ;;  %v17350_v19 = vld [vmem:[%s23612_s11 + $0x234] ss:$8 sps:$4 sm:$0xff]  }
 0xb30   : > { %v11567_v12 = vshll.u32 %v22458_v45, 16  ;;  %v11270_v27 = vpack.c.bf16 %v11260_v53, %v11258_v30  ;;  %v11218_v32 = vpop.f32.mrf.mxu1  ;;  %v11565_v6 = vshrl.u32 %v22458_v45, 16  ;;  %v17353_v30 = vld [vmem:[%s23612_s11 + $0x344] ss:$8 sps:$4 sm:$0xff]  }
 0xb31   : > { %v11219_v36 = vadd.f32 %v11218_v32, %v22425_v18  ;;  %v11250_v50 = vmul.f32 0.01, %v11217_v0  ;;  %v11261_v1 = vsel %vm11237_vm2, %v11215_v13, %v11249_v15  ;;  %vm11238_vm10 = vcmp.gt.f32.partialorder %v11217_v0, 0.0  ;;  %v17345_v13 = vld [vmem:[%s23612_s11 + $0x350] ss:$8 sps:$4 sm:$0xff]  }
 0xb32   : > { %13113 = vmatprep.mubr.bf16.mxu0 %v11270_v27  ;;  %v11583_v57 = vrot.slane %v11270_v27, 1  ;;  %v11220_v3 = vpop.f32.mrf.mxu1  ;;  %v11574_v61 = vshll.u32 %v11270_v27, 16  ;;  %v11569_v29 = vrot.slane %v11567_v12, 1  ;;  %v11572_v46 = vshrl.u32 %v11270_v27, 16  ;;  %v17348_v12 = vld [vmem:[%s23612_s11 + $0x230] ss:$8 sps:$4 sm:$0xff]  }
 0xb33   : > { %13114 = vmatmul.mubr.bf16.vlgmr.msra.gmra.mxu0 %v22458_v45  ;;  %vm11239_vm9 = vcmp.gt.f32.partialorder %v11219_v36, 0.0  ;;  %v11251_v49 = vmul.f32 0.01, %v11219_v36  ;;  %v11221_v18 = vadd.f32 %v11220_v3, %v11158_v34  ;;  %v11262_v42 = vsel %vm11238_vm10, %v11217_v0, %v11250_v50  ;;  %v17356_v15 = vld [vmem:[%s23612_s11 + $0x224] ss:$8 sps:$4 sm:$0xff]  }
 0xb34   : > { %13164 = vmatpush1.bf16.msra.mxu0 %v17324_v21  ;;  %13195 = vmatprep.mubr.bf16.mxu0 %v11583_v57  ;;  %v11576_v22 = vrot.slane %v11574_v61, 1  ;;  %v11224_v2 = vpop.f32.mrf.mxu1  ;;  %v11570_v33 = vor.u32 %v11569_v29, %v11565_v6  ;;  %v17351_v21 = vld [vmem:[%s23612_s11 + $0x340] ss:$8 sps:$4 sm:$0xff]   ;;  %v17359_v32 = vld [vmem:[%s23612_s11 + $0x334] ss:$8 sps:$4 sm:$0xff]  }
 0xb35   : > { %v11263_v47 = vsel %vm11239_vm9, %v11219_v36, %v11251_v49  ;;  %13165 = vmatprep.subr.bf16.mxu0 %v17332_v10  ;;  %vm11240_vm12 = vcmp.gt.f32.partialorder %v11221_v18, 0.0  ;;  %v11252_v51 = vmul.f32 0.01, %v11221_v18  ;;  %v11225_v43 = vadd.f32 %v11224_v2, %v22431_v41  ;;  %v17354_v34 = vld [vmem:[%s23612_s11 + $0x220] ss:$8 sps:$4 sm:$0xff]  }
 0xb36   : > { %v22481_v54 = vpack.c.bf16 %v11263_v47, %v11261_v1  ;;  %v11577_v11 = vor.u32 %v11576_v22, %v11572_v46  ;;  %v11226_v59 = vpop.f32.mrf.mxu1  ;;  %v17362_v36 = vld [vmem:[%s23612_s11 + $0x214] ss:$8 sps:$4 sm:$0xff]   ;;  %v17357_v10 = vld [vmem:[%s23612_s11 + $0x330] ss:$8 sps:$4 sm:$0xff]   ;;  %v17368_v50 = vld [vmem:[%s23612_s11 + $0x204] ss:$8 sps:$4 sm:$0xff]  }
 0xb37   : > { %v11264_v62 = vsel %vm11240_vm12, %v11221_v18, %v11252_v51  ;;  %v11227_v56 = vadd.f32 %v11226_v59, %v11164_v40  ;;  %v11253_v16 = vmul.f32 0.01, %v11225_v43  ;;  %vm11241_vm11 = vcmp.gt.f32.partialorder %v11225_v43, 0.0  ;;  %v17365_v40 = vld [vmem:[%s23612_s11 + $0x324] ss:$8 sps:$4 sm:$0xff]  }
 0xb38   : > { %13166 = vmatpush1.bf16.msra.mxu0 %v17330_v58  ;;  %v22490_v41 = vpack.c.bf16 %v11264_v62, %v11262_v42  ;;  %13154 = vmatprep.mubr.bf16.mxu1 %v11577_v11  ;;  %v11228_v55 = vpop.f32.mrf.mxu1  ;;  %v17360_v6 = vld [vmem:[%s23612_s11 + $0x210] ss:$8 sps:$4 sm:$0xff]   ;;  %v17363_v57 = vld [vmem:[%s23612_s11 + $0x320] ss:$8 sps:$4 sm:$0xff]   ;;  %v17371_v3 = vld [vmem:[%s23612_s11 + $0x314] ss:$8 sps:$4 sm:$0xff]  }
 0xb39   : > { %13155 = vmatmul.mubr.bf16.vlgmr.msra.gmra.mxu1 %v11570_v33  ;;  %13167 = vmatprep.subr.bf16.mxu0 %v17338_v39  ;;  %v11229_v60 = vadd.f32 %v11228_v55, %v22441_v28  ;;  %v11254_v48 = vmul.f32 0.01, %v11227_v56  ;;  %v17342_v28 = vld [vmem:[%s23612_s11 + $0x240] ss:$8 sps:$4 sm:$0xff]   ;;  %vm11242_vm13 = vcmp.gt.f32.partialorder %v11227_v56, 0.0  ;;  %v11265_v38 = vsel %vm11241_vm11, %v11225_v43, %v11253_v16 }
 0xb3a   : > { %13205 = vmatpush1.bf16.msra.mxu1 %v17333_v17  ;;  %13236 = vmatprep.mubr.bf16.mxu1 %v22490_v41  ;;  %v11230_v8 = vpop.f32.mrf.mxu1  ;;  %v17366_v61 = vld [vmem:[%s23612_s11 + $0x200] ss:$8 sps:$4 sm:$0xff]   ;;  %v17374_v29 = vld [vmem:[%s23612_s11 + $0x2f4] ss:$8 sps:$4 sm:$0xff]   ;;  %v17369_v49 = vld [vmem:[%s23612_s11 + $0x310] ss:$8 sps:$4 sm:$0xff]  }
 0xb3b   : > { %13206 = vmatprep.subr.bf16.mxu1 %v17341_v20  ;;  %vm11243_vm3 = vcmp.gt.f32.partialorder %v11229_v60, 0.0  ;;  %v11255_v23 = vmul.f32 0.01, %v11229_v60  ;;  %v11231_v7 = vadd.f32 %v11230_v8, %v11168_v26  ;;  %v11266_v53 = vsel %vm11242_vm13, %v11227_v56, %v11254_v48  ;;  %v17377_v18 = vld [vmem:[%s23612_s11 + $0x304] ss:$8 sps:$4 sm:$0xff]  }
 0xb3c   : > { %13168 = vmatpush1.bf16.msra.mxu0 %v17336_v24  ;;  %v17372_v1 = vld [vmem:[%s23612_s11 + $0x2f0] ss:$8 sps:$4 sm:$0xff]   ;;  %v17380_v58 = vld [vmem:[%s23612_s11 + $0x2e4] ss:$8 sps:$4 sm:$0xff]   ;;  %v17375_v46 = vld [vmem:[%s23612_s11 + $0x300] ss:$8 sps:$4 sm:$0xff]  }
 0xb3d   : > { %13169 = vmatprep.subr.bf16.mxu0 %v17344_v5  ;;  %v11267_v52 = vsel %vm11243_vm3, %v11229_v60, %v11255_v23  ;;  %vm11244_vm1 = vcmp.gt.f32.partialorder %v11231_v7, 0.0  ;;  %v11256_v44 = vmul.f32 0.01, %v11231_v7  ;;  %v17383_v22 = vld [vmem:[%s23612_s11 + $0x3f4] ss:$8 sps:$4 sm:$0xff]   ;;  %v11596_v48 = vshll.u32 %v22490_v41, 16 }
 0xb3e   : > { %13207 = vmatpush1.bf16.msra.mxu1 %v17339_v9  ;;  %v22516_v4 = vpack.c.bf16 %v11267_v52, %v11265_v38  ;;  %v17378_v2 = vld [vmem:[%s23612_s11 + $0x2e0] ss:$8 sps:$4 sm:$0xff]   ;;  %v17386_v47 = vld [vmem:[%s23612_s11 + $0x2d4] ss:$8 sps:$4 sm:$0xff]   ;;  %v17381_v51 = vld [vmem:[%s23612_s11 + $0x3f0] ss:$8 sps:$4 sm:$0xff]  }
 0xb3f   : > { %13208 = vmatprep.subr.bf16.mxu1 %v17347_v14  ;;  %v11268_v0 = vsel %vm11244_vm1, %v11231_v7, %v11256_v44  ;;  %v17389_v39 = vld [vmem:[%s23612_s11 + $0x3e4] ss:$8 sps:$4 sm:$0xff]   ;;  %v17384_v43 = vld [vmem:[%s23612_s11 + $0x2d0] ss:$8 sps:$4 sm:$0xff]   ;;  %v17387_v17 = vld [vmem:[%s23612_s11 + $0x3e0] ss:$8 sps:$4 sm:$0xff]  }
 0xb40   : > { %13170 = vmatpush1.bf16.msra.mxu0 %v17342_v28  ;;  %v22524_v27 = vpack.c.bf16 %v11268_v0, %v11266_v53  ;;  %v17392_v11 = vld [vmem:[%s23612_s11 + $0x2c4] ss:$8 sps:$4 sm:$0xff]   ;;  %v17395_v59 = vld [vmem:[%s23612_s11 + $0x3d4] ss:$8 sps:$4 sm:$0xff]   ;;  %v17393_v42 = vld [vmem:[%s23612_s11 + $0x3d0] ss:$8 sps:$4 sm:$0xff]  }
 0xb41   : > { %13171 = vmatprep.subr.bf16.mxu0 %v17350_v19  ;;  %v17398_v33 = vld [vmem:[%s23612_s11 + $0x2b4] ss:$8 sps:$4 sm:$0xff]   ;;  %v17401_v62 = vld [vmem:[%s23612_s11 + $0x3c4] ss:$8 sps:$4 sm:$0xff]   ;;  %v17396_v20 = vld [vmem:[%s23612_s11 + $0x2b0] ss:$8 sps:$4 sm:$0xff]  }
 0xb42   : > { %13209 = vmatpush1.bf16.msra.mxu1 %v17345_v13  ;;  %v17404_v56 = vld [vmem:[%s23612_s11 + $0x2a4] ss:$8 sps:$4 sm:$0xff]   ;;  %v17399_v24 = vld [vmem:[%s23612_s11 + $0x3c0] ss:$8 sps:$4 sm:$0xff]   ;;  %v17407_v55 = vld [vmem:[%s23612_s11 + $0x3b4] ss:$8 sps:$4 sm:$0xff]  }
 0xb43   : > { %13210 = vmatprep.subr.bf16.mxu1 %v17353_v30  ;;  %v17402_v5 = vld [vmem:[%s23612_s11 + $0x2a0] ss:$8 sps:$4 sm:$0xff]   ;;  %v17410_v16 = vld [vmem:[%s23612_s11 + $0x294] ss:$8 sps:$4 sm:$0xff]   ;;  %v17405_v26 = vld [vmem:[%s23612_s11 + $0x3b0] ss:$8 sps:$4 sm:$0xff]  }
 0xb44   : > { %13172 = vmatpush1.bf16.msra.mxu0 %v17348_v12  ;;  %v17413_v60 = vld [vmem:[%s23612_s11 + $0x3a4] ss:$8 sps:$4 sm:$0xff]   ;;  %v17408_v9 = vld [vmem:[%s23612_s11 + $0x290] ss:$8 sps:$4 sm:$0xff]   ;;  %v17411_v8 = vld [vmem:[%s23612_s11 + $0x3a0] ss:$8 sps:$4 sm:$0xff]  }
 0xb45   : > { %13173 = vmatprep.subr.bf16.mxu0 %v17356_v15  ;;  %v17416_v14 = vld [vmem:[%s23612_s11 + $0x284] ss:$8 sps:$4 sm:$0xff]   ;;  %v17419_v23 = vld [vmem:[%s23612_s11 + $0x394] ss:$8 sps:$4 sm:$0xff]   ;;  %v17414_v7 = vld [vmem:[%s23612_s11 + $0x280] ss:$8 sps:$4 sm:$0xff]  }
 0xb46   : > { %13211 = vmatpush1.bf16.msra.mxu1 %v17351_v21  ;;  %v17422_v28 = vld [vmem:[%s23612_s11 + $0x474] ss:$8 sps:$4 sm:$0xff]   ;;  %v17417_v19 = vld [vmem:[%s23612_s11 + $0x390] ss:$8 sps:$4 sm:$0xff]   ;;  %v11598_v38 = vrot.slane %v11596_v48, 1  ;;  %v11594_v13 = vshrl.u32 %v22490_v41, 16 }
 0xb47   : > { %13212 = vmatprep.subr.bf16.mxu1 %v17359_v32  ;;  %v17425_v52 = vld [vmem:[%s23612_s11 + $0x384] ss:$8 sps:$4 sm:$0xff]   ;;  %v17420_v44 = vld [vmem:[%s23612_s11 + $0x470] ss:$8 sps:$4 sm:$0xff]   ;;  %v11582_v30 = vrot.slane %v22458_v45, 1  ;;  %vm14580_vm11 = vcmask 0  }
 0xb48   : > { %13174 = vmatpush1.bf16.msra.mxu0 %v17354_v34  ;;  %v17428_v53 = vld [vmem:[%s23612_s11 + $0x464] ss:$8 sps:$4 sm:$0xff]   ;;  %v11599_v0 = vor.u32 %v11598_v38, %v11594_v13  ;;  %v17423_v12 = vld [vmem:[%s23612_s11 + $0x380] ss:$8 sps:$4 sm:$0xff]   ;;  %v17431_v15 = vld [vmem:[%s23612_s11 + $0x574] ss:$8 sps:$4 sm:$0xff]  }
 0xb49   : > { %13175 = vmatprep.subr.bf16.mxu0 %v17362_v36  ;;  %v17426_v45 = vld [vmem:[%s23612_s11 + $0x460] ss:$8 sps:$4 sm:$0xff]   ;;  %v17434_v21 = vld [vmem:[%s23612_s11 + $0x454] ss:$8 sps:$4 sm:$0xff]   ;;  %v17429_v32 = vld [vmem:[%s23612_s11 + $0x570] ss:$8 sps:$4 sm:$0xff]  }
 0xb4a   : > { %13213 = vmatpush1.bf16.msra.mxu1 %v17357_v10  ;;  %v17437_v34 = vld [vmem:[%s23612_s11 + $0x564] ss:$8 sps:$4 sm:$0xff]   ;;  %v11605_v36 = vrot.slane %v22490_v41, 1  ;;  %v17432_v10 = vld [vmem:[%s23612_s11 + $0x450] ss:$8 sps:$4 sm:$0xff]  }
 0xb4b   : > { %13214 = vmatprep.subr.bf16.mxu1 %v17365_v40  ;;  %v17440_v40 = vld [vmem:[%s23612_s11 + $0x444] ss:$8 sps:$4 sm:$0xff]   ;;  %v17443_v41 = vld [vmem:[%s23612_s11 + $0x554] ss:$8 sps:$4 sm:$0xff]   ;;  %v17489_v48 = vld [vmem:[%s23612_s11 + $0x5d0] ss:$8 sps:$4 sm:$0xff]  }
 0xb4c   : > { %13176 = vmatpush1.bf16.msra.mxu0 %v17360_v6  ;;  %v17435_v6 = vld [vmem:[%s23612_s11 + $0x560] ss:$8 sps:$4 sm:$0xff]   ;;  %v17503_v38 = vld [vmem:[%s23612_s11 + $0x5b4] ss:$8 sps:$4 sm:$0xff]   ;;  %v17501_v13 = vld [vmem:[%s23612_s11 + $0x5b0] ss:$8 sps:$4 sm:$0xff]  }
 0xb4d   : > { %13177 = vmatprep.subr.bf16.mxu0 %v17368_v50  ;;  %v17438_v50 = vld [vmem:[%s23612_s11 + $0x440] ss:$8 sps:$4 sm:$0xff]  }
 0xb4e   : > { %13215 = vmatpush1.bf16.msra.mxu1 %v17363_v57  ;;  %v17446_v57 = vld [vmem:[%s23612_s11 + $0x434] ss:$8 sps:$4 sm:$0xff]  }
 0xb4f   : > { %13216 = vmatprep.subr.bf16.mxu1 %v17371_v3  ;;  %v17441_v3 = vld [vmem:[%s23612_s11 + $0x550] ss:$8 sps:$4 sm:$0xff]  }
 0xb50   : > { %13178 = vmatpush1.bf16.msra.mxu0 %v17366_v61  ;;  %v17449_v61 = vld [vmem:[%s23612_s11 + $0x544] ss:$8 sps:$4 sm:$0xff]  }
 0xb51   : > { %13179 = vmatprep.subr.bf16.mxu0 %v17374_v29  ;;  %v17444_v29 = vld [vmem:[%s23612_s11 + $0x430] ss:$8 sps:$4 sm:$0xff]  }
 0xb52   : > { %13217 = vmatpush1.bf16.msra.mxu1 %v17369_v49  ;;  %v17452_v49 = vld [vmem:[%s23612_s11 + $0x424] ss:$8 sps:$4 sm:$0xff]  }
 0xb53   : > { %13218 = vmatprep.subr.bf16.mxu1 %v17377_v18  ;;  %v17447_v18 = vld [vmem:[%s23612_s11 + $0x540] ss:$8 sps:$4 sm:$0xff]  }
 0xb54   : > { %13180 = vmatpush2.bf16.msra.mxu0 %v17372_v1  ;;  %v17455_v1 = vld [vmem:[%s23612_s11 + $0x534] ss:$8 sps:$4 sm:$0xff]  }
 0xb55   : > { %13181 = vmatprep.subr.bf16.mxu0 %v17380_v58  ;;  %v17450_v58 = vld [vmem:[%s23612_s11 + $0x420] ss:$8 sps:$4 sm:$0xff]  }
 0xb56   : > { %13219 = vmatpush1.bf16.msra.mxu1 %v17375_v46  ;;  %v17458_v46 = vld [vmem:[%s23612_s11 + $0x414] ss:$8 sps:$4 sm:$0xff]  }
 0xb57   : > { %13220 = vmatprep.subr.bf16.mxu1 %v17383_v22  ;;  %v17453_v22 = vld [vmem:[%s23612_s11 + $0x530] ss:$8 sps:$4 sm:$0xff]  }
 0xb58   : > { %13182 = vmatpush2.bf16.msra.mxu0 %v17378_v2  ;;  %v17461_v2 = vld [vmem:[%s23612_s11 + $0x524] ss:$8 sps:$4 sm:$0xff]  }
 0xb59   : > { %13183 = vmatprep.subr.bf16.mxu0 %v17386_v47  ;;  %v17456_v47 = vld [vmem:[%s23612_s11 + $0x410] ss:$8 sps:$4 sm:$0xff]  }
 0xb5a   : > { %13221 = vmatpush2.bf16.msra.mxu1 %v17381_v51  ;;  %v17464_v51 = vld [vmem:[%s23612_s11 + $0x404] ss:$8 sps:$4 sm:$0xff]  }
 0xb5b   : > { %13222 = vmatprep.subr.bf16.mxu1 %v17389_v39  ;;  %v17459_v39 = vld [vmem:[%s23612_s11 + $0x520] ss:$8 sps:$4 sm:$0xff]  }
 0xb5c   : > { %13184 = vmatpush2.bf16.msra.mxu0 %v17384_v43  ;;  %v17467_v43 = vld [vmem:[%s23612_s11 + $0x514] ss:$8 sps:$4 sm:$0xff]  }
 0xb5d   : > { %13185 = vmatprep.subr.bf16.mxu0 %v17392_v11  ;;  %v17462_v11 = vld [vmem:[%s23612_s11 + $0x400] ss:$8 sps:$4 sm:$0xff]  }
 0xb5e   : > { %13223 = vmatpush2.bf16.msra.mxu1 %v17387_v17  ;;  %v17470_v17 = vld [vmem:[%s23612_s11 + $0x4f4] ss:$8 sps:$4 sm:$0xff]  }
 0xb5f   : > { %13224 = vmatprep.subr.bf16.mxu1 %v17395_v59  ;;  %v17465_v59 = vld [vmem:[%s23612_s11 + $0x510] ss:$8 sps:$4 sm:$0xff]  }
 0xb60   : > { %13186 = vmatpush2.bf16.msra.mxu0 %v17390_v35  ;;  %v17473_v35 = vld [vmem:[%s23612_s11 + $0x504] ss:$8 sps:$4 sm:$0xff]  }
 0xb61   : > { %13187 = vmatprep.subr.bf16.mxu0 %v17398_v33  ;;  %v17468_v33 = vld [vmem:[%s23612_s11 + $0x4f0] ss:$8 sps:$4 sm:$0xff]  }
 0xb62   : > { %13225 = vmatpush2.bf16.msra.mxu1 %v17393_v42  ;;  %v17476_v42 = vld [vmem:[%s23612_s11 + $0x4e4] ss:$8 sps:$4 sm:$0xff]  }
 0xb63   : > { %13226 = vmatprep.subr.bf16.mxu1 %v17401_v62  ;;  %v17471_v62 = vld [vmem:[%s23612_s11 + $0x500] ss:$8 sps:$4 sm:$0xff]  }
 0xb64   : > { %13188 = vmatpush2.bf16.msra.mxu0 %v17396_v20  ;;  %v17479_v20 = vld [vmem:[%s23612_s11 + $0x5f4] ss:$8 sps:$4 sm:$0xff]  }
 0xb65   : > { %13189 = vmatprep.subr.bf16.mxu0 %v17404_v56  ;;  %v17474_v56 = vld [vmem:[%s23612_s11 + $0x4e0] ss:$8 sps:$4 sm:$0xff]  }
 0xb66   : > { %13227 = vmatpush2.bf16.msra.mxu1 %v17399_v24  ;;  %v17482_v24 = vld [vmem:[%s23612_s11 + $0x4d4] ss:$8 sps:$4 sm:$0xff]  }
 0xb67   : > { %13228 = vmatprep.subr.bf16.mxu1 %v17407_v55  ;;  %v17477_v55 = vld [vmem:[%s23612_s11 + $0x5f0] ss:$8 sps:$4 sm:$0xff]  }
 0xb68   : > { %13190 = vmatpush2.bf16.msra.mxu0 %v17402_v5  ;;  %v17485_v5 = vld [vmem:[%s23612_s11 + $0x5e4] ss:$8 sps:$4 sm:$0xff]  }
 0xb69   : > { %13191 = vmatprep.subr.bf16.mxu0 %v17410_v16  ;;  %v17480_v16 = vld [vmem:[%s23612_s11 + $0x4d0] ss:$8 sps:$4 sm:$0xff]  }
 0xb6a   : > { %13229 = vmatpush2.bf16.msra.mxu1 %v17405_v26  ;;  %v17488_v26 = vld [vmem:[%s23612_s11 + $0x4c4] ss:$8 sps:$4 sm:$0xff]  }
 0xb6b   : > { %13230 = vmatprep.subr.bf16.mxu1 %v17413_v60  ;;  %v17483_v60 = vld [vmem:[%s23612_s11 + $0x5e0] ss:$8 sps:$4 sm:$0xff]  }
 0xb6c   : > { %13192 = vmatpush2.bf16.msra.mxu0 %v17408_v9  ;;  %v17491_v9 = vld [vmem:[%s23612_s11 + $0x5d4] ss:$8 sps:$4 sm:$0xff]  }
 0xb6d   : > { %13193 = vmatprep.subr.bf16.mxu0 %v17416_v14  ;;  %v17486_v14 = vld [vmem:[%s23612_s11 + $0x4c0] ss:$8 sps:$4 sm:$0xff]  }
 0xb6e   : > { %13231 = vmatpush2.bf16.msra.mxu1 %v17411_v8  ;;  %v17494_v8 = vld [vmem:[%s23612_s11 + $0x4b4] ss:$8 sps:$4 sm:$0xff]  }
 0xb6f   : > { %13232 = vmatprep.subr.bf16.mxu1 %v17419_v23  ;;  %v17497_v23 = vld [vmem:[%s23612_s11 + $0x5c4] ss:$8 sps:$4 sm:$0xff]  }
 0xb70   : > { %13194 = vmatpush2.bf16.msra.mxu0 %v17414_v7  ;;  %v17492_v7 = vld [vmem:[%s23612_s11 + $0x4b0] ss:$8 sps:$4 sm:$0xff]  }
 0xb71   : > { %13245 = vmatprep.subr.bf16.mxu0 %v17422_v28  ;;  %v17500_v28 = vld [vmem:[%s23612_s11 + $0x4a4] ss:$8 sps:$4 sm:$0xff]  }
 0xb72   : > { %13233 = vmatpush2.bf16.msra.mxu1 %v17417_v19  ;;  %v17495_v19 = vld [vmem:[%s23612_s11 + $0x5c0] ss:$8 sps:$4 sm:$0xff]  }
 0xb73   : > { %13196 = vmatmul.mubr.bf16.vlgmr.msra.gmra.mxu0 %v11582_v30  ;;  %13234 = vmatprep.subr.bf16.mxu1 %v17425_v52  ;;  %v17498_v52 = vld [vmem:[%s23612_s11 + $0x4a0] ss:$8 sps:$4 sm:$0xff]   ;;  %v17509_v30 = vld [vmem:[%s23612_s11 + $0x5a4] ss:$8 sps:$4 sm:$0xff]  }
 0xb74   : > { %13246 = vmatpush1.bf16.msra.mxu0 %v17420_v44  ;;  %13277 = vmatprep.mubr.bf16.mxu0 %v11599_v0  ;;  %v17506_v44 = vld [vmem:[%s23612_s11 + $0x494] ss:$8 sps:$4 sm:$0xff]   ;;  %v11589_v0 = vshll.u32 %v22481_v54, 16 }
 0xb75   : > { %13247 = vmatprep.subr.bf16.mxu0 %v17428_v53  ;;  %v17504_v53 = vld [vmem:[%s23612_s11 + $0x490] ss:$8 sps:$4 sm:$0xff]  }
 0xb76   : > { %13235 = vmatpush2.bf16.msra.mxu1 %v17423_v12  ;;  %v17512_v12 = vld [vmem:[%s23612_s11 + $0x484] ss:$8 sps:$4 sm:$0xff]  }
 0xb77   : > { %13286 = vmatprep.subr.bf16.mxu1 %v17431_v15  ;;  %v17507_v15 = vld [vmem:[%s23612_s11 + $0x5a0] ss:$8 sps:$4 sm:$0xff]  }
 0xb78   : > { %13248 = vmatpush1.bf16.msra.mxu0 %v17426_v45  ;;  %v17515_v45 = vld [vmem:[%s23612_s11 + $0x594] ss:$8 sps:$4 sm:$0xff]  }
 0xb79   : > { %13237 = vmatmul.mubr.bf16.vlgmr.msra.gmra.mxu1 %v22481_v54  ;;  %13249 = vmatprep.subr.bf16.mxu0 %v17434_v21  ;;  %v17510_v21 = vld [vmem:[%s23612_s11 + $0x480] ss:$8 sps:$4 sm:$0xff]  }
 0xb7a   : > { %13287 = vmatpush1.bf16.msra.mxu1 %v17429_v32  ;;  %13318 = vmatprep.mubr.bf16.mxu1 %v11605_v36  ;;  %v11591_v32 = vrot.slane %v11589_v0, 1  ;;  %v17513_v36 = vld [vmem:[%s23612_s11 + $0x590] ss:$8 sps:$4 sm:$0xff]   ;;  %v17579_v0 = vld [vmem:[%s23612_s11 + $0x7e0] ss:$8 sps:$4 sm:$0xff]  }
 0xb7b   : > { %13288 = vmatprep.subr.bf16.mxu1 %v17437_v34  ;;  %v17518_v34 = vld [vmem:[%s23612_s11 + $0x674] ss:$8 sps:$4 sm:$0xff]  }
 0xb7c   : > { %13250 = vmatpush1.bf16.msra.mxu0 %v17432_v10  ;;  %v11587_v10 = vshrl.u32 %v22481_v54, 16 }
 0xb7d   : > { %13251 = vmatprep.subr.bf16.mxu0 %v17440_v40  ;;  %v17521_v40 = vld [vmem:[%s23612_s11 + $0x584] ss:$8 sps:$4 sm:$0xff]  }
 0xb7e   : > { %13289 = vmatpush1.bf16.msra.mxu1 %v17435_v6  ;;  %v17516_v6 = vld [vmem:[%s23612_s11 + $0x670] ss:$8 sps:$4 sm:$0xff]  }
 0xb7f   : > { %13290 = vmatprep.subr.bf16.mxu1 %v17443_v41  ;;  %v11618_v41 = vshll.u32 %v22524_v27, 16 }
 0xb80   : > { %13252 = vmatpush1.bf16.msra.mxu0 %v17438_v50  ;;  %v11592_v50 = vor.u32 %v11591_v32, %v11587_v10  ;;  %v17593_v32 = vld [vmem:[%s23612_s11 + $0x7c4] ss:$8 sps:$4 sm:$0xff]   ;;  %v17591_v10 = vld [vmem:[%s23612_s11 + $0x7c0] ss:$8 sps:$4 sm:$0xff]  }
 0xb81   : > { %13253 = vmatprep.subr.bf16.mxu0 %v17446_v57  ;;  %v17524_v57 = vld [vmem:[%s23612_s11 + $0x664] ss:$8 sps:$4 sm:$0xff]  }
 0xb82   : > { %13291 = vmatpush1.bf16.msra.mxu1 %v17441_v3  ;;  %v17519_v3 = vld [vmem:[%s23612_s11 + $0x580] ss:$8 sps:$4 sm:$0xff]  }
 0xb83   : > { %13292 = vmatprep.subr.bf16.mxu1 %v17449_v61  ;;  %v17527_v61 = vld [vmem:[%s23612_s11 + $0x774] ss:$8 sps:$4 sm:$0xff]  }
 0xb84   : > { %13254 = vmatpush1.bf16.msra.mxu0 %v17444_v29  ;;  %v17522_v29 = vld [vmem:[%s23612_s11 + $0x660] ss:$8 sps:$4 sm:$0xff]  }
 0xb85   : > { %13255 = vmatprep.subr.bf16.mxu0 %v17452_v49  ;;  %v11620_v49 = vrot.slane %v11618_v41, 1  ;;  %v17602_v41 = vld [vmem:[%s23612_s11 + $0x694] ss:$8 sps:$4 sm:$0xff]  }
 0xb86   : > { %13293 = vmatpush1.bf16.msra.mxu1 %v17447_v18  ;;  %v17530_v18 = vld [vmem:[%s23612_s11 + $0x654] ss:$8 sps:$4 sm:$0xff]  }
 0xb87   : > { %13294 = vmatprep.subr.bf16.mxu1 %v17455_v1  ;;  %v17525_v1 = vld [vmem:[%s23612_s11 + $0x770] ss:$8 sps:$4 sm:$0xff]  }
 0xb88   : > { %13256 = vmatpush1.bf16.msra.mxu0 %v17450_v58  ;;  %v11616_v58 = vshrl.u32 %v22524_v27, 16 }
 0xb89   : > { %13257 = vmatprep.subr.bf16.mxu0 %v17458_v46  ;;  %v11604_v46 = vrot.slane %v22481_v54, 1  ;;  %v17531_v54 = vld [vmem:[%s23612_s11 + $0x760] ss:$8 sps:$4 sm:$0xff]  }
 0xb8a   : > { %13295 = vmatpush1.bf16.msra.mxu1 %v17453_v22  ;;  %v17533_v22 = vld [vmem:[%s23612_s11 + $0x764] ss:$8 sps:$4 sm:$0xff]  }
 0xb8b   : > { %13296 = vmatprep.subr.bf16.mxu1 %v17461_v2  ;;  %v11621_v2 = vor.u32 %v11620_v49, %v11616_v58  ;;  %v17611_v49 = vld [vmem:[%s23612_s11 + $0x794] ss:$8 sps:$4 sm:$0xff]   ;;  %v17609_v58 = vld [vmem:[%s23612_s11 + $0x790] ss:$8 sps:$4 sm:$0xff]  }
 0xb8c   : > { %13258 = vmatpush1.bf16.msra.mxu0 %v17456_v47  ;;  %v17528_v47 = vld [vmem:[%s23612_s11 + $0x650] ss:$8 sps:$4 sm:$0xff]  }
 0xb8d   : > { %13259 = vmatprep.subr.bf16.mxu0 %v17464_v51  ;;  %v17536_v51 = vld [vmem:[%s23612_s11 + $0x644] ss:$8 sps:$4 sm:$0xff]  }
 0xb8e   : > { %13297 = vmatpush1.bf16.msra.mxu1 %v17459_v39  ;;  %v17539_v39 = vld [vmem:[%s23612_s11 + $0x754] ss:$8 sps:$4 sm:$0xff]  }
 0xb8f   : > { %13298 = vmatprep.subr.bf16.mxu1 %v17467_v43  ;;  %v17534_v43 = vld [vmem:[%s23612_s11 + $0x640] ss:$8 sps:$4 sm:$0xff]  }
 0xb90   : > { %13260 = vmatpush1.bf16.msra.mxu0 %v17462_v11  ;;  %v17542_v11 = vld [vmem:[%s23612_s11 + $0x634] ss:$8 sps:$4 sm:$0xff]  }
 0xb91   : > { %13261 = vmatprep.subr.bf16.mxu0 %v17470_v17  ;;  %v17537_v17 = vld [vmem:[%s23612_s11 + $0x750] ss:$8 sps:$4 sm:$0xff]  }
 0xb92   : > { %13299 = vmatpush1.bf16.msra.mxu1 %v17465_v59  ;;  %v17545_v59 = vld [vmem:[%s23612_s11 + $0x744] ss:$8 sps:$4 sm:$0xff]  }
 0xb93   : > { %13300 = vmatprep.subr.bf16.mxu1 %v17473_v35  ;;  %v17540_v35 = vld [vmem:[%s23612_s11 + $0x630] ss:$8 sps:$4 sm:$0xff]  }
 0xb94   : > { %13262 = vmatpush2.bf16.msra.mxu0 %v17468_v33  ;;  %v17548_v33 = vld [vmem:[%s23612_s11 + $0x624] ss:$8 sps:$4 sm:$0xff]  }
 0xb95   : > { %13263 = vmatprep.subr.bf16.mxu0 %v17476_v42  ;;  %v17543_v42 = vld [vmem:[%s23612_s11 + $0x740] ss:$8 sps:$4 sm:$0xff]  }
 0xb96   : > { %13301 = vmatpush1.bf16.msra.mxu1 %v17471_v62  ;;  %v17551_v62 = vld [vmem:[%s23612_s11 + $0x734] ss:$8 sps:$4 sm:$0xff]  }
 0xb97   : > { %13302 = vmatprep.subr.bf16.mxu1 %v17479_v20  ;;  %v17546_v20 = vld [vmem:[%s23612_s11 + $0x620] ss:$8 sps:$4 sm:$0xff]  }
 0xb98   : > { %13264 = vmatpush2.bf16.msra.mxu0 %v17474_v56  ;;  %v17554_v56 = vld [vmem:[%s23612_s11 + $0x614] ss:$8 sps:$4 sm:$0xff]  }
 0xb99   : > { %13265 = vmatprep.subr.bf16.mxu0 %v17482_v24  ;;  %v17549_v24 = vld [vmem:[%s23612_s11 + $0x730] ss:$8 sps:$4 sm:$0xff]  }
 0xb9a   : > { %13303 = vmatpush2.bf16.msra.mxu1 %v17477_v55  ;;  %v17557_v55 = vld [vmem:[%s23612_s11 + $0x724] ss:$8 sps:$4 sm:$0xff]  }
 0xb9b   : > { %13304 = vmatprep.subr.bf16.mxu1 %v17485_v5  ;;  %v17552_v5 = vld [vmem:[%s23612_s11 + $0x610] ss:$8 sps:$4 sm:$0xff]  }
 0xb9c   : > { %13266 = vmatpush2.bf16.msra.mxu0 %v17480_v16  ;;  %v17560_v16 = vld [vmem:[%s23612_s11 + $0x604] ss:$8 sps:$4 sm:$0xff]  }
 0xb9d   : > { %13267 = vmatprep.subr.bf16.mxu0 %v17488_v26  ;;  %v17555_v26 = vld [vmem:[%s23612_s11 + $0x720] ss:$8 sps:$4 sm:$0xff]  }
 0xb9e   : > { %13305 = vmatpush2.bf16.msra.mxu1 %v17483_v60  ;;  %v17563_v60 = vld [vmem:[%s23612_s11 + $0x714] ss:$8 sps:$4 sm:$0xff]  }
 0xb9f   : > { %13306 = vmatprep.subr.bf16.mxu1 %v17491_v9  ;;  %v17558_v9 = vld [vmem:[%s23612_s11 + $0x600] ss:$8 sps:$4 sm:$0xff]  }
 0xba0   : > { %13268 = vmatpush2.bf16.msra.mxu0 %v17486_v14  ;;  %v17566_v14 = vld [vmem:[%s23612_s11 + $0x6f4] ss:$8 sps:$4 sm:$0xff]  }
 0xba1   : > { %13269 = vmatprep.subr.bf16.mxu0 %v17494_v8  ;;  %v17561_v8 = vld [vmem:[%s23612_s11 + $0x710] ss:$8 sps:$4 sm:$0xff]  }
 0xba2   : > { %13307 = vmatpush2.bf16.msra.mxu1 %v17489_v48  ;;  %v17569_v48 = vld [vmem:[%s23612_s11 + $0x704] ss:$8 sps:$4 sm:$0xff]  }
 0xba3   : > { %13308 = vmatprep.subr.bf16.mxu1 %v17497_v23  ;;  %v17564_v23 = vld [vmem:[%s23612_s11 + $0x6f0] ss:$8 sps:$4 sm:$0xff]  }
 0xba4   : > { %13270 = vmatpush2.bf16.msra.mxu0 %v17492_v7  ;;  %v17572_v7 = vld [vmem:[%s23612_s11 + $0x6e4] ss:$8 sps:$4 sm:$0xff]  }
 0xba5   : > { %13271 = vmatprep.subr.bf16.mxu0 %v17500_v28  ;;  %v17567_v28 = vld [vmem:[%s23612_s11 + $0x700] ss:$8 sps:$4 sm:$0xff]  }
 0xba6   : > { %13309 = vmatpush2.bf16.msra.mxu1 %v17495_v19  ;;  %v17575_v19 = vld [vmem:[%s23612_s11 + $0x7f4] ss:$8 sps:$4 sm:$0xff]  }
 0xba7   : > { %13310 = vmatprep.subr.bf16.mxu1 %v17503_v38  ;;  %v17570_v38 = vld [vmem:[%s23612_s11 + $0x6e0] ss:$8 sps:$4 sm:$0xff]  }
 0xba8   : > { %13272 = vmatpush2.bf16.msra.mxu0 %v17498_v52  ;;  %v17578_v52 = vld [vmem:[%s23612_s11 + $0x6d4] ss:$8 sps:$4 sm:$0xff]  }
 0xba9   : > { %13273 = vmatprep.subr.bf16.mxu0 %v17506_v44  ;;  %v17573_v44 = vld [vmem:[%s23612_s11 + $0x7f0] ss:$8 sps:$4 sm:$0xff]  }
 0xbaa   : > { %13311 = vmatpush2.bf16.msra.mxu1 %v17501_v13  ;;  %v17581_v13 = vld [vmem:[%s23612_s11 + $0x7e4] ss:$8 sps:$4 sm:$0xff]  }
 0xbab   : > { %13312 = vmatprep.subr.bf16.mxu1 %v17509_v30  ;;  %v17576_v30 = vld [vmem:[%s23612_s11 + $0x6d0] ss:$8 sps:$4 sm:$0xff]  }
 0xbac   : > { %13274 = vmatpush2.bf16.msra.mxu0 %v17504_v53  ;;  %v17584_v53 = vld [vmem:[%s23612_s11 + $0x6c4] ss:$8 sps:$4 sm:$0xff]  }
 0xbad   : > { %13275 = vmatprep.subr.bf16.mxu0 %v17512_v12  ;;  %v17587_v12 = vld [vmem:[%s23612_s11 + $0x7d4] ss:$8 sps:$4 sm:$0xff]  }
 0xbae   : > { %13313 = vmatpush2.bf16.msra.mxu1 %v17507_v15  ;;  %v17582_v15 = vld [vmem:[%s23612_s11 + $0x6c0] ss:$8 sps:$4 sm:$0xff]  }
 0xbaf   : > { %13314 = vmatprep.subr.bf16.mxu1 %v17515_v45  ;;  %v17590_v45 = vld [vmem:[%s23612_s11 + $0x6b4] ss:$8 sps:$4 sm:$0xff]  }
 0xbb0   : > { %13276 = vmatpush2.bf16.msra.mxu0 %v17510_v21  ;;  %v17585_v21 = vld [vmem:[%s23612_s11 + $0x7d0] ss:$8 sps:$4 sm:$0xff]  }
 0xbb1   : > { %13327 = vmatprep.subr.bf16.mxu0 %v17518_v34  ;;  %v17588_v34 = vld [vmem:[%s23612_s11 + $0x6b0] ss:$8 sps:$4 sm:$0xff]  }
 0xbb2   : > { %13315 = vmatpush2.bf16.msra.mxu1 %v17513_v36  ;;  %v17596_v36 = vld [vmem:[%s23612_s11 + $0x6a4] ss:$8 sps:$4 sm:$0xff]  }
 0xbb3   : > { %13278 = vmatmul.mubr.bf16.vlgmr.msra.gmra.mxu0 %v11592_v50  ;;  %13316 = vmatprep.subr.bf16.mxu1 %v17521_v40  ;;  %v17599_v40 = vld [vmem:[%s23612_s11 + $0x7b4] ss:$8 sps:$4 sm:$0xff]   ;;  %v17597_v50 = vld [vmem:[%s23612_s11 + $0x7b0] ss:$8 sps:$4 sm:$0xff]  }
 0xbb4   : > { %13328 = vmatpush1.bf16.msra.mxu0 %v17516_v6  ;;  %13359 = vmatprep.mubr.bf16.mxu0 %v22524_v27  ;;  %v17594_v6 = vld [vmem:[%s23612_s11 + $0x6a0] ss:$8 sps:$4 sm:$0xff]  }
 0xbb5   : > { %13329 = vmatprep.subr.bf16.mxu0 %v17524_v57  ;;  %v17605_v57 = vld [vmem:[%s23612_s11 + $0x7a4] ss:$8 sps:$4 sm:$0xff]  }
 0xbb6   : > { %13317 = vmatpush2.bf16.msra.mxu1 %v17519_v3  ;;  %v17600_v3 = vld [vmem:[%s23612_s11 + $0x690] ss:$8 sps:$4 sm:$0xff]  }
 0xbb7   : > { %13368 = vmatprep.subr.bf16.mxu1 %v17527_v61  ;;  %v17608_v61 = vld [vmem:[%s23612_s11 + $0x684] ss:$8 sps:$4 sm:$0xff]  }
 0xbb8   : > { %13330 = vmatpush1.bf16.msra.mxu0 %v17522_v29  ;;  %v17603_v29 = vld [vmem:[%s23612_s11 + $0x7a0] ss:$8 sps:$4 sm:$0xff]  }
 0xbb9   : > { %13319 = vmatmul.mubr.bf16.vlgmr.msra.gmra.mxu1 %v11604_v46  ;;  %13331 = vmatprep.subr.bf16.mxu0 %v17530_v18  ;;  %v17606_v18 = vld [vmem:[%s23612_s11 + $0x680] ss:$8 sps:$4 sm:$0xff]   ;;  %v11611_v46 = vshll.u32 %v22516_v4, 16 }
 0xbba   : > { %13369 = vmatpush1.bf16.msra.mxu1 %v17525_v1  ;;  %13400 = vmatprep.mubr.bf16.mxu1 %v11621_v2  ;;  %v17614_v1 = vld [vmem:[%s23612_s11 + $0x874] ss:$8 sps:$4 sm:$0xff]   ;;  %v17612_v2 = vld [vmem:[%s23612_s11 + $0x870] ss:$8 sps:$4 sm:$0xff]  }
 0xbbb   : > { %13370 = vmatprep.subr.bf16.mxu1 %v17533_v22  ;;  %v17617_v22 = vld [vmem:[%s23612_s11 + $0x784] ss:$8 sps:$4 sm:$0xff]  }
 0xbbc   : > { %13332 = vmatpush1.bf16.msra.mxu0 %v17528_v47  ;;  %v11563_v47 = vld [vmem:[%s23613_s12] sm:$0x3] }
 0xbbd   : > { %13333 = vmatprep.subr.bf16.mxu0 %v17536_v51  ;;  %v17620_v51 = vld [vmem:[%s23612_s11 + $0x864] ss:$8 sps:$4 sm:$0xff]  }
 0xbbe   : > { %13371 = vmatpush1.bf16.msra.mxu1 %v17531_v54  ;;  %v11627_v54 = vrot.slane %v22524_v27, 1  ;;  %v11609_v27 = vshrl.u32 %v22516_v4, 16 }
 0xbbf   : > { %13372 = vmatprep.subr.bf16.mxu1 %v17539_v39  ;;  %v17615_v39 = vld [vmem:[%s23612_s11 + $0x780] ss:$8 sps:$4 sm:$0xff]  }
 0xbc0   : > { %13334 = vmatpush1.bf16.msra.mxu0 %v17534_v43 }
 0xbc1   : > { %13335 = vmatprep.subr.bf16.mxu0 %v17542_v11  ;;  %v11613_v11 = vrot.slane %v11611_v46, 1 }
 0xbc2   : > { %13373 = vmatpush1.bf16.msra.mxu1 %v17537_v17  ;;  %v11634_v17 = vrot.slane %v11563_v47, %v22385_v37 }
 0xbc3   : > { %13374 = vmatprep.subr.bf16.mxu1 %v17545_v59  ;;  %v17618_v59 = vld [vmem:[%s23612_s11 + $0x860] ss:$8 sps:$4 sm:$0xff]  }
 0xbc4   : > { %13336 = vmatpush1.bf16.msra.mxu0 %v17540_v35 }
 0xbc5   : > { %13337 = vmatprep.subr.bf16.mxu0 %v17548_v33  ;;  %v17623_v33 = vld [vmem:[%s23612_s11 + $0x854] ss:$8 sps:$4 sm:$0xff]  }
 0xbc6   : > { %13375 = vmatpush1.bf16.msra.mxu1 %v17543_v42  ;;  %v11638_v42 = vrot.slane %v11563_v47, %v22409_v25 }
 0xbc7   : > { %13376 = vmatprep.subr.bf16.mxu1 %v17551_v62 }
 0xbc8   : > { %13338 = vmatpush1.bf16.msra.mxu0 %v17546_v20  ;;  %v11614_v20 = vor.u32 %v11613_v11, %v11609_v27 }
 0xbc9   : > { %13339 = vmatprep.subr.bf16.mxu0 %v17554_v56 }
 0xbca   : > { %13377 = vmatpush1.bf16.msra.mxu1 %v17549_v24  ;;  %v17621_v24 = vld [vmem:[%s23612_s11 + $0x850] ss:$8 sps:$4 sm:$0xff]  }
 0xbcb   : > { %13378 = vmatprep.subr.bf16.mxu1 %v17557_v55 }
 0xbcc   : > { %13340 = vmatpush1.bf16.msra.mxu0 %v17552_v5 }
 0xbcd   : > { %13341 = vmatprep.subr.bf16.mxu0 %v17560_v16  ;;  %v17626_v16 = vld [vmem:[%s23612_s11 + $0x844] ss:$8 sps:$4 sm:$0xff]  }
 0xbce   : > { %13379 = vmatpush1.bf16.msra.mxu1 %v17555_v26 }
 0xbcf   : > { %13380 = vmatprep.subr.bf16.mxu1 %v17563_v60 }
 0xbd0   : > { %13342 = vmatpush1.bf16.msra.mxu0 %v17558_v9 }
 0xbd1   : > { %13343 = vmatprep.subr.bf16.mxu0 %v17566_v14 }
 0xbd2   : > { %13381 = vmatpush1.bf16.msra.mxu1 %v17561_v8  ;;  %v17624_v8 = vld [vmem:[%s23612_s11 + $0x840] ss:$8 sps:$4 sm:$0xff]  }
 0xbd3   : > { %13382 = vmatprep.subr.bf16.mxu1 %v17569_v48 }
 0xbd4   : > { %13344 = vmatpush2.bf16.msra.mxu0 %v17564_v23  ;;  %v17629_v23 = vld [vmem:[%s23612_s11 + $0x834] ss:$8 sps:$4 sm:$0xff]  }
 0xbd5   : > { %13345 = vmatprep.subr.bf16.mxu0 %v17572_v7 }
 0xbd6   : > { %13383 = vmatpush1.bf16.msra.mxu1 %v17567_v28  ;;  %v17627_v28 = vld [vmem:[%s23612_s11 + $0x830] ss:$8 sps:$4 sm:$0xff]  }
 0xbd7   : > { %13384 = vmatprep.subr.bf16.mxu1 %v17575_v19  ;;  %v17630_v19 = vld [vmem:[%s23612_s11 + $0x820] ss:$8 sps:$4 sm:$0xff]  }
 0xbd8   : > { %13346 = vmatpush2.bf16.msra.mxu0 %v17570_v38  ;;  %v17635_v38 = vld [vmem:[%s23612_s11 + $0x814] ss:$8 sps:$4 sm:$0xff]  }
 0xbd9   : > { %13347 = vmatprep.subr.bf16.mxu0 %v17578_v52  ;;  %v17633_v52 = vld [vmem:[%s23612_s11 + $0x810] ss:$8 sps:$4 sm:$0xff]  }
 0xbda   : > { %13385 = vmatpush2.bf16.msra.mxu1 %v17573_v44  ;;  %v17638_v44 = vld [vmem:[%s23612_s11 + $0x804] ss:$8 sps:$4 sm:$0xff]  }
 0xbdb   : > { %13386 = vmatprep.subr.bf16.mxu1 %v17581_v13  ;;  %v17636_v13 = vld [vmem:[%s23612_s11 + $0x800] ss:$8 sps:$4 sm:$0xff]  }
 0xbdc   : > { %13348 = vmatpush2.bf16.msra.mxu0 %v17576_v30  ;;  %v17641_v30 = vld [vmem:[%s23612_s11 + $0x8f4] ss:$8 sps:$4 sm:$0xff]  }
 0xbdd   : > { %13349 = vmatprep.subr.bf16.mxu0 %v17584_v53  ;;  %v17639_v53 = vld [vmem:[%s23612_s11 + $0x8f0] ss:$8 sps:$4 sm:$0xff]  }
 0xbde   : > { %13387 = vmatpush2.bf16.msra.mxu1 %v17579_v0  ;;  %v17644_v0 = vld [vmem:[%s23612_s11 + $0x8e4] ss:$8 sps:$4 sm:$0xff]  }
 0xbdf   : > { %13388 = vmatprep.subr.bf16.mxu1 %v17587_v12  ;;  %v17642_v12 = vld [vmem:[%s23612_s11 + $0x8e0] ss:$8 sps:$4 sm:$0xff]  }
 0xbe0   : > { %13350 = vmatpush2.bf16.msra.mxu0 %v17582_v15  ;;  %v17647_v15 = vld [vmem:[%s23612_s11 + $0x8d4] ss:$8 sps:$4 sm:$0xff]  }
 0xbe1   : > { %13351 = vmatprep.subr.bf16.mxu0 %v17590_v45  ;;  %v17645_v45 = vld [vmem:[%s23612_s11 + $0x8d0] ss:$8 sps:$4 sm:$0xff]  }
 0xbe2   : > { %13389 = vmatpush2.bf16.msra.mxu1 %v17585_v21  ;;  %v17650_v21 = vld [vmem:[%s23612_s11 + $0x8c4] ss:$8 sps:$4 sm:$0xff]  }
 0xbe3   : > { %13390 = vmatprep.subr.bf16.mxu1 %v17593_v32  ;;  %v17648_v32 = vld [vmem:[%s23612_s11 + $0x8c0] ss:$8 sps:$4 sm:$0xff]  }
 0xbe4   : > { %13352 = vmatpush2.bf16.msra.mxu0 %v17588_v34  ;;  %v17653_v34 = vld [vmem:[%s23612_s11 + $0x8b4] ss:$8 sps:$4 sm:$0xff]  }
 0xbe5   : > { %13353 = vmatprep.subr.bf16.mxu0 %v17596_v36  ;;  %v17651_v36 = vld [vmem:[%s23612_s11 + $0x8b0] ss:$8 sps:$4 sm:$0xff]  }
 0xbe6   : > { %13391 = vmatpush2.bf16.msra.mxu1 %v17591_v10  ;;  %v17656_v10 = vld [vmem:[%s23612_s11 + $0x8a4] ss:$8 sps:$4 sm:$0xff]  }
 0xbe7   : > { %13392 = vmatprep.subr.bf16.mxu1 %v17599_v40  ;;  %v17654_v40 = vld [vmem:[%s23612_s11 + $0x8a0] ss:$8 sps:$4 sm:$0xff]  }
 0xbe8   : > { %13354 = vmatpush2.bf16.msra.mxu0 %v17594_v6  ;;  %v17659_v6 = vld [vmem:[%s23612_s11 + $0x894] ss:$8 sps:$4 sm:$0xff]  }
 0xbe9   : > { %13355 = vmatprep.subr.bf16.mxu0 %v17602_v41  ;;  %v17657_v41 = vld [vmem:[%s23612_s11 + $0x890] ss:$8 sps:$4 sm:$0xff]  }
 0xbea   : > { %13393 = vmatpush2.bf16.msra.mxu1 %v17597_v50  ;;  %v17662_v50 = vld [vmem:[%s23612_s11 + $0x884] ss:$8 sps:$4 sm:$0xff]  }
 0xbeb   : > { %13394 = vmatprep.subr.bf16.mxu1 %v17605_v57  ;;  %v17660_v57 = vld [vmem:[%s23612_s11 + $0x880] ss:$8 sps:$4 sm:$0xff]  }
 0xbec   : > { %13356 = vmatpush2.bf16.msra.mxu0 %v17600_v3  ;;  %v11626_v3 = vrot.slane %v22516_v4, 1 }
 0xbed   : > { %13357 = vmatprep.subr.bf16.mxu0 %v17608_v61 }
 0xbee   : > { %13395 = vmatpush2.bf16.msra.mxu1 %v17603_v29 }
 0xbef   : > { %13396 = vmatprep.subr.bf16.mxu1 %v17611_v49 }
 0xbf0   : > { %13358 = vmatpush2.bf16.msra.mxu0 %v17606_v18 }
 0xbf1   : > { %13409 = vmatprep.subr.bf16.mxu0 %v17614_v1 }
 0xbf2   : > { %13397 = vmatpush2.bf16.msra.mxu1 %v17609_v58 }
 0xbf3   : > { %13360 = vmatmul.mubr.bf16.vlgmr.msra.gmra.mxu0 %v22516_v4  ;;  %v13115_v43 = vpop.f32.mrf.mxu0  ;;  %13398 = vmatprep.subr.bf16.mxu1 %v17617_v22 }
 0xbf4   : > { %13410 = vmatpush1.bf16.msra.mxu0 %v17612_v2  ;;  %13441 = vmatprep.mubr.bf16.mxu0 %v11627_v54  ;;  %v13116_v56 = vadd.f32 %v13115_v43, %v11634_v17 }
 0xbf5   : > { %v13117_v35 = vpop.f32.mrf.mxu0  ;;  %13411 = vmatprep.subr.bf16.mxu0 %v17620_v51 }
 0xbf6   : > { %13399 = vmatpush2.bf16.msra.mxu1 %v17615_v39  ;;  %v13118_v26 = vadd.f32 %v13117_v35, %v11638_v42 }
 0xbf7   : > { %v13119_v62 = vpop.f32.mrf.mxu0 }
 0xbf8   : > { %13412 = vmatpush1.bf16.msra.mxu0 %v17618_v59 }
 0xbf9   : > { %13401 = vmatmul.mubr.bf16.vlgmr.msra.gmra.mxu1 %v11614_v20  ;;  %v13120_v55 = vpop.f32.mrf.mxu0  ;;  %v13156_v5 = vpop.f32.mrf.mxu1  ;;  %13413 = vmatprep.subr.bf16.mxu0 %v17623_v33 }
 0xbfa   : > { %v13157_v60 = vadd.f32 %v13156_v5, %v13116_v56  ;;  %13501 = vmatprep.mubr.bf16.mxu1 %v23967_v31  ;;  %v17632_v31 = vld [vmem:[%s23612_s11 + $0x824] ss:$8 sps:$4 sm:$0xff]  }
 0xbfb   : > { %v13158_v9 = vpop.f32.mrf.mxu1  ;;  %v13569_v56 = vld [vmem:[%s23617_s16 + $0x1c8] sm:$0xff] }
 0xbfc   : > { %v13159_v14 = vadd.f32 %v13158_v9, %v13118_v26  ;;  %13414 = vmatpush1.bf16.msra.mxu0 %v17621_v24  ;;  %v13573_v24 = vld [vmem:[%s23617_s16 + $0x1e8] sm:$0xff] }
 0xbfd   : > { %v13160_v48 = vpop.f32.mrf.mxu1  ;;  %13415 = vmatprep.subr.bf16.mxu0 %v17626_v16  ;;  %v15613_v55 = vcombine.low %v13569_v56, %v13573_v24  ;;  %v15614_v5 = vcombine.high %v13569_v56, %v13573_v24  ;;  %v13561_v16 = vld [vmem:[%s23617_s16 + $0x188] sm:$0xff] }
 0xbfe   : > { %v13565_v26 = vld [vmem:[%s23617_s16 + $0x1a8] sm:$0xff] }
 0xbff   : > { %v13161_v7 = vpop.f32.mrf.mxu1  ;;  %v15606_v9 = vcombine.high %v13561_v16, %v13565_v26 }
 0xc00   : > { %13416 = vmatpush1.bf16.msra.mxu0 %v17624_v8  ;;  %v13557_v8 = vld [vmem:[%s23617_s16 + $0x168] sm:$0xff] }
 0xc01   : > { %13417 = vmatprep.subr.bf16.mxu0 %v17629_v23  ;;  %v13545_v7 = vld [vmem:[%s23617_s16 + $0x108] sm:$0xff] }
 0xc04   : > { %13418 = vmatpush1.bf16.msra.mxu0 %v17627_v28  ;;  %v13549_v28 = vld [vmem:[%s23617_s16 + $0x128] sm:$0xff] }
 0xc05   : > { %13419 = vmatprep.subr.bf16.mxu0 %v17632_v31  ;;  %v15589_v31 = vcombine.low %v13545_v7, %v13549_v28 }
 0xc08   : > { %13420 = vmatpush1.bf16.msra.mxu0 %v17630_v19  ;;  %v15590_v19 = vcombine.high %v13545_v7, %v13549_v28 }
 0xc09   : > { %13421 = vmatprep.subr.bf16.mxu0 %v17635_v38  ;;  %v13537_v38 = vld [vmem:[%s23617_s16 + $0xc8] sm:$0xff] }
 0xc0c   : > { %13422 = vmatpush1.bf16.msra.mxu0 %v17633_v52  ;;  %v13541_v52 = vld [vmem:[%s23617_s16 + $0xe8] sm:$0xff] }
 0xc0d   : > { %13423 = vmatprep.subr.bf16.mxu0 %v17638_v44  ;;  %v15581_v44 = vcombine.low %v13537_v38, %v13541_v52 }
 0xc10   : > { %13424 = vmatpush1.bf16.msra.mxu0 %v17636_v13  ;;  %v15582_v13 = vcombine.high %v13537_v38, %v13541_v52 }
 0xc11   : > { %13425 = vmatprep.subr.bf16.mxu0 %v17641_v30  ;;  %v13529_v30 = vld [vmem:[%s23617_s16 + $0x88] sm:$0xff] }
 0xc14   : > { %13426 = vmatpush2.bf16.msra.mxu0 %v17639_v53  ;;  %v13533_v53 = vld [vmem:[%s23617_s16 + $0xa8] sm:$0xff] }
 0xc15   : > { %13427 = vmatprep.subr.bf16.mxu0 %v17644_v0  ;;  %v15573_v0 = vcombine.low %v13529_v30, %v13533_v53 }
 0xc18   : > { %13428 = vmatpush2.bf16.msra.mxu0 %v17642_v12  ;;  %v15574_v12 = vcombine.high %v13529_v30, %v13533_v53  ;;  %v13568_v53 = vld [vmem:[%s23617_s16 + $0x1c0] sm:$0xff] }
 0xc19   : > { %13429 = vmatprep.subr.bf16.mxu0 %v17647_v15  ;;  %v13521_v15 = vld [vmem:[%s23617_s16 + $0x48] sm:$0xff] }
 0xc1c   : > { %13430 = vmatpush2.bf16.msra.mxu0 %v17645_v45  ;;  %v13525_v45 = vld [vmem:[%s23617_s16 + $0x68] sm:$0xff] }
 0xc1d   : > { %13431 = vmatprep.subr.bf16.mxu0 %v17650_v21  ;;  %v15565_v21 = vcombine.low %v13521_v15, %v13525_v45 }
 0xc20   : > { %13432 = vmatpush2.bf16.msra.mxu0 %v17648_v32  ;;  %v15566_v32 = vcombine.high %v13521_v15, %v13525_v45 }
 0xc21   : > { %13433 = vmatprep.subr.bf16.mxu0 %v17653_v34  ;;  %v13513_v34 = vld [vmem:[%s23617_s16 + $0x8] sm:$0xff] }
 0xc24   : > { %13434 = vmatpush2.bf16.msra.mxu0 %v17651_v36  ;;  %v13517_v36 = vld [vmem:[%s23617_s16 + $0x28] sm:$0xff] }
 0xc25   : > { %13435 = vmatprep.subr.bf16.mxu0 %v17656_v10  ;;  %v15557_v10 = vcombine.low %v13513_v34, %v13517_v36 }
 0xc28   : > { %13436 = vmatpush2.bf16.msra.mxu0 %v17654_v40  ;;  %v15558_v40 = vcombine.high %v13513_v34, %v13517_v36  ;;  %v13458_v36 = vld [vmem:[%s23616_s15] sm:$0xf] }
 0xc29   : > { %13437 = vmatprep.subr.bf16.mxu0 %v17659_v6  ;;  %v13633_v6 = vld [vmem:[%s23617_s16 + $0x3c8] sm:$0xff] }
 0xc2c   : > { %13438 = vmatpush2.bf16.msra.mxu0 %v17657_v41  ;;  %v13637_v41 = vld [vmem:[%s23617_s16 + $0x3e8] sm:$0xff] }
 0xc2d   : > { %13439 = vmatprep.subr.bf16.mxu0 %v17662_v50  ;;  %v15677_v50 = vcombine.low %v13633_v6, %v13637_v41 }
 0xc30   : > { %13440 = vmatpush2.bf16.msra.mxu0 %v17660_v57  ;;  %v15678_v57 = vcombine.high %v13633_v6, %v13637_v41  ;;  %v13552_v6 = vld [vmem:[%s23617_s16 + $0x140] sm:$0xff] }
 0xc31   : > { %14363 = vmatprep.subr.bf16.mxu0 %v15614_v5  ;;  %v13589_v5 = vld [vmem:[%s23617_s16 + $0x268] sm:$0xff]  ;;  %v13556_v41 = vld [vmem:[%s23617_s16 + $0x160] sm:$0xff] }
 0xc33   : > { %v13197_v61 = vpop.f32.mrf.mxu0  ;;  %13442 = vmatmul.mubr.bf16.vlgmr.msra.gmra.mxu0 %v11626_v3  ;;  %v13625_v3 = vld [vmem:[%s23617_s16 + $0x388] sm:$0xff] }
 0xc34   : > { %v13198_v29 = vadd.f32 %v13197_v61, %v13157_v60  ;;  %14364 = vmatpush1.bf16.msra.mxu0 %v15613_v55  ;;  %v15605_v60 = vcombine.low %v13561_v16, %v13565_v26  ;;  %v13629_v61 = vld [vmem:[%s23617_s16 + $0x3a8] sm:$0xff] }
 0xc35   : > { %v13199_v49 = vpop.f32.mrf.mxu0  ;;  %14365 = vmatprep.subr.bf16.mxu0 %v15606_v9  ;;  %v13585_v55 = vld [vmem:[%s23617_s16 + $0x248] sm:$0xff] }
 0xc36   : > { %v13200_v18 = vadd.f32 %v13199_v49, %v13159_v14  ;;  %v13553_v14 = vld [vmem:[%s23617_s16 + $0x148] sm:$0xff]  ;;  %v15670_v49 = vcombine.high %v13625_v3, %v13629_v61  ;;  %v15629_v26 = vcombine.low %v13585_v55, %v13589_v5 }
 0xc37   : > { %v13201_v1 = vpop.f32.mrf.mxu0  ;;  %v15597_v48 = vcombine.low %v13553_v14, %v13557_v8  ;;  %v15598_v23 = vcombine.high %v13553_v14, %v13557_v8 }
 0xc38   : > { %14366 = vmatpush1.bf16.msra.mxu0 %v15605_v60  ;;  %v13621_v1 = vld [vmem:[%s23617_s16 + $0x368] sm:$0xff]  ;;  %v15630_v60 = vcombine.high %v13585_v55, %v13589_v5  ;;  %v13628_v55 = vld [vmem:[%s23617_s16 + $0x3a0] sm:$0xff] }
 0xc39   : > { %v13202_v58 = vpop.f32.mrf.mxu0  ;;  %v13238_v46 = vpop.f32.mrf.mxu1  ;;  %14367 = vmatprep.subr.bf16.mxu0 %v15598_v23 }
 0xc3a   : > { %v13239_v22 = vadd.f32 %v13238_v46, %v13198_v29  ;;  %v15669_v29 = vcombine.low %v13625_v3, %v13629_v61  ;;  %v13544_v3 = vld [vmem:[%s23617_s16 + $0x100] sm:$0xff] }
 0xc3b   : > { %v13240_v2 = vpop.f32.mrf.mxu1  ;;  %v13548_v61 = vld [vmem:[%s23617_s16 + $0x120] sm:$0xff] }
 0xc3c   : > { %v13241_v47 = vadd.f32 %v13240_v2, %v13200_v18  ;;  %14368 = vmatpush1.bf16.msra.mxu0 %v15597_v48  ;;  %v13617_v18 = vld [vmem:[%s23617_s16 + $0x348] sm:$0xff] }
 0xc3d   : > { %v13242_v51 = vpop.f32.mrf.mxu1  ;;  %14369 = vmatprep.subr.bf16.mxu0 %v15590_v19  ;;  %v15661_v58 = vcombine.low %v13617_v18, %v13621_v1  ;;  %v15662_v46 = vcombine.high %v13617_v18, %v13621_v1  ;;  %v13613_v2 = vld [vmem:[%s23617_s16 + $0x328] sm:$0xff]  ;;  %v13536_v18 = vld [vmem:[%s23617_s16 + $0xc0] sm:$0xff] }
 0xc3e   : > { %v13540_v1 = vld [vmem:[%s23617_s16 + $0xe0] sm:$0xff] }
 0xc3f   : > { %v13243_v54 = vpop.f32.mrf.mxu1 }
 0xc40   : > { %14370 = vmatpush1.bf16.msra.mxu0 %v15589_v31  ;;  %v13601_v54 = vld [vmem:[%s23617_s16 + $0x2c8] sm:$0xff] }
 0xc41   : > { %14371 = vmatprep.subr.bf16.mxu0 %v15582_v13 }
 0xc44   : > { %14372 = vmatpush1.bf16.msra.mxu0 %v15581_v44 }
 0xc45   : > { %14373 = vmatprep.subr.bf16.mxu0 %v15574_v12 }
 0xc48   : > { %14374 = vmatpush1.bf16.msra.mxu0 %v15573_v0 }
 0xc49   : > { %14375 = vmatprep.subr.bf16.mxu0 %v15566_v32  ;;  %v13564_v32 = vld [vmem:[%s23617_s16 + $0x1a0] sm:$0xff] }
 0xc4c   : > { %14376 = vmatpush1.bf16.msra.mxu0 %v15565_v21  ;;  %v13560_v21 = vld [vmem:[%s23617_s16 + $0x180] sm:$0xff] }
 0xc4d   : > { %14377 = vmatprep.subr.bf16.mxu0 %v15558_v40  ;;  %v15604_v40 = vcombine.high %v13560_v21, %v13564_v32 }
 0xc50   : > { %14378 = vmatpush1.bf16.msra.mxu0 %v15557_v10 }
 0xc51   : > { %14379 = vmatprep.subr.bf16.mxu0 %v15678_v57  ;;  %v15596_v57 = vcombine.high %v13552_v6, %v13556_v41 }
 0xc54   : > { %14380 = vmatpush2.bf16.msra.mxu0 %v15677_v50  ;;  %v15603_v50 = vcombine.low %v13560_v21, %v13564_v32 }
 0xc55   : > { %14381 = vmatprep.subr.bf16.mxu0 %v15670_v49  ;;  %v15588_v49 = vcombine.high %v13544_v3, %v13548_v61 }
 0xc58   : > { %14382 = vmatpush2.bf16.msra.mxu0 %v15669_v29  ;;  %v15595_v29 = vcombine.low %v13552_v6, %v13556_v41  ;;  %v13570_v6 = vld [vmem:[%s23617_s16 + $0x1d0] sm:$0xff] }
 0xc59   : > { %14383 = vmatprep.subr.bf16.mxu0 %v15662_v46  ;;  %v15580_v46 = vcombine.high %v13536_v18, %v13540_v1  ;;  %v13574_v41 = vld [vmem:[%s23617_s16 + $0x1f0] sm:$0xff] }
 0xc5c   : > { %14384 = vmatpush2.bf16.msra.mxu0 %v15661_v58  ;;  %v15587_v58 = vcombine.low %v13544_v3, %v13548_v61  ;;  %v13571_v3 = vld [vmem:[%s23617_s16 + $0x1d8] sm:$0xff] }
 0xc5d   : > { %v13575_v61 = vld [vmem:[%s23617_s16 + $0x1f8] sm:$0xff] }
 0xc73   : > { %v13279_v39 = vpop.f32.mrf.mxu0 }
 0xc74   : > { %v13280_v43 = vadd.f32 %v13279_v39, %v13239_v22  ;;  %v13609_v22 = vld [vmem:[%s23617_s16 + $0x308] sm:$0xff] }
 0xc75   : > { %v13281_v11 = vpop.f32.mrf.mxu0  ;;  %v15654_v51 = vcombine.high %v13609_v22, %v13613_v2  ;;  %v13605_v39 = vld [vmem:[%s23617_s16 + $0x2e8] sm:$0xff] }
 0xc76   : > { %v13282_v17 = vadd.f32 %v13281_v11, %v13241_v47  ;;  %v15653_v47 = vcombine.low %v13609_v22, %v13613_v2  ;;  %v15645_v11 = vcombine.low %v13601_v54, %v13605_v39  ;;  %v13528_v22 = vld [vmem:[%s23617_s16 + $0x80] sm:$0xff] }
 0xc77   : > { %v13283_v59 = vpop.f32.mrf.mxu0  ;;  %14385 = vmatprep.subr.bf16.mxu0 %v15654_v51  ;;  %v13532_v2 = vld [vmem:[%s23617_s16 + $0xa0] sm:$0xff] }
 0xc78   : > { %14386 = vmatpush2.bf16.msra.mxu0 %v15653_v47  ;;  %v15579_v47 = vcombine.low %v13536_v18, %v13540_v1  ;;  %v15572_v51 = vcombine.high %v13528_v22, %v13532_v2  ;;  %v13562_v1 = vld [vmem:[%s23617_s16 + $0x190] sm:$0xff] }
 0xc79   : > { %v13284_v35 = vpop.f32.mrf.mxu0  ;;  %v13320_v4 = vpop.f32.mrf.mxu1 }
 0xc7a   : > { %v23169_v27 = vadd.f32 %v13320_v4, %v13280_v43  ;;  %v13593_v35 = vld [vmem:[%s23617_s16 + $0x288] sm:$0xff] }
 0xc7b   : > { %v13322_v33 = vpop.f32.mrf.mxu1  ;;  %v13597_v4 = vld [vmem:[%s23617_s16 + $0x2a8] sm:$0xff] }
 0xc7c   : > { %v23171_v42 = vadd.f32 %v13322_v33, %v13282_v17  ;;  %v15646_v17 = vcombine.high %v13601_v54, %v13605_v39  ;;  %v13520_v54 = vld [vmem:[%s23617_s16 + $0x40] sm:$0xff] }
 0xc7d   : > { %v13324_v62 = vpop.f32.mrf.mxu1  ;;  %v13524_v39 = vld [vmem:[%s23617_s16 + $0x60] sm:$0xff] }
 0xc7e   : > { %14387 = vmatprep.subr.bf16.mxu0 %v15646_v17  ;;  %v15637_v62 = vcombine.low %v13593_v35, %v13597_v4  ;;  %v13512_v17 = vld [vmem:[%s23617_s16] sm:$0xff] }
 0xc7f   : > { %v13325_v20 = vpop.f32.mrf.mxu1  ;;  %14388 = vmatpush2.bf16.msra.mxu0 %v15645_v11  ;;  %v15564_v11 = vcombine.high %v13520_v54, %v13524_v39 }
 0xc80   : > { %v15638_v20 = vcombine.high %v13593_v35, %v13597_v4  ;;  %v15563_v35 = vcombine.low %v13520_v54, %v13524_v39 }
 0xc82   : > { %14389 = vmatprep.subr.bf16.mxu0 %v15638_v20 }
 0xc83   : > { %14390 = vmatpush2.bf16.msra.mxu0 %v15637_v62  ;;  %v13636_v62 = vld [vmem:[%s23617_s16 + $0x3e0] sm:$0xff] }
 0xc84   : > { %14391 = vmatprep.subr.bf16.mxu0 %v15630_v60  ;;  %v13620_v60 = vld [vmem:[%s23617_s16 + $0x360] sm:$0xff] }
 0xc87   : > { %14392 = vmatpush2.bf16.msra.mxu0 %v15629_v26  ;;  %v13616_v26 = vld [vmem:[%s23617_s16 + $0x340] sm:$0xff] }
 0xcb3   : > { %v13361_v43 = vpop.f32.mrf.mxu0 }
 0xcb4   : > { %v13362_v8 = vadd.f32 %v13361_v43, %v23169_v27  ;;  %v13572_v27 = vld [vmem:[%s23617_s16 + $0x1e0] sm:$0xff]  ;;  %v15571_v43 = vcombine.low %v13528_v22, %v13532_v2  ;;  %v13567_v22 = vld [vmem:[%s23617_s16 + $0x1b8] sm:$0xff] }
 0xcb5   : > { %v13363_v59 = vpop.f32.mrf.mxu0  ;;  %v15612_v45 = vcombine.high %v13568_v53, %v13572_v27  ;;  %v15611_v10 = vcombine.low %v13568_v53, %v13572_v27  ;;  %v13584_v53 = vld [vmem:[%s23617_s16 + $0x240] sm:$0xff] }
 0xcb6   : > { %v13364_v48 = vadd.f32 %v13363_v59, %v23171_v42  ;;  %v13516_v59 = vld [vmem:[%s23617_s16 + $0x20] sm:$0xff] }
 0xcb7   : > { %v13365_v33 = vpop.f32.mrf.mxu0  ;;  %v15556_v4 = vcombine.high %v13512_v17, %v13516_v59  ;;  %v15555_v20 = vcombine.low %v13512_v17, %v13516_v59  ;;  %v13588_v27 = vld [vmem:[%s23617_s16 + $0x260] sm:$0xff]  ;;  %v13558_v17 = vld [vmem:[%s23617_s16 + $0x170] sm:$0xff]  ;;  %v13555_v59 = vld [vmem:[%s23617_s16 + $0x158] sm:$0xff] }
 0xcb8   : > { %v13632_v33 = vld [vmem:[%s23617_s16 + $0x3c0] sm:$0xff] }
 0xcb9   : > { %v13366_v56 = vpop.f32.mrf.mxu0  ;;  %v13402_v24 = vpop.f32.mrf.mxu1  ;;  %v15675_v5 = vcombine.low %v13632_v33, %v13636_v62 }
 0xcba   : > { %v13403_v23 = vadd.f32 %v13402_v24, %v13362_v8  ;;  %v15676_v56 = vcombine.high %v13632_v33, %v13636_v62  ;;  %v13624_v24 = vld [vmem:[%s23617_s16 + $0x380] sm:$0xff] }
 0xcbb   : > { %v13404_v16 = vpop.f32.mrf.mxu1  ;;  %v13608_v8 = vld [vmem:[%s23617_s16 + $0x300] sm:$0xff] }
 0xcbc   : > { %v13405_v28 = vadd.f32 %v13404_v16, %v13364_v48  ;;  %v15668_v16 = vcombine.high %v13624_v24, %v13628_v55  ;;  %v13612_v48 = vld [vmem:[%s23617_s16 + $0x320] sm:$0xff] }
 0xcbd   : > { %v13406_v9 = vpop.f32.mrf.mxu1 }
 0xcbe   : > { %v15667_v9 = vcombine.low %v13624_v24, %v13628_v55  ;;  %v13546_v24 = vld [vmem:[%s23617_s16 + $0x110] sm:$0xff] }
 0xcbf   : > { %v13407_v14 = vpop.f32.mrf.mxu1  ;;  %v13550_v55 = vld [vmem:[%s23617_s16 + $0x130] sm:$0xff] }
 0xcc0   : > { %v15660_v14 = vcombine.high %v13616_v26, %v13620_v60 }
 0xcf3   : > { %v13443_v7 = vpop.f32.mrf.mxu0 }
 0xcf4   : > { %v13444_v31 = vadd.f32 %v13443_v7, %v13403_v23  ;;  %v15659_v23 = vcombine.low %v13616_v26, %v13620_v60  ;;  %v15652_v7 = vcombine.high %v13608_v8, %v13612_v48 }
 0xcf5   : > { %v13445_v19 = vpop.f32.mrf.mxu0 }
 0xcf6   : > { %vm13450_vm4 = vcmp.gt.f32.partialorder %v13444_v31, 0.0  ;;  %v13452_v38 = vmul.f32 0.01, %v13444_v31  ;;  %v13446_v52 = vadd.f32 %v13445_v19, %v13405_v28  ;;  %v13600_v28 = vld [vmem:[%s23617_s16 + $0x2c0] sm:$0xff]  ;;  %v15651_v19 = vcombine.low %v13608_v8, %v13612_v48  ;;  %v13538_v8 = vld [vmem:[%s23617_s16 + $0xd0] sm:$0xff] }
 0xcf7   : > { %v13447_v44 = vpop.f32.mrf.mxu0  ;;  %v13542_v48 = vld [vmem:[%s23617_s16 + $0xf0] sm:$0xff] }
 0xcf8   : > { %v13454_v13 = vsel %vm13450_vm4, %v13444_v31, %v13452_v38  ;;  %vm13451_vm5 = vcmp.gt.f32.partialorder %v13446_v52, 0.0  ;;  %v13453_v30 = vmul.f32 0.01, %v13446_v52  ;;  %v13604_v31 = vld [vmem:[%s23617_s16 + $0x2e0] sm:$0xff] }
 0xcf9   : > { %v13456_v42 = vpack.c.bf16 %v13454_v13, %v13454_v13  ;;  %v13448_v0 = vpop.f32.mrf.mxu0  ;;  %v15644_v38 = vcombine.high %v13600_v28, %v13604_v31  ;;  %v13596_v44 = vld [vmem:[%s23617_s16 + $0x2a0] sm:$0xff]  ;;  %v15643_v13 = vcombine.low %v13600_v28, %v13604_v31  ;;  %v15591_v28 = vcombine.low %v13546_v24, %v13550_v55 }
 0xcfa   : > { %v13455_v12 = vsel %vm13451_vm5, %v13446_v52, %v13453_v30  ;;  %v13592_v52 = vld [vmem:[%s23617_s16 + $0x280] sm:$0xff]  ;;  %v15628_v0 = vcombine.high %v13584_v53, %v13588_v27 }
 0xcfb   : > { %v13457_v15 = vpack.c.bf16 %v13455_v12, %v13455_v12  ;;  %v13464_v34 = vsel %vm1394_vm0, %v13456_v42, 0  ;;  %v15636_v30 = vcombine.high %v13592_v52, %v13596_v44  ;;  %v15635_v42 = vcombine.low %v13592_v52, %v13596_v44  ;;  %v13530_v52 = vld [vmem:[%s23617_s16 + $0x90] sm:$0xff] }
 0xcfc   : > { %v15627_v12 = vcombine.low %v13584_v53, %v13588_v27  ;;  %v13534_v44 = vld [vmem:[%s23617_s16 + $0xb0] sm:$0xff]  ;;  %v15583_v53 = vcombine.low %v13538_v8, %v13542_v48 }
 0xcfd   : > { %15553 = vmatprep.subr.msk.bf16.mxu1 %vm1394_vm0, %v13457_v15  ;;  %v13576_v15 = vld [vmem:[%s23617_s16 + $0x200] sm:$0xff] }
 0xcfe   : > { %13484 = vmatpush1.bf16.msra.mxu1 %v13464_v34  ;;  %v13577_v34 = vld [vmem:[%s23617_s16 + $0x208] sm:$0xff] }
 0xcff   : > { %14322 = vmatprep.subr.bf16.mxu1 %v15612_v45  ;;  %v13580_v45 = vld [vmem:[%s23617_s16 + $0x220] sm:$0xff] }
 0xd00   : > { %v15619_v21 = vcombine.low %v13576_v15, %v13580_v45  ;;  %v15620_v32 = vcombine.high %v13576_v15, %v13580_v45  ;;  %v13526_v15 = vld [vmem:[%s23617_s16 + $0x70] sm:$0xff]  ;;  %v13523_v45 = vld [vmem:[%s23617_s16 + $0x58] sm:$0xff] }
 0xd01   : > { %15554 = vmatmul.mubr.msk.bf16.vlgmr.msra.gmra.mxu1 %vm13459_vm6, %v13458_v36  ;;  %v13581_v36 = vld [vmem:[%s23617_s16 + $0x228] sm:$0xff] }
 0xd02   : > { %14323 = vmatpush1.bf16.msra.mxu1 %v15611_v10  ;;  %v15621_v10 = vcombine.low %v13577_v34, %v13581_v36 }
 0xd03   : > { %14324 = vmatprep.subr.bf16.mxu1 %v15604_v40  ;;  %v15622_v40 = vcombine.high %v13577_v34, %v13581_v36 }
 0xd05   : > { %14393 = vmatprep.subr.bf16.mxu0 %v15622_v40  ;;  %v13514_v40 = vld [vmem:[%s23617_s16 + $0x10] sm:$0xff] }
 0xd06   : > { %14325 = vmatpush1.bf16.msra.mxu1 %v15603_v50  ;;  %v15615_v50 = vcombine.low %v13570_v6, %v13574_v41  ;;  %14394 = vmatpush2.bf16.msra.mxu0 %v15621_v10 }
 0xd07   : > { %14326 = vmatprep.subr.bf16.mxu1 %v15596_v57  ;;  %v15616_v57 = vcombine.high %v13570_v6, %v13574_v41  ;;  %v13518_v6 = vld [vmem:[%s23617_s16 + $0x30] sm:$0xff]  ;;  %v13515_v41 = vld [vmem:[%s23617_s16 + $0x18] sm:$0xff] }
 0xd0a   : > { %14327 = vmatpush1.bf16.msra.mxu1 %v15595_v29  ;;  %v15617_v29 = vcombine.low %v13571_v3, %v13575_v61 }
 0xd0b   : > { %14328 = vmatprep.subr.bf16.mxu1 %v15588_v49  ;;  %v15618_v49 = vcombine.high %v13571_v3, %v13575_v61  ;;  %v15560_v61 = vcombine.high %v13514_v40, %v13518_v6 }
 0xd0d   : > { %14445 = vmatprep.subr.bf16.mxu0 %v15618_v49  ;;  %v13634_v49 = vld [vmem:[%s23617_s16 + $0x3d0] sm:$0xff] }
 0xd0e   : > { %14329 = vmatpush1.bf16.msra.mxu1 %v15587_v58  ;;  %v13566_v58 = vld [vmem:[%s23617_s16 + $0x1b0] sm:$0xff] }
 0xd0f   : > { %14330 = vmatprep.subr.bf16.mxu1 %v15580_v46  ;;  %v13563_v46 = vld [vmem:[%s23617_s16 + $0x198] sm:$0xff]  ;;  %v15608_v54 = vcombine.high %v13562_v1, %v13566_v58  ;;  %v15607_v33 = vcombine.low %v13562_v1, %v13566_v58 }
 0xd10   : > { %v15610_v39 = vcombine.high %v13563_v46, %v13567_v22  ;;  %v15609_v62 = vcombine.low %v13563_v46, %v13567_v22  ;;  %v13635_v1 = vld [vmem:[%s23617_s16 + $0x3d8] sm:$0xff]  ;;  %v15559_v46 = vcombine.low %v13514_v40, %v13518_v6 }
 0xd11   : > { %v13639_v58 = vld [vmem:[%s23617_s16 + $0x3f8] sm:$0xff] }
 0xd12   : > { %14331 = vmatpush1.bf16.msra.mxu1 %v15579_v47 }
 0xd13   : > { %14332 = vmatprep.subr.bf16.mxu1 %v15572_v51 }
 0xd16   : > { %14333 = vmatpush1.bf16.msra.mxu1 %v15571_v43  ;;  %v13554_v43 = vld [vmem:[%s23617_s16 + $0x150] sm:$0xff] }
 0xd17   : > { %14334 = vmatprep.subr.bf16.mxu1 %v15564_v11  ;;  %v15599_v26 = vcombine.low %v13554_v43, %v13558_v17 }
 0xd1a   : > { %14335 = vmatpush1.bf16.msra.mxu1 %v15563_v35  ;;  %v13559_v35 = vld [vmem:[%s23617_s16 + $0x178] sm:$0xff] }
 0xd1b   : > { %14336 = vmatprep.subr.bf16.mxu1 %v15556_v4  ;;  %v15601_v60 = vcombine.low %v13555_v59, %v13559_v35 }
 0xd1e   : > { %14337 = vmatpush1.bf16.msra.mxu1 %v15555_v20  ;;  %v15600_v20 = vcombine.high %v13554_v43, %v13558_v17  ;;  %v13627_v43 = vld [vmem:[%s23617_s16 + $0x398] sm:$0xff] }
 0xd1f   : > { %14338 = vmatprep.subr.bf16.mxu1 %v15676_v56  ;;  %v15602_v56 = vcombine.high %v13555_v59, %v13559_v35  ;;  %v15681_v59 = vcombine.low %v13635_v1, %v13639_v58 }
 0xd22   : > { %14339 = vmatpush2.bf16.msra.mxu1 %v15675_v5  ;;  %v13547_v5 = vld [vmem:[%s23617_s16 + $0x118] sm:$0xff] }
 0xd23   : > { %14340 = vmatprep.subr.bf16.mxu1 %v15668_v16  ;;  %v13551_v16 = vld [vmem:[%s23617_s16 + $0x138] sm:$0xff] }
 0xd24   : > { %v15593_v31 = vcombine.low %v13547_v5, %v13551_v16 }
 0xd26   : > { %14341 = vmatpush2.bf16.msra.mxu1 %v15667_v9  ;;  %v15592_v9 = vcombine.high %v13546_v24, %v13550_v55 }
 0xd27   : > { %14342 = vmatprep.subr.bf16.mxu1 %v15660_v14  ;;  %v15594_v14 = vcombine.high %v13547_v5, %v13551_v16 }
 0xd2a   : > { %14343 = vmatpush2.bf16.msra.mxu1 %v15659_v23  ;;  %v13539_v23 = vld [vmem:[%s23617_s16 + $0xd8] sm:$0xff] }
 0xd2b   : > { %14344 = vmatprep.subr.bf16.mxu1 %v15652_v7  ;;  %v13543_v7 = vld [vmem:[%s23617_s16 + $0xf8] sm:$0xff] }
 0xd2c   : > { %v15585_v27 = vcombine.low %v13539_v23, %v13543_v7 }
 0xd2e   : > { %14345 = vmatpush2.bf16.msra.mxu1 %v15651_v19  ;;  %v15584_v19 = vcombine.high %v13538_v8, %v13542_v48 }
 0xd2f   : > { %14346 = vmatprep.subr.bf16.mxu1 %v15644_v38  ;;  %v15586_v38 = vcombine.high %v13539_v23, %v13543_v7 }
 0xd32   : > { %14347 = vmatpush2.bf16.msra.mxu1 %v15643_v13  ;;  %v13531_v13 = vld [vmem:[%s23617_s16 + $0x98] sm:$0xff] }
 0xd33   : > { %14348 = vmatprep.subr.bf16.mxu1 %v15636_v30  ;;  %v13535_v30 = vld [vmem:[%s23617_s16 + $0xb8] sm:$0xff] }
 0xd34   : > { %v15577_v34 = vcombine.low %v13531_v13, %v13535_v30 }
 0xd36   : > { %14349 = vmatpush2.bf16.msra.mxu1 %v15635_v42  ;;  %v15576_v42 = vcombine.high %v13530_v52, %v13534_v44 }
 0xd37   : > { %14350 = vmatprep.subr.bf16.mxu1 %v15628_v0  ;;  %v15578_v0 = vcombine.high %v13531_v13, %v13535_v30 }
 0xd3a   : > { %14351 = vmatpush2.bf16.msra.mxu1 %v15627_v12  ;;  %v13522_v12 = vld [vmem:[%s23617_s16 + $0x50] sm:$0xff] }
 0xd3b   : > { %14352 = vmatprep.subr.bf16.mxu1 %v15620_v32  ;;  %v15575_v32 = vcombine.low %v13530_v52, %v13534_v44  ;;  %v15568_v36 = vcombine.high %v13522_v12, %v13526_v15 }
 0xd3e   : > { %14353 = vmatpush2.bf16.msra.mxu1 %v15619_v21  ;;  %v13527_v21 = vld [vmem:[%s23617_s16 + $0x78] sm:$0xff] }
 0xd3f   : > { %14404 = vmatprep.subr.bf16.mxu1 %v15616_v57  ;;  %v15570_v10 = vcombine.high %v13523_v45, %v13527_v21  ;;  %v15567_v57 = vcombine.low %v13522_v12, %v13526_v15  ;;  %v15569_v3 = vcombine.low %v13523_v45, %v13527_v21 }
 0xdc1   : > { %v13503_v18 = vpop.f32.mrf.mxu1 }
 0xdc2   : > { %v23396_v51 = vpack.c.bf16 %v13503_v18, %v13503_v18  ;;  %v13638_v18 = vld [vmem:[%s23617_s16 + $0x3f0] sm:$0xff] }
 0xdc3   : > { %v13505_v2 = vpop.f32.mrf.mxu1  ;;  %v15679_v17 = vcombine.low %v13634_v49, %v13638_v18 }
 0xdc4   : > { %v13511_v47 = vpack.c.bf16 %v13505_v2, %v13505_v2  ;;  %v15680_v2 = vcombine.high %v13634_v49, %v13638_v18 }
 0xdc5   : > { %v13507_v11 = vpop.f32.mrf.mxu1 }
 0xdc6   : > { %14354 = vmatprep.mubr.bf16.mxu1 %v13511_v47  ;;  %14395 = vmatprep.mubr.bf16.mxu0 %v13511_v47  ;;  %v13631_v11 = vld [vmem:[%s23617_s16 + $0x3b8] sm:$0xff] }
 0xdc7   : > { %14355 = vmatmul.mubr.bf16.vlgmr.msra.gmra.mxu1 %v23396_v51  ;;  %14396 = vmatmul.mubr.bf16.vlgmr.msra.gmra.mxu0 %v23396_v51  ;;  %v13508_v4 = vpop.f32.mrf.mxu1  ;;  %v15673_v55 = vcombine.low %v13627_v43, %v13631_v11 }
 0xdc8   : > { %14405 = vmatpush1.bf16.msra.mxu1 %v15615_v50  ;;  %14446 = vmatpush1.bf16.msra.mxu0 %v15617_v29  ;;  %v13519_v50 = vld [vmem:[%s23617_s16 + $0x38] sm:$0xff]  ;;  %v15674_v4 = vcombine.high %v13627_v43, %v13631_v11 }
 0xdc9   : > { %14406 = vmatprep.subr.bf16.mxu1 %v15608_v54  ;;  %14447 = vmatprep.subr.bf16.mxu0 %v15610_v39  ;;  %v15562_v29 = vcombine.high %v13515_v41, %v13519_v50  ;;  %v15561_v22 = vcombine.low %v13515_v41, %v13519_v50  ;;  %v13626_v54 = vld [vmem:[%s23617_s16 + $0x390] sm:$0xff] }
 0xdca   : > { %14436 = vmatprep.mubr.bf16.mxu1 %v13511_v47  ;;  %14477 = vmatprep.mubr.bf16.mxu0 %v13511_v47  ;;  %v15682_v47 = vcombine.high %v13635_v1, %v13639_v58  ;;  %v13630_v39 = vld [vmem:[%s23617_s16 + $0x3b0] sm:$0xff] }
 0xdcb   : > { %v15672_v35 = vcombine.high %v13626_v54, %v13630_v39  ;;  %v15671_v24 = vcombine.low %v13626_v54, %v13630_v39 }
 0xdcc   : > { %14407 = vmatpush1.bf16.msra.mxu1 %v15607_v33  ;;  %14448 = vmatpush1.bf16.msra.mxu0 %v15609_v62  ;;  %v13618_v33 = vld [vmem:[%s23617_s16 + $0x350] sm:$0xff] }
 0xdcd   : > { %14408 = vmatprep.subr.bf16.mxu1 %v15600_v20  ;;  %14449 = vmatprep.subr.bf16.mxu0 %v15602_v56  ;;  %v13622_v62 = vld [vmem:[%s23617_s16 + $0x370] sm:$0xff]  ;;  %v13619_v20 = vld [vmem:[%s23617_s16 + $0x358] sm:$0xff] }
 0xdce   : > { %v13623_v56 = vld [vmem:[%s23617_s16 + $0x378] sm:$0xff]  ;;  %v15664_v5 = vcombine.high %v13618_v33, %v13622_v62  ;;  %v15663_v8 = vcombine.low %v13618_v33, %v13622_v62  ;;  %v14292_v62 = vsub.s32 2, %v22376_v63 }
 0xdcf   : > { %v15666_v16 = vcombine.high %v13619_v20, %v13623_v56  ;;  %v15665_v48 = vcombine.low %v13619_v20, %v13623_v56 }
 0xdd0   : > { %14409 = vmatpush1.bf16.msra.mxu1 %v15599_v26  ;;  %14450 = vmatpush1.bf16.msra.mxu0 %v15601_v60  ;;  %v13610_v26 = vld [vmem:[%s23617_s16 + $0x310] sm:$0xff] }
 0xdd1   : > { %14410 = vmatprep.subr.bf16.mxu1 %v15592_v9  ;;  %14451 = vmatprep.subr.bf16.mxu0 %v15594_v14  ;;  %v13614_v60 = vld [vmem:[%s23617_s16 + $0x330] sm:$0xff]  ;;  %v13611_v9 = vld [vmem:[%s23617_s16 + $0x318] sm:$0xff] }
 0xdd2   : > { %v13615_v14 = vld [vmem:[%s23617_s16 + $0x338] sm:$0xff]  ;;  %v15656_v23 = vcombine.high %v13610_v26, %v13614_v60  ;;  %v15655_v52 = vcombine.low %v13610_v26, %v13614_v60 }
 0xdd3   : > { %v15658_v7 = vcombine.high %v13611_v9, %v13615_v14  ;;  %v15657_v44 = vcombine.low %v13611_v9, %v13615_v14 }
 0xdd4   : > { %14411 = vmatpush1.bf16.msra.mxu1 %v15591_v28  ;;  %14452 = vmatpush1.bf16.msra.mxu0 %v15593_v31  ;;  %v13602_v28 = vld [vmem:[%s23617_s16 + $0x2d0] sm:$0xff] }
 0xdd5   : > { %14412 = vmatprep.subr.bf16.mxu1 %v15584_v19  ;;  %14453 = vmatprep.subr.bf16.mxu0 %v15586_v38  ;;  %v13606_v31 = vld [vmem:[%s23617_s16 + $0x2f0] sm:$0xff]  ;;  %v13603_v19 = vld [vmem:[%s23617_s16 + $0x2d8] sm:$0xff] }
 0xdd6   : > { %v13607_v38 = vld [vmem:[%s23617_s16 + $0x2f8] sm:$0xff]  ;;  %v15648_v13 = vcombine.high %v13602_v28, %v13606_v31  ;;  %v15647_v12 = vcombine.low %v13602_v28, %v13606_v31 }
 0xdd7   : > { %v15650_v30 = vcombine.high %v13603_v19, %v13607_v38  ;;  %v15649_v15 = vcombine.low %v13603_v19, %v13607_v38  ;;  %v14300_v38 = vsub.s32 4, %v22376_v63 }
 0xdd8   : > { %14413 = vmatpush1.bf16.msra.mxu1 %v15583_v53  ;;  %14454 = vmatpush1.bf16.msra.mxu0 %v15585_v27  ;;  %v13594_v53 = vld [vmem:[%s23617_s16 + $0x290] sm:$0xff] }
 0xdd9   : > { %14414 = vmatprep.subr.bf16.mxu1 %v15576_v42  ;;  %14455 = vmatprep.subr.bf16.mxu0 %v15578_v0  ;;  %v13598_v27 = vld [vmem:[%s23617_s16 + $0x2b0] sm:$0xff]  ;;  %v13595_v42 = vld [vmem:[%s23617_s16 + $0x298] sm:$0xff] }
 0xdda   : > { %v13599_v0 = vld [vmem:[%s23617_s16 + $0x2b8] sm:$0xff]  ;;  %v15640_v45 = vcombine.high %v13594_v53, %v13598_v27  ;;  %v15639_v40 = vcombine.low %v13594_v53, %v13598_v27  ;;  %v14312_v53 = vsub.s32 7, %v22376_v63 }
 0xddb   : > { %v15642_v21 = vcombine.high %v13595_v42, %v13599_v0  ;;  %v15641_v6 = vcombine.low %v13595_v42, %v13599_v0 }
 0xddc   : > { %14415 = vmatpush1.bf16.msra.mxu1 %v15575_v32  ;;  %14456 = vmatpush1.bf16.msra.mxu0 %v15577_v34  ;;  %v13586_v32 = vld [vmem:[%s23617_s16 + $0x250] sm:$0xff] }
 0xddd   : > { %14416 = vmatprep.subr.bf16.mxu1 %v15568_v36  ;;  %14457 = vmatprep.subr.bf16.mxu0 %v15570_v10  ;;  %v13590_v34 = vld [vmem:[%s23617_s16 + $0x270] sm:$0xff]  ;;  %v13587_v36 = vld [vmem:[%s23617_s16 + $0x258] sm:$0xff] }
 0xdde   : > { %v13591_v10 = vld [vmem:[%s23617_s16 + $0x278] sm:$0xff]  ;;  %v15632_v41 = vcombine.high %v13586_v32, %v13590_v34  ;;  %v15631_v49 = vcombine.low %v13586_v32, %v13590_v34 }
 0xddf   : > { %v15634_v50 = vcombine.high %v13587_v36, %v13591_v10  ;;  %v15633_v18 = vcombine.low %v13587_v36, %v13591_v10 }
 0xde0   : > { %14417 = vmatpush1.bf16.msra.mxu1 %v15567_v57  ;;  %14458 = vmatpush1.bf16.msra.mxu0 %v15569_v3  ;;  %v13578_v57 = vld [vmem:[%s23617_s16 + $0x210] sm:$0xff] }
 0xde1   : > { %14418 = vmatprep.subr.bf16.mxu1 %v15560_v61  ;;  %14459 = vmatprep.subr.bf16.mxu0 %v15562_v29  ;;  %v13582_v3 = vld [vmem:[%s23617_s16 + $0x230] sm:$0xff]  ;;  %v13579_v61 = vld [vmem:[%s23617_s16 + $0x218] sm:$0xff] }
 0xde2   : > { %v13583_v29 = vld [vmem:[%s23617_s16 + $0x238] sm:$0xff]  ;;  %v15624_v1 = vcombine.high %v13578_v57, %v13582_v3 }
 0xde3   : > { %v15626_v58 = vcombine.high %v13579_v61, %v13583_v29 }
 0xde4   : > { %14419 = vmatpush1.bf16.msra.mxu1 %v15559_v46  ;;  %14460 = vmatpush1.bf16.msra.mxu0 %v15561_v22  ;;  %v15623_v46 = vcombine.low %v13578_v57, %v13582_v3  ;;  %v15625_v22 = vcombine.low %v13579_v61, %v13583_v29 }
 0xde5   : > { %14420 = vmatprep.subr.bf16.mxu1 %v15680_v2  ;;  %14461 = vmatprep.subr.bf16.mxu0 %v15682_v47 }
 0xde8   : > { %14421 = vmatpush2.bf16.msra.mxu1 %v15679_v17  ;;  %14462 = vmatpush2.bf16.msra.mxu0 %v15681_v59 }
 0xde9   : > { %14422 = vmatprep.subr.bf16.mxu1 %v15672_v35  ;;  %14463 = vmatprep.subr.bf16.mxu0 %v15674_v4  ;;  %v13640_v35 = vld [vmem:[%s23618_s17] sm:$0xff] }
 0xdea   : > { %v14289_v4 = vrot.slane %v13640_v35, %v22409_v25  ;;  %v14285_v33 = vrot.slane %v13640_v35, %v22385_v37  ;;  %v14293_v56 = vrot.slane %v13640_v35, %v14292_v62  ;;  %v14301_v0 = vrot.slane %v13640_v35, %v14300_v38 }
 0xdeb   : > { %v14313_v36 = vrot.slane %v13640_v35, %v14312_v53 }
 0xdec   : > { %14423 = vmatpush2.bf16.msra.mxu1 %v15671_v24  ;;  %14464 = vmatpush2.bf16.msra.mxu0 %v15673_v55  ;;  %v14296_v24 = vsub.s32 3, %v22376_v63 }
 0xded   : > { %14424 = vmatprep.subr.bf16.mxu1 %v15664_v5  ;;  %14465 = vmatprep.subr.bf16.mxu0 %v15666_v16  ;;  %v14510_v16 = vld [vmem:[%s23619_s18] sm:$0xff] }
 0xdee   : > { %v14297_v60 = vrot.slane %v13640_v35, %v14296_v24  ;;  %v14519_v9 = vrot.slane %v14510_v16, %v22409_v25  ;;  %v14523_v19 = vrot.slane %v14510_v16, %v14292_v62  ;;  %v14304_v25 = vsub.s32 5, %v22376_v63 }
 0xdef   : > { %v14531_v57 = vrot.slane %v14510_v16, %v14300_v38 }
 0xdf0   : > { %14425 = vmatpush2.bf16.msra.mxu1 %v15663_v8  ;;  %14466 = vmatpush2.bf16.msra.mxu0 %v15665_v48  ;;  %v14515_v8 = vrot.slane %v14510_v16, %v22385_v37  ;;  %v14527_v37 = vrot.slane %v14510_v16, %v14296_v24 }
 0xdf1   : > { %14426 = vmatprep.subr.bf16.mxu1 %v15656_v23  ;;  %14467 = vmatprep.subr.bf16.mxu0 %v15658_v7 }
 0xdf4   : > { %14427 = vmatpush2.bf16.msra.mxu1 %v15655_v52  ;;  %14468 = vmatpush2.bf16.msra.mxu0 %v15657_v44  ;;  %v14308_v52 = vsub.s32 6, %v22376_v63  ;;  %v14535_v63 = vrot.slane %v14510_v16, %v14304_v25 }
 0xdf5   : > { %14428 = vmatprep.subr.bf16.mxu1 %v15648_v13  ;;  %14469 = vmatprep.subr.bf16.mxu0 %v15650_v30 }
 0xdf8   : > { %14429 = vmatpush2.bf16.msra.mxu1 %v15647_v12  ;;  %14470 = vmatpush2.bf16.msra.mxu0 %v15649_v15  ;;  %v14309_v12 = vrot.slane %v13640_v35, %v14308_v52 }
 0xdf9   : > { %14430 = vmatprep.subr.bf16.mxu1 %v15640_v45  ;;  %14471 = vmatprep.subr.bf16.mxu0 %v15642_v21  ;;  %v14305_v21 = vrot.slane %v13640_v35, %v14304_v25 }
 0xdfc   : > { %14431 = vmatpush2.bf16.msra.mxu1 %v15639_v40  ;;  %14472 = vmatpush2.bf16.msra.mxu0 %v15641_v6 }
 0xdfd   : > { %14432 = vmatprep.subr.bf16.mxu1 %v15632_v41  ;;  %14473 = vmatprep.subr.bf16.mxu0 %v15634_v50 }
 0xe00   : > { %14433 = vmatpush2.bf16.msra.mxu1 %v15631_v49  ;;  %14474 = vmatpush2.bf16.msra.mxu0 %v15633_v18 }
 0xe01   : > { %14434 = vmatprep.subr.bf16.mxu1 %v15624_v1  ;;  %14475 = vmatprep.subr.bf16.mxu0 %v15626_v58  ;;  %v14539_v1 = vrot.slane %v14510_v16, %v14308_v52 }
 0xe04   : > { %14435 = vmatpush2.bf16.msra.mxu1 %v15623_v46  ;;  %14476 = vmatpush2.bf16.msra.mxu0 %v15625_v22  ;;  %v14543_v46 = vrot.slane %v14510_v16, %v14312_v53 }
 0xe07   : > { %14437 = vmatmul.mubr.bf16.vlgmr.msra.gmra.mxu1 %v23396_v51  ;;  %14478 = vmatmul.mubr.bf16.vlgmr.msra.gmra.mxu0 %v23396_v51 }
 0xe87   : > { %v14356_v2 = vpop.f32.mrf.mxu1  ;;  %v14397_v47 = vpop.f32.mrf.mxu0 }
 0xe88   : > { %v14357_v51 = vadd.f32 %v14356_v2, %v14285_v33  ;;  %v14398_v26 = vadd.f32 %v14397_v47, %v14293_v56 }
 0xe89   : > { %v14358_v54 = vpop.f32.mrf.mxu1  ;;  %v14399_v39 = vpop.f32.mrf.mxu0 }
 0xe8a   : > { %v14359_v20 = vadd.f32 %v14358_v54, %v14289_v4  ;;  %v14494_v5 = vmul.f32 0.01, %v14357_v51  ;;  %vm14486_vm14 = vcmp.gt.f32.partialorder %v14357_v51, 0.0  ;;  %v14496_v23 = vmul.f32 0.01, %v14398_v26 }
 0xe8b   : > { %v14360_v43 = vpop.f32.mrf.mxu1  ;;  %v14401_v11 = vpop.f32.mrf.mxu0  ;;  %v14400_v7 = vadd.f32 %v14399_v39, %v14297_v60  ;;  %vm14488_vm15 = vcmp.gt.f32.partialorder %v14398_v26, 0.0 }
 0xe8c   : > { %v14495_v55 = vmul.f32 0.01, %v14359_v20  ;;  %vm14487_vm0 = vcmp.gt.f32.partialorder %v14359_v20, 0.0  ;;  %v14502_v48 = vsel %vm14486_vm14, %v14357_v51, %v14494_v5  ;;  %v14504_v44 = vsel %vm14488_vm15, %v14398_v26, %v14496_v23 }
 0xe8d   : > { %v14361_v17 = vpop.f32.mrf.mxu1  ;;  %v14402_v59 = vpop.f32.mrf.mxu0  ;;  %v14552_v31 = vmul.f32 %v14515_v8, %v14502_v48  ;;  %v14497_v13 = vmul.f32 0.01, %v14400_v7  ;;  %vm14489_vm8 = vcmp.gt.f32.partialorder %v14400_v7, 0.0  ;;  %v14554_v42 = vmul.f32 %v14523_v19, %v14504_v44  ;;  %v14578_v8 = vld [vmem:[#allocation2] sm:$0x1] }
 0xe8e   : > { %v14503_v14 = vsel %vm14487_vm0, %v14359_v20, %v14495_v55 }
 0xe8f   : > { %v14553_v28 = vmul.f32 %v14519_v9, %v14503_v14  ;;  %v14561_v27 = vsel %vm14560_vm7, %v14552_v31, 0.0  ;;  %v14505_v45 = vsel %vm14489_vm8, %v14400_v7, %v14497_v13  ;;  %v14564_v10 = vsel %vm14560_vm7, %v14554_v42, 0.0 }
 0xe90   : > { %v14555_v40 = vmul.f32 %v14527_v37, %v14505_v45 }
 0xe91   : > { %v14562_v30 = vsel %vm14560_vm7, %v14553_v28, 0.0 }
 0xe92   : > { %v14563_v15 = vadd.f32 %v14562_v30, %v14561_v27  ;;  %v14566_v47 = vsel %vm14560_vm7, %v14555_v40, 0.0 }
 0xe94   : > { %v14565_v50 = vadd.f32 %v14564_v10, %v14563_v15 }
 0xe96   : > { %v14567_v4 = vadd.f32 %v14566_v47, %v14565_v50 }
 0xec7   : > { %v14438_v32 = vpop.f32.mrf.mxu1  ;;  %v14479_v34 = vpop.f32.mrf.mxu0 }
 0xec8   : > { %v14439_v6 = vadd.f32 %v14438_v32, %v14301_v0  ;;  %v14480_v41 = vadd.f32 %v14479_v34, %v14309_v12 }
 0xec9   : > { %v14440_v3 = vpop.f32.mrf.mxu1  ;;  %v14481_v61 = vpop.f32.mrf.mxu0 }
 0xeca   : > { %vm14490_vm2 = vcmp.gt.f32.partialorder %v14439_v6, 0.0  ;;  %v14498_v29 = vmul.f32 0.01, %v14439_v6  ;;  %v14441_v49 = vadd.f32 %v14440_v3, %v14305_v21  ;;  %vm14492_vm9 = vcmp.gt.f32.partialorder %v14480_v41, 0.0 }
 0xecb   : > { %v14500_v18 = vmul.f32 0.01, %v14480_v41  ;;  %v14482_v58 = vadd.f32 %v14481_v61, %v14313_v36  ;;  %v14442_v22 = vpop.f32.mrf.mxu1  ;;  %v14483_v2 = vpop.f32.mrf.mxu0 }
 0xecc   : > { %v14506_v54 = vsel %vm14490_vm2, %v14439_v6, %v14498_v29  ;;  %vm14491_vm10 = vcmp.gt.f32.partialorder %v14441_v49, 0.0  ;;  %v14499_v39 = vmul.f32 0.01, %v14441_v49 }
 0xecd   : > { %v14556_v43 = vmul.f32 %v14531_v57, %v14506_v54  ;;  %v14508_v11 = vsel %vm14492_vm9, %v14480_v41, %v14500_v18  ;;  %vm14493_vm12 = vcmp.gt.f32.partialorder %v14482_v58, 0.0  ;;  %v14501_v17 = vmul.f32 0.01, %v14482_v58  ;;  %v14443_v59 = vpop.f32.mrf.mxu1  ;;  %v14484_v35 = vpop.f32.mrf.mxu0 }
 0xece   : > { %v14507_v33 = vsel %vm14491_vm10, %v14441_v49, %v14499_v39  ;;  %v14558_v51 = vmul.f32 %v14539_v1, %v14508_v11 }
 0xecf   : > { %v14568_v62 = vsel %vm14560_vm7, %v14556_v43, 0.0  ;;  %v14557_v20 = vmul.f32 %v14535_v63, %v14507_v33  ;;  %v14509_v56 = vsel %vm14493_vm12, %v14482_v58, %v14501_v17 }
 0xed0   : > { %v14569_v24 = vadd.f32 %v14568_v62, %v14567_v4  ;;  %v14559_v5 = vmul.f32 %v14543_v46, %v14509_v56  ;;  %v14572_v26 = vsel %vm14560_vm7, %v14558_v51, 0.0 }
 0xed1   : > { %v14570_v55 = vsel %vm14560_vm7, %v14557_v20, 0.0 }
 0xed2   : > { %v14571_v16 = vadd.f32 %v14570_v55, %v14569_v24  ;;  %v14574_v9 = vsel %vm14560_vm7, %v14559_v5, 0.0 }
 0xed4   : > { %v14573_v60 = vadd.f32 %v14572_v26, %v14571_v16 }
 0xed6   : > { %v14575_v14 = vadd.f32 %v14574_v9, %v14573_v60 }
 0xed8   : > { %14576 = vadd.xlane.f32.xlu0 %v14575_v14 }
 0xf61   : > { %v14577_v48 = vpop.xlane.xlu0 %14576 }
 0xf62   : > { %v14579_v23 = vadd.f32 %v14578_v8, %v14577_v48 }
 0xf64   : > { %14581 = vst.msk [vmem:[%s627_s28] sm:$0x1] %vm14580_vm11, %v14579_v23 }
 0xf65 PF: > { %s32_s23 = sadd.s32 1, %s17673_s23  }
 0xf66   : > { %p29_p4 = scmp.ge.s32.totalorder %s32_s23, 4  }
 0xf68   :  { %31 = sbr.rel (!%p29_p4) target bundleno = 6 (0x6), region = 130 }

</bundles_post_ra>
